<compile_context>
chip_gen: v7x
topology: tpu7x:2x2x1
jax: 0.10.0
libtpu: 0.0.40
codegen_flags: <defaults>
</compile_context>

<pallas_src>
import jax
import jax.numpy as jnp
import numpy as np
from jax import lax
from jax.experimental import pallas as pl
from jax.experimental.pallas import tpu as pltpu

# ----------------------------- geometry -----------------------------
C_IN = 4
H_IN = 50                          # fc1.in_features = 7744 = 64*11*11  =>  50x50 input
C1 = 10                            # conv1 out channels (logical)
C2 = 64                            # conv2 out channels
KS = 3
N_TAPS = KS * KS                   # 9
PATCH_K = N_TAPS * C_IN            # 36   conv1 im2col width
LANES = 128                        # conv1 activations carried at full lane width
CONV1_HW = H_IN - KS + 1           # 48
POOL1_HW = CONV1_HW // 2           # 24
CONV2_HW = POOL1_HW - KS + 1       # 22
POOL2_HW = CONV2_HW // 2           # 11
N_FC1, N_CLS = 16, 2

ROWS1 = CONV1_HW * CONV1_HW        # 2304 conv1 rows, r = h*48 + w
ROWS_M1 = POOL1_HW * CONV1_HW      # 1152 H-pooled conv1 rows, r = hp*48 + w
ROWS_P1 = POOL1_HW * POOL1_HW      # 576  compact pool1 rows, r = hp*24 + q
ROW2 = POOL1_HW                    # 24   conv2 output row stride
ROWS2 = CONV2_HW * ROW2            # 528  conv2 rows, r = h2*24 + w2 (w2 in [0,24), 22/23 junk)
K2 = LANES                         # 128  padded conv2 im2col width (9*10 = 90 used)
ROWS_M2 = POOL2_HW * ROW2          # 264  H-pooled conv2 rows, r = p*24 + w2
Q_DIM = POOL2_HW + 1               # 12   (q = 11 is the zero-masked junk column)
FEAT_ROWS = POOL2_HW * Q_DIM       # 132  compact pool2 rows, r = p*12 + q
C1P_ROWS = ROWS_P1 + 8             # 584  pool1 buffer incl. zeroed tail for tap overreach


# ----------------------------- fused forward kernel -----------------------------
def _net_kernel(x_ref, w1_ref, b1_ref, w2_ref, b2_ref, w3_ref, b3_ref,
                w4_ref, b4_ref, o_ref, m1_buf, c1_buf, m2_buf):
    f32 = jnp.float32

    # ---- conv1: ONE im2col matmul (patches built in the wrapper). w1/b1 are replicated
    # into 9 lane blocks of 10 and zero-padded to 128 lanes (free on MXU and VPU).
    y1 = jnp.dot(x_ref[0], w1_ref[...], preferred_element_type=f32)          # (2304, 128)
    y1 = jnp.maximum(y1 + b1_ref[...], 0.0)

    # ---- maxpool1 2x2/2: H direction is a free leading-dim regroup + max ...
    y1 = y1.reshape(POOL1_HW, 2, CONV1_HW, LANES)
    m1_buf[...] = jnp.maximum(y1[:, 0], y1[:, 1]).reshape(ROWS_M1, LANES)    # rows hp*48 + w
    # ... W direction + compaction fused into stride-2 row reads: row hp*24 + q.
    c1p = jnp.maximum(m1_buf[pl.ds(0, ROWS_P1, 2), :],
                      m1_buf[pl.ds(1, ROWS_P1, 2), :])                       # (576, 128)
    c1_buf[0:ROWS_P1, :] = c1p
    # Finite zero tail: junk conv2 output rows (w2 in {22,23} at h2=21) read up to row 577.
    # Zeroed every step (1 vreg): a program_id==0 guard would be unsafe if the parallel
    # batch axis is split across TensorCores (each core owns its own scratch).
    c1_buf[ROWS_P1:C1P_ROWS, :] = jnp.zeros((C1P_ROWS - ROWS_P1, LANES), f32)

    # ---- conv2: ONE fused im2col matmul. Tap (i, j) is the row-shifted read starting at
    # i*24 + j; because conv1 channels are replicated per lane block, lane block
    # [10t, 10t+10) of shifted read t already holds exactly the values that tap needs, so
    # the (528, 90->128) LHS is assembled with 8 masked selects (no concats, no adds).
    lane128 = lax.broadcasted_iota(jnp.int32, (1, LANES), 1)
    cat = None
    for i in range(KS):
        for j in range(KS):
            t = i * KS + j
            shift = i * ROW2 + j
            piece = c1_buf[shift:shift + ROWS2, :]                           # (528, 128)
            cat = piece if cat is None else jnp.where(lane128 < t * C1, cat, piece)
    y2 = jnp.dot(cat, w2_ref[...], preferred_element_type=f32)               # (528, 64)
    y2 = jnp.maximum(y2 + b2_ref[...], 0.0)                                  # rows h2*24 + w2

    # ---- maxpool2 2x2/2: H via free regroup, W + compaction via stride-2 reads.
    y2 = y2.reshape(POOL2_HW, 2, ROW2, C2)
    m2_buf[...] = jnp.maximum(y2[:, 0], y2[:, 1]).reshape(ROWS_M2, C2)       # rows p*24 + w2
    feat = jnp.maximum(m2_buf[pl.ds(0, FEAT_ROWS, 2), :],
                       m2_buf[pl.ds(1, FEAT_ROWS, 2), :])                    # (132, 64), p*12+q

    # ---- fc1 + ReLU: 16 multiply-reduce passes against pre-scattered weights (zeros mask
    # the junk q=11 rows). Kept on the VPU: an MXU contraction at M=1 would require
    # flattening the (132, 64) slab into lanes, whose relayout costs more than it saves.
    lane16 = lax.broadcasted_iota(jnp.int32, (1, N_FC1), 1)
    h = jnp.zeros((1, N_FC1), f32)
    for o in range(N_FC1):
        s = jnp.sum(feat * w3_ref[o], axis=0, keepdims=True)                 # (1, 64)
        s = jnp.sum(s, axis=1, keepdims=True)                                # (1, 1)
        h = h + jnp.where(lane16 == o, s, 0.0)
    h = jnp.maximum(h + b3_ref[...], 0.0)                                    # (1, 16)
    # TODO(synk): nn.Dropout2d is identity in eval mode; training-mode channel dropout is
    # not implemented here.

    # ---- fc2 + softmax ----
    logits = jnp.dot(h, w4_ref[...], preferred_element_type=f32) + b4_ref[...]   # (1, 2)
    z = logits - jnp.max(logits, axis=-1, keepdims=True)
    e = jnp.exp(z)
    o_ref[0] = e / jnp.sum(e, axis=-1, keepdims=True)


def _forward_pallas(patches, pp):
    n = patches.shape[0]
    grid_spec = pltpu.PrefetchScalarGridSpec(
        num_scalar_prefetch=0,
        grid=(n,),
        in_specs=[
            pl.BlockSpec((1, ROWS1, PATCH_K), lambda b: (b, 0, 0)),      # conv1 im2col patches
            pl.BlockSpec((PATCH_K, LANES), lambda b: (0, 0)),            # w1 (replicated, padded)
            pl.BlockSpec((1, LANES), lambda b: (0, 0)),                  # b1
            pl.BlockSpec((K2, C2), lambda b: (0, 0)),                    # w2 (packed taps, padded)
            pl.BlockSpec((1, C2), lambda b: (0, 0)),                     # b2
            pl.BlockSpec((N_FC1, FEAT_ROWS, C2), lambda b: (0, 0, 0)),   # fc1 (scattered, compact)
            pl.BlockSpec((1, N_FC1), lambda b: (0, 0)),                  # fc1 bias
            pl.BlockSpec((N_FC1, N_CLS), lambda b: (0, 0)),              # fc2 weight
            pl.BlockSpec((1, N_CLS), lambda b: (0, 0)),                  # fc2 bias
        ],
        out_specs=pl.BlockSpec((1, 1, N_CLS), lambda b: (b, 0, 0)),
        scratch_shapes=[
            pltpu.VMEM((ROWS_M1, LANES), jnp.float32),    # H-pooled conv1 map
            pltpu.VMEM((C1P_ROWS, LANES), jnp.float32),   # compact pool1 map + zero tail
            pltpu.VMEM((ROWS_M2, C2), jnp.float32),       # H-pooled conv2 map
        ],
    )
    out = pl.pallas_call(
        _net_kernel,
        out_shape=jax.ShapeDtypeStruct((n, 1, N_CLS), jnp.float32),
        grid_spec=grid_spec,
        compiler_params=pltpu.CompilerParams(
            dimension_semantics=("parallel",),            # v7x: one sample per TensorCore
        ),
    )(patches, pp["w1"], pp["b1"], pp["w2"], pp["b2"],
      pp["w3"], pp["b3"], pp["w4"], pp["b4"])
    return out.reshape(n, N_CLS)


# ----------------------------- one-time parameter repack -----------------------------
def prepare_params(p):
    """Repack PyTorch-layout parameters into kernel layouts (done once, outside forward)."""
    f32 = jnp.float32
    # conv1: (O,I,KH,KW) -> im2col rows (i*3+j)*4 + c; columns replicated into 9 lane
    # blocks of 10 (and zero-padded to 128) so conv2's im2col needs only masked selects.
    w1 = jnp.transpose(p["conv1_w"], (2, 3, 1, 0)).reshape(PATCH_K, C1).astype(f32)
    w1 = jnp.zeros((PATCH_K, LANES), f32).at[:, :N_TAPS * C1].set(jnp.tile(w1, (1, N_TAPS)))
    b1 = jnp.zeros((1, LANES), f32).at[0, :N_TAPS * C1].set(
        jnp.tile(p["conv1_b"].astype(f32), (N_TAPS,)))
    # conv2: (O,I,KH,KW) -> packed rows (i*3+j)*10 + c, zero-padded to K = 128.
    w2 = jnp.transpose(p["conv2_w"], (2, 3, 1, 0)).reshape(N_TAPS * C1, C2).astype(f32)
    w2 = jnp.zeros((K2, C2), f32).at[:N_TAPS * C1, :].set(w2)
    b2 = p["conv2_b"].reshape(1, C2).astype(f32)
    # fc1: PyTorch flattens NCHW -> feature = c*121 + p*11 + q. The kernel's compact pooled
    # map has row p*12 + q with channels on lanes; q = 11 rows are junk -> zero weights.
    w3 = p["fc1_w"].reshape(N_FC1, C2, POOL2_HW, POOL2_HW).astype(f32)   # (o, c, p, q)
    w3 = jnp.transpose(w3, (0, 2, 3, 1))                                 # (o, p, q, c)
    w3f = jnp.zeros((N_FC1, POOL2_HW, Q_DIM, C2), f32).at[:, :, :POOL2_HW, :].set(w3)
    w3 = w3f.reshape(N_FC1, FEAT_ROWS, C2)
    b3 = p["fc1_b"].reshape(1, N_FC1).astype(f32)
    w4 = jnp.transpose(p["fc2_w"]).astype(f32)                           # (16, 2)
    b4 = p["fc2_b"].reshape(1, N_CLS).astype(f32)
    return {"w1": w1, "b1": b1, "w2": w2, "b2": b2,
            "w3": w3, "b3": b3, "w4": w4, "b4": b4}


# ----------------------------- public forward -----------------------------
@jax.jit
def net_forward(x_nchw, prepared):
    # Layout plumbing in XLA (not compute): NCHW -> NHWC, then conv1 im2col -- the 9
    # shifted 48x48 window views concatenated channel-last -> (N, 2304, 36).
    x = jnp.transpose(x_nchw, (0, 2, 3, 1))
    cols = [x[:, i:i + CONV1_HW, j:j + CONV1_HW, :]
            for i in range(KS) for j in range(KS)]
    patches = jnp.concatenate(cols, axis=-1).reshape(x.shape[0], ROWS1, PATCH_K)
    return _forward_pallas(patches, prepared)


# ----------------------------- pure-JAX reference -----------------------------
def reference_forward(x, p):
    dn = ("NCHW", "OIHW", "NCHW")
    y = lax.conv_general_dilated(x, p["conv1_w"], (1, 1), "VALID", dimension_numbers=dn)
    y = jnp.maximum(y + p["conv1_b"][None, :, None, None], 0.0)
    y = lax.reduce_window(y, -jnp.inf, lax.max, (1, 1, 2, 2), (1, 1, 2, 2), "VALID")
    y = lax.conv_general_dilated(y, p["conv2_w"], (1, 1), "VALID", dimension_numbers=dn)
    y = jnp.maximum(y + p["conv2_b"][None, :, None, None], 0.0)
    y = lax.reduce_window(y, -jnp.inf, lax.max, (1, 1, 2, 2), (1, 1, 2, 2), "VALID")
    yf = y.reshape(y.shape[0], -1)
    h = jnp.maximum(yf @ p["fc1_w"].T + p["fc1_b"], 0.0)
    logits = h @ p["fc2_w"].T + p["fc2_b"]
    return jax.nn.softmax(logits, axis=1)


if __name__ == "__main__":
    key = jax.random.PRNGKey(0)
    keys = jax.random.split(key, 9)

    def uinit(k, shape, fan_in):
        bound = 1.0 / float(np.sqrt(fan_in))
        return jax.random.uniform(k, shape, jnp.float32, -bound, bound)

    params = {
        "conv1_w": uinit(keys[0], (C1, C_IN, KS, KS), C_IN * KS * KS),   # PyTorch OIHW
        "conv1_b": uinit(keys[1], (C1,), C_IN * KS * KS),
        "conv2_w": uinit(keys[2], (C2, C1, KS, KS), C1 * KS * KS),
        "conv2_b": uinit(keys[3], (C2,), C1 * KS * KS),
        "fc1_w": uinit(keys[4], (N_FC1, 7744), 7744),                    # PyTorch (out, in)
        "fc1_b": uinit(keys[5], (N_FC1,), 7744),
        "fc2_w": uinit(keys[6], (N_CLS, N_FC1), N_FC1),
        "fc2_b": uinit(keys[7], (N_CLS,), N_FC1),
    }

    # Input: NCHW, batch=2, IMG_CHANNEL=4, 50x50 (required by fc1's 7744 = 64*11*11).
    x = jax.random.normal(keys[8], (2, C_IN, H_IN, H_IN), jnp.float32)

    prepared = prepare_params(params)                 # one-time weight repack
    out = jax.block_until_ready(net_forward(x, prepared))
    assert out.shape == (2, N_CLS), out.shape

    ref = np.asarray(reference_forward(x, params))
    if not np.allclose(np.asarray(out), ref, atol=1e-4, rtol=1e-4):
        raise AssertionError(f"mismatch vs reference:\n{np.asarray(out)}\nvs\n{ref}")

    print("KERNEL_OK")
</pallas_src>

<mosaic_0001>
module attributes {stable_mosaic.version = 11 : i64} {
  func.func @_net_kernel(%arg0: i32, %arg1: memref<1x2304x36xf32, #tpu.memory_space<vmem>>, %arg2: memref<36x128xf32, #tpu.memory_space<vmem>>, %arg3: memref<1x128xf32, #tpu.memory_space<vmem>>, %arg4: memref<128x64xf32, #tpu.memory_space<vmem>>, %arg5: memref<1x64xf32, #tpu.memory_space<vmem>>, %arg6: memref<16x132x64xf32, #tpu.memory_space<vmem>>, %arg7: memref<1x16xf32, #tpu.memory_space<vmem>>, %arg8: memref<16x2xf32, #tpu.memory_space<vmem>>, %arg9: memref<1x2xf32, #tpu.memory_space<vmem>>, %arg10: memref<1x1x2xf32, #tpu.memory_space<vmem>>, %arg11: memref<1152x128xf32, #tpu.memory_space<vmem>>, %arg12: memref<584x128xf32, #tpu.memory_space<vmem>>, %arg13: memref<264x64xf32, #tpu.memory_space<vmem>>) attributes {dimension_semantics = [#tpu.dimension_semantics<parallel>], iteration_bounds = array<i64: 2>, scalar_prefetch = 0 : i64, scratch_operands = 3 : i64, tpu.core_type = #tpu.core_type<tc>, window_params = [{transform_indices = @transform_0, window_bounds = array<i64: 1, 2304, 36>}, {pipeline_mode = #tpu.pipeline_mode<synchronous>, transform_indices = @transform_1, window_bounds = array<i64: 36, 128>}, {pipeline_mode = #tpu.pipeline_mode<synchronous>, transform_indices = @transform_2, window_bounds = array<i64: 1, 128>}, {pipeline_mode = #tpu.pipeline_mode<synchronous>, transform_indices = @transform_3, window_bounds = array<i64: 128, 64>}, {pipeline_mode = #tpu.pipeline_mode<synchronous>, transform_indices = @transform_4, window_bounds = array<i64: 1, 64>}, {pipeline_mode = #tpu.pipeline_mode<synchronous>, transform_indices = @transform_5, window_bounds = array<i64: 16, 132, 64>}, {pipeline_mode = #tpu.pipeline_mode<synchronous>, transform_indices = @transform_6, window_bounds = array<i64: 1, 16>}, {pipeline_mode = #tpu.pipeline_mode<synchronous>, transform_indices = @transform_7, window_bounds = array<i64: 16, 2>}, {pipeline_mode = #tpu.pipeline_mode<synchronous>, transform_indices = @transform_8, window_bounds = array<i64: 1, 2>}, {transform_indices = @transform_9, window_bounds = array<i64: 1, 1, 2>}]} {
    %c0 = arith.constant 0 : index
    %c0_0 = arith.constant 0 : index
    %c0_1 = arith.constant 0 : index
    %0 = vector.load %arg1[%c0, %c0_0, %c0_1] : memref<1x2304x36xf32, #tpu.memory_space<vmem>>, vector<1x2304x36xf32>
    %1 = vector.shape_cast %0 : vector<1x2304x36xf32> to vector<2304x36xf32>
    %c0_2 = arith.constant 0 : index
    %c0_3 = arith.constant 0 : index
    %2 = vector.load %arg2[%c0_2, %c0_3] : memref<36x128xf32, #tpu.memory_space<vmem>>, vector<36x128xf32>
    %cst = arith.constant dense<0.000000e+00> : vector<2304x128xf32>
    %3 = tpu.matmul %1, %2, %cst {dimension_numbers = #tpu.dot_dimension_numbers<[1], [0], [0], [1], [0, 0, 1, 1], [], []>} : vector<2304x36xf32>, vector<36x128xf32>, vector<2304x128xf32> -> vector<2304x128xf32>
    %c0_4 = arith.constant 0 : index
    %c0_5 = arith.constant 0 : index
    %4 = vector.load %arg3[%c0_4, %c0_5] : memref<1x128xf32, #tpu.memory_space<vmem>>, vector<1x128xf32>
    %5 = vector.broadcast %4 : vector<1x128xf32> to vector<2304x128xf32>
    %6 = arith.addf %3, %5 : vector<2304x128xf32>
    %cst_6 = arith.constant 0.000000e+00 : f32
    %7 = vector.broadcast %cst_6 : f32 to vector<2304x128xf32>
    %8 = arith.maximumf %6, %7 : vector<2304x128xf32>
    %9 = vector.shape_cast %8 : vector<2304x128xf32> to vector<24x2x48x128xf32>
    %10 = vector.extract_strided_slice %9 {offsets = [0, 0, 0, 0], sizes = [24, 1, 48, 128], strides = [1, 1, 1, 1]} : vector<24x2x48x128xf32> to vector<24x1x48x128xf32>
    %11 = vector.shape_cast %10 : vector<24x1x48x128xf32> to vector<24x48x128xf32>
    %12 = vector.extract_strided_slice %9 {offsets = [0, 1, 0, 0], sizes = [24, 1, 48, 128], strides = [1, 1, 1, 1]} : vector<24x2x48x128xf32> to vector<24x1x48x128xf32>
    %13 = vector.shape_cast %12 : vector<24x1x48x128xf32> to vector<24x48x128xf32>
    %14 = arith.maximumf %11, %13 : vector<24x48x128xf32>
    %15 = vector.shape_cast %14 : vector<24x48x128xf32> to vector<1152x128xf32>
    %c0_7 = arith.constant 0 : index
    %c0_8 = arith.constant 0 : index
    %16 = vector.load %arg11[%c0_7, %c0_8] : memref<1152x128xf32, #tpu.memory_space<vmem>>, vector<1152x128xf32>
    tpu.vector_store %arg11[%c0_7, %c0_8], %15 {strides = array<i32>} : memref<1152x128xf32, #tpu.memory_space<vmem>>, vector<1152x128xf32>,
    %c0_9 = arith.constant 0 : index
    %c0_10 = arith.constant 0 : index
    %17 = tpu.strided_load %arg11[%c0_9, %c0_10] {strides = array<i32: 2, 1>} : memref<1152x128xf32, #tpu.memory_space<vmem>>, vector<576x128xf32>
    %c1 = arith.constant 1 : index
    %c0_11 = arith.constant 0 : index
    %18 = tpu.strided_load %arg11[%c1, %c0_11] {strides = array<i32: 2, 1>} : memref<1152x128xf32, #tpu.memory_space<vmem>>, vector<576x128xf32>
    %19 = arith.maximumf %17, %18 : vector<576x128xf32>
    %c0_12 = arith.constant 0 : index
    %c0_13 = arith.constant 0 : index
    %20 = vector.load %arg12[%c0_12, %c0_13] : memref<584x128xf32, #tpu.memory_space<vmem>>, vector<576x128xf32>
    tpu.vector_store %arg12[%c0_12, %c0_13], %19 {strides = array<i32>} : memref<584x128xf32, #tpu.memory_space<vmem>>, vector<576x128xf32>,
    %cst_14 = arith.constant 0.000000e+00 : f32
    %21 = vector.broadcast %cst_14 : f32 to vector<8x128xf32>
    %c576 = arith.constant 576 : index
    %c0_15 = arith.constant 0 : index
    %22 = vector.load %arg12[%c576, %c0_15] : memref<584x128xf32, #tpu.memory_space<vmem>>, vector<8x128xf32>
    tpu.vector_store %arg12[%c576, %c0_15], %21 {strides = array<i32>} : memref<584x128xf32, #tpu.memory_space<vmem>>, vector<8x128xf32>,
    %23 = tpu.iota {dimensions = array<i32: 1>} : vector<1x128xi32>
    %c0_16 = arith.constant 0 : index
    %c0_17 = arith.constant 0 : index
    %24 = vector.load %arg12[%c0_16, %c0_17] : memref<584x128xf32, #tpu.memory_space<vmem>>, vector<528x128xf32>
    %c1_18 = arith.constant 1 : index
    %c0_19 = arith.constant 0 : index
    %25 = vector.load %arg12[%c1_18, %c0_19] : memref<584x128xf32, #tpu.memory_space<vmem>>, vector<528x128xf32>
    %c10_i32 = arith.constant 10 : i32
    %26 = vector.broadcast %c10_i32 : i32 to vector<1x128xi32>
    %27 = arith.cmpi slt, %23, %26 : vector<1x128xi32>
    %28 = vector.shape_cast %27 : vector<1x128xi1> to vector<1x128xi1>
    %29 = vector.broadcast %28 : vector<1x128xi1> to vector<528x128xi1>
    %30 = arith.select %29, %24, %25 : vector<528x128xi1>, vector<528x128xf32>
    %c2 = arith.constant 2 : index
    %c0_20 = arith.constant 0 : index
    %31 = vector.load %arg12[%c2, %c0_20] : memref<584x128xf32, #tpu.memory_space<vmem>>, vector<528x128xf32>
    %c20_i32 = arith.constant 20 : i32
    %32 = vector.broadcast %c20_i32 : i32 to vector<1x128xi32>
    %33 = arith.cmpi slt, %23, %32 : vector<1x128xi32>
    %34 = vector.shape_cast %33 : vector<1x128xi1> to vector<1x128xi1>
    %35 = vector.broadcast %34 : vector<1x128xi1> to vector<528x128xi1>
    %36 = arith.select %35, %30, %31 : vector<528x128xi1>, vector<528x128xf32>
    %c24 = arith.constant 24 : index
    %c0_21 = arith.constant 0 : index
    %37 = vector.load %arg12[%c24, %c0_21] : memref<584x128xf32, #tpu.memory_space<vmem>>, vector<528x128xf32>
    %c30_i32 = arith.constant 30 : i32
    %38 = vector.broadcast %c30_i32 : i32 to vector<1x128xi32>
    %39 = arith.cmpi slt, %23, %38 : vector<1x128xi32>
    %40 = vector.shape_cast %39 : vector<1x128xi1> to vector<1x128xi1>
    %41 = vector.broadcast %40 : vector<1x128xi1> to vector<528x128xi1>
    %42 = arith.select %41, %36, %37 : vector<528x128xi1>, vector<528x128xf32>
    %c25 = arith.constant 25 : index
    %c0_22 = arith.constant 0 : index
    %43 = vector.load %arg12[%c25, %c0_22] : memref<584x128xf32, #tpu.memory_space<vmem>>, vector<528x128xf32>
    %c40_i32 = arith.constant 40 : i32
    %44 = vector.broadcast %c40_i32 : i32 to vector<1x128xi32>
    %45 = arith.cmpi slt, %23, %44 : vector<1x128xi32>
    %46 = vector.shape_cast %45 : vector<1x128xi1> to vector<1x128xi1>
    %47 = vector.broadcast %46 : vector<1x128xi1> to vector<528x128xi1>
    %48 = arith.select %47, %42, %43 : vector<528x128xi1>, vector<528x128xf32>
    %c26 = arith.constant 26 : index
    %c0_23 = arith.constant 0 : index
    %49 = vector.load %arg12[%c26, %c0_23] : memref<584x128xf32, #tpu.memory_space<vmem>>, vector<528x128xf32>
    %c50_i32 = arith.constant 50 : i32
    %50 = vector.broadcast %c50_i32 : i32 to vector<1x128xi32>
    %51 = arith.cmpi slt, %23, %50 : vector<1x128xi32>
    %52 = vector.shape_cast %51 : vector<1x128xi1> to vector<1x128xi1>
    %53 = vector.broadcast %52 : vector<1x128xi1> to vector<528x128xi1>
    %54 = arith.select %53, %48, %49 : vector<528x128xi1>, vector<528x128xf32>
    %c48 = arith.constant 48 : index
    %c0_24 = arith.constant 0 : index
    %55 = vector.load %arg12[%c48, %c0_24] : memref<584x128xf32, #tpu.memory_space<vmem>>, vector<528x128xf32>
    %c60_i32 = arith.constant 60 : i32
    %56 = vector.broadcast %c60_i32 : i32 to vector<1x128xi32>
    %57 = arith.cmpi slt, %23, %56 : vector<1x128xi32>
    %58 = vector.shape_cast %57 : vector<1x128xi1> to vector<1x128xi1>
    %59 = vector.broadcast %58 : vector<1x128xi1> to vector<528x128xi1>
    %60 = arith.select %59, %54, %55 : vector<528x128xi1>, vector<528x128xf32>
    %c49 = arith.constant 49 : index
    %c0_25 = arith.constant 0 : index
    %61 = vector.load %arg12[%c49, %c0_25] : memref<584x128xf32, #tpu.memory_space<vmem>>, vector<528x128xf32>
    %c70_i32 = arith.constant 70 : i32
    %62 = vector.broadcast %c70_i32 : i32 to vector<1x128xi32>
    %63 = arith.cmpi slt, %23, %62 : vector<1x128xi32>
    %64 = vector.shape_cast %63 : vector<1x128xi1> to vector<1x128xi1>
    %65 = vector.broadcast %64 : vector<1x128xi1> to vector<528x128xi1>
    %66 = arith.select %65, %60, %61 : vector<528x128xi1>, vector<528x128xf32>
    %c50 = arith.constant 50 : index
    %c0_26 = arith.constant 0 : index
    %67 = vector.load %arg12[%c50, %c0_26] : memref<584x128xf32, #tpu.memory_space<vmem>>, vector<528x128xf32>
    %c80_i32 = arith.constant 80 : i32
    %68 = vector.broadcast %c80_i32 : i32 to vector<1x128xi32>
    %69 = arith.cmpi slt, %23, %68 : vector<1x128xi32>
    %70 = vector.shape_cast %69 : vector<1x128xi1> to vector<1x128xi1>
    %71 = vector.broadcast %70 : vector<1x128xi1> to vector<528x128xi1>
    %72 = arith.select %71, %66, %67 : vector<528x128xi1>, vector<528x128xf32>
    %c0_27 = arith.constant 0 : index
    %c0_28 = arith.constant 0 : index
    %73 = vector.load %arg4[%c0_27, %c0_28] : memref<128x64xf32, #tpu.memory_space<vmem>>, vector<128x64xf32>
    %cst_29 = arith.constant dense<0.000000e+00> : vector<528x64xf32>
    %74 = tpu.matmul %72, %73, %cst_29 {dimension_numbers = #tpu.dot_dimension_numbers<[1], [0], [0], [1], [0, 0, 1, 1], [], []>} : vector<528x128xf32>, vector<128x64xf32>, vector<528x64xf32> -> vector<528x64xf32>
    %c0_30 = arith.constant 0 : index
    %c0_31 = arith.constant 0 : index
    %75 = vector.load %arg5[%c0_30, %c0_31] : memref<1x64xf32, #tpu.memory_space<vmem>>, vector<1x64xf32>
    %76 = vector.broadcast %75 : vector<1x64xf32> to vector<528x64xf32>
    %77 = arith.addf %74, %76 : vector<528x64xf32>
    %cst_32 = arith.constant 0.000000e+00 : f32
    %78 = vector.broadcast %cst_32 : f32 to vector<528x64xf32>
    %79 = arith.maximumf %77, %78 : vector<528x64xf32>
    %80 = vector.shape_cast %79 : vector<528x64xf32> to vector<11x2x24x64xf32>
    %81 = vector.extract_strided_slice %80 {offsets = [0, 0, 0, 0], sizes = [11, 1, 24, 64], strides = [1, 1, 1, 1]} : vector<11x2x24x64xf32> to vector<11x1x24x64xf32>
    %82 = vector.shape_cast %81 : vector<11x1x24x64xf32> to vector<11x24x64xf32>
    %83 = vector.extract_strided_slice %80 {offsets = [0, 1, 0, 0], sizes = [11, 1, 24, 64], strides = [1, 1, 1, 1]} : vector<11x2x24x64xf32> to vector<11x1x24x64xf32>
    %84 = vector.shape_cast %83 : vector<11x1x24x64xf32> to vector<11x24x64xf32>
    %85 = arith.maximumf %82, %84 : vector<11x24x64xf32>
    %86 = vector.shape_cast %85 : vector<11x24x64xf32> to vector<264x64xf32>
    %c0_33 = arith.constant 0 : index
    %c0_34 = arith.constant 0 : index
    %87 = vector.load %arg13[%c0_33, %c0_34] : memref<264x64xf32, #tpu.memory_space<vmem>>, vector<264x64xf32>
    tpu.vector_store %arg13[%c0_33, %c0_34], %86 {strides = array<i32>} : memref<264x64xf32, #tpu.memory_space<vmem>>, vector<264x64xf32>,
    %c0_35 = arith.constant 0 : index
    %c0_36 = arith.constant 0 : index
    %88 = tpu.strided_load %arg13[%c0_35, %c0_36] {strides = array<i32: 2, 1>} : memref<264x64xf32, #tpu.memory_space<vmem>>, vector<132x64xf32>
    %c1_37 = arith.constant 1 : index
    %c0_38 = arith.constant 0 : index
    %89 = tpu.strided_load %arg13[%c1_37, %c0_38] {strides = array<i32: 2, 1>} : memref<264x64xf32, #tpu.memory_space<vmem>>, vector<132x64xf32>
    %90 = arith.maximumf %88, %89 : vector<132x64xf32>
    %91 = tpu.iota {dimensions = array<i32: 1>} : vector<1x16xi32>
    %cst_39 = arith.constant 0.000000e+00 : f32
    %92 = vector.broadcast %cst_39 : f32 to vector<1x16xf32>
    %c0_40 = arith.constant 0 : index
    %c0_41 = arith.constant 0 : index
    %c0_42 = arith.constant 0 : index
    %93 = vector.load %arg6[%c0_40, %c0_41, %c0_42] : memref<16x132x64xf32, #tpu.memory_space<vmem>>, vector<1x132x64xf32>
    %94 = vector.shape_cast %93 : vector<1x132x64xf32> to vector<132x64xf32>
    %95 = arith.mulf %90, %94 : vector<132x64xf32>
    %cst_43 = arith.constant dense<0.000000e+00> : vector<64xf32>
    %96 = vector.multi_reduction <add>, %95, %cst_43 [0] : vector<132x64xf32> to vector<64xf32>
    %97 = vector.shape_cast %96 : vector<64xf32> to vector<1x64xf32>
    %cst_44 = arith.constant dense<0.000000e+00> : vector<1xf32>
    %98 = vector.multi_reduction <add>, %97, %cst_44 [1] : vector<1x64xf32> to vector<1xf32>
    %99 = vector.shape_cast %98 : vector<1xf32> to vector<1x1xf32>
    %c0_i32 = arith.constant 0 : i32
    %100 = vector.broadcast %c0_i32 : i32 to vector<1x16xi32>
    %101 = arith.cmpi eq, %91, %100 : vector<1x16xi32>
    %cst_45 = arith.constant 0.000000e+00 : f32
    %102 = vector.shape_cast %99 : vector<1x1xf32> to vector<1x1xf32>
    %103 = vector.broadcast %102 : vector<1x1xf32> to vector<1x16xf32>
    %104 = vector.broadcast %cst_45 : f32 to vector<1x16xf32>
    %105 = arith.select %101, %103, %104 : vector<1x16xi1>, vector<1x16xf32>
    %106 = arith.addf %92, %105 : vector<1x16xf32>
    %c1_46 = arith.constant 1 : index
    %c0_47 = arith.constant 0 : index
    %c0_48 = arith.constant 0 : index
    %107 = vector.load %arg6[%c1_46, %c0_47, %c0_48] : memref<16x132x64xf32, #tpu.memory_space<vmem>>, vector<1x132x64xf32>
    %108 = vector.shape_cast %107 : vector<1x132x64xf32> to vector<132x64xf32>
    %109 = arith.mulf %90, %108 : vector<132x64xf32>
    %cst_49 = arith.constant dense<0.000000e+00> : vector<64xf32>
    %110 = vector.multi_reduction <add>, %109, %cst_49 [0] : vector<132x64xf32> to vector<64xf32>
    %111 = vector.shape_cast %110 : vector<64xf32> to vector<1x64xf32>
    %cst_50 = arith.constant dense<0.000000e+00> : vector<1xf32>
    %112 = vector.multi_reduction <add>, %111, %cst_50 [1] : vector<1x64xf32> to vector<1xf32>
    %113 = vector.shape_cast %112 : vector<1xf32> to vector<1x1xf32>
    %c1_i32 = arith.constant 1 : i32
    %114 = vector.broadcast %c1_i32 : i32 to vector<1x16xi32>
    %115 = arith.cmpi eq, %91, %114 : vector<1x16xi32>
    %cst_51 = arith.constant 0.000000e+00 : f32
    %116 = vector.shape_cast %113 : vector<1x1xf32> to vector<1x1xf32>
    %117 = vector.broadcast %116 : vector<1x1xf32> to vector<1x16xf32>
    %118 = vector.broadcast %cst_51 : f32 to vector<1x16xf32>
    %119 = arith.select %115, %117, %118 : vector<1x16xi1>, vector<1x16xf32>
    %120 = arith.addf %106, %119 : vector<1x16xf32>
    %c2_52 = arith.constant 2 : index
    %c0_53 = arith.constant 0 : index
    %c0_54 = arith.constant 0 : index
    %121 = vector.load %arg6[%c2_52, %c0_53, %c0_54] : memref<16x132x64xf32, #tpu.memory_space<vmem>>, vector<1x132x64xf32>
    %122 = vector.shape_cast %121 : vector<1x132x64xf32> to vector<132x64xf32>
    %123 = arith.mulf %90, %122 : vector<132x64xf32>
    %cst_55 = arith.constant dense<0.000000e+00> : vector<64xf32>
    %124 = vector.multi_reduction <add>, %123, %cst_55 [0] : vector<132x64xf32> to vector<64xf32>
    %125 = vector.shape_cast %124 : vector<64xf32> to vector<1x64xf32>
    %cst_56 = arith.constant dense<0.000000e+00> : vector<1xf32>
    %126 = vector.multi_reduction <add>, %125, %cst_56 [1] : vector<1x64xf32> to vector<1xf32>
    %127 = vector.shape_cast %126 : vector<1xf32> to vector<1x1xf32>
    %c2_i32 = arith.constant 2 : i32
    %128 = vector.broadcast %c2_i32 : i32 to vector<1x16xi32>
    %129 = arith.cmpi eq, %91, %128 : vector<1x16xi32>
    %cst_57 = arith.constant 0.000000e+00 : f32
    %130 = vector.shape_cast %127 : vector<1x1xf32> to vector<1x1xf32>
    %131 = vector.broadcast %130 : vector<1x1xf32> to vector<1x16xf32>
    %132 = vector.broadcast %cst_57 : f32 to vector<1x16xf32>
    %133 = arith.select %129, %131, %132 : vector<1x16xi1>, vector<1x16xf32>
    %134 = arith.addf %120, %133 : vector<1x16xf32>
    %c3 = arith.constant 3 : index
    %c0_58 = arith.constant 0 : index
    %c0_59 = arith.constant 0 : index
    %135 = vector.load %arg6[%c3, %c0_58, %c0_59] : memref<16x132x64xf32, #tpu.memory_space<vmem>>, vector<1x132x64xf32>
    %136 = vector.shape_cast %135 : vector<1x132x64xf32> to vector<132x64xf32>
    %137 = arith.mulf %90, %136 : vector<132x64xf32>
    %cst_60 = arith.constant dense<0.000000e+00> : vector<64xf32>
    %138 = vector.multi_reduction <add>, %137, %cst_60 [0] : vector<132x64xf32> to vector<64xf32>
    %139 = vector.shape_cast %138 : vector<64xf32> to vector<1x64xf32>
    %cst_61 = arith.constant dense<0.000000e+00> : vector<1xf32>
    %140 = vector.multi_reduction <add>, %139, %cst_61 [1] : vector<1x64xf32> to vector<1xf32>
    %141 = vector.shape_cast %140 : vector<1xf32> to vector<1x1xf32>
    %c3_i32 = arith.constant 3 : i32
    %142 = vector.broadcast %c3_i32 : i32 to vector<1x16xi32>
    %143 = arith.cmpi eq, %91, %142 : vector<1x16xi32>
    %cst_62 = arith.constant 0.000000e+00 : f32
    %144 = vector.shape_cast %141 : vector<1x1xf32> to vector<1x1xf32>
    %145 = vector.broadcast %144 : vector<1x1xf32> to vector<1x16xf32>
    %146 = vector.broadcast %cst_62 : f32 to vector<1x16xf32>
    %147 = arith.select %143, %145, %146 : vector<1x16xi1>, vector<1x16xf32>
    %148 = arith.addf %134, %147 : vector<1x16xf32>
    %c4 = arith.constant 4 : index
    %c0_63 = arith.constant 0 : index
    %c0_64 = arith.constant 0 : index
    %149 = vector.load %arg6[%c4, %c0_63, %c0_64] : memref<16x132x64xf32, #tpu.memory_space<vmem>>, vector<1x132x64xf32>
    %150 = vector.shape_cast %149 : vector<1x132x64xf32> to vector<132x64xf32>
    %151 = arith.mulf %90, %150 : vector<132x64xf32>
    %cst_65 = arith.constant dense<0.000000e+00> : vector<64xf32>
    %152 = vector.multi_reduction <add>, %151, %cst_65 [0] : vector<132x64xf32> to vector<64xf32>
    %153 = vector.shape_cast %152 : vector<64xf32> to vector<1x64xf32>
    %cst_66 = arith.constant dense<0.000000e+00> : vector<1xf32>
    %154 = vector.multi_reduction <add>, %153, %cst_66 [1] : vector<1x64xf32> to vector<1xf32>
    %155 = vector.shape_cast %154 : vector<1xf32> to vector<1x1xf32>
    %c4_i32 = arith.constant 4 : i32
    %156 = vector.broadcast %c4_i32 : i32 to vector<1x16xi32>
    %157 = arith.cmpi eq, %91, %156 : vector<1x16xi32>
    %cst_67 = arith.constant 0.000000e+00 : f32
    %158 = vector.shape_cast %155 : vector<1x1xf32> to vector<1x1xf32>
    %159 = vector.broadcast %158 : vector<1x1xf32> to vector<1x16xf32>
    %160 = vector.broadcast %cst_67 : f32 to vector<1x16xf32>
    %161 = arith.select %157, %159, %160 : vector<1x16xi1>, vector<1x16xf32>
    %162 = arith.addf %148, %161 : vector<1x16xf32>
    %c5 = arith.constant 5 : index
    %c0_68 = arith.constant 0 : index
    %c0_69 = arith.constant 0 : index
    %163 = vector.load %arg6[%c5, %c0_68, %c0_69] : memref<16x132x64xf32, #tpu.memory_space<vmem>>, vector<1x132x64xf32>
    %164 = vector.shape_cast %163 : vector<1x132x64xf32> to vector<132x64xf32>
    %165 = arith.mulf %90, %164 : vector<132x64xf32>
    %cst_70 = arith.constant dense<0.000000e+00> : vector<64xf32>
    %166 = vector.multi_reduction <add>, %165, %cst_70 [0] : vector<132x64xf32> to vector<64xf32>
    %167 = vector.shape_cast %166 : vector<64xf32> to vector<1x64xf32>
    %cst_71 = arith.constant dense<0.000000e+00> : vector<1xf32>
    %168 = vector.multi_reduction <add>, %167, %cst_71 [1] : vector<1x64xf32> to vector<1xf32>
    %169 = vector.shape_cast %168 : vector<1xf32> to vector<1x1xf32>
    %c5_i32 = arith.constant 5 : i32
    %170 = vector.broadcast %c5_i32 : i32 to vector<1x16xi32>
    %171 = arith.cmpi eq, %91, %170 : vector<1x16xi32>
    %cst_72 = arith.constant 0.000000e+00 : f32
    %172 = vector.shape_cast %169 : vector<1x1xf32> to vector<1x1xf32>
    %173 = vector.broadcast %172 : vector<1x1xf32> to vector<1x16xf32>
    %174 = vector.broadcast %cst_72 : f32 to vector<1x16xf32>
    %175 = arith.select %171, %173, %174 : vector<1x16xi1>, vector<1x16xf32>
    %176 = arith.addf %162, %175 : vector<1x16xf32>
    %c6 = arith.constant 6 : index
    %c0_73 = arith.constant 0 : index
    %c0_74 = arith.constant 0 : index
    %177 = vector.load %arg6[%c6, %c0_73, %c0_74] : memref<16x132x64xf32, #tpu.memory_space<vmem>>, vector<1x132x64xf32>
    %178 = vector.shape_cast %177 : vector<1x132x64xf32> to vector<132x64xf32>
    %179 = arith.mulf %90, %178 : vector<132x64xf32>
    %cst_75 = arith.constant dense<0.000000e+00> : vector<64xf32>
    %180 = vector.multi_reduction <add>, %179, %cst_75 [0] : vector<132x64xf32> to vector<64xf32>
    %181 = vector.shape_cast %180 : vector<64xf32> to vector<1x64xf32>
    %cst_76 = arith.constant dense<0.000000e+00> : vector<1xf32>
    %182 = vector.multi_reduction <add>, %181, %cst_76 [1] : vector<1x64xf32> to vector<1xf32>
    %183 = vector.shape_cast %182 : vector<1xf32> to vector<1x1xf32>
    %c6_i32 = arith.constant 6 : i32
    %184 = vector.broadcast %c6_i32 : i32 to vector<1x16xi32>
    %185 = arith.cmpi eq, %91, %184 : vector<1x16xi32>
    %cst_77 = arith.constant 0.000000e+00 : f32
    %186 = vector.shape_cast %183 : vector<1x1xf32> to vector<1x1xf32>
    %187 = vector.broadcast %186 : vector<1x1xf32> to vector<1x16xf32>
    %188 = vector.broadcast %cst_77 : f32 to vector<1x16xf32>
    %189 = arith.select %185, %187, %188 : vector<1x16xi1>, vector<1x16xf32>
    %190 = arith.addf %176, %189 : vector<1x16xf32>
    %c7 = arith.constant 7 : index
    %c0_78 = arith.constant 0 : index
    %c0_79 = arith.constant 0 : index
    %191 = vector.load %arg6[%c7, %c0_78, %c0_79] : memref<16x132x64xf32, #tpu.memory_space<vmem>>, vector<1x132x64xf32>
    %192 = vector.shape_cast %191 : vector<1x132x64xf32> to vector<132x64xf32>
    %193 = arith.mulf %90, %192 : vector<132x64xf32>
    %cst_80 = arith.constant dense<0.000000e+00> : vector<64xf32>
    %194 = vector.multi_reduction <add>, %193, %cst_80 [0] : vector<132x64xf32> to vector<64xf32>
    %195 = vector.shape_cast %194 : vector<64xf32> to vector<1x64xf32>
    %cst_81 = arith.constant dense<0.000000e+00> : vector<1xf32>
    %196 = vector.multi_reduction <add>, %195, %cst_81 [1] : vector<1x64xf32> to vector<1xf32>
    %197 = vector.shape_cast %196 : vector<1xf32> to vector<1x1xf32>
    %c7_i32 = arith.constant 7 : i32
    %198 = vector.broadcast %c7_i32 : i32 to vector<1x16xi32>
    %199 = arith.cmpi eq, %91, %198 : vector<1x16xi32>
    %cst_82 = arith.constant 0.000000e+00 : f32
    %200 = vector.shape_cast %197 : vector<1x1xf32> to vector<1x1xf32>
    %201 = vector.broadcast %200 : vector<1x1xf32> to vector<1x16xf32>
    %202 = vector.broadcast %cst_82 : f32 to vector<1x16xf32>
    %203 = arith.select %199, %201, %202 : vector<1x16xi1>, vector<1x16xf32>
    %204 = arith.addf %190, %203 : vector<1x16xf32>
    %c8 = arith.constant 8 : index
    %c0_83 = arith.constant 0 : index
    %c0_84 = arith.constant 0 : index
    %205 = vector.load %arg6[%c8, %c0_83, %c0_84] : memref<16x132x64xf32, #tpu.memory_space<vmem>>, vector<1x132x64xf32>
    %206 = vector.shape_cast %205 : vector<1x132x64xf32> to vector<132x64xf32>
    %207 = arith.mulf %90, %206 : vector<132x64xf32>
    %cst_85 = arith.constant dense<0.000000e+00> : vector<64xf32>
    %208 = vector.multi_reduction <add>, %207, %cst_85 [0] : vector<132x64xf32> to vector<64xf32>
    %209 = vector.shape_cast %208 : vector<64xf32> to vector<1x64xf32>
    %cst_86 = arith.constant dense<0.000000e+00> : vector<1xf32>
    %210 = vector.multi_reduction <add>, %209, %cst_86 [1] : vector<1x64xf32> to vector<1xf32>
    %211 = vector.shape_cast %210 : vector<1xf32> to vector<1x1xf32>
    %c8_i32 = arith.constant 8 : i32
    %212 = vector.broadcast %c8_i32 : i32 to vector<1x16xi32>
    %213 = arith.cmpi eq, %91, %212 : vector<1x16xi32>
    %cst_87 = arith.constant 0.000000e+00 : f32
    %214 = vector.shape_cast %211 : vector<1x1xf32> to vector<1x1xf32>
    %215 = vector.broadcast %214 : vector<1x1xf32> to vector<1x16xf32>
    %216 = vector.broadcast %cst_87 : f32 to vector<1x16xf32>
    %217 = arith.select %213, %215, %216 : vector<1x16xi1>, vector<1x16xf32>
    %218 = arith.addf %204, %217 : vector<1x16xf32>
    %c9 = arith.constant 9 : index
    %c0_88 = arith.constant 0 : index
    %c0_89 = arith.constant 0 : index
    %219 = vector.load %arg6[%c9, %c0_88, %c0_89] : memref<16x132x64xf32, #tpu.memory_space<vmem>>, vector<1x132x64xf32>
    %220 = vector.shape_cast %219 : vector<1x132x64xf32> to vector<132x64xf32>
    %221 = arith.mulf %90, %220 : vector<132x64xf32>
    %cst_90 = arith.constant dense<0.000000e+00> : vector<64xf32>
    %222 = vector.multi_reduction <add>, %221, %cst_90 [0] : vector<132x64xf32> to vector<64xf32>
    %223 = vector.shape_cast %222 : vector<64xf32> to vector<1x64xf32>
    %cst_91 = arith.constant dense<0.000000e+00> : vector<1xf32>
    %224 = vector.multi_reduction <add>, %223, %cst_91 [1] : vector<1x64xf32> to vector<1xf32>
    %225 = vector.shape_cast %224 : vector<1xf32> to vector<1x1xf32>
    %c9_i32 = arith.constant 9 : i32
    %226 = vector.broadcast %c9_i32 : i32 to vector<1x16xi32>
    %227 = arith.cmpi eq, %91, %226 : vector<1x16xi32>
    %cst_92 = arith.constant 0.000000e+00 : f32
    %228 = vector.shape_cast %225 : vector<1x1xf32> to vector<1x1xf32>
    %229 = vector.broadcast %228 : vector<1x1xf32> to vector<1x16xf32>
    %230 = vector.broadcast %cst_92 : f32 to vector<1x16xf32>
    %231 = arith.select %227, %229, %230 : vector<1x16xi1>, vector<1x16xf32>
    %232 = arith.addf %218, %231 : vector<1x16xf32>
    %c10 = arith.constant 10 : index
    %c0_93 = arith.constant 0 : index
    %c0_94 = arith.constant 0 : index
    %233 = vector.load %arg6[%c10, %c0_93, %c0_94] : memref<16x132x64xf32, #tpu.memory_space<vmem>>, vector<1x132x64xf32>
    %234 = vector.shape_cast %233 : vector<1x132x64xf32> to vector<132x64xf32>
    %235 = arith.mulf %90, %234 : vector<132x64xf32>
    %cst_95 = arith.constant dense<0.000000e+00> : vector<64xf32>
    %236 = vector.multi_reduction <add>, %235, %cst_95 [0] : vector<132x64xf32> to vector<64xf32>
    %237 = vector.shape_cast %236 : vector<64xf32> to vector<1x64xf32>
    %cst_96 = arith.constant dense<0.000000e+00> : vector<1xf32>
    %238 = vector.multi_reduction <add>, %237, %cst_96 [1] : vector<1x64xf32> to vector<1xf32>
    %239 = vector.shape_cast %238 : vector<1xf32> to vector<1x1xf32>
    %c10_i32_97 = arith.constant 10 : i32
    %240 = vector.broadcast %c10_i32_97 : i32 to vector<1x16xi32>
    %241 = arith.cmpi eq, %91, %240 : vector<1x16xi32>
    %cst_98 = arith.constant 0.000000e+00 : f32
    %242 = vector.shape_cast %239 : vector<1x1xf32> to vector<1x1xf32>
    %243 = vector.broadcast %242 : vector<1x1xf32> to vector<1x16xf32>
    %244 = vector.broadcast %cst_98 : f32 to vector<1x16xf32>
    %245 = arith.select %241, %243, %244 : vector<1x16xi1>, vector<1x16xf32>
    %246 = arith.addf %232, %245 : vector<1x16xf32>
    %c11 = arith.constant 11 : index
    %c0_99 = arith.constant 0 : index
    %c0_100 = arith.constant 0 : index
    %247 = vector.load %arg6[%c11, %c0_99, %c0_100] : memref<16x132x64xf32, #tpu.memory_space<vmem>>, vector<1x132x64xf32>
    %248 = vector.shape_cast %247 : vector<1x132x64xf32> to vector<132x64xf32>
    %249 = arith.mulf %90, %248 : vector<132x64xf32>
    %cst_101 = arith.constant dense<0.000000e+00> : vector<64xf32>
    %250 = vector.multi_reduction <add>, %249, %cst_101 [0] : vector<132x64xf32> to vector<64xf32>
    %251 = vector.shape_cast %250 : vector<64xf32> to vector<1x64xf32>
    %cst_102 = arith.constant dense<0.000000e+00> : vector<1xf32>
    %252 = vector.multi_reduction <add>, %251, %cst_102 [1] : vector<1x64xf32> to vector<1xf32>
    %253 = vector.shape_cast %252 : vector<1xf32> to vector<1x1xf32>
    %c11_i32 = arith.constant 11 : i32
    %254 = vector.broadcast %c11_i32 : i32 to vector<1x16xi32>
    %255 = arith.cmpi eq, %91, %254 : vector<1x16xi32>
    %cst_103 = arith.constant 0.000000e+00 : f32
    %256 = vector.shape_cast %253 : vector<1x1xf32> to vector<1x1xf32>
    %257 = vector.broadcast %256 : vector<1x1xf32> to vector<1x16xf32>
    %258 = vector.broadcast %cst_103 : f32 to vector<1x16xf32>
    %259 = arith.select %255, %257, %258 : vector<1x16xi1>, vector<1x16xf32>
    %260 = arith.addf %246, %259 : vector<1x16xf32>
    %c12 = arith.constant 12 : index
    %c0_104 = arith.constant 0 : index
    %c0_105 = arith.constant 0 : index
    %261 = vector.load %arg6[%c12, %c0_104, %c0_105] : memref<16x132x64xf32, #tpu.memory_space<vmem>>, vector<1x132x64xf32>
    %262 = vector.shape_cast %261 : vector<1x132x64xf32> to vector<132x64xf32>
    %263 = arith.mulf %90, %262 : vector<132x64xf32>
    %cst_106 = arith.constant dense<0.000000e+00> : vector<64xf32>
    %264 = vector.multi_reduction <add>, %263, %cst_106 [0] : vector<132x64xf32> to vector<64xf32>
    %265 = vector.shape_cast %264 : vector<64xf32> to vector<1x64xf32>
    %cst_107 = arith.constant dense<0.000000e+00> : vector<1xf32>
    %266 = vector.multi_reduction <add>, %265, %cst_107 [1] : vector<1x64xf32> to vector<1xf32>
    %267 = vector.shape_cast %266 : vector<1xf32> to vector<1x1xf32>
    %c12_i32 = arith.constant 12 : i32
    %268 = vector.broadcast %c12_i32 : i32 to vector<1x16xi32>
    %269 = arith.cmpi eq, %91, %268 : vector<1x16xi32>
    %cst_108 = arith.constant 0.000000e+00 : f32
    %270 = vector.shape_cast %267 : vector<1x1xf32> to vector<1x1xf32>
    %271 = vector.broadcast %270 : vector<1x1xf32> to vector<1x16xf32>
    %272 = vector.broadcast %cst_108 : f32 to vector<1x16xf32>
    %273 = arith.select %269, %271, %272 : vector<1x16xi1>, vector<1x16xf32>
    %274 = arith.addf %260, %273 : vector<1x16xf32>
    %c13 = arith.constant 13 : index
    %c0_109 = arith.constant 0 : index
    %c0_110 = arith.constant 0 : index
    %275 = vector.load %arg6[%c13, %c0_109, %c0_110] : memref<16x132x64xf32, #tpu.memory_space<vmem>>, vector<1x132x64xf32>
    %276 = vector.shape_cast %275 : vector<1x132x64xf32> to vector<132x64xf32>
    %277 = arith.mulf %90, %276 : vector<132x64xf32>
    %cst_111 = arith.constant dense<0.000000e+00> : vector<64xf32>
    %278 = vector.multi_reduction <add>, %277, %cst_111 [0] : vector<132x64xf32> to vector<64xf32>
    %279 = vector.shape_cast %278 : vector<64xf32> to vector<1x64xf32>
    %cst_112 = arith.constant dense<0.000000e+00> : vector<1xf32>
    %280 = vector.multi_reduction <add>, %279, %cst_112 [1] : vector<1x64xf32> to vector<1xf32>
    %281 = vector.shape_cast %280 : vector<1xf32> to vector<1x1xf32>
    %c13_i32 = arith.constant 13 : i32
    %282 = vector.broadcast %c13_i32 : i32 to vector<1x16xi32>
    %283 = arith.cmpi eq, %91, %282 : vector<1x16xi32>
    %cst_113 = arith.constant 0.000000e+00 : f32
    %284 = vector.shape_cast %281 : vector<1x1xf32> to vector<1x1xf32>
    %285 = vector.broadcast %284 : vector<1x1xf32> to vector<1x16xf32>
    %286 = vector.broadcast %cst_113 : f32 to vector<1x16xf32>
    %287 = arith.select %283, %285, %286 : vector<1x16xi1>, vector<1x16xf32>
    %288 = arith.addf %274, %287 : vector<1x16xf32>
    %c14 = arith.constant 14 : index
    %c0_114 = arith.constant 0 : index
    %c0_115 = arith.constant 0 : index
    %289 = vector.load %arg6[%c14, %c0_114, %c0_115] : memref<16x132x64xf32, #tpu.memory_space<vmem>>, vector<1x132x64xf32>
    %290 = vector.shape_cast %289 : vector<1x132x64xf32> to vector<132x64xf32>
    %291 = arith.mulf %90, %290 : vector<132x64xf32>
    %cst_116 = arith.constant dense<0.000000e+00> : vector<64xf32>
    %292 = vector.multi_reduction <add>, %291, %cst_116 [0] : vector<132x64xf32> to vector<64xf32>
    %293 = vector.shape_cast %292 : vector<64xf32> to vector<1x64xf32>
    %cst_117 = arith.constant dense<0.000000e+00> : vector<1xf32>
    %294 = vector.multi_reduction <add>, %293, %cst_117 [1] : vector<1x64xf32> to vector<1xf32>
    %295 = vector.shape_cast %294 : vector<1xf32> to vector<1x1xf32>
    %c14_i32 = arith.constant 14 : i32
    %296 = vector.broadcast %c14_i32 : i32 to vector<1x16xi32>
    %297 = arith.cmpi eq, %91, %296 : vector<1x16xi32>
    %cst_118 = arith.constant 0.000000e+00 : f32
    %298 = vector.shape_cast %295 : vector<1x1xf32> to vector<1x1xf32>
    %299 = vector.broadcast %298 : vector<1x1xf32> to vector<1x16xf32>
    %300 = vector.broadcast %cst_118 : f32 to vector<1x16xf32>
    %301 = arith.select %297, %299, %300 : vector<1x16xi1>, vector<1x16xf32>
    %302 = arith.addf %288, %301 : vector<1x16xf32>
    %c15 = arith.constant 15 : index
    %c0_119 = arith.constant 0 : index
    %c0_120 = arith.constant 0 : index
    %303 = vector.load %arg6[%c15, %c0_119, %c0_120] : memref<16x132x64xf32, #tpu.memory_space<vmem>>, vector<1x132x64xf32>
    %304 = vector.shape_cast %303 : vector<1x132x64xf32> to vector<132x64xf32>
    %305 = arith.mulf %90, %304 : vector<132x64xf32>
    %cst_121 = arith.constant dense<0.000000e+00> : vector<64xf32>
    %306 = vector.multi_reduction <add>, %305, %cst_121 [0] : vector<132x64xf32> to vector<64xf32>
    %307 = vector.shape_cast %306 : vector<64xf32> to vector<1x64xf32>
    %cst_122 = arith.constant dense<0.000000e+00> : vector<1xf32>
    %308 = vector.multi_reduction <add>, %307, %cst_122 [1] : vector<1x64xf32> to vector<1xf32>
    %309 = vector.shape_cast %308 : vector<1xf32> to vector<1x1xf32>
    %c15_i32 = arith.constant 15 : i32
    %310 = vector.broadcast %c15_i32 : i32 to vector<1x16xi32>
    %311 = arith.cmpi eq, %91, %310 : vector<1x16xi32>
    %cst_123 = arith.constant 0.000000e+00 : f32
    %312 = vector.shape_cast %309 : vector<1x1xf32> to vector<1x1xf32>
    %313 = vector.broadcast %312 : vector<1x1xf32> to vector<1x16xf32>
    %314 = vector.broadcast %cst_123 : f32 to vector<1x16xf32>
    %315 = arith.select %311, %313, %314 : vector<1x16xi1>, vector<1x16xf32>
    %316 = arith.addf %302, %315 : vector<1x16xf32>
    %c0_124 = arith.constant 0 : index
    %c0_125 = arith.constant 0 : index
    %317 = vector.load %arg7[%c0_124, %c0_125] : memref<1x16xf32, #tpu.memory_space<vmem>>, vector<1x16xf32>
    %318 = arith.addf %316, %317 : vector<1x16xf32>
    %cst_126 = arith.constant 0.000000e+00 : f32
    %319 = vector.broadcast %cst_126 : f32 to vector<1x16xf32>
    %320 = arith.maximumf %318, %319 : vector<1x16xf32>
    %c0_127 = arith.constant 0 : index
    %c0_128 = arith.constant 0 : index
    %321 = vector.load %arg8[%c0_127, %c0_128] : memref<16x2xf32, #tpu.memory_space<vmem>>, vector<16x2xf32>
    %cst_129 = arith.constant dense<0.000000e+00> : vector<1x2xf32>
    %322 = tpu.matmul %320, %321, %cst_129 {dimension_numbers = #tpu.dot_dimension_numbers<[1], [0], [0], [1], [0, 0, 1, 1], [], []>} : vector<1x16xf32>, vector<16x2xf32>, vector<1x2xf32> -> vector<1x2xf32>
    %c0_130 = arith.constant 0 : index
    %c0_131 = arith.constant 0 : index
    %323 = vector.load %arg9[%c0_130, %c0_131] : memref<1x2xf32, #tpu.memory_space<vmem>>, vector<1x2xf32>
    %324 = arith.addf %322, %323 : vector<1x2xf32>
    %cst_132 = arith.constant dense<0xFF800000> : vector<1xf32>
    %325 = vector.multi_reduction <maximumf>, %324, %cst_132 [1] : vector<1x2xf32> to vector<1xf32>
    %326 = vector.shape_cast %325 : vector<1xf32> to vector<1x1xf32>
    %327 = vector.broadcast %326 : vector<1x1xf32> to vector<1x2xf32>
    %328 = arith.subf %324, %327 : vector<1x2xf32>
    %329 = math.exp %328 : vector<1x2xf32>
    %cst_133 = arith.constant dense<0.000000e+00> : vector<1xf32>
    %330 = vector.multi_reduction <add>, %329, %cst_133 [1] : vector<1x2xf32> to vector<1xf32>
    %331 = vector.shape_cast %330 : vector<1xf32> to vector<1x1xf32>
    %332 = vector.broadcast %331 : vector<1x1xf32> to vector<1x2xf32>
    %333 = arith.divf %329, %332 : vector<1x2xf32>
    %c0_134 = arith.constant 0 : index
    %c0_135 = arith.constant 0 : index
    %c0_136 = arith.constant 0 : index
    %334 = vector.load %arg10[%c0_134, %c0_135, %c0_136] : memref<1x1x2xf32, #tpu.memory_space<vmem>>, vector<1x1x2xf32>
    %335 = vector.shape_cast %334 : vector<1x1x2xf32> to vector<1x2xf32>
    %336 = vector.shape_cast %333 : vector<1x2xf32> to vector<1x1x2xf32>
    tpu.vector_store %arg10[%c0_134, %c0_135, %c0_136], %336 {strides = array<i32>} : memref<1x1x2xf32, #tpu.memory_space<vmem>>, vector<1x1x2xf32>,
    return
  }
  func.func @transform_0(%arg0: i32) -> (i32, i32, i32) {
    %c0_i32 = arith.constant 0 : i32
    %c0_i32_0 = arith.constant 0 : i32
    %c0_i32_1 = arith.constant 0 : i32
    return %arg0, %c0_i32, %c0_i32_0 : i32, i32, i32
  }
  func.func @transform_1(%arg0: i32) -> (i32, i32) {
    %c0_i32 = arith.constant 0 : i32
    %c0_i32_0 = arith.constant 0 : i32
    %c0_i32_1 = arith.constant 0 : i32
    return %c0_i32, %c0_i32_0 : i32, i32
  }
  func.func @transform_2(%arg0: i32) -> (i32, i32) {
    %c0_i32 = arith.constant 0 : i32
    %c0_i32_0 = arith.constant 0 : i32
    %c0_i32_1 = arith.constant 0 : i32
    return %c0_i32, %c0_i32_0 : i32, i32
  }
  func.func @transform_3(%arg0: i32) -> (i32, i32) {
    %c0_i32 = arith.constant 0 : i32
    %c0_i32_0 = arith.constant 0 : i32
    %c0_i32_1 = arith.constant 0 : i32
    return %c0_i32, %c0_i32_0 : i32, i32
  }
  func.func @transform_4(%arg0: i32) -> (i32, i32) {
    %c0_i32 = arith.constant 0 : i32
    %c0_i32_0 = arith.constant 0 : i32
    %c0_i32_1 = arith.constant 0 : i32
    return %c0_i32, %c0_i32_0 : i32, i32
  }
  func.func @transform_5(%arg0: i32) -> (i32, i32, i32) {
    %c0_i32 = arith.constant 0 : i32
    %c0_i32_0 = arith.constant 0 : i32
    %c0_i32_1 = arith.constant 0 : i32
    %c0_i32_2 = arith.constant 0 : i32
    return %c0_i32, %c0_i32_0, %c0_i32_1 : i32, i32, i32
  }
  func.func @transform_6(%arg0: i32) -> (i32, i32) {
    %c0_i32 = arith.constant 0 : i32
    %c0_i32_0 = arith.constant 0 : i32
    %c0_i32_1 = arith.constant 0 : i32
    return %c0_i32, %c0_i32_0 : i32, i32
  }
  func.func @transform_7(%arg0: i32) -> (i32, i32) {
    %c0_i32 = arith.constant 0 : i32
    %c0_i32_0 = arith.constant 0 : i32
    %c0_i32_1 = arith.constant 0 : i32
    return %c0_i32, %c0_i32_0 : i32, i32
  }
  func.func @transform_8(%arg0: i32) -> (i32, i32) {
    %c0_i32 = arith.constant 0 : i32
    %c0_i32_0 = arith.constant 0 : i32
    %c0_i32_1 = arith.constant 0 : i32
    return %c0_i32, %c0_i32_0 : i32, i32
  }
  func.func @transform_9(%arg0: i32) -> (i32, i32, i32) {
    %c0_i32 = arith.constant 0 : i32
    %c0_i32_0 = arith.constant 0 : i32
    %c0_i32_1 = arith.constant 0 : i32
    return %arg0, %c0_i32, %c0_i32_0 : i32, i32, i32
  }
}

</mosaic_0001>

<bundles_post_ra>
// kernel: net_forward.1
= control target key start
LH: loop header
LB: loop body
LE: loop exit
PB: predicated region body
PF: predicated region fallthrough
CT: control target
= control target key end

     0   :  { %14 = vsyncpa [#allocation6], 0  ;;  %s14002_s0 = inlined_call_operand.vmem [shape: f32[2,2304,36], index: 0, kind: input, shape index: {}]   ;;  %s14003_s1 = inlined_call_operand.vmem [shape: f32[36,128], index: 1, kind: input, shape index: {}]   ;;  %s14004_s2 = inlined_call_operand.vmem [shape: f32[1,128], index: 2, kind: input, shape index: {}]   ;;  %s14005_s3 = inlined_call_operand.vmem [shape: f32[128,64], index: 3, kind: input, shape index: {}]   ;;  %s14006_s4 = inlined_call_operand.vmem [shape: f32[1,64], index: 4, kind: input, shape index: {}]   ;;  %s14007_s5 = inlined_call_operand.vmem [shape: f32[16,132,64], index: 5, kind: input, shape index: {}]   ;;  %s14008_s6 = inlined_call_operand.vmem [shape: f32[1,16], index: 6, kind: input, shape index: {}]   ;;  %s14009_s7 = inlined_call_operand.vmem [shape: f32[16,2], index: 7, kind: input, shape index: {}]   ;;  %s14010_s8 = inlined_call_operand.vmem [shape: f32[1,2], index: 8, kind: input, shape index: {}]   ;;  %s14011_s9 = inlined_call_operand.hbm [shape: f32[2,1,2], index: 9, kind: output, shape index: {}]  }
   0x1   :  { %16 = vsyncpa [#allocation6 + $0x1], 0  ;;  %s8594_s30 = smov 0   ;;  %s8596_s10 = smov 0  }
   0x2   :  { %s8598_s11 = smov 0   ;;  %s8600_s12 = smov 0  }
   0x3 LB: > { %s8615_s13 = sadd.s32 4294967295, %s8538_s12   ;;  %s6858_s14 = sadd.s32 4294967294, %s8538_s12   ;;  %s8538_s12 = sphi %s8600_s12, %s14026_s12   ;;  %s8534_s11 = sphi %s8598_s11, %s14025_s11   ;;  %s8530_s10 = sphi %s8596_s10, %s14024_s10   ;;  %s8526_s30 = sphi %s8594_s30, %s14023_s30  }
   0x4   : > { %s8619_s15 = sadd.s32 1, %s8538_s12   ;;  %s223_s16 = sadd.s32 1, %s8534_s11 }
   0x5   : > { %s220_s17 = ssub.s32 %s8538_s12, %s8619_s15  ;;  %p233_p0 = scmp.ne.s32.totalorder %s8534_s11, %s8530_s10 }
   0x6   : > { %p221_p1 = scmp.eq.s32.totalorder %s220_s17, 0  ;;  %p234_p2 = scmp.eq.s32.totalorder %s8615_s13, 1 }
   0x7   : > { %p239_p3 = scmp.ne.s32.totalorder %s8530_s10, %s8526_s30  ;;  %p240_p4 = scmp.eq.s32.totalorder %s6858_s14, 1 }
   0x8   : > { %s8630_s18 = scalar_select %p221_p1, %s8534_s11, %s223_s16  }
   0x9   : > { %p8632_p5 = por %p234_p2, %p233_p0  ;;  %p8636_p6 = por %p240_p4, %p239_p3 }
   0xa   : > { %p6861_p7 = scmp.ge.s32.totalorder %s8538_s12, 1  ;;  %p290_p8 = scmp.lt.s32.totalorder %s8538_s12, 3 }
   0xc   : > { %p291_p9 = pnand %p6861_p7, %p290_p8 }
   0xe   : > { %294 = sbr.rel (%p291_p9) target bundleno = 1717 (0x6b5), region = 56 }
  0x15   : > { %v618_v0 = vld [vmem:[%s14003_s1] sm:$0xff]  ;;  %v619_v1 = vld [vmem:[%s14003_s1 + $0x8] sm:$0xff]  ;;  %v620_v2 = vld [vmem:[%s14003_s1 + $0x10] sm:$0xff]  ;;  %p325_p10 = scmp.lt.s32.totalorder %s8615_s13, 1  ;;  %vm630_vm0 = vcmask 293888   ;;  %vm1495_vm1 = vcmask 1043456  }
  0x16   : > { %v8371_v3 = vpack.c.bf16 %v619_v1, %v618_v0  ;;  %v621_v4 = vld [vmem:[%s14003_s1 + $0x18] sm:$0xff]  ;;  %v622_v6 = vld [vmem:[%s14003_s1 + $0x20] sm:$0xf]  ;;  %vm5299_vm10 = vcmask 523264   ;;  %vm5482_vm11 = vcmask 519168   ;;  %vm8542_vm12 = vmmov 0  }
  0x17   : > { %v8375_v5 = vpack.c.bf16 %v621_v4, %v620_v2  ;;  %s326_s29 = scalar_select %p325_p10, %s8615_s13, 1 }
  0x18   : > { %8372 = vmatprep.subr.bf16.mxu0 %v8371_v3  ;;  %8414 = vmatprep.subr.bf16.mxu1 %v8371_v3  ;;  %s323_s25 = sand.u32 1, %s8530_s10   ;;  %s7410_s26 = sshll.u32 %s8615_s13, 4 }
  0x19   : > { %8374 = vmatpush3.bf16.msra.mxu0 %v8371_v3  ;;  %s8420_s14 = smul.u32 2304, %s326_s29  ;;  %8417 = vmatpush3.bf16.msra.mxu1 %v8371_v3  ;;  %s6791_s16 = scalar_lea.sflag [#allocation6], %s323_s25 }
  0x1a   : > { %8376 = vmatprep.subr.bf16.mxu0 %v8375_v5  ;;  %8415 = vmatprep.subr.bf16.mxu1 %v8375_v5  ;;  %s8543_s13 = smov [#allocation5]  }
  0x1b   : > { %s8662_s23 = scalar_lea.vmem %s14002_s0, %s8420_s14  ;;  %s13959_s14 = scalar_lea.hbm %s14011_s9, %s7410_s26 }
  0x1c   : > { %v330_v7 = vld [vmem:[%s8662_s23] sm:$0xff]  ;;  %v331_v8 = vld [vmem:[%s8662_s23 + $0x8] sm:$0xff]  ;;  %v332_v9 = vld [vmem:[%s8662_s23 + $0x10] sm:$0xff]  ;;  %s8480_s21 = sshll.u32 %s8543_s13, 4  ;;  %s8481_s21 = int_to_ptr.vmem [resolvable:$false] %s8480_s21 }
  0x1d   : > { %8378 = vmatpush3.bf16.msra.mxu0 %v8375_v5  ;;  %7801 = vmatprep.mubr.msk.f32.mxu0 %vm630_vm0, %v330_v7  ;;  %v333_v10 = vld [vmem:[%s8662_s23 + $0x18] sm:$0xff]  ;;  %v334_v11 = vld [vmem:[%s8662_s23 + $0x20] sm:$0xff]  ;;  %v335_v12 = vld [vmem:[%s8662_s23 + $0x28] sm:$0xff]  ;;  %s8482_s22 = scalar_lea.vmem %s8481_s21, 32 }
  0x1e   : > { %7799 = vmatprep.subr.msk.mxu0 %vm1495_vm1, %v622_v6  ;;  %8418 = vmatpush3.bf16.msra.mxu1 %v8375_v5  ;;  %v336_v13 = vld [vmem:[%s8662_s23 + $0x30] sm:$0xff]  ;;  %v337_v15 = vld [vmem:[%s8662_s23 + $0x38] sm:$0xff]  ;;  %v338_v17 = vld [vmem:[%s8662_s23 + $0x40] sm:$0xff] }
  0x1f   : > { %8416 = vmatprep.subr.msk.mxu1 %vm1495_vm1, %v622_v6  ;;  %v508_v14 = vld [vmem:[%s8662_s23 + $0x590] sm:$0xff]  ;;  %v509_v16 = vld [vmem:[%s8662_s23 + $0x598] sm:$0xff]  ;;  %v510_v18 = vld [vmem:[%s8662_s23 + $0x5a0] sm:$0xff] }
  0x20   : > { %8068 = vmatprep.mubr.msk.f32.mxu1 %vm630_vm0, %v508_v14  ;;  %v511_v19 = vld [vmem:[%s8662_s23 + $0x5a8] sm:$0xff]  ;;  %v512_v20 = vld [vmem:[%s8662_s23 + $0x5b0] sm:$0xff]  ;;  %v513_v23 = vld [vmem:[%s8662_s23 + $0x5b8] sm:$0xff] }
  0x21   : > { %7800 = vmatpush3.msk.msra.mxu0 %vm1495_vm1, %v622_v6  ;;  %v339_v21 = vld [vmem:[%s8662_s23 + $0x48] sm:$0xff]  ;;  %v340_v22 = vld [vmem:[%s8662_s23 + $0x50] sm:$0xff]  ;;  %v514_v24 = vld [vmem:[%s8662_s23 + $0x5c0] sm:$0xff] }
  0x22   : > { %7802 = vmatmul.mubr.msk.f32.vlgmr.msra.gmra.mrb[0].mxu0 %vm630_vm0, %v331_v8  ;;  %8419 = vmatpush3.msk.msra.mxu1 %vm1495_vm1, %v622_v6  ;;  %v341_v25 = vld [vmem:[%s8662_s23 + $0x58] sm:$0xff]  ;;  %v342_v26 = vld [vmem:[%s8662_s23 + $0x60] sm:$0xff]  ;;  %v515_v27 = vld [vmem:[%s8662_s23 + $0x5c8] sm:$0xff] }
  0x23   : > { %7804 = vmatprep.mubr.msk.f32.mxu0 %vm630_vm0, %v332_v9  ;;  %8069 = vmatmul.mubr.msk.f32.vlgmr.msra.gmra.mrb[0].mxu1 %vm630_vm0, %v509_v16  ;;  %v516_v28 = vld [vmem:[%s8662_s23 + $0x5d0] sm:$0xff]  ;;  %v343_v29 = vld [vmem:[%s8662_s23 + $0x68] sm:$0xff]  ;;  %v517_v31 = vld [vmem:[%s8662_s23 + $0x5d8] sm:$0xff] }
  0x24   : > { %8071 = vmatprep.mubr.msk.f32.mxu1 %vm630_vm0, %v510_v18  ;;  %v344_v30 = vld [vmem:[%s8662_s23 + $0x70] sm:$0xff]  ;;  %v518_v32 = vld [vmem:[%s8662_s23 + $0x5e0] sm:$0xff]  ;;  %v345_v33 = vld [vmem:[%s8662_s23 + $0x78] sm:$0xff] }
  0x25   : > { %v346_v34 = vld [vmem:[%s8662_s23 + $0x80] sm:$0xff]  ;;  %v519_v35 = vld [vmem:[%s8662_s23 + $0x5e8] sm:$0xff]  ;;  %v520_v36 = vld [vmem:[%s8662_s23 + $0x5f0] sm:$0xff] }
  0x26   : > { %7805 = vmatmul.mubr.msk.f32.gmra.mrb[2].mxu0 %vm630_vm0, %v333_v10  ;;  %v347_v37 = vld [vmem:[%s8662_s23 + $0x88] sm:$0xff]  ;;  %v348_v38 = vld [vmem:[%s8662_s23 + $0x90] sm:$0xff]  ;;  %v521_v39 = vld [vmem:[%s8662_s23 + $0x5f8] sm:$0xff] }
  0x27   : > { %7807 = vmatprep.mubr.msk.f32.mxu0 %vm630_vm0, %v334_v11  ;;  %8072 = vmatmul.mubr.msk.f32.gmra.mrb[2].mxu1 %vm630_vm0, %v511_v19  ;;  %v522_v40 = vld [vmem:[%s8662_s23 + $0x600] sm:$0xff]  ;;  %v349_v41 = vld [vmem:[%s8662_s23 + $0x98] sm:$0xff]  ;;  %v523_v43 = vld [vmem:[%s8662_s23 + $0x608] sm:$0xff] }
  0x28   : > { %8074 = vmatprep.mubr.msk.f32.mxu1 %vm630_vm0, %v512_v20  ;;  %v350_v42 = vld [vmem:[%s8662_s23 + $0xa0] sm:$0xff]  ;;  %v524_v44 = vld [vmem:[%s8662_s23 + $0x610] sm:$0xff]  ;;  %v351_v45 = vld [vmem:[%s8662_s23 + $0xa8] sm:$0xff] }
  0x29   : > { %v352_v46 = vld [vmem:[%s8662_s23 + $0xb0] sm:$0xff]  ;;  %v525_v47 = vld [vmem:[%s8662_s23 + $0x618] sm:$0xff]  ;;  %v526_v48 = vld [vmem:[%s8662_s23 + $0x620] sm:$0xff] }
  0x2a   : > { %7808 = vmatmul.mubr.msk.f32.gmra.mrb[4].mxu0 %vm630_vm0, %v335_v12  ;;  %v353_v49 = vld [vmem:[%s8662_s23 + $0xb8] sm:$0xff]  ;;  %v354_v50 = vld [vmem:[%s8662_s23 + $0xc0] sm:$0xff]  ;;  %v527_v51 = vld [vmem:[%s8662_s23 + $0x628] sm:$0xff] }
  0x2b   : > { %7810 = vmatprep.mubr.msk.f32.mxu0 %vm630_vm0, %v336_v13  ;;  %8075 = vmatmul.mubr.msk.f32.gmra.mrb[4].mxu1 %vm630_vm0, %v513_v23  ;;  %v528_v52 = vld [vmem:[%s8662_s23 + $0x630] sm:$0xff]  ;;  %v355_v53 = vld [vmem:[%s8662_s23 + $0xc8] sm:$0xff]  ;;  %v529_v55 = vld [vmem:[%s8662_s23 + $0x638] sm:$0xff] }
  0x2c   : > { %8077 = vmatprep.mubr.msk.f32.mxu1 %vm630_vm0, %v514_v24  ;;  %v356_v54 = vld [vmem:[%s8662_s23 + $0xd0] sm:$0xff]  ;;  %v530_v56 = vld [vmem:[%s8662_s23 + $0x640] sm:$0xff]  ;;  %v357_v57 = vld [vmem:[%s8662_s23 + $0xd8] sm:$0xff] }
  0x2d   : > { %v358_v58 = vld [vmem:[%s8662_s23 + $0xe0] sm:$0xff]  ;;  %v531_v59 = vld [vmem:[%s8662_s23 + $0x648] sm:$0xff]  ;;  %v532_v60 = vld [vmem:[%s8662_s23 + $0x650] sm:$0xff] }
  0x2e   : > { %7811 = vmatmul.mubr.msk.f32.gmra.mrb[6].mxu0 %vm630_vm0, %v337_v15  ;;  %v359_v61 = vld [vmem:[%s8662_s23 + $0xe8] sm:$0xff]  ;;  %v360_v62 = vld [vmem:[%s8662_s23 + $0xf0] sm:$0xff]  ;;  %v533_v63 = vld [vmem:[%s8662_s23 + $0x658] sm:$0xff] }
  0x2f   : > { %7813 = vmatprep.mubr.msk.f32.mxu0 %vm630_vm0, %v338_v17  ;;  %8078 = vmatmul.mubr.msk.f32.gmra.mrb[6].mxu1 %vm630_vm0, %v515_v27  ;;  %v534_v0 = vld [vmem:[%s8662_s23 + $0x660] sm:$0xff]  ;;  %v361_v1 = vld [vmem:[%s8662_s23 + $0xf8] sm:$0xff]  ;;  %v535_v3 = vld [vmem:[%s8662_s23 + $0x668] sm:$0xff] }
  0x30   : > { %8080 = vmatprep.mubr.msk.f32.mxu1 %vm630_vm0, %v516_v28  ;;  %v362_v2 = vld [vmem:[%s8662_s23 + $0x100] sm:$0xff]  ;;  %v536_v4 = vld [vmem:[%s8662_s23 + $0x670] sm:$0xff]  ;;  %v363_v5 = vld [vmem:[%s8662_s23 + $0x108] sm:$0xff] }
  0x31   : > { %v364_v6 = vld [vmem:[%s8662_s23 + $0x110] sm:$0xff]  ;;  %v537_v7 = vld [vmem:[%s8662_s23 + $0x678] sm:$0xff]  ;;  %v538_v8 = vld [vmem:[%s8662_s23 + $0x680] sm:$0xff] }
  0x32   : > { %7814 = vmatmul.mubr.msk.f32.gmra.mrb[8].mxu0 %vm630_vm0, %v339_v21  ;;  %v365_v9 = vld [vmem:[%s8662_s23 + $0x118] sm:$0xff]  ;;  %v366_v10 = vld [vmem:[%s8662_s23 + $0x120] sm:$0xff]  ;;  %v539_v11 = vld [vmem:[%s8662_s23 + $0x688] sm:$0xff] }
  0x33   : > { %7816 = vmatprep.mubr.msk.f32.mxu0 %vm630_vm0, %v340_v22  ;;  %8081 = vmatmul.mubr.msk.f32.gmra.mrb[8].mxu1 %vm630_vm0, %v517_v31  ;;  %v540_v12 = vld [vmem:[%s8662_s23 + $0x690] sm:$0xff]  ;;  %v367_v13 = vld [vmem:[%s8662_s23 + $0x128] sm:$0xff]  ;;  %v541_v15 = vld [vmem:[%s8662_s23 + $0x698] sm:$0xff] }
  0x34   : > { %8083 = vmatprep.mubr.msk.f32.mxu1 %vm630_vm0, %v518_v32  ;;  %v368_v14 = vld [vmem:[%s8662_s23 + $0x130] sm:$0xff]  ;;  %v542_v16 = vld [vmem:[%s8662_s23 + $0x6a0] sm:$0xff]  ;;  %v369_v17 = vld [vmem:[%s8662_s23 + $0x138] sm:$0xff] }
  0x35   : > { %v370_v18 = vld [vmem:[%s8662_s23 + $0x140] sm:$0xff]  ;;  %v543_v19 = vld [vmem:[%s8662_s23 + $0x6a8] sm:$0xff]  ;;  %v544_v20 = vld [vmem:[%s8662_s23 + $0x6b0] sm:$0xff] }
  0x36   : > { %7817 = vmatmul.mubr.msk.f32.gmra.mrb[10].mxu0 %vm630_vm0, %v341_v25  ;;  %v371_v21 = vld [vmem:[%s8662_s23 + $0x148] sm:$0xff]  ;;  %v372_v22 = vld [vmem:[%s8662_s23 + $0x150] sm:$0xff]  ;;  %v545_v23 = vld [vmem:[%s8662_s23 + $0x6b8] sm:$0xff] }
  0x37   : > { %7819 = vmatprep.mubr.msk.f32.mxu0 %vm630_vm0, %v342_v26  ;;  %8084 = vmatmul.mubr.msk.f32.gmra.mrb[10].mxu1 %vm630_vm0, %v519_v35  ;;  %v546_v24 = vld [vmem:[%s8662_s23 + $0x6c0] sm:$0xff]  ;;  %v373_v25 = vld [vmem:[%s8662_s23 + $0x158] sm:$0xff]  ;;  %v547_v27 = vld [vmem:[%s8662_s23 + $0x6c8] sm:$0xff] }
  0x38   : > { %8086 = vmatprep.mubr.msk.f32.mxu1 %vm630_vm0, %v520_v36  ;;  %v374_v26 = vld [vmem:[%s8662_s23 + $0x160] sm:$0xff]  ;;  %v548_v28 = vld [vmem:[%s8662_s23 + $0x6d0] sm:$0xff]  ;;  %v549_v31 = vld [vmem:[%s8662_s23 + $0x6d8] sm:$0xff] }
  0x39   : > { %v550_v32 = vld [vmem:[%s8662_s23 + $0x6e0] sm:$0xff]  ;;  %v551_v35 = vld [vmem:[%s8662_s23 + $0x6e8] sm:$0xff]  ;;  %v552_v36 = vld [vmem:[%s8662_s23 + $0x6f0] sm:$0xff] }
  0x3a   : > { %7820 = vmatmul.mubr.msk.f32.gmra.mrb[12].mxu0 %vm630_vm0, %v343_v29  ;;  %v375_v29 = vld [vmem:[%s8662_s23 + $0x168] sm:$0xff] }
  0x3b   : > { %7822 = vmatprep.mubr.msk.f32.mxu0 %vm630_vm0, %v344_v30  ;;  %8087 = vmatmul.mubr.msk.f32.gmra.mrb[12].mxu1 %vm630_vm0, %v521_v39  ;;  %v376_v30 = vld [vmem:[%s8662_s23 + $0x170] sm:$0xff]  ;;  %v553_v39 = vld [vmem:[%s8662_s23 + $0x6f8] sm:$0xff] }
  0x3c   : > { %8089 = vmatprep.mubr.msk.f32.mxu1 %vm630_vm0, %v522_v40  ;;  %v554_v40 = vld [vmem:[%s8662_s23 + $0x700] sm:$0xff] }
  0x3e   : > { %7823 = vmatmul.mubr.msk.f32.gmra.mrb[14].mxu0 %vm630_vm0, %v345_v33  ;;  %v377_v33 = vld [vmem:[%s8662_s23 + $0x178] sm:$0xff] }
  0x3f   : > { %7825 = vmatprep.mubr.msk.f32.mxu0 %vm630_vm0, %v346_v34  ;;  %8090 = vmatmul.mubr.msk.f32.gmra.mrb[14].mxu1 %vm630_vm0, %v523_v43  ;;  %v378_v34 = vld [vmem:[%s8662_s23 + $0x180] sm:$0xff]  ;;  %v555_v43 = vld [vmem:[%s8662_s23 + $0x708] sm:$0xff] }
  0x40   : > { %8092 = vmatprep.mubr.msk.f32.mxu1 %vm630_vm0, %v524_v44  ;;  %v556_v44 = vld [vmem:[%s8662_s23 + $0x710] sm:$0xff] }
  0x42   : > { %7826 = vmatmul.mubr.msk.f32.gmra.mrb[16].mxu0 %vm630_vm0, %v347_v37  ;;  %v379_v37 = vld [vmem:[%s8662_s23 + $0x188] sm:$0xff] }
  0x43   : > { %7828 = vmatprep.mubr.msk.f32.mxu0 %vm630_vm0, %v348_v38  ;;  %8093 = vmatmul.mubr.msk.f32.gmra.mrb[16].mxu1 %vm630_vm0, %v525_v47  ;;  %v380_v38 = vld [vmem:[%s8662_s23 + $0x190] sm:$0xff]  ;;  %v557_v47 = vld [vmem:[%s8662_s23 + $0x718] sm:$0xff] }
  0x44   : > { %8095 = vmatprep.mubr.msk.f32.mxu1 %vm630_vm0, %v526_v48  ;;  %v558_v48 = vld [vmem:[%s8662_s23 + $0x720] sm:$0xff] }
  0x46   : > { %7829 = vmatmul.mubr.msk.f32.gmra.mrb[18].mxu0 %vm630_vm0, %v349_v41  ;;  %v381_v41 = vld [vmem:[%s8662_s23 + $0x198] sm:$0xff] }
  0x47   : > { %7831 = vmatprep.mubr.msk.f32.mxu0 %vm630_vm0, %v350_v42  ;;  %8096 = vmatmul.mubr.msk.f32.gmra.mrb[18].mxu1 %vm630_vm0, %v527_v51  ;;  %v382_v42 = vld [vmem:[%s8662_s23 + $0x1a0] sm:$0xff]  ;;  %v559_v51 = vld [vmem:[%s8662_s23 + $0x728] sm:$0xff] }
  0x48   : > { %8098 = vmatprep.mubr.msk.f32.mxu1 %vm630_vm0, %v528_v52  ;;  %v560_v52 = vld [vmem:[%s8662_s23 + $0x730] sm:$0xff] }
  0x4a   : > { %7832 = vmatmul.mubr.msk.f32.gmra.mrb[20].mxu0 %vm630_vm0, %v351_v45  ;;  %v383_v45 = vld [vmem:[%s8662_s23 + $0x1a8] sm:$0xff] }
  0x4b   : > { %7834 = vmatprep.mubr.msk.f32.mxu0 %vm630_vm0, %v352_v46  ;;  %8099 = vmatmul.mubr.msk.f32.gmra.mrb[20].mxu1 %vm630_vm0, %v529_v55  ;;  %v384_v46 = vld [vmem:[%s8662_s23 + $0x1b0] sm:$0xff]  ;;  %v561_v55 = vld [vmem:[%s8662_s23 + $0x738] sm:$0xff] }
  0x4c   : > { %8101 = vmatprep.mubr.msk.f32.mxu1 %vm630_vm0, %v530_v56  ;;  %v562_v56 = vld [vmem:[%s8662_s23 + $0x740] sm:$0xff] }
  0x4e   : > { %7835 = vmatmul.mubr.msk.f32.gmra.mrb[22].mxu0 %vm630_vm0, %v353_v49  ;;  %v385_v49 = vld [vmem:[%s8662_s23 + $0x1b8] sm:$0xff] }
  0x4f   : > { %7837 = vmatprep.mubr.msk.f32.mxu0 %vm630_vm0, %v354_v50  ;;  %8102 = vmatmul.mubr.msk.f32.gmra.mrb[22].mxu1 %vm630_vm0, %v531_v59  ;;  %v386_v50 = vld [vmem:[%s8662_s23 + $0x1c0] sm:$0xff]  ;;  %v563_v59 = vld [vmem:[%s8662_s23 + $0x748] sm:$0xff] }
  0x50   : > { %8104 = vmatprep.mubr.msk.f32.mxu1 %vm630_vm0, %v532_v60  ;;  %v564_v60 = vld [vmem:[%s8662_s23 + $0x750] sm:$0xff] }
  0x52   : > { %7838 = vmatmul.mubr.msk.f32.gmra.mrb[24].mxu0 %vm630_vm0, %v355_v53  ;;  %v387_v53 = vld [vmem:[%s8662_s23 + $0x1c8] sm:$0xff] }
  0x53   : > { %7840 = vmatprep.mubr.msk.f32.mxu0 %vm630_vm0, %v356_v54  ;;  %8105 = vmatmul.mubr.msk.f32.gmra.mrb[24].mxu1 %vm630_vm0, %v533_v63  ;;  %v388_v54 = vld [vmem:[%s8662_s23 + $0x1d0] sm:$0xff]  ;;  %v565_v63 = vld [vmem:[%s8662_s23 + $0x758] sm:$0xff] }
  0x54   : > { %8107 = vmatprep.mubr.msk.f32.mxu1 %vm630_vm0, %v534_v0  ;;  %v566_v0 = vld [vmem:[%s8662_s23 + $0x760] sm:$0xff] }
  0x56   : > { %7841 = vmatmul.mubr.msk.f32.gmra.mrb[26].mxu0 %vm630_vm0, %v357_v57  ;;  %v389_v57 = vld [vmem:[%s8662_s23 + $0x1d8] sm:$0xff] }
  0x57   : > { %7843 = vmatprep.mubr.msk.f32.mxu0 %vm630_vm0, %v358_v58  ;;  %8108 = vmatmul.mubr.msk.f32.gmra.mrb[26].mxu1 %vm630_vm0, %v535_v3  ;;  %v390_v58 = vld [vmem:[%s8662_s23 + $0x1e0] sm:$0xff]  ;;  %v567_v3 = vld [vmem:[%s8662_s23 + $0x768] sm:$0xff] }
  0x58   : > { %8110 = vmatprep.mubr.msk.f32.mxu1 %vm630_vm0, %v536_v4  ;;  %v568_v4 = vld [vmem:[%s8662_s23 + $0x770] sm:$0xff] }
  0x5a   : > { %7844 = vmatmul.mubr.msk.f32.gmra.mrb[28].mxu0 %vm630_vm0, %v359_v61  ;;  %v391_v61 = vld [vmem:[%s8662_s23 + $0x1e8] sm:$0xff] }
  0x5b   : > { %7846 = vmatprep.mubr.msk.f32.mxu0 %vm630_vm0, %v360_v62  ;;  %8111 = vmatmul.mubr.msk.f32.gmra.mrb[28].mxu1 %vm630_vm0, %v537_v7  ;;  %v392_v62 = vld [vmem:[%s8662_s23 + $0x1f0] sm:$0xff]  ;;  %v569_v7 = vld [vmem:[%s8662_s23 + $0x778] sm:$0xff] }
  0x5c   : > { %8113 = vmatprep.mubr.msk.f32.mxu1 %vm630_vm0, %v538_v8  ;;  %v570_v8 = vld [vmem:[%s8662_s23 + $0x780] sm:$0xff] }
  0x5e   : > { %7847 = vmatmul.mubr.msk.f32.gmra.mrb[30].mxu0 %vm630_vm0, %v361_v1  ;;  %v393_v1 = vld [vmem:[%s8662_s23 + $0x1f8] sm:$0xff] }
  0x5f   : > { %7849 = vmatprep.mubr.msk.f32.mxu0 %vm630_vm0, %v362_v2  ;;  %8114 = vmatmul.mubr.msk.f32.gmra.mrb[30].mxu1 %vm630_vm0, %v539_v11  ;;  %v394_v2 = vld [vmem:[%s8662_s23 + $0x200] sm:$0xff]  ;;  %v571_v11 = vld [vmem:[%s8662_s23 + $0x788] sm:$0xff] }
  0x60   : > { %8116 = vmatprep.mubr.msk.f32.mxu1 %vm630_vm0, %v540_v12  ;;  %v572_v12 = vld [vmem:[%s8662_s23 + $0x790] sm:$0xff] }
  0x62   : > { %7850 = vmatmul.mubr.msk.f32.gmra.mrb[32].mxu0 %vm630_vm0, %v363_v5  ;;  %v395_v5 = vld [vmem:[%s8662_s23 + $0x208] sm:$0xff] }
  0x63   : > { %7852 = vmatprep.mubr.msk.f32.mxu0 %vm630_vm0, %v364_v6  ;;  %8117 = vmatmul.mubr.msk.f32.gmra.mrb[32].mxu1 %vm630_vm0, %v541_v15  ;;  %v396_v6 = vld [vmem:[%s8662_s23 + $0x210] sm:$0xff]  ;;  %v573_v15 = vld [vmem:[%s8662_s23 + $0x798] sm:$0xff] }
  0x64   : > { %8119 = vmatprep.mubr.msk.f32.mxu1 %vm630_vm0, %v542_v16  ;;  %v574_v16 = vld [vmem:[%s8662_s23 + $0x7a0] sm:$0xff] }
  0x66   : > { %7853 = vmatmul.mubr.msk.f32.gmra.mrb[34].mxu0 %vm630_vm0, %v365_v9  ;;  %v397_v9 = vld [vmem:[%s8662_s23 + $0x218] sm:$0xff] }
  0x67   : > { %7855 = vmatprep.mubr.msk.f32.mxu0 %vm630_vm0, %v366_v10  ;;  %8120 = vmatmul.mubr.msk.f32.gmra.mrb[34].mxu1 %vm630_vm0, %v543_v19  ;;  %v398_v10 = vld [vmem:[%s8662_s23 + $0x220] sm:$0xff]  ;;  %v575_v19 = vld [vmem:[%s8662_s23 + $0x7a8] sm:$0xff] }
  0x68   : > { %8122 = vmatprep.mubr.msk.f32.mxu1 %vm630_vm0, %v544_v20  ;;  %v576_v20 = vld [vmem:[%s8662_s23 + $0x7b0] sm:$0xff] }
  0x6a   : > { %7856 = vmatmul.mubr.msk.f32.gmra.mrb[36].mxu0 %vm630_vm0, %v367_v13  ;;  %v399_v13 = vld [vmem:[%s8662_s23 + $0x228] sm:$0xff] }
  0x6b   : > { %7858 = vmatprep.mubr.msk.f32.mxu0 %vm630_vm0, %v368_v14  ;;  %8123 = vmatmul.mubr.msk.f32.gmra.mrb[36].mxu1 %vm630_vm0, %v545_v23  ;;  %v400_v14 = vld [vmem:[%s8662_s23 + $0x230] sm:$0xff]  ;;  %v577_v23 = vld [vmem:[%s8662_s23 + $0x7b8] sm:$0xff] }
  0x6c   : > { %8125 = vmatprep.mubr.msk.f32.mxu1 %vm630_vm0, %v546_v24  ;;  %v578_v24 = vld [vmem:[%s8662_s23 + $0x7c0] sm:$0xff] }
  0x6e   : > { %7859 = vmatmul.mubr.msk.f32.gmra.mrb[38].mxu0 %vm630_vm0, %v369_v17  ;;  %v401_v17 = vld [vmem:[%s8662_s23 + $0x238] sm:$0xff] }
  0x6f   : > { %7861 = vmatprep.mubr.msk.f32.mxu0 %vm630_vm0, %v370_v18  ;;  %8126 = vmatmul.mubr.msk.f32.gmra.mrb[38].mxu1 %vm630_vm0, %v547_v27  ;;  %v402_v18 = vld [vmem:[%s8662_s23 + $0x240] sm:$0xff]  ;;  %v405_v27 = vld [vmem:[%s8662_s23 + $0x258] sm:$0xff] }
  0x70   : > { %8128 = vmatprep.mubr.msk.f32.mxu1 %vm630_vm0, %v548_v28 }
  0x72   : > { %7862 = vmatmul.mubr.msk.f32.gmra.mrb[40].mxu0 %vm630_vm0, %v371_v21  ;;  %v403_v21 = vld [vmem:[%s8662_s23 + $0x248] sm:$0xff] }
  0x73   : > { %7864 = vmatprep.mubr.msk.f32.mxu0 %vm630_vm0, %v372_v22  ;;  %8129 = vmatmul.mubr.msk.f32.gmra.mrb[40].mxu1 %vm630_vm0, %v549_v31  ;;  %v404_v22 = vld [vmem:[%s8662_s23 + $0x250] sm:$0xff] }
  0x74   : > { %8131 = vmatprep.mubr.msk.f32.mxu1 %vm630_vm0, %v550_v32  ;;  %v580_v31 = vld [vmem:[%s8662_s23 + $0x7d0] sm:$0xff] }
  0x75   : > { %v4784_v32 = vld [vmem:[%s14005_s3 + $0x10] sm:$0xff] }
  0x76   : > { %7865 = vmatmul.mubr.msk.f32.gmra.mrb[42].mxu0 %vm630_vm0, %v373_v25  ;;  %v4782_v25 = vld [vmem:[%s14005_s3] sm:$0xff] }
  0x77   : > { %7867 = vmatprep.mubr.msk.f32.mxu0 %vm630_vm0, %v374_v26  ;;  %8132 = vmatmul.mubr.msk.f32.gmra.mrb[42].mxu1 %vm630_vm0, %v551_v35  ;;  %v4783_v26 = vld [vmem:[%s14005_s3 + $0x8] sm:$0xff] }
  0x78   : > { %8134 = vmatprep.mubr.msk.f32.mxu1 %vm630_vm0, %v552_v36  ;;  %v8379_v28 = vpack.c.bf16 %v4783_v26, %v4782_v25  ;;  %v408_v36 = vld [vmem:[%s8662_s23 + $0x270] sm:$0xff]  ;;  %v425_v25 = vld [vmem:[%s8662_s23 + $0x2f8] sm:$0xff]  ;;  %v426_v26 = vld [vmem:[%s8662_s23 + $0x300] sm:$0xff] }
  0x7a   : > { %7868 = vmatmul.mubr.msk.f32.gmra.mrb[44].mxu0 %vm630_vm0, %v375_v29  ;;  %v406_v29 = vld [vmem:[%s8662_s23 + $0x260] sm:$0xff]  ;;  %8380 = vmatprep.subr.bf16.mxu1 %v8379_v28 }
  0x7b   : > { %7870 = vmatprep.mubr.msk.f32.mxu0 %vm630_vm0, %v376_v30  ;;  %8135 = vmatmul.mubr.msk.f32.gmra.mrb[44].mxu1 %vm630_vm0, %v553_v39  ;;  %v579_v30 = vld [vmem:[%s8662_s23 + $0x7c8] sm:$0xff]  ;;  %v4786_v39 = vld [vmem:[%s14005_s3 + $0x20] sm:$0xff] }
  0x7c   : > { %8137 = vmatprep.mubr.msk.f32.mxu1 %vm630_vm0, %v554_v40  ;;  %8382 = vmatpush3.bf16.msra.mxu1 %v8379_v28  ;;  %v4787_v40 = vld [vmem:[%s14005_s3 + $0x28] sm:$0xff]  ;;  %v600_v28 = vld [vmem:[%s8662_s23 + $0x870] sm:$0xff] }
  0x7e   : > { %7871 = vmatmul.mubr.msk.f32.gmra.mrb[46].mxu0 %vm630_vm0, %v377_v33  ;;  %v4785_v33 = vld [vmem:[%s14005_s3 + $0x18] sm:$0xff] }
  0x7f   : > { %7873 = vmatprep.mubr.msk.f32.mxu0 %vm630_vm0, %v378_v34  ;;  %8138 = vmatmul.mubr.msk.f32.gmra.mrb[46].mxu1 %vm630_vm0, %v555_v43  ;;  %v407_v34 = vld [vmem:[%s8662_s23 + $0x268] sm:$0xff]  ;;  %v8383_v35 = vpack.c.bf16 %v4785_v33, %v4784_v32  ;;  %v410_v43 = vld [vmem:[%s8662_s23 + $0x280] sm:$0xff]  ;;  %v429_v33 = vld [vmem:[%s8662_s23 + $0x318] sm:$0xff] }
  0x80   : > { %8140 = vmatprep.mubr.msk.f32.mxu1 %vm630_vm0, %v556_v44  ;;  %v583_v44 = vld [vmem:[%s8662_s23 + $0x7e8] sm:$0xff]  ;;  %v602_v32 = vld [vmem:[%s8662_s23 + $0x880] sm:$0xff] }
  0x81   : > { %8384 = vmatprep.subr.bf16.mxu1 %v8383_v35 }
  0x82   : > { %7874 = vmatmul.mubr.msk.f32.gmra.mrb[48].mxu0 %vm630_vm0, %v379_v37  ;;  %v581_v37 = vld [vmem:[%s8662_s23 + $0x7d8] sm:$0xff]  ;;  %8386 = vmatpush3.bf16.msra.mxu1 %v8383_v35  ;;  %v603_v35 = vld [vmem:[%s8662_s23 + $0x888] sm:$0xff] }
  0x83   : > { %7876 = vmatprep.mubr.msk.f32.mxu0 %vm630_vm0, %v380_v38  ;;  %8141 = vmatmul.mubr.msk.f32.gmra.mrb[48].mxu1 %vm630_vm0, %v557_v47  ;;  %v582_v38 = vld [vmem:[%s8662_s23 + $0x7e0] sm:$0xff]  ;;  %v4789_v47 = vld [vmem:[%s14005_s3 + $0x38] sm:$0xff] }
  0x84   : > { %8143 = vmatprep.mubr.msk.f32.mxu1 %vm630_vm0, %v558_v48  ;;  %v411_v48 = vld [vmem:[%s8662_s23 + $0x288] sm:$0xff] }
  0x86   : > { %7877 = vmatmul.mubr.msk.f32.gmra.mrb[50].mxu0 %vm630_vm0, %v381_v41  ;;  %v409_v41 = vld [vmem:[%s8662_s23 + $0x278] sm:$0xff] }
  0x87   : > { %7879 = vmatprep.mubr.msk.f32.mxu0 %vm630_vm0, %v382_v42  ;;  %8144 = vmatmul.mubr.msk.f32.gmra.mrb[50].mxu1 %vm630_vm0, %v559_v51  ;;  %v8387_v42 = vpack.c.bf16 %v4787_v40, %v4786_v39  ;;  %v585_v51 = vld [vmem:[%s8662_s23 + $0x7f8] sm:$0xff]  ;;  %v606_v40 = vld [vmem:[%s8662_s23 + $0x8a0] sm:$0xff] }
  0x88   : > { %8146 = vmatprep.mubr.msk.f32.mxu1 %vm630_vm0, %v560_v52  ;;  %v586_v52 = vld [vmem:[%s8662_s23 + $0x800] sm:$0xff]  ;;  %v605_v39 = vld [vmem:[%s8662_s23 + $0x898] sm:$0xff] }
  0x89   : > { %8388 = vmatprep.subr.bf16.mxu1 %v8387_v42 }
  0x8a   : > { %7880 = vmatmul.mubr.msk.f32.gmra.mrb[52].mxu0 %vm630_vm0, %v383_v45  ;;  %v584_v45 = vld [vmem:[%s8662_s23 + $0x7f0] sm:$0xff]  ;;  %8390 = vmatpush3.bf16.msra.mxu1 %v8387_v42  ;;  %v434_v42 = vld [vmem:[%s8662_s23 + $0x340] sm:$0xff] }
  0x8b   : > { %7882 = vmatprep.mubr.msk.f32.mxu0 %vm630_vm0, %v384_v46  ;;  %8147 = vmatmul.mubr.msk.f32.gmra.mrb[52].mxu1 %vm630_vm0, %v561_v55  ;;  %v4788_v46 = vld [vmem:[%s14005_s3 + $0x30] sm:$0xff]  ;;  %v413_v55 = vld [vmem:[%s8662_s23 + $0x298] sm:$0xff] }
  0x8c   : > { %8149 = vmatprep.mubr.msk.f32.mxu1 %vm630_vm0, %v562_v56 }
  0x8e   : > { %7883 = vmatmul.mubr.msk.f32.gmra.mrb[54].mxu0 %vm630_vm0, %v385_v49  ;;  %v8391_v49 = vpack.c.bf16 %v4789_v47, %v4788_v46  ;;  %v436_v46 = vld [vmem:[%s8662_s23 + $0x350] sm:$0xff]  ;;  %v609_v47 = vld [vmem:[%s8662_s23 + $0x8b8] sm:$0xff] }
  0x8f   : > { %7885 = vmatprep.mubr.msk.f32.mxu0 %vm630_vm0, %v386_v50  ;;  %8150 = vmatmul.mubr.msk.f32.gmra.mrb[54].mxu1 %vm630_vm0, %v563_v59  ;;  %v412_v50 = vld [vmem:[%s8662_s23 + $0x290] sm:$0xff] }
  0x90   : > { %8152 = vmatprep.mubr.msk.f32.mxu1 %vm630_vm0, %v564_v60  ;;  %8392 = vmatprep.subr.bf16.mxu1 %v8391_v49  ;;  %v588_v59 = vld [vmem:[%s8662_s23 + $0x810] sm:$0xff] }
  0x91   : > { %8394 = vmatpush3.bf16.msra.mxu1 %v8391_v49  ;;  %v4792_v60 = vld [vmem:[%s14005_s3 + $0x50] sm:$0xff]  ;;  %v437_v49 = vld [vmem:[%s8662_s23 + $0x358] sm:$0xff] }
  0x92   : > { %7886 = vmatmul.mubr.msk.f32.gmra.mrb[56].mxu0 %vm630_vm0, %v387_v53  ;;  %v4790_v53 = vld [vmem:[%s14005_s3 + $0x40] sm:$0xff] }
  0x93   : > { %7888 = vmatprep.mubr.msk.f32.mxu0 %vm630_vm0, %v388_v54  ;;  %8153 = vmatmul.mubr.msk.f32.gmra.mrb[56].mxu1 %vm630_vm0, %v565_v63  ;;  %v4791_v54 = vld [vmem:[%s14005_s3 + $0x48] sm:$0xff] }
  0x94   : > { %8155 = vmatprep.mubr.msk.f32.mxu1 %vm630_vm0, %v566_v0  ;;  %v8395_v56 = vpack.c.bf16 %v4791_v54, %v4790_v53  ;;  %v416_v0 = vld [vmem:[%s8662_s23 + $0x2b0] sm:$0xff] }
  0x95   : > { %v612_v54 = vld [vmem:[%s8662_s23 + $0x8d0] sm:$0xff] }
  0x96   : > { %7889 = vmatmul.mubr.msk.f32.gmra.mrb[58].mxu0 %vm630_vm0, %v389_v57  ;;  %v414_v57 = vld [vmem:[%s8662_s23 + $0x2a0] sm:$0xff]  ;;  %8396 = vmatprep.subr.bf16.mxu1 %v8395_v56 }
  0x97   : > { %7891 = vmatprep.mubr.msk.f32.mxu0 %vm630_vm0, %v390_v58  ;;  %8156 = vmatmul.mubr.msk.f32.gmra.mrb[58].mxu1 %vm630_vm0, %v567_v3  ;;  %v587_v58 = vld [vmem:[%s8662_s23 + $0x808] sm:$0xff]  ;;  %v4794_v3 = vld [vmem:[%s14005_s3 + $0x60] sm:$0xff] }
  0x98   : > { %8158 = vmatprep.mubr.msk.f32.mxu1 %vm630_vm0, %v568_v4  ;;  %8398 = vmatpush3.bf16.msra.mxu1 %v8395_v56  ;;  %v4795_v4 = vld [vmem:[%s14005_s3 + $0x68] sm:$0xff]  ;;  %v440_v56 = vld [vmem:[%s8662_s23 + $0x370] sm:$0xff] }
  0x9a   : > { %7892 = vmatmul.mubr.msk.f32.gmra.mrb[60].mxu0 %vm630_vm0, %v391_v61  ;;  %v4793_v61 = vld [vmem:[%s14005_s3 + $0x58] sm:$0xff] }
  0x9b   : > { %7894 = vmatprep.mubr.msk.f32.mxu0 %vm630_vm0, %v392_v62  ;;  %8159 = vmatmul.mubr.msk.f32.gmra.mrb[60].mxu1 %vm630_vm0, %v569_v7  ;;  %v415_v62 = vld [vmem:[%s8662_s23 + $0x2a8] sm:$0xff]  ;;  %v8399_v63 = vpack.c.bf16 %v4793_v61, %v4792_v60  ;;  %v418_v7 = vld [vmem:[%s8662_s23 + $0x2c0] sm:$0xff]  ;;  %v441_v61 = vld [vmem:[%s8662_s23 + $0x378] sm:$0xff] }
  0x9c   : > { %8161 = vmatprep.mubr.msk.f32.mxu1 %vm630_vm0, %v570_v8  ;;  %v591_v8 = vld [vmem:[%s8662_s23 + $0x828] sm:$0xff]  ;;  %v614_v60 = vld [vmem:[%s8662_s23 + $0x8e0] sm:$0xff] }
  0x9d   : > { %8400 = vmatprep.subr.bf16.mxu1 %v8399_v63 }
  0x9e   : > { %7895 = vmatmul.mubr.msk.f32.gmra.mrb[62].mxu0 %vm630_vm0, %v393_v1  ;;  %v589_v1 = vld [vmem:[%s8662_s23 + $0x818] sm:$0xff]  ;;  %8402 = vmatpush3.bf16.msra.mxu1 %v8399_v63  ;;  %v9152_v63 = vld [vmem:[%s14004_s2] ss:$0 sm:$0xff] }
  0x9f   : > { %7897 = vmatprep.mubr.msk.f32.mxu0 %vm630_vm0, %v394_v2  ;;  %8162 = vmatmul.mubr.msk.f32.gmra.mrb[62].mxu1 %vm630_vm0, %v571_v11  ;;  %v590_v2 = vld [vmem:[%s8662_s23 + $0x820] sm:$0xff]  ;;  %v4797_v11 = vld [vmem:[%s14005_s3 + $0x78] sm:$0xff] }
  0xa0   : > { %8164 = vmatprep.mubr.msk.f32.mxu1 %vm630_vm0, %v572_v12  ;;  %v419_v12 = vld [vmem:[%s8662_s23 + $0x2c8] sm:$0xff] }
  0xa2   : > { %7898 = vmatmul.mubr.msk.f32.gmra.mrb[64].mxu0 %vm630_vm0, %v395_v5  ;;  %v417_v5 = vld [vmem:[%s8662_s23 + $0x2b8] sm:$0xff] }
  0xa3   : > { %7900 = vmatprep.mubr.msk.f32.mxu0 %vm630_vm0, %v396_v6  ;;  %8165 = vmatmul.mubr.msk.f32.gmra.mrb[64].mxu1 %vm630_vm0, %v573_v15  ;;  %v8403_v6 = vpack.c.bf16 %v4795_v4, %v4794_v3  ;;  %v593_v15 = vld [vmem:[%s8662_s23 + $0x838] sm:$0xff]  ;;  %v616_v3 = vld [vmem:[%s8662_s23 + $0x8f0] sm:$0xff]  ;;  %v443_v4 = vld [vmem:[%s8662_s23 + $0x388] sm:$0xff] }
  0xa4   : > { %8167 = vmatprep.mubr.msk.f32.mxu1 %vm630_vm0, %v574_v16  ;;  %v594_v16 = vld [vmem:[%s8662_s23 + $0x840] sm:$0xff] }
  0xa5   : > { %8404 = vmatprep.subr.bf16.mxu1 %v8403_v6 }
  0xa6   : > { %7901 = vmatmul.mubr.msk.f32.gmra.mrb[66].mxu0 %vm630_vm0, %v397_v9  ;;  %v592_v9 = vld [vmem:[%s8662_s23 + $0x830] sm:$0xff]  ;;  %8406 = vmatpush3.bf16.msra.mxu1 %v8403_v6 }
  0xa7   : > { %7903 = vmatprep.mubr.msk.f32.mxu0 %vm630_vm0, %v398_v10  ;;  %8168 = vmatmul.mubr.msk.f32.gmra.mrb[66].mxu1 %vm630_vm0, %v575_v19  ;;  %v4796_v10 = vld [vmem:[%s14005_s3 + $0x70] sm:$0xff]  ;;  %v595_v19 = vld [vmem:[%s8662_s23 + $0x848] sm:$0xff] }
  0xa8   : > { %8170 = vmatprep.mubr.msk.f32.mxu1 %vm630_vm0, %v576_v20  ;;  %v596_v20 = vld [vmem:[%s8662_s23 + $0x850] sm:$0xff] }
  0xa9   : > { %v444_v6 = vld [vmem:[%s8662_s23 + $0x390] sm:$0xff] }
  0xaa   : > { %7904 = vmatmul.mubr.msk.f32.gmra.mrb[68].mxu0 %vm630_vm0, %v399_v13  ;;  %v8407_v13 = vpack.c.bf16 %v4797_v11, %v4796_v10 }
  0xab   : > { %7906 = vmatprep.mubr.msk.f32.mxu0 %vm630_vm0, %v400_v14  ;;  %8171 = vmatmul.mubr.msk.f32.gmra.mrb[68].mxu1 %vm630_vm0, %v577_v23  ;;  %v420_v14 = vld [vmem:[%s8662_s23 + $0x2d0] sm:$0xff]  ;;  %v597_v23 = vld [vmem:[%s8662_s23 + $0x858] sm:$0xff] }
  0xac   : > { %8173 = vmatprep.mubr.msk.f32.mxu1 %vm630_vm0, %v578_v24  ;;  %8408 = vmatprep.subr.bf16.mxu1 %v8407_v13  ;;  %v598_v24 = vld [vmem:[%s8662_s23 + $0x860] sm:$0xff] }
  0xad   : > { %8410 = vmatpush3.bf16.msra.mxu1 %v8407_v13  ;;  %v445_v13 = vld [vmem:[%s8662_s23 + $0x398] sm:$0xff] }
  0xae   : > { %7907 = vmatmul.mubr.msk.f32.gmra.mrb[70].mxu0 %vm630_vm0, %v401_v17  ;;  %v421_v17 = vld [vmem:[%s8662_s23 + $0x2d8] sm:$0xff] }
  0xaf   : > { %7909 = vmatprep.mubr.msk.f32.mxu0 %vm630_vm0, %v402_v18  ;;  %8174 = vmatmul.mubr.msk.f32.gmra.mrb[70].mxu1 %vm630_vm0, %v579_v30  ;;  %v422_v18 = vld [vmem:[%s8662_s23 + $0x2e0] sm:$0xff]  ;;  %v428_v30 = vld [vmem:[%s8662_s23 + $0x310] sm:$0xff] }
  0xb0   : > { %8176 = vmatprep.mubr.msk.f32.mxu1 %vm630_vm0, %v580_v31  ;;  %v601_v31 = vld [vmem:[%s8662_s23 + $0x878] sm:$0xff] }
  0xb2   : > { %7910 = vmatmul.mubr.msk.f32.gmra.mrb[72].mxu0 %vm630_vm0, %v403_v21  ;;  %v423_v21 = vld [vmem:[%s8662_s23 + $0x2e8] sm:$0xff] }
  0xb3   : > { %7912 = vmatprep.mubr.msk.f32.mxu0 %vm630_vm0, %v404_v22  ;;  %8177 = vmatmul.mubr.msk.f32.gmra.mrb[72].mxu1 %vm630_vm0, %v581_v37  ;;  %v424_v22 = vld [vmem:[%s8662_s23 + $0x2f0] sm:$0xff]  ;;  %v431_v37 = vld [vmem:[%s8662_s23 + $0x328] sm:$0xff] }
  0xb4   : > { %8179 = vmatprep.mubr.msk.f32.mxu1 %vm630_vm0, %v582_v38  ;;  %v432_v38 = vld [vmem:[%s8662_s23 + $0x330] sm:$0xff] }
  0xb6   : > { %7913 = vmatmul.mubr.msk.f32.gmra.mrb[74].mxu0 %vm630_vm0, %v405_v27  ;;  %v599_v27 = vld [vmem:[%s8662_s23 + $0x868] sm:$0xff] }
  0xb7   : > { %7915 = vmatprep.mubr.msk.f32.mxu0 %vm630_vm0, %v406_v29  ;;  %8180 = vmatmul.mubr.msk.f32.gmra.mrb[74].mxu1 %vm630_vm0, %v583_v44  ;;  %v427_v29 = vld [vmem:[%s8662_s23 + $0x308] sm:$0xff]  ;;  %v608_v44 = vld [vmem:[%s8662_s23 + $0x8b0] sm:$0xff] }
  0xb8   : > { %8182 = vmatprep.mubr.msk.f32.mxu1 %vm630_vm0, %v584_v45  ;;  %v435_v45 = vld [vmem:[%s8662_s23 + $0x348] sm:$0xff] }
  0xba   : > { %7916 = vmatmul.mubr.msk.f32.gmra.mrb[76].mxu0 %vm630_vm0, %v407_v34  ;;  %v430_v34 = vld [vmem:[%s8662_s23 + $0x320] sm:$0xff] }
  0xbb   : > { %7918 = vmatprep.mubr.msk.f32.mxu0 %vm630_vm0, %v408_v36  ;;  %8183 = vmatmul.mubr.msk.f32.gmra.mrb[76].mxu1 %vm630_vm0, %v585_v51  ;;  %v604_v36 = vld [vmem:[%s8662_s23 + $0x890] sm:$0xff] }
  0xbc   : > { %8185 = vmatprep.mubr.msk.f32.mxu1 %vm630_vm0, %v586_v52  ;;  %v611_v52 = vld [vmem:[%s8662_s23 + $0x8c8] sm:$0xff] }
  0xbe   : > { %7919 = vmatmul.mubr.msk.f32.gmra.mrb[78].mxu0 %vm630_vm0, %v409_v41  ;;  %v433_v41 = vld [vmem:[%s8662_s23 + $0x338] sm:$0xff] }
  0xbf   : > { %7921 = vmatprep.mubr.msk.f32.mxu0 %vm630_vm0, %v410_v43  ;;  %8186 = vmatmul.mubr.msk.f32.gmra.mrb[78].mxu1 %vm630_vm0, %v587_v58  ;;  %v607_v43 = vld [vmem:[%s8662_s23 + $0x8a8] sm:$0xff]  ;;  %v613_v58 = vld [vmem:[%s8662_s23 + $0x8d8] sm:$0xff] }
  0xc0   : > { %8188 = vmatprep.mubr.msk.f32.mxu1 %vm630_vm0, %v588_v59 }
  0xc2   : > { %7922 = vmatmul.mubr.msk.f32.gmra.mrb[80].mxu0 %vm630_vm0, %v411_v48  ;;  %v610_v48 = vld [vmem:[%s8662_s23 + $0x8c0] sm:$0xff] }
  0xc3   : > { %7924 = vmatprep.mubr.msk.f32.mxu0 %vm630_vm0, %v412_v50  ;;  %8189 = vmatmul.mubr.msk.f32.gmra.mrb[80].mxu1 %vm630_vm0, %v589_v1  ;;  %v438_v50 = vld [vmem:[%s8662_s23 + $0x360] sm:$0xff]  ;;  %v615_v1 = vld [vmem:[%s8662_s23 + $0x8e8] sm:$0xff] }
  0xc4   : > { %8191 = vmatprep.mubr.msk.f32.mxu1 %vm630_vm0, %v590_v2 }
  0xc6   : > { %7925 = vmatmul.mubr.msk.f32.gmra.mrb[82].mxu0 %vm630_vm0, %v413_v55  ;;  %v439_v55 = vld [vmem:[%s8662_s23 + $0x368] sm:$0xff] }
  0xc7   : > { %7927 = vmatprep.mubr.msk.f32.mxu0 %vm630_vm0, %v414_v57  ;;  %8192 = vmatmul.mubr.msk.f32.gmra.mrb[82].mxu1 %vm630_vm0, %v591_v8 }
  0xc8   : > { %8194 = vmatprep.mubr.msk.f32.mxu1 %vm630_vm0, %v592_v9  ;;  %v617_v9 = vld [vmem:[%s8662_s23 + $0x8f8] sm:$0xff] }
  0xca   : > { %7928 = vmatmul.mubr.msk.f32.gmra.mrb[84].mxu0 %vm630_vm0, %v415_v62  ;;  %v442_v62 = vld [vmem:[%s8662_s23 + $0x380] sm:$0xff] }
  0xcb   : > { %7930 = vmatprep.mubr.msk.f32.mxu0 %vm630_vm0, %v416_v0  ;;  %8195 = vmatmul.mubr.msk.f32.gmra.mrb[84].mxu1 %vm630_vm0, %v593_v15 }
  0xcc   : > { %8197 = vmatprep.mubr.msk.f32.mxu1 %vm630_vm0, %v594_v16 }
  0xce   : > { %7931 = vmatmul.mubr.msk.f32.gmra.mrb[86].mxu0 %vm630_vm0, %v417_v5 }
  0xcf   : > { %7933 = vmatprep.mubr.msk.f32.mxu0 %vm630_vm0, %v418_v7  ;;  %8198 = vmatmul.mubr.msk.f32.gmra.mrb[86].mxu1 %vm630_vm0, %v595_v19 }
  0xd0   : > { %8200 = vmatprep.mubr.msk.f32.mxu1 %vm630_vm0, %v596_v20 }
  0xd2   : > { %7934 = vmatmul.mubr.msk.f32.gmra.mrb[88].mxu0 %vm630_vm0, %v419_v12 }
  0xd3   : > { %7936 = vmatprep.mubr.msk.f32.mxu0 %vm630_vm0, %v420_v14  ;;  %8201 = vmatmul.mubr.msk.f32.gmra.mrb[88].mxu1 %vm630_vm0, %v597_v23 }
  0xd4   : > { %8203 = vmatprep.mubr.msk.f32.mxu1 %vm630_vm0, %v598_v24 }
  0xd6   : > { %7937 = vmatmul.mubr.msk.f32.gmra.mrb[90].mxu0 %vm630_vm0, %v421_v17  ;;  %v446_v17 = vld [vmem:[%s8662_s23 + $0x3a0] sm:$0xff] }
  0xd7   : > { %7939 = vmatprep.mubr.msk.f32.mxu0 %vm630_vm0, %v422_v18  ;;  %8204 = vmatmul.mubr.msk.f32.gmra.mrb[90].mxu1 %vm630_vm0, %v599_v27  ;;  %v447_v27 = vld [vmem:[%s8662_s23 + $0x3a8] sm:$0xff] }
  0xd8   : > { %8206 = vmatprep.mubr.msk.f32.mxu1 %vm630_vm0, %v600_v28 }
  0xda   : > { %7940 = vmatmul.mubr.msk.f32.gmra.mrb[92].mxu0 %vm630_vm0, %v423_v21 }
  0xdb   : > { %7942 = vmatprep.mubr.msk.f32.mxu0 %vm630_vm0, %v424_v22  ;;  %8207 = vmatmul.mubr.msk.f32.gmra.mrb[92].mxu1 %vm630_vm0, %v601_v31  ;;  %v448_v31 = vld [vmem:[%s8662_s23 + $0x3b0] sm:$0xff] }
  0xdc   : > { %8209 = vmatprep.mubr.msk.f32.mxu1 %vm630_vm0, %v602_v32 }
  0xde   : > { %7943 = vmatmul.mubr.msk.f32.gmra.mrb[94].mxu0 %vm630_vm0, %v425_v25 }
  0xdf   : > { %7945 = vmatprep.mubr.msk.f32.mxu0 %vm630_vm0, %v426_v26  ;;  %8210 = vmatmul.mubr.msk.f32.gmra.mrb[94].mxu1 %vm630_vm0, %v603_v35 }
  0xe0   : > { %8212 = vmatprep.mubr.msk.f32.mxu1 %vm630_vm0, %v604_v36 }
  0xe2   : > { %7946 = vmatmul.mubr.msk.f32.gmra.mrb[96].mxu0 %vm630_vm0, %v427_v29 }
  0xe3   : > { %7948 = vmatprep.mubr.msk.f32.mxu0 %vm630_vm0, %v428_v30  ;;  %8213 = vmatmul.mubr.msk.f32.gmra.mrb[96].mxu1 %vm630_vm0, %v605_v39 }
  0xe4   : > { %8215 = vmatprep.mubr.msk.f32.mxu1 %vm630_vm0, %v606_v40 }
  0xe6   : > { %7949 = vmatmul.mubr.msk.f32.gmra.mrb[98].mxu0 %vm630_vm0, %v429_v33 }
  0xe7   : > { %7951 = vmatprep.mubr.msk.f32.mxu0 %vm630_vm0, %v430_v34  ;;  %8216 = vmatmul.mubr.msk.f32.gmra.mrb[98].mxu1 %vm630_vm0, %v607_v43 }
  0xe8   : > { %8218 = vmatprep.mubr.msk.f32.mxu1 %vm630_vm0, %v608_v44  ;;  %v450_v44 = vld [vmem:[%s8662_s23 + $0x3c0] sm:$0xff] }
  0xea   : > { %7952 = vmatmul.mubr.msk.f32.gmra.mrb[100].mxu0 %vm630_vm0, %v431_v37 }
  0xeb   : > { %7954 = vmatprep.mubr.msk.f32.mxu0 %vm630_vm0, %v432_v38  ;;  %8219 = vmatmul.mubr.msk.f32.gmra.mrb[100].mxu1 %vm630_vm0, %v609_v47 }
  0xec   : > { %8221 = vmatprep.mubr.msk.f32.mxu1 %vm630_vm0, %v610_v48 }
  0xee   : > { %7955 = vmatmul.mubr.msk.f32.gmra.mrb[102].mxu0 %vm630_vm0, %v433_v41  ;;  %v449_v41 = vld [vmem:[%s8662_s23 + $0x3b8] sm:$0xff] }
  0xef   : > { %7957 = vmatprep.mubr.msk.f32.mxu0 %vm630_vm0, %v434_v42  ;;  %8222 = vmatmul.mubr.msk.f32.gmra.mrb[102].mxu1 %vm630_vm0, %v611_v52 }
  0xf0   : > { %8224 = vmatprep.mubr.msk.f32.mxu1 %vm630_vm0, %v612_v54  ;;  %v452_v54 = vld [vmem:[%s8662_s23 + $0x3d0] sm:$0xff] }
  0xf2   : > { %7958 = vmatmul.mubr.msk.f32.gmra.mrb[104].mxu0 %vm630_vm0, %v435_v45 }
  0xf3   : > { %7960 = vmatprep.mubr.msk.f32.mxu0 %vm630_vm0, %v436_v46  ;;  %8225 = vmatmul.mubr.msk.f32.gmra.mrb[104].mxu1 %vm630_vm0, %v613_v58  ;;  %v453_v58 = vld [vmem:[%s8662_s23 + $0x3d8] sm:$0xff] }
  0xf4   : > { %8227 = vmatprep.mubr.msk.f32.mxu1 %vm630_vm0, %v614_v60 }
  0xf5   : > { %v7803_v51 = vpop.f32.mrb[0].mxu0 }
  0xf6   : > { %v1565_v53 = vpop.f32.mrb[1].mxu0  ;;  %7961 = vmatmul.mubr.msk.f32.gmra.mrb[106].mxu0 %vm630_vm0, %v437_v49  ;;  %v1571_v5 = vadd.f32 %v7803_v51, %v9152_v63  ;;  %v451_v51 = vld [vmem:[%s8662_s23 + $0x3c8] sm:$0xff] }
  0xf7   : > { %7963 = vmatprep.mubr.msk.f32.mxu0 %vm630_vm0, %v438_v50  ;;  %8228 = vmatmul.mubr.msk.f32.gmra.mrb[106].mxu1 %vm630_vm0, %v615_v1  ;;  %v1566_v7 = vadd.f32 %v9152_v63, %v1565_v53 }
  0xf8   : > { %8230 = vmatprep.mubr.msk.f32.mxu1 %vm630_vm0, %v616_v3  ;;  %v3005_v14 = vmax.f32 %v1571_v5, 0.0 }
  0xf9   : > { %v7806_v57 = vpop.f32.mrb[2].mxu0  ;;  %v3004_v18 = vmax.f32 %v1566_v7, 0.0 }
  0xfa   : > { %v1575_v59 = vpop.f32.mrb[3].mxu0  ;;  %7964 = vmatmul.mubr.msk.f32.gmra.mrb[108].mxu0 %vm630_vm0, %v439_v55  ;;  %v1581_v15 = vadd.f32 %v7806_v57, %v9152_v63 }
  0xfb   : > { %7966 = vmatprep.mubr.msk.f32.mxu0 %vm630_vm0, %v440_v56  ;;  %8231 = vmatmul.mubr.msk.f32.gmra.mrb[108].mxu1 %vm630_vm0, %v617_v9  ;;  %v1576_v19 = vadd.f32 %v9152_v63, %v1575_v59 }
  0xfc   : > { %v3007_v28 = vmax.f32 %v1581_v15, 0.0 }
  0xfd   : > { %v7809_v0 = vpop.f32.mrb[4].mxu0  ;;  %v3006_v32 = vmax.f32 %v1576_v19, 0.0  ;;  %v458_v19 = vld [vmem:[%s8662_s23 + $0x400] sm:$0xff] }
  0xfe   : > { %v1585_v2 = vpop.f32.mrb[5].mxu0  ;;  %7967 = vmatmul.mubr.msk.f32.gmra.mrb[110].mxu0 %vm630_vm0, %v441_v61  ;;  %v1591_v29 = vadd.f32 %v7809_v0, %v9152_v63  ;;  %v454_v61 = vld [vmem:[%s8662_s23 + $0x3e0] sm:$0xff] }
  0xff   : > { %7969 = vmatprep.mubr.msk.f32.mxu0 %vm630_vm0, %v442_v62  ;;  %v1586_v33 = vadd.f32 %v9152_v63, %v1585_v2  ;;  %v455_v2 = vld [vmem:[%s8662_s23 + $0x3e8] sm:$0xff] }
 0x100   : > { %v3009_v42 = vmax.f32 %v1591_v29, 0.0 }
 0x101   : > { %v7812_v8 = vpop.f32.mrb[6].mxu0  ;;  %v3008_v45 = vmax.f32 %v1586_v33, 0.0 }
 0x102   : > { %v1601_v10 = vadd.f32 %v7812_v8, %v9152_v63  ;;  %v1595_v11 = vpop.f32.mrb[7].mxu0  ;;  %7970 = vmatmul.mubr.msk.f32.gmra.mrb[112].mxu0 %vm630_vm0, %v443_v4 }
 0x103   : > { %v1596_v12 = vadd.f32 %v9152_v63, %v1595_v11  ;;  %7972 = vmatprep.mubr.msk.f32.mxu0 %vm630_vm0, %v444_v6  ;;  %v456_v6 = vld [vmem:[%s8662_s23 + $0x3f0] sm:$0xff] }
 0x104   : > { %v3011_v16 = vmax.f32 %v1601_v10, 0.0 }
 0x105   : > { %v3010_v20 = vmax.f32 %v1596_v12, 0.0  ;;  %v7815_v21 = vpop.f32.mrb[8].mxu0  ;;  %v9213_v12 = vpop.f32.mrb[0].mxu1 }
 0x106   : > { %v3293_v22 = vmax.f32 %v3005_v14, %v3011_v16  ;;  %v1611_v23 = vadd.f32 %v7815_v21, %v9152_v63  ;;  %v1605_v24 = vpop.f32.mrb[9].mxu0  ;;  %7973 = vmatmul.mubr.msk.f32.gmra.mrb[114].mxu0 %vm630_vm0, %v445_v13  ;;  %v457_v14 = vld [vmem:[%s8662_s23 + $0x3f8] sm:$0xff]  ;;  %v9219_v15 = vpop.f32.mrb[1].mxu1 }
 0x107   : > { %v3292_v25 = vmax.f32 %v3004_v18, %v3010_v20  ;;  %v1606_v26 = vadd.f32 %v9152_v63, %v1605_v24  ;;  %7975 = vmatprep.mubr.msk.f32.mxu0 %vm630_vm0, %v446_v17  ;;  %v9223_v20 = vpop.f32.mrb[2].mxu1 }
 0x108   : > { %3437 = vst [vmem:[#allocation2 + $0x8] sm:$0xff] %v3293_v22  ;;  %v3013_v30 = vmax.f32 %v1611_v23, 0.0 }
 0x109   : > { %3436 = vst [vmem:[#allocation2] sm:$0xff] %v3292_v25  ;;  %v3012_v34 = vmax.f32 %v1606_v26, 0.0  ;;  %v7818_v35 = vpop.f32.mrb[10].mxu0  ;;  %v9226_v25 = vpop.f32.mrb[3].mxu1 }
 0x10a   : > { %v3295_v36 = vmax.f32 %v3007_v28, %v3013_v30  ;;  %v1621_v37 = vadd.f32 %v7818_v35, %v9152_v63  ;;  %v1615_v38 = vpop.f32.mrb[11].mxu0  ;;  %7976 = vmatmul.mubr.msk.f32.gmra.mrb[116].mxu0 %vm630_vm0, %v447_v27  ;;  %v9230_v29 = vpop.f32.mrb[4].mxu1 }
 0x10b   : > { %v3294_v39 = vmax.f32 %v3006_v32, %v3012_v34  ;;  %v1616_v40 = vadd.f32 %v9152_v63, %v1615_v38  ;;  %7978 = vmatprep.mubr.msk.f32.mxu0 %vm630_vm0, %v448_v31  ;;  %v459_v32 = vld [vmem:[%s8662_s23 + $0x408] sm:$0xff]  ;;  %v9235_v33 = vpop.f32.mrb[5].mxu1 }
 0x10c   : > { %3439 = vst [vmem:[#allocation2 + $0x18] sm:$0xff] %v3295_v36  ;;  %v3015_v43 = vmax.f32 %v1621_v37, 0.0  ;;  %v460_v37 = vld [vmem:[%s8662_s23 + $0x410] sm:$0xff]  ;;  %v9239_v38 = vpop.f32.mrb[6].mxu1 }
 0x10d   : > { %3438 = vst [vmem:[#allocation2 + $0x10] sm:$0xff] %v3294_v39  ;;  %v3014_v46 = vmax.f32 %v1616_v40, 0.0  ;;  %v7821_v47 = vpop.f32.mrb[12].mxu0 }
 0x10e   : > { %v3297_v48 = vmax.f32 %v3009_v42, %v3015_v43  ;;  %v1625_v49 = vpop.f32.mrb[13].mxu0  ;;  %7979 = vmatmul.mubr.msk.f32.gmra.mrb[118].mxu0 %vm630_vm0, %v449_v41  ;;  %v1631_v5 = vadd.f32 %v7821_v47, %v9152_v63  ;;  %v9242_v43 = vpop.f32.mrb[7].mxu1 }
 0x10f   : > { %v3296_v50 = vmax.f32 %v3008_v45, %v3014_v46  ;;  %7981 = vmatprep.mubr.msk.f32.mxu0 %vm630_vm0, %v450_v44  ;;  %v1626_v8 = vadd.f32 %v9152_v63, %v1625_v49  ;;  %v9246_v47 = vpop.f32.mrb[8].mxu1 }
 0x110   : > { %v3580_v52 = vld [vmem:[#allocation2] ss:$2 sm:$0xff]  ;;  %v3724_v53 = vld [vmem:[#allocation2 + $0x1] ss:$2 sm:$0xff]  ;;  %3441 = vst [vmem:[#allocation2 + $0x28] sm:$0xff] %v3297_v48  ;;  %v3017_v16 = vmax.f32 %v1631_v5, 0.0 }
 0x111   : > { %v9193_v55 = vmax.f32 %v3580_v52, %v3724_v53  ;;  %3440 = vst [vmem:[#allocation2 + $0x20] sm:$0xff] %v3296_v50  ;;  %v7824_v56 = vpop.f32.mrb[14].mxu0  ;;  %v3016_v21 = vmax.f32 %v1626_v8, 0.0  ;;  %v461_v50 = vld [vmem:[%s8662_s23 + $0x418] sm:$0xff] }
 0x112   : > { %v1635_v57 = vpop.f32.mrb[15].mxu0  ;;  %7982 = vmatmul.mubr.msk.f32.gmra.mrb[120].mxu0 %vm630_vm0, %v451_v51  ;;  %v1641_v17 = vadd.f32 %v7824_v56, %v9152_v63  ;;  %v9251_v51 = vpop.f32.mrb[9].mxu1 }
 0x113   : > { %3939 = vst [vmem:[#allocation3] sm:$0xff] %v9193_v55  ;;  %7984 = vmatprep.mubr.msk.f32.mxu0 %vm630_vm0, %v452_v54  ;;  %v1636_v22 = vadd.f32 %v9152_v63, %v1635_v57  ;;  %v462_v54 = vld [vmem:[%s8662_s23 + $0x420] sm:$0xff]  ;;  %v9254_v56 = vpop.f32.mrb[10].mxu1 }
 0x114   : > { %v3582_v59 = vld [vmem:[#allocation2 + $0x10] ss:$2 sm:$0xff]  ;;  %v3726_v60 = vld [vmem:[#allocation2 + $0x11] ss:$2 sm:$0xff]  ;;  %v3019_v34 = vmax.f32 %v1641_v17, 0.0 }
 0x115   : > { %v9200_v62 = vmax.f32 %v3582_v59, %v3726_v60  ;;  %v7827_v0 = vpop.f32.mrb[16].mxu0  ;;  %v3018_v39 = vmax.f32 %v1636_v22, 0.0  ;;  %v9256_v60 = vpop.f32.mrb[11].mxu1 }
 0x116   : > { %v1645_v1 = vpop.f32.mrb[17].mxu0  ;;  %7985 = vmatmul.mubr.msk.f32.gmra.mrb[122].mxu0 %vm630_vm0, %v453_v58  ;;  %v1651_v35 = vadd.f32 %v7827_v0, %v9152_v63 }
 0x117   : > { %3940 = vst [vmem:[#allocation3 + $0x8] sm:$0xff] %v9200_v62  ;;  %7987 = vmatprep.mubr.msk.f32.mxu0 %vm630_vm0, %v454_v61  ;;  %v1646_v40 = vadd.f32 %v9152_v63, %v1645_v1  ;;  %v9259_v1 = vpop.f32.mrb[12].mxu1 }
 0x118   : > { %v3584_v3 = vld [vmem:[#allocation2 + $0x20] ss:$2 sm:$0xff]  ;;  %v3728_v4 = vld [vmem:[#allocation2 + $0x21] ss:$2 sm:$0xff]  ;;  %v3021_v52 = vmax.f32 %v1651_v35, 0.0  ;;  %v9263_v5 = vpop.f32.mrb[13].mxu1  ;;  %v2481_v35 = vadd.f32 %v9230_v29, %v9152_v63 }
 0x119   : > { %v9208_v7 = vmax.f32 %v3584_v3, %v3728_v4  ;;  %v7830_v9 = vpop.f32.mrb[18].mxu0  ;;  %v3020_v57 = vmax.f32 %v1646_v40, 0.0  ;;  %v463_v3 = vld [vmem:[%s8662_s23 + $0x428] sm:$0xff]  ;;  %v4012_v4 = vlaneseq }
 0x11a   : > { %v1661_v10 = vadd.f32 %v7830_v9, %v9152_v63  ;;  %v1655_v11 = vpop.f32.mrb[19].mxu0  ;;  %7988 = vmatmul.mubr.msk.f32.gmra.mrb[124].mxu0 %vm630_vm0, %v455_v2  ;;  %v464_v9 = vld [vmem:[%s8662_s23 + $0x430] sm:$0xff]  ;;  %v467_v29 = vld [vmem:[%s8662_s23 + $0x448] sm:$0xff] }
 0x11b   : > { %3941 = vst [vmem:[#allocation3 + $0x10] sm:$0xff] %v9208_v7  ;;  %v1656_v13 = vadd.f32 %v9152_v63, %v1655_v11  ;;  %7990 = vmatprep.mubr.msk.f32.mxu0 %vm630_vm0, %v456_v6  ;;  %v9284_v22 = vand.u32 127, %v4012_v4 }
 0x11c   : > { %v3023_v18 = vmax.f32 %v1661_v10, 0.0  ;;  %v9266_v10 = vpop.f32.mrb[14].mxu1 }
 0x11d   : > { %v3022_v23 = vmax.f32 %v1656_v13, 0.0  ;;  %v7833_v24 = vpop.f32.mrb[20].mxu0  ;;  %vm4146_vm2 = vcmp.lt.s32.totalorder %v9284_v22, 10  ;;  %vm4281_vm3 = vcmp.lt.s32.totalorder %v9284_v22, 20  ;;  %vm4353_vm4 = vcmp.lt.s32.totalorder %v9284_v22, 30 }
 0x11e   : > { %v3299_v26 = vmax.f32 %v3017_v16, %v3023_v18  ;;  %v1671_v27 = vadd.f32 %v7833_v24, %v9152_v63  ;;  %v1665_v28 = vpop.f32.mrb[21].mxu0  ;;  %7991 = vmatmul.mubr.msk.f32.gmra.mrb[126].mxu0 %vm630_vm0, %v457_v14  ;;  %v9270_v14 = vpop.f32.mrb[15].mxu1  ;;  %vm4425_vm5 = vcmp.lt.s32.totalorder %v9284_v22, 40  ;;  %vm4497_vm6 = vcmp.lt.s32.totalorder %v9284_v22, 50 }
 0x11f   : > { %v3298_v30 = vmax.f32 %v3016_v21, %v3022_v23  ;;  %v1666_v31 = vadd.f32 %v9152_v63, %v1665_v28  ;;  %7993 = vmatprep.mubr.msk.f32.mxu0 %vm630_vm0, %v458_v19  ;;  %v9276_v18 = vpop.f32.mrb[16].mxu1  ;;  %v465_v21 = vld [vmem:[%s8662_s23 + $0x438] sm:$0xff]  ;;  %v2471_v23 = vadd.f32 %v9223_v20, %v9152_v63  ;;  %v466_v28 = vld [vmem:[%s8662_s23 + $0x440] sm:$0xff]  ;;  %vm4569_vm7 = vcmp.lt.s32.totalorder %v9284_v22, 60 }
 0x120   : > { %3443 = vst [vmem:[#allocation2 + $0x38] sm:$0xff] %v3299_v26  ;;  %v3025_v36 = vmax.f32 %v1671_v27, 0.0  ;;  %v9288_v24 = vpop.f32.mrb[17].mxu1  ;;  %vm4641_vm8 = vcmp.lt.s32.totalorder %v9284_v22, 70  ;;  %vm4713_vm9 = vcmp.lt.s32.totalorder %v9284_v22, 80  ;;  %vm5574_vm13 = vcmp.eq.s32.totalorder %v9284_v22, 1 }
 0x121   : > { %3442 = vst [vmem:[#allocation2 + $0x30] sm:$0xff] %v3298_v30  ;;  %v3024_v41 = vmax.f32 %v1666_v31, 0.0  ;;  %v7836_v42 = vpop.f32.mrb[22].mxu0  ;;  %v2466_v30 = vadd.f32 %v9152_v63, %v9226_v25  ;;  %v9293_v31 = vpop.f32.mrb[18].mxu1  ;;  %vm5494_vm14 = vcmp.eq.s32.totalorder %v9284_v22, 0  ;;  %vm5654_vm15 = vcmp.eq.s32.totalorder %v9284_v22, 2 }
 0x122   : > { %v3301_v44 = vmax.f32 %v3019_v34, %v3025_v36  ;;  %v1681_v45 = vadd.f32 %v7836_v42, %v9152_v63  ;;  %v1675_v46 = vpop.f32.mrb[23].mxu0  ;;  %7994 = vmatmul.mubr.msk.f32.gmra.mrb[128].mxu0 %vm630_vm0, %v459_v32  ;;  %v9301_v20 = vpop.f32.mrb[19].mxu1  ;;  %v3185_v42 = vmax.f32 %v2471_v23, 0.0  ;;  %vm5814_vm1 = vcmp.eq.s32.totalorder %v9284_v22, 4 }
 0x123   : > { %v3300_v48 = vmax.f32 %v3018_v39, %v3024_v41  ;;  %v1676_v49 = vadd.f32 %v9152_v63, %v1675_v46  ;;  %7996 = vmatprep.mubr.msk.f32.mxu0 %vm630_vm0, %v460_v37  ;;  %v9307_v39 = vpop.f32.mrb[20].mxu1  ;;  %v468_v41 = vld [vmem:[%s8662_s23 + $0x450] sm:$0xff] }
 0x124   : > { %3445 = vst [vmem:[#allocation2 + $0x48] sm:$0xff] %v3301_v44  ;;  %v3027_v53 = vmax.f32 %v1681_v45, 0.0  ;;  %v9320_v44 = vadd.f32 %v9152_v63, %v9235_v33  ;;  %v9322_v45 = vpop.f32.mrb[21].mxu1 }
 0x125   : > { %3444 = vst [vmem:[#allocation2 + $0x40] sm:$0xff] %v3300_v48  ;;  %v3026_v58 = vmax.f32 %v1676_v49, 0.0  ;;  %v7839_v59 = vpop.f32.mrb[24].mxu0  ;;  %v3184_v49 = vmax.f32 %v2466_v30, 0.0 }
 0x126   : > { %v3303_v61 = vmax.f32 %v3021_v52, %v3027_v53  ;;  %v1685_v0 = vpop.f32.mrb[25].mxu0  ;;  %7997 = vmatmul.mubr.msk.f32.gmra.mrb[130].mxu0 %vm630_vm0, %v461_v50  ;;  %v9273_v16 = vadd.f32 %v7839_v59, %v9152_v63  ;;  %v2501_v50 = vadd.f32 %v9246_v47, %v9152_v63  ;;  %v2496_v52 = vadd.f32 %v9152_v63, %v9251_v51 }
 0x127   : > { %v3302_v2 = vmax.f32 %v3020_v57, %v3026_v58  ;;  %7999 = vmatprep.mubr.msk.f32.mxu0 %vm630_vm0, %v462_v54  ;;  %v9280_v19 = vadd.f32 %v9152_v63, %v1685_v0  ;;  %v2511_v53 = vadd.f32 %v9254_v56, %v9152_v63  ;;  %v9330_v54 = vpop.f32.mrb[22].mxu1  ;;  %v3187_v59 = vmax.f32 %v2481_v35, 0.0 }
 0x128   : > { %v3586_v6 = vld [vmem:[#allocation2 + $0x30] ss:$2 sm:$0xff]  ;;  %v3730_v8 = vld [vmem:[#allocation2 + $0x31] ss:$2 sm:$0xff]  ;;  %3447 = vst [vmem:[#allocation2 + $0x58] sm:$0xff] %v3303_v61  ;;  %v3029_v36 = vmax.f32 %v9273_v16, 0.0  ;;  %v2491_v61 = vadd.f32 %v9239_v38, %v9152_v63 }
 0x129   : > { %v9268_v11 = vmax.f32 %v3586_v6, %v3730_v8  ;;  %3446 = vst [vmem:[#allocation2 + $0x50] sm:$0xff] %v3302_v2  ;;  %v7842_v13 = vpop.f32.mrb[26].mxu0  ;;  %v3028_v25 = vmax.f32 %v9280_v19, 0.0  ;;  %v9339_v47 = vpop.f32.mrb[23].mxu1  ;;  %v3191_v56 = vmax.f32 %v2501_v50, 0.0  ;;  %v3190_v2 = vmax.f32 %v2496_v52, 0.0 }
 0x12a   : > { %v1695_v17 = vpop.f32.mrb[27].mxu0  ;;  %8000 = vmatmul.mubr.msk.f32.gmra.mrb[132].mxu0 %vm630_vm0, %v463_v3  ;;  %v9312_v40 = vadd.f32 %v7842_v13, %v9152_v63  ;;  %v3193_v3 = vmax.f32 %v2511_v53, 0.0  ;;  %v469_v38 = vld [vmem:[%s8662_s23 + $0x458] sm:$0xff]  ;;  %v3186_v6 = vmax.f32 %v9320_v44, 0.0  ;;  %v2506_v8 = vadd.f32 %v9152_v63, %v9256_v60  ;;  %v9353_v13 = vpop.f32.mrb[24].mxu1  ;;  %v471_v52 = vld [vmem:[%s8662_s23 + $0x468] sm:$0xff] }
 0x12b   : > { %3942 = vst [vmem:[#allocation3 + $0x18] sm:$0xff] %v9268_v11  ;;  %8002 = vmatprep.mubr.msk.f32.mxu0 %vm630_vm0, %v464_v9  ;;  %v9335_v33 = vadd.f32 %v9152_v63, %v1695_v17  ;;  %v2521_v9 = vadd.f32 %v9259_v1, %v9152_v63  ;;  %v470_v17 = vld [vmem:[%s8662_s23 + $0x460] sm:$0xff]  ;;  %v9359_v19 = vadd.f32 %v9152_v63, %v9242_v43  ;;  %v3189_v60 = vmax.f32 %v2491_v61, 0.0  ;;  %v472_v61 = vld [vmem:[%s8662_s23 + $0x470] sm:$0xff] }
 0x12c   : > { %v3588_v26 = vld [vmem:[#allocation2 + $0x40] ss:$2 sm:$0xff]  ;;  %v3732_v27 = vld [vmem:[#allocation2 + $0x41] ss:$2 sm:$0xff]  ;;  %v3382_v23 = vmax.f32 %v3184_v49, %v3190_v2  ;;  %v3385_v30 = vmax.f32 %v3187_v59, %v3193_v3  ;;  %v3192_v35 = vmax.f32 %v2506_v8, 0.0 }
 0x12d   : > { %v9295_v32 = vmax.f32 %v3588_v26, %v3732_v27  ;;  %v9297_v34 = vpop.f32.mrb[28].mxu0  ;;  %v9361_v26 = vpop.f32.mrb[25].mxu1  ;;  %v3195_v43 = vmax.f32 %v2521_v9, 0.0  ;;  %v4080_v53 = vld [vmem:[#allocation3 + $0x1] sm:$0xff] }
 0x12e   : > { %v9304_v37 = vpop.f32.mrb[29].mxu0  ;;  %8003 = vmatmul.mubr.msk.f32.gmra.mrb[134].mxu0 %vm630_vm0, %v465_v21  ;;  %v3383_v21 = vmax.f32 %v3185_v42, %v3191_v56  ;;  %v9363_v1 = vpop.f32.mrb[26].mxu1  ;;  %3526 = vst [vmem:[#allocation2 + $0x2d0] sm:$0xff] %v3382_v23  ;;  %v2516_v42 = vadd.f32 %v9152_v63, %v9263_v5  ;;  %v1711_v49 = vadd.f32 %v9297_v34, %v9152_v63  ;;  %3529 = vst [vmem:[#allocation2 + $0x2e8] sm:$0xff] %v3385_v30 }
 0x12f   : > { %3943 = vst [vmem:[#allocation3 + $0x20] sm:$0xff] %v9295_v32  ;;  %8005 = vmatprep.mubr.msk.f32.mxu0 %vm630_vm0, %v466_v28  ;;  %v1706_v5 = vadd.f32 %v9152_v63, %v9304_v37  ;;  %v3188_v34 = vmax.f32 %v9359_v19, 0.0  ;;  %v3030_v56 = vmax.f32 %v9335_v33, 0.0  ;;  %v473_v19 = vld [vmem:[%s8662_s23 + $0x478] sm:$0xff] }
 0x130   : > { %v3590_v46 = vld [vmem:[#allocation2 + $0x50] ss:$2 sm:$0xff]  ;;  %v3734_v48 = vld [vmem:[#allocation2 + $0x51] ss:$2 sm:$0xff]  ;;  %3527 = vst [vmem:[#allocation2 + $0x2d8] sm:$0xff] %v3383_v21 }
 0x131   : > { %v9332_v57 = vmax.f32 %v3590_v46, %v3734_v48  ;;  %v7848_v58 = vpop.f32.mrb[30].mxu0  ;;  %v9369_v46 = vpop.f32.mrb[27].mxu1  ;;  %v3031_v48 = vmax.f32 %v9312_v40, 0.0  ;;  %v4081_v40 = vld [vmem:[#allocation3 + $0x9] sm:$0xff] }
 0x132   : > { %v1721_v51 = vadd.f32 %v7848_v58, %v9152_v63  ;;  %v1715_v0 = vpop.f32.mrb[31].mxu0  ;;  %8006 = vmatmul.mubr.msk.f32.gmra.mrb[136].mxu0 %vm630_vm0, %v467_v29  ;;  %v9377_v58 = vpop.f32.mrb[28].mxu1  ;;  %v4150_v21 = vsel %vm4146_vm2, %v9200_v62, %v4081_v40 }
 0x133   : > { %3944 = vst [vmem:[#allocation3 + $0x28] sm:$0xff] %v9332_v57  ;;  %v1716_v4 = vadd.f32 %v9152_v63, %v1715_v0  ;;  %8008 = vmatprep.mubr.msk.f32.mxu0 %vm630_vm0, %v468_v41  ;;  %v9383_v0 = vpop.f32.mrb[29].mxu1 }
 0x134   : > { %v3035_v16 = vmax.f32 %v1721_v51, 0.0  ;;  %v4082_v51 = vld [vmem:[#allocation3 + $0x11] sm:$0xff] }
 0x135   : > { %v3034_v27 = vmax.f32 %v1716_v4, 0.0  ;;  %v7851_v28 = vpop.f32.mrb[32].mxu0  ;;  %v3387_v4 = vmax.f32 %v3189_v60, %v3195_v43  ;;  %v4151_v23 = vsel %vm4146_vm2, %v9208_v7, %v4082_v51  ;;  %v3032_v60 = vmax.f32 %v1706_v5, 0.0 }
 0x136   : > { %v3305_v29 = vmax.f32 %v3029_v36, %v3035_v16  ;;  %v1731_v41 = vadd.f32 %v7851_v28, %v9152_v63  ;;  %v1725_v44 = vpop.f32.mrb[33].mxu0  ;;  %8009 = vmatmul.mubr.msk.f32.gmra.mrb[138].mxu0 %vm630_vm0, %v469_v38  ;;  %v3194_v38 = vmax.f32 %v2516_v42, 0.0  ;;  %v4215_v16 = vld [vmem:[#allocation3 + $0x2] sm:$0xff]  ;;  %v3033_v28 = vmax.f32 %v1711_v49, 0.0 }
 0x137   : > { %v3304_v36 = vmax.f32 %v3028_v25, %v3034_v27  ;;  %v1726_v50 = vadd.f32 %v9152_v63, %v1725_v44  ;;  %8011 = vmatprep.mubr.msk.f32.mxu0 %vm630_vm0, %v470_v17  ;;  %v3384_v25 = vmax.f32 %v3186_v6, %v3192_v35  ;;  %v4149_v6 = vsel %vm4146_vm2, %v9193_v55, %v4080_v53  ;;  %v4217_v55 = vld [vmem:[#allocation3 + $0x12] sm:$0xff]  ;;  %v9401_v27 = vpop.f32.mrb[30].mxu1  ;;  %v474_v35 = vld [vmem:[%s8662_s23 + $0x480] sm:$0xff] }
 0x138   : > { %3449 = vst [vmem:[#allocation2 + $0x68] sm:$0xff] %v3305_v29  ;;  %v3037_v59 = vmax.f32 %v1731_v41, 0.0  ;;  %3531 = vst [vmem:[#allocation2 + $0x2f8] sm:$0xff] %v3387_v4  ;;  %v4216_v29 = vld [vmem:[#allocation3 + $0xa] sm:$0xff]  ;;  %v3386_v41 = vmax.f32 %v3188_v34, %v3194_v38  ;;  %v9404_v44 = vpop.f32.mrb[31].mxu1  ;;  %v4284_v7 = vsel %vm4281_vm3, %v4149_v6, %v4215_v16  ;;  %v9412_v49 = vadd.f32 %v9266_v10, %v9152_v63 }
 0x139   : > { %3448 = vst [vmem:[#allocation2 + $0x60] sm:$0xff] %v3304_v36  ;;  %v3036_v2 = vmax.f32 %v1726_v50, 0.0  ;;  %v7854_v3 = vpop.f32.mrb[34].mxu0  ;;  %3528 = vst [vmem:[#allocation2 + $0x2e0] sm:$0xff] %v3384_v25  ;;  %v3670_v42 = vld [vmem:[#allocation2 + $0x2d0] ss:$2 sm:$0xff]  ;;  %v9421_v5 = vadd.f32 %v9152_v63, %v9270_v14  ;;  %v4356_v40 = vsel %vm4353_vm4, %v4284_v7, %v9268_v11  ;;  %v4285_v51 = vsel %vm4281_vm3, %v4150_v21, %v4216_v29 }
 0x13a   : > { %v3307_v8 = vmax.f32 %v3031_v48, %v3037_v59  ;;  %v1741_v37 = vadd.f32 %v7854_v3, %v9152_v63  ;;  %v1735_v9 = vpop.f32.mrb[35].mxu0  ;;  %8012 = vmatmul.mubr.msk.f32.gmra.mrb[140].mxu0 %vm630_vm0, %v471_v52  ;;  %v3814_v48 = vld [vmem:[#allocation2 + $0x2d1] ss:$2 sm:$0xff]  ;;  %v4286_v52 = vsel %vm4281_vm3, %v4151_v23, %v4217_v55  ;;  %3530 = vst [vmem:[#allocation2 + $0x2f0] sm:$0xff] %v3386_v41  ;;  %v9432_v34 = vpop.f32.mrb[32].mxu1  ;;  %v3197_v16 = vmax.f32 %v9412_v49, 0.0 }
 0x13b   : > { %v3306_v33 = vmax.f32 %v3030_v56, %v3036_v2  ;;  %v1736_v17 = vadd.f32 %v9152_v63, %v1735_v9  ;;  %8014 = vmatprep.mubr.msk.f32.mxu0 %vm630_vm0, %v472_v61  ;;  %v3912_v53 = vmax.f32 %v3670_v42, %v3814_v48  ;;  %v475_v61 = vld [vmem:[%s8662_s23 + $0x488] sm:$0xff]  ;;  %v476_v10 = vld [vmem:[%s8662_s23 + $0x490] sm:$0xff]  ;;  %v4083_v14 = vld [vmem:[#allocation3 + $0x19] sm:$0xff]  ;;  %v9437_v2 = vsel %vm4353_vm4, %v4285_v51, %v9295_v32  ;;  %v9473_v55 = vpop.f32.mrb[33].mxu1 }
 0x13c   : > { %3451 = vst [vmem:[#allocation2 + $0x78] sm:$0xff] %v3307_v8  ;;  %v3039_v30 = vmax.f32 %v1741_v37, 0.0  ;;  %v9441_v3 = vadd.f32 %v9276_v18, %v9152_v63  ;;  %v2561_v4 = vadd.f32 %v9307_v39, %v9152_v63  ;;  %v2556_v38 = vadd.f32 %v9152_v63, %v9322_v45  ;;  %v9487_v29 = vpop.f32.mrb[34].mxu1 }
 0x13d   : > { %3450 = vst [vmem:[#allocation2 + $0x70] sm:$0xff] %v3306_v33  ;;  %v3038_v62 = vmax.f32 %v1736_v17, 0.0  ;;  %v9406_v43 = vpop.f32.mrb[36].mxu0  ;;  %3984 = vst [vmem:[#allocation3 + $0x168] sm:$0xff] %v3912_v53  ;;  %v9454_v9 = vsel %vm4353_vm4, %v4286_v52, %v9332_v57  ;;  %v9459_v39 = vadd.f32 %v9152_v63, %v9288_v24  ;;  %v477_v33 = vld [vmem:[%s8662_s23 + $0x498] sm:$0xff]  ;;  %v9469_v21 = vadd.f32 %v9293_v31, %v9152_v63  ;;  %v478_v24 = vld [vmem:[%s8662_s23 + $0x4a0] sm:$0xff] }
 0x13e   : > { %v3309_v36 = vmax.f32 %v3033_v28, %v3039_v30  ;;  %v9414_v50 = vpop.f32.mrb[37].mxu0  ;;  %8015 = vmatmul.mubr.msk.f32.gmra.mrb[142].mxu0 %vm630_vm0, %v473_v19  ;;  %v3196_v19 = vmax.f32 %v9421_v5, 0.0  ;;  %v2571_v23 = vadd.f32 %v9330_v54, %v9152_v63  ;;  %v4152_v28 = vsel %vm4146_vm2, %v9268_v11, %v4083_v14  ;;  %v4084_v30 = vld [vmem:[#allocation3 + $0x21] sm:$0xff]  ;;  %v9503_v51 = vpop.f32.mrb[35].mxu1 }
 0x13f   : > { %v3308_v59 = vmax.f32 %v3032_v60, %v3038_v62  ;;  %8017 = vmatprep.mubr.msk.f32.mxu0 %vm630_vm0, %v474_v35  ;;  %v4218_v60 = vld [vmem:[#allocation3 + $0x1a] sm:$0xff]  ;;  %v9483_v31 = vadd.f32 %v9152_v63, %v9301_v20  ;;  %v3203_v35 = vmax.f32 %v2561_v4, 0.0  ;;  %v2566_v54 = vadd.f32 %v9152_v63, %v9339_v47 }
 0x140   : > { %v3592_v25 = vld [vmem:[#allocation2 + $0x60] ss:$2 sm:$0xff]  ;;  %v3736_v56 = vld [vmem:[#allocation2 + $0x61] ss:$2 sm:$0xff]  ;;  %3453 = vst [vmem:[#allocation2 + $0x88] sm:$0xff] %v3309_v36  ;;  %v4428_v7 = vsel %vm4425_vm5, %v4356_v40, %v4083_v14  ;;  %v3199_v11 = vmax.f32 %v9441_v3, 0.0  ;;  %v2581_v48 = vadd.f32 %v9353_v13, %v9152_v63  ;;  %v2576_v5 = vadd.f32 %v9152_v63, %v9361_v26 }
 0x141   : > { %3452 = vst [vmem:[#allocation2 + $0x80] sm:$0xff] %v3308_v59  ;;  %v9447_v8 = vpop.f32.mrb[38].mxu0  ;;  %v9449_v37 = vmax.f32 %v3592_v25, %v3736_v56  ;;  %v3672_v6 = vld [vmem:[#allocation2 + $0x2e0] ss:$2 sm:$0xff]  ;;  %v3816_v18 = vld [vmem:[#allocation2 + $0x2e1] ss:$2 sm:$0xff]  ;;  %v3389_v53 = vmax.f32 %v3197_v16, %v3203_v35  ;;  %v9511_v26 = vsel %vm4281_vm3, %v4152_v28, %v4218_v60  ;;  %v4500_v14 = vsel %vm4497_vm6, %v4428_v7, %v4218_v60 }
 0x142   : > { %v9461_v45 = vpop.f32.mrb[39].mxu0  ;;  %8018 = vmatmul.mubr.msk.f32.gmra.mrb[144].mxu0 %vm630_vm0, %v475_v61  ;;  %v3913_v17 = vmax.f32 %v3672_v6, %v3816_v18  ;;  %v3202_v42 = vmax.f32 %v2556_v38, 0.0  ;;  %v3674_v47 = vld [vmem:[#allocation2 + $0x2f0] ss:$2 sm:$0xff]  ;;  %v3818_v36 = vld [vmem:[#allocation2 + $0x2f1] ss:$2 sm:$0xff]  ;;  %v1751_v16 = vadd.f32 %v9406_v43, %v9152_v63 }
 0x143   : > { %8020 = vmatprep.mubr.msk.f32.mxu0 %vm630_vm0, %v476_v10  ;;  %3945 = vst [vmem:[#allocation3 + $0x30] sm:$0xff] %v9449_v37  ;;  %v3198_v52 = vmax.f32 %v9459_v39, 0.0  ;;  %v3914_v13 = vmax.f32 %v3674_v47, %v3818_v36  ;;  %v3201_v61 = vmax.f32 %v9469_v21, 0.0  ;;  %v3205_v40 = vmax.f32 %v2571_v23, 0.0  ;;  %v479_v25 = vld [vmem:[%s8662_s23 + $0x4a8] sm:$0xff]  ;;  %v480_v56 = vld [vmem:[%s8662_s23 + $0x4b0] sm:$0xff] }
 0x144   : > { %v3594_v41 = vld [vmem:[#allocation2 + $0x70] ss:$2 sm:$0xff]  ;;  %v3738_v62 = vld [vmem:[#allocation2 + $0x71] ss:$2 sm:$0xff]  ;;  %3985 = vst [vmem:[#allocation3 + $0x170] sm:$0xff] %v3913_v17  ;;  %v3388_v10 = vmax.f32 %v3196_v19, %v3202_v42  ;;  %v3200_v3 = vmax.f32 %v9483_v31, 0.0  ;;  %v1746_v23 = vadd.f32 %v9152_v63, %v9414_v50  ;;  %v1761_v31 = vadd.f32 %v9447_v8, %v9152_v63 }
 0x145   : > { %v7863_v20 = vpop.f32.mrb[40].mxu0  ;;  %v9494_v49 = vmax.f32 %v3594_v41, %v3738_v62  ;;  %3533 = vst [vmem:[#allocation2 + $0x308] sm:$0xff] %v3389_v53  ;;  %v3204_v4 = vmax.f32 %v2566_v54, 0.0  ;;  %v9516_v38 = vpop.f32.mrb[36].mxu1  ;;  %v9520_v39 = vld [vmem:[#allocation3 + $0x22] sm:$0xff]  ;;  %3986 = vst [vmem:[#allocation3 + $0x178] sm:$0xff] %v3914_v13  ;;  %v3391_v17 = vmax.f32 %v3199_v11, %v3205_v40  ;;  %v9538_v54 = vsel %vm4146_vm2, %v9295_v32, %v4084_v30 }
 0x146   : > { %v1765_v59 = vpop.f32.mrb[41].mxu0  ;;  %8021 = vmatmul.mubr.msk.f32.gmra.mrb[146].mxu0 %vm630_vm0, %v477_v33  ;;  %v4429_v33 = vsel %vm4425_vm5, %v9437_v2, %v4084_v30  ;;  %3532 = vst [vmem:[#allocation2 + $0x300] sm:$0xff] %v3388_v10  ;;  %v3207_v19 = vmax.f32 %v2581_v48, 0.0  ;;  %v3206_v60 = vmax.f32 %v2576_v5, 0.0  ;;  %v9529_v43 = vpop.f32.mrb[37].mxu1  ;;  %v9543_v41 = vadd.f32 %v9152_v63, %v9461_v45  ;;  %v481_v62 = vld [vmem:[%s8662_s23 + $0x4b8] sm:$0xff] }
 0x147   : > { %8023 = vmatprep.mubr.msk.f32.mxu0 %vm630_vm0, %v478_v24  ;;  %3946 = vst [vmem:[#allocation3 + $0x38] sm:$0xff] %v9494_v49  ;;  %v3390_v28 = vmax.f32 %v3198_v52, %v3204_v4  ;;  %3535 = vst [vmem:[#allocation2 + $0x318] sm:$0xff] %v3391_v17  ;;  %v4501_v7 = vsel %vm4497_vm6, %v4429_v33, %v9520_v39  ;;  %v9551_v30 = vpop.f32.mrb[38].mxu1  ;;  %v3041_v11 = vmax.f32 %v1751_v16, 0.0  ;;  %v482_v47 = vld [vmem:[%s8662_s23 + $0x4c0] sm:$0xff]  ;;  %v3040_v52 = vmax.f32 %v1746_v23, 0.0 }
 0x148   : > { %v3596_v6 = vld [vmem:[#allocation2 + $0x80] ss:$2 sm:$0xff]  ;;  %v3740_v18 = vld [vmem:[#allocation2 + $0x81] ss:$2 sm:$0xff]  ;;  %v3393_v50 = vmax.f32 %v3201_v61, %v3207_v19  ;;  %v3392_v32 = vmax.f32 %v3200_v3, %v3206_v60  ;;  %v9554_v42 = vadd.f32 %v7863_v20, %v9152_v63  ;;  %v9557_v45 = vadd.f32 %v9152_v63, %v1765_v59  ;;  %v9560_v36 = vpop.f32.mrb[39].mxu1 }
 0x149   : > { %v9525_v21 = vmax.f32 %v3596_v6, %v3740_v18  ;;  %v7866_v24 = vpop.f32.mrb[42].mxu0  ;;  %3534 = vst [vmem:[#allocation2 + $0x310] sm:$0xff] %v3390_v28  ;;  %v4572_v13 = vsel %vm4569_vm7, %v4500_v14, %v9449_v37  ;;  %v9567_v20 = vadd.f32 %v9363_v1, %v9152_v63  ;;  %v3043_v59 = vmax.f32 %v1761_v31, 0.0  ;;  %v483_v3 = vld [vmem:[%s8662_s23 + $0x4c8] sm:$0xff]  ;;  %v9586_v17 = vpop.f32.mrb[40].mxu1  ;;  %v484_v28 = vld [vmem:[%s8662_s23 + $0x4d0] sm:$0xff] }
 0x14a   : > { %v1781_v2 = vadd.f32 %v7866_v24, %v9152_v63  ;;  %v1775_v35 = vpop.f32.mrb[43].mxu0  ;;  %8024 = vmatmul.mubr.msk.f32.gmra.mrb[148].mxu0 %vm630_vm0, %v479_v25  ;;  %3537 = vst [vmem:[#allocation2 + $0x328] sm:$0xff] %v3393_v50  ;;  %3536 = vst [vmem:[#allocation2 + $0x320] sm:$0xff] %v3392_v32  ;;  %v9578_v14 = vadd.f32 %v9152_v63, %v9369_v46  ;;  %v3042_v1 = vmax.f32 %v9543_v41, 0.0  ;;  %v3045_v19 = vmax.f32 %v9554_v42, 0.0  ;;  %v9594_v60 = vpop.f32.mrb[41].mxu1 }
 0x14b   : > { %3947 = vst [vmem:[#allocation3 + $0x40] sm:$0xff] %v9525_v21  ;;  %v1776_v8 = vadd.f32 %v9152_v63, %v1775_v35  ;;  %8026 = vmatprep.mubr.msk.f32.mxu0 %vm630_vm0, %v480_v56  ;;  %v4573_v18 = vsel %vm4569_vm7, %v4501_v7, %v9494_v49  ;;  %v3044_v46 = vmax.f32 %v9557_v45, 0.0  ;;  %v4085_v50 = vld [vmem:[#allocation3 + $0x29] sm:$0xff] }
 0x14c   : > { %v3047_v48 = vmax.f32 %v1781_v2, 0.0 }
 0x14d   : > { %v3046_v53 = vmax.f32 %v1776_v8, 0.0  ;;  %v7869_v5 = vpop.f32.mrb[44].mxu0  ;;  %v3676_v16 = vld [vmem:[#allocation2 + $0x300] ss:$2 sm:$0xff]  ;;  %v3820_v33 = vld [vmem:[#allocation2 + $0x301] ss:$2 sm:$0xff] }
 0x14e   : > { %v3311_v61 = vmax.f32 %v3041_v11, %v3047_v48  ;;  %v1791_v10 = vadd.f32 %v7869_v5, %v9152_v63  ;;  %v1785_v40 = vpop.f32.mrb[45].mxu0  ;;  %8027 = vmatmul.mubr.msk.f32.gmra.mrb[150].mxu0 %vm630_vm0, %v481_v62  ;;  %v9571_v25 = vld [vmem:[#allocation3 + $0x31] sm:$0xff]  ;;  %v3915_v41 = vmax.f32 %v3676_v16, %v3820_v33  ;;  %v3209_v8 = vmax.f32 %v9567_v20, 0.0 }
 0x14f   : > { %v9573_v56 = vld [vmem:[#allocation3 + $0x32] sm:$0xff]  ;;  %v3310_v4 = vmax.f32 %v3040_v52, %v3046_v53  ;;  %v1786_v6 = vadd.f32 %v9152_v63, %v1785_v40  ;;  %8029 = vmatprep.mubr.msk.f32.mxu0 %vm630_vm0, %v482_v47  ;;  %v4644_v24 = vsel %vm4641_vm8, %v4572_v13, %v9571_v25  ;;  %v3208_v48 = vmax.f32 %v9578_v14, 0.0  ;;  %v9622_v40 = vpop.f32.mrb[42].mxu1 }
 0x150   : > { %3455 = vst [vmem:[#allocation2 + $0x98] sm:$0xff] %v3311_v61  ;;  %v3049_v23 = vmax.f32 %v1791_v10, 0.0  ;;  %v4716_v35 = vsel %vm4713_vm9, %v4644_v24, %v9573_v56  ;;  %v3678_v45 = vld [vmem:[#allocation2 + $0x310] ss:$2 sm:$0xff]  ;;  %v9609_v47 = vadd.f32 %v9377_v58, %v9152_v63  ;;  %3987 = vst [vmem:[#allocation3 + $0x180] sm:$0xff] %v3915_v41  ;;  %v9620_v10 = vadd.f32 %v9152_v63, %v9383_v0  ;;  %v9635_v0 = vpop.f32.mrb[43].mxu1 }
 0x151   : > { %3454 = vst [vmem:[#allocation2 + $0x90] sm:$0xff] %v3310_v4  ;;  %v3048_v31 = vmax.f32 %v1786_v6, 0.0  ;;  %v7872_v2 = vpop.f32.mrb[46].mxu0  ;;  %8265 = vmatprep.mubr.f32.mxu1 %v4716_v35  ;;  %v485_v13 = vld [vmem:[%s8662_s23 + $0x4d8] sm:$0xff]  ;;  %v3680_v4 = vld [vmem:[#allocation2 + $0x320] ss:$2 sm:$0xff] }
 0x152   : > { %v3313_v62 = vmax.f32 %v3043_v59, %v3049_v23  ;;  %v1801_v7 = vadd.f32 %v7872_v2, %v9152_v63  ;;  %v1795_v32 = vpop.f32.mrb[47].mxu0  ;;  %8030 = vmatmul.mubr.msk.f32.gmra.mrb[152].mxu0 %vm630_vm0, %v483_v3  ;;  %v9602_v11 = vld [vmem:[#allocation3 + $0x39] sm:$0xff]  ;;  %v3824_v6 = vld [vmem:[#allocation2 + $0x321] ss:$2 sm:$0xff]  ;;  %v4154_v23 = vsel %vm4146_vm2, %v9332_v57, %v4085_v50  ;;  %v488_v35 = vld [vmem:[%s8662_s23 + $0x4f0] sm:$0xff] }
 0x153   : > { %v9604_v42 = vld [vmem:[#allocation3 + $0x3a] sm:$0xff]  ;;  %v3312_v52 = vmax.f32 %v3042_v1, %v3048_v31  ;;  %v1796_v53 = vadd.f32 %v9152_v63, %v1795_v32  ;;  %8032 = vmatprep.mubr.msk.f32.mxu0 %vm630_vm0, %v484_v28  ;;  %v4645_v5 = vsel %vm4641_vm8, %v4573_v18, %v9602_v11  ;;  %v4288_v1 = vsel %vm4281_vm3, %v9538_v54, %v9520_v39  ;;  %v4220_v41 = vld [vmem:[#allocation3 + $0x2a] sm:$0xff] }
 0x154   : > { %v486_v59 = vld [vmem:[%s8662_s23 + $0x4e0] sm:$0xff]  ;;  %v3822_v61 = vld [vmem:[#allocation2 + $0x311] ss:$2 sm:$0xff]  ;;  %3457 = vst [vmem:[#allocation2 + $0xa8] sm:$0xff] %v3313_v62  ;;  %v3051_v58 = vmax.f32 %v1801_v7, 0.0  ;;  %v4717_v3 = vsel %vm4713_vm9, %v4645_v5, %v9604_v42  ;;  %v9633_v18 = vadd.f32 %v9401_v27, %v9152_v63  ;;  %v3917_v39 = vmax.f32 %v3680_v4, %v3824_v6  ;;  %v9660_v7 = vpop.f32.mrb[44].mxu1 }
 0x155   : > { %3456 = vst [vmem:[#allocation2 + $0xa0] sm:$0xff] %v3312_v52  ;;  %v3050_v16 = vmax.f32 %v1796_v53, 0.0  ;;  %v7875_v33 = vpop.f32.mrb[48].mxu0  ;;  %8266 = vmatmul.mubr.f32.vlgmr.msra.gmra.mrb[110].mxu1 %v4717_v3  ;;  %v3916_v24 = vmax.f32 %v3678_v45, %v3822_v61  ;;  %v4430_v63 = vsel %vm4425_vm5, %v9454_v9, %v4085_v50  ;;  %v3211_v27 = vmax.f32 %v9609_v47, 0.0  ;;  %v9648_v31 = vld [vmem:[%s14004_s2] ss:$0 sm:$0xff] }
 0x156   : > { %v3315_v54 = vmax.f32 %v3045_v19, %v3051_v58  ;;  %v1805_v28 = vpop.f32.mrb[49].mxu0  ;;  %8033 = vmatmul.mubr.msk.f32.gmra.mrb[154].mxu0 %vm630_vm0, %v485_v13  ;;  %v2621_v57 = vadd.f32 %v9648_v31, %v9432_v34  ;;  %v487_v19 = vld [vmem:[%s8662_s23 + $0x4e8] sm:$0xff]  ;;  %3989 = vst [vmem:[#allocation3 + $0x190] sm:$0xff] %v3917_v39  ;;  %v3210_v9 = vmax.f32 %v9620_v10, 0.0  ;;  %v2616_v50 = vadd.f32 %v9648_v31, %v9473_v55 }
 0x157   : > { %v3314_v2 = vmax.f32 %v3044_v46, %v3050_v16  ;;  %8035 = vmatprep.mubr.msk.f32.mxu0 %vm630_vm0, %v486_v59  ;;  %3988 = vst [vmem:[#allocation3 + $0x188] sm:$0xff] %v3916_v24  ;;  %v2631_v62 = vadd.f32 %v9648_v31, %v9487_v29  ;;  %v3213_v46 = vmax.f32 %v9633_v18, 0.0  ;;  %v2626_v47 = vadd.f32 %v9648_v31, %v9503_v51  ;;  %v9671_v59 = vpop.f32.mrb[45].mxu1  ;;  %v490_v24 = vld [vmem:[%s8662_s23 + $0x500] sm:$0xff] }
 0x158   : > { %v3598_v32 = vld [vmem:[#allocation2 + $0x90] ss:$2 sm:$0xff]  ;;  %v3742_v34 = vld [vmem:[#allocation2 + $0x91] ss:$2 sm:$0xff]  ;;  %3459 = vst [vmem:[#allocation2 + $0xb8] sm:$0xff] %v3315_v54  ;;  %v3215_v45 = vmax.f32 %v2621_v57, 0.0  ;;  %v2641_v52 = vadd.f32 %v9648_v31, %v9516_v38  ;;  %v2606_v29 = vadd.f32 %v9648_v31, %v9404_v44  ;;  %v4359_v51 = vsel %vm4353_vm4, %v9511_v26, %v9449_v37 }
 0x159   : > { %v9667_v53 = vmax.f32 %v3598_v32, %v3742_v34  ;;  %3458 = vst [vmem:[#allocation2 + $0xb0] sm:$0xff] %v3314_v2  ;;  %v7878_v55 = vpop.f32.mrb[50].mxu0  ;;  %v3214_v5 = vmax.f32 %v2616_v50, 0.0  ;;  %v3217_v13 = vmax.f32 %v2631_v62, 0.0  ;;  %v3216_v10 = vmax.f32 %v2626_v47, 0.0  ;;  %v489_v44 = vld [vmem:[%s8662_s23 + $0x4f8] sm:$0xff] }
 0x15a   : > { %v1815_v61 = vpop.f32.mrb[51].mxu0  ;;  %8036 = vmatmul.mubr.msk.f32.gmra.mrb[156].mxu0 %vm630_vm0, %v487_v19  ;;  %v3395_v38 = vmax.f32 %v3209_v8, %v3215_v45  ;;  %v3219_v58 = vmax.f32 %v2641_v52, 0.0  ;;  %v4289_v3 = vsel %vm4281_vm3, %v4154_v23, %v4220_v41  ;;  %v4502_v26 = vsel %vm4497_vm6, %v4430_v63, %v4220_v41  ;;  %v9692_v8 = vpop.f32.mrb[46].mxu1  ;;  %v492_v47 = vld [vmem:[%s8662_s23 + $0x510] sm:$0xff] }
 0x15b   : > { %3948 = vst [vmem:[#allocation3 + $0x48] sm:$0xff] %v9667_v53  ;;  %8038 = vmatprep.mubr.msk.f32.mxu0 %vm630_vm0, %v488_v35  ;;  %v4360_v4 = vsel %vm4353_vm4, %v4288_v1, %v9494_v49  ;;  %v3394_v20 = vmax.f32 %v3208_v48, %v3214_v5  ;;  %v4431_v16 = vsel %vm4425_vm5, %v4359_v51, %v9571_v25  ;;  %v9698_v63 = vpop.f32.mrb[47].mxu1  ;;  %v3212_v57 = vmax.f32 %v2606_v29, 0.0 }
 0x15c   : > { %v3600_v6 = vld [vmem:[#allocation2 + $0xa0] ss:$2 sm:$0xff]  ;;  %v3744_v18 = vld [vmem:[#allocation2 + $0xa1] ss:$2 sm:$0xff]  ;;  %3539 = vst [vmem:[#allocation2 + $0x338] sm:$0xff] %v3395_v38  ;;  %v3397_v23 = vmax.f32 %v3211_v27, %v3217_v13  ;;  %v3396_v39 = vmax.f32 %v3210_v9, %v3216_v10  ;;  %v3399_v54 = vmax.f32 %v3213_v46, %v3219_v58  ;;  %v9701_v1 = vadd.f32 %v9648_v31, %v7875_v33  ;;  %v9728_v50 = vpop.f32.mrb[48].mxu1 }
 0x15d   : > { %v7881_v14 = vpop.f32.mrb[52].mxu0  ;;  %v9703_v48 = vmax.f32 %v3600_v6, %v3744_v18  ;;  %3538 = vst [vmem:[#allocation2 + $0x330] sm:$0xff] %v3394_v20  ;;  %v2636_v2 = vadd.f32 %v9648_v31, %v9529_v43  ;;  %v9708_v19 = vadd.f32 %v9648_v31, %v1805_v28  ;;  %v9711_v27 = vadd.f32 %v9648_v31, %v7878_v55  ;;  %v491_v43 = vld [vmem:[%s8662_s23 + $0x508] sm:$0xff]  ;;  %v9755_v13 = vpop.f32.mrb[49].mxu1  ;;  %v493_v20 = vld [vmem:[%s8662_s23 + $0x518] sm:$0xff]  ;;  %v494_v6 = vld [vmem:[%s8662_s23 + $0x520] sm:$0xff] }
 0x15e   : > { %v1825_v35 = vpop.f32.mrb[53].mxu0  ;;  %8039 = vmatmul.mubr.msk.f32.gmra.mrb[158].mxu0 %vm630_vm0, %v489_v44  ;;  %v4432_v33 = vsel %vm4425_vm5, %v4360_v4, %v9602_v11  ;;  %3541 = vst [vmem:[#allocation2 + $0x348] sm:$0xff] %v3397_v23  ;;  %3540 = vst [vmem:[#allocation2 + $0x340] sm:$0xff] %v3396_v39  ;;  %v9718_v41 = vadd.f32 %v9648_v31, %v1815_v61  ;;  %v9725_v28 = vsel %vm4353_vm4, %v4289_v3, %v9525_v21  ;;  %v9780_v18 = vpop.f32.mrb[50].mxu1 }
 0x15f   : > { %3543 = vst [vmem:[#allocation2 + $0x358] sm:$0xff] %v3399_v54  ;;  %8041 = vmatprep.mubr.msk.f32.mxu0 %vm630_vm0, %v490_v24  ;;  %3949 = vst [vmem:[#allocation3 + $0x50] sm:$0xff] %v9703_v48  ;;  %v3218_v9 = vmax.f32 %v2636_v2, 0.0  ;;  %v9734_v62 = vsel %vm4146_vm2, %v9449_v37, %v9571_v25  ;;  %v4503_v32 = vsel %vm4497_vm6, %v4431_v16, %v9573_v56  ;;  %v3053_v37 = vmax.f32 %v9701_v1, 0.0 }
 0x160   : > { %v3602_v34 = vld [vmem:[#allocation2 + $0xb0] ss:$2 sm:$0xff]  ;;  %v3746_v46 = vld [vmem:[#allocation2 + $0xb1] ss:$2 sm:$0xff]  ;;  %v9743_v45 = vsel %vm4146_vm2, %v9494_v49, %v9602_v11  ;;  %v4574_v52 = vsel %vm4569_vm7, %v4502_v26, %v9525_v21  ;;  %v4504_v29 = vsel %vm4497_vm6, %v4432_v33, %v9604_v42  ;;  %v3052_v49 = vmax.f32 %v9708_v19, 0.0 }
 0x161   : > { %v9749_v55 = vmax.f32 %v3602_v34, %v3746_v46  ;;  %v7884_v25 = vpop.f32.mrb[54].mxu0  ;;  %v3398_v5 = vmax.f32 %v3212_v57, %v3218_v9  ;;  %v3055_v11 = vmax.f32 %v9711_v27, 0.0  ;;  %v4575_v58 = vsel %vm4569_vm7, %v4503_v32, %v9667_v53 }
 0x162   : > { %v1841_v51 = vadd.f32 %v9648_v31, %v7884_v25  ;;  %v1835_v61 = vpop.f32.mrb[55].mxu0  ;;  %8042 = vmatmul.mubr.msk.f32.gmra.mrb[160].mxu0 %vm630_vm0, %v491_v43  ;;  %v9761_v38 = vld [vmem:[#allocation3 + $0x41] sm:$0xff]  ;;  %v3054_v44 = vmax.f32 %v9718_v41, 0.0  ;;  %v9771_v3 = vadd.f32 %v9648_v31, %v7881_v14  ;;  %v9787_v54 = vadd.f32 %v9648_v31, %v9551_v30  ;;  %v9793_v14 = vpop.f32.mrb[51].mxu1 }
 0x163   : > { %v9763_v10 = vld [vmem:[#allocation3 + $0x42] sm:$0xff]  ;;  %3950 = vst [vmem:[#allocation3 + $0x58] sm:$0xff] %v9749_v55  ;;  %v1836_v26 = vadd.f32 %v9648_v31, %v1835_v61  ;;  %8044 = vmatprep.mubr.msk.f32.mxu0 %vm630_vm0, %v492_v47  ;;  %v4646_v4 = vsel %vm4641_vm8, %v4574_v52, %v9761_v38  ;;  %3542 = vst [vmem:[#allocation2 + $0x350] sm:$0xff] %v3398_v5  ;;  %v9791_v1 = vadd.f32 %v9648_v31, %v9560_v36  ;;  %v9819_v5 = vpop.f32.mrb[52].mxu1 }
 0x164   : > { %v3059_v16 = vmax.f32 %v1841_v51, 0.0  ;;  %v4718_v24 = vsel %vm4713_vm9, %v4646_v4, %v9763_v10  ;;  %v3682_v23 = vld [vmem:[#allocation2 + $0x330] ss:$2 sm:$0xff]  ;;  %v3826_v39 = vld [vmem:[#allocation2 + $0x331] ss:$2 sm:$0xff]  ;;  %v9797_v43 = vadd.f32 %v9648_v31, %v9586_v17  ;;  %v9801_v30 = vadd.f32 %v9648_v31, %v9594_v60 }
 0x165   : > { %v3058_v57 = vmax.f32 %v1836_v26, 0.0  ;;  %v7887_v2 = vpop.f32.mrb[56].mxu0  ;;  %8268 = vmatprep.mubr.f32.mxu1 %v4718_v24  ;;  %v3918_v19 = vmax.f32 %v3682_v23, %v3826_v39  ;;  %v3684_v27 = vld [vmem:[#allocation2 + $0x340] ss:$2 sm:$0xff]  ;;  %v3828_v33 = vld [vmem:[#allocation2 + $0x341] ss:$2 sm:$0xff]  ;;  %v9804_v36 = vadd.f32 %v9648_v31, %v1825_v35  ;;  %v9831_v26 = vadd.f32 %v9648_v31, %v9635_v0 }
 0x166   : > { %v3317_v9 = vmax.f32 %v3053_v37, %v3059_v16  ;;  %v1851_v32 = vadd.f32 %v9648_v31, %v7887_v2  ;;  %v1845_v34 = vpop.f32.mrb[57].mxu0  ;;  %8045 = vmatmul.mubr.msk.f32.gmra.mrb[162].mxu0 %vm630_vm0, %v493_v20  ;;  %v9808_v46 = vld [vmem:[#allocation3 + $0x49] sm:$0xff]  ;;  %v3919_v17 = vmax.f32 %v3684_v27, %v3828_v33  ;;  %v3057_v52 = vmax.f32 %v9771_v3, 0.0  ;;  %v497_v27 = vld [vmem:[%s8662_s23 + $0x538] sm:$0xff] }
 0x167   : > { %v9810_v47 = vld [vmem:[#allocation3 + $0x4a] sm:$0xff]  ;;  %v3316_v25 = vmax.f32 %v3052_v49, %v3058_v57  ;;  %v1846_v60 = vadd.f32 %v9648_v31, %v1845_v34  ;;  %8047 = vmatprep.mubr.msk.f32.mxu0 %vm630_vm0, %v494_v6  ;;  %v4576_v37 = vsel %vm4569_vm7, %v4504_v29, %v9703_v48  ;;  %3990 = vst [vmem:[#allocation3 + $0x198] sm:$0xff] %v3918_v19  ;;  %v9833_v29 = vpop.f32.mrb[53].mxu1  ;;  %v3221_v2 = vmax.f32 %v9787_v54, 0.0 }
 0x168   : > { %v495_v35 = vld [vmem:[%s8662_s23 + $0x528] sm:$0xff]  ;;  %3461 = vst [vmem:[#allocation2 + $0xc8] sm:$0xff] %v3317_v9  ;;  %v3061_v51 = vmax.f32 %v1851_v32, 0.0  ;;  %v4647_v61 = vsel %vm4641_vm8, %v4575_v58, %v9808_v46  ;;  %v496_v3 = vld [vmem:[%s8662_s23 + $0x530] sm:$0xff]  ;;  %3991 = vst [vmem:[#allocation3 + $0x1a0] sm:$0xff] %v3919_v17  ;;  %v9827_v49 = vadd.f32 %v9648_v31, %v9622_v40  ;;  %v2681_v58 = vadd.f32 %v9648_v31, %v9660_v7  ;;  %v9858_v32 = vpop.f32.mrb[54].mxu1 }
 0x169   : > { %3460 = vst [vmem:[#allocation2 + $0xc0] sm:$0xff] %v3316_v25  ;;  %v3060_v4 = vmax.f32 %v1846_v60, 0.0  ;;  %v7890_v20 = vpop.f32.mrb[58].mxu0  ;;  %v4719_v6 = vsel %vm4713_vm9, %v4647_v61, %v9810_v47  ;;  %v2676_v40 = vadd.f32 %v9648_v31, %v9671_v59  ;;  %v2691_v7 = vadd.f32 %v9648_v31, %v9692_v8  ;;  %v9866_v34 = vpop.f32.mrb[55].mxu1 }
 0x16a   : > { %v3319_v16 = vmax.f32 %v3055_v11, %v3061_v51  ;;  %v1861_v0 = vadd.f32 %v9648_v31, %v7890_v20  ;;  %8269 = vmatmul.mubr.f32.gmra.mrb[112].mxu1 %v4719_v6  ;;  %v1855_v24 = vpop.f32.mrb[59].mxu0  ;;  %8048 = vmatmul.mubr.msk.f32.gmra.mrb[164].mxu0 %vm630_vm0, %v495_v35  ;;  %v9844_v23 = vld [vmem:[#allocation3 + $0x51] sm:$0xff]  ;;  %v3056_v59 = vmax.f32 %v9804_v36, 0.0  ;;  %v3220_v9 = vmax.f32 %v9791_v1, 0.0  ;;  %v498_v36 = vld [vmem:[%s8662_s23 + $0x540] sm:$0xff]  ;;  %v499_v20 = vld [vmem:[%s8662_s23 + $0x548] sm:$0xff] }
 0x16b   : > { %v9846_v39 = vld [vmem:[#allocation3 + $0x52] sm:$0xff]  ;;  %v3318_v11 = vmax.f32 %v3054_v44, %v3060_v4  ;;  %v1856_v19 = vadd.f32 %v9648_v31, %v1855_v24  ;;  %8050 = vmatprep.mubr.msk.f32.mxu0 %vm630_vm0, %v496_v3  ;;  %v4648_v8 = vsel %vm4641_vm8, %v4576_v37, %v9844_v23  ;;  %v3223_v41 = vmax.f32 %v9797_v43, 0.0 }
 0x16c   : > { %v3686_v57 = vld [vmem:[#allocation2 + $0x350] ss:$2 sm:$0xff]  ;;  %v3830_v33 = vld [vmem:[#allocation2 + $0x351] ss:$2 sm:$0xff]  ;;  %3463 = vst [vmem:[#allocation2 + $0xd8] sm:$0xff] %v3319_v16  ;;  %v3063_v54 = vmax.f32 %v1861_v0, 0.0  ;;  %v4720_v1 = vsel %vm4713_vm9, %v4648_v8, %v9846_v39  ;;  %v4157_v3 = vsel %vm4146_vm2, %v9525_v21, %v9761_v38  ;;  %v2686_v6 = vadd.f32 %v9648_v31, %v9698_v63 }
 0x16d   : > { %v3222_v44 = vmax.f32 %v9801_v30, 0.0  ;;  %3462 = vst [vmem:[#allocation2 + $0xd0] sm:$0xff] %v3318_v11  ;;  %v3062_v17 = vmax.f32 %v1856_v19, 0.0  ;;  %v7893_v25 = vpop.f32.mrb[60].mxu0  ;;  %v3920_v60 = vmax.f32 %v3686_v57, %v3830_v33  ;;  %v3227_v35 = vmax.f32 %v2681_v58, 0.0  ;;  %8271 = vmatprep.mubr.f32.mxu1 %v4720_v1  ;;  %v9881_v58 = vpop.f32.mrb[56].mxu1 }
 0x16e   : > { %v3321_v51 = vmax.f32 %v3057_v52, %v3063_v54  ;;  %v1865_v37 = vpop.f32.mrb[61].mxu0  ;;  %8051 = vmatmul.mubr.msk.f32.gmra.mrb[166].mxu0 %vm630_vm0, %v497_v27  ;;  %v3225_v43 = vmax.f32 %v9827_v49, 0.0  ;;  %v3226_v30 = vmax.f32 %v2676_v40, 0.0  ;;  %v3229_v61 = vmax.f32 %v2691_v7, 0.0  ;;  %v500_v21 = vld [vmem:[%s8662_s23 + $0x550] sm:$0xff] }
 0x16f   : > { %v3320_v4 = vmax.f32 %v3056_v59, %v3062_v17  ;;  %8053 = vmatprep.mubr.msk.f32.mxu0 %vm630_vm0, %v498_v36  ;;  %3992 = vst [vmem:[#allocation3 + $0x1a8] sm:$0xff] %v3920_v60  ;;  %v3401_v52 = vmax.f32 %v3221_v2, %v3227_v35  ;;  %v4433_v40 = vsel %vm4425_vm5, %v9725_v28, %v9761_v38  ;;  %v9890_v2 = vpop.f32.mrb[57].mxu1  ;;  %v3228_v28 = vmax.f32 %v2686_v6, 0.0  ;;  %v504_v6 = vld [vmem:[%s8662_s23 + $0x570] sm:$0xff] }
 0x170   : > { %v3604_v16 = vld [vmem:[#allocation2 + $0xc0] ss:$2 sm:$0xff]  ;;  %v3748_v49 = vld [vmem:[#allocation2 + $0xc1] ss:$2 sm:$0xff]  ;;  %3465 = vst [vmem:[#allocation2 + $0xe8] sm:$0xff] %v3321_v51  ;;  %v3400_v0 = vmax.f32 %v3220_v9, %v3226_v30  ;;  %v3403_v24 = vmax.f32 %v3223_v41, %v3229_v61  ;;  %v2701_v57 = vadd.f32 %v9648_v31, %v9728_v50  ;;  %v4290_v63 = vsel %vm4281_vm3, %v9734_v62, %v9573_v56  ;;  %v9921_v33 = vpop.f32.mrb[58].mxu1 }
 0x171   : > { %v9896_v7 = vmax.f32 %v3604_v16, %v3748_v49  ;;  %3464 = vst [vmem:[#allocation2 + $0xe0] sm:$0xff] %v3320_v4  ;;  %v7896_v59 = vpop.f32.mrb[62].mxu0  ;;  %3545 = vst [vmem:[#allocation2 + $0x368] sm:$0xff] %v3401_v52  ;;  %v2696_v38 = vadd.f32 %v9648_v31, %v9755_v13  ;;  %v4362_v50 = vsel %vm4353_vm4, %v4290_v63, %v9667_v53  ;;  %v3224_v62 = vmax.f32 %v9831_v26, 0.0  ;;  %v502_v41 = vld [vmem:[%s8662_s23 + $0x560] sm:$0xff]  ;;  %v9941_v51 = vpop.f32.mrb[59].mxu1 }
 0x172   : > { %v4291_v11 = vsel %vm4281_vm3, %v9743_v45, %v9604_v42  ;;  %v1875_v56 = vpop.f32.mrb[63].mxu0  ;;  %8054 = vmatmul.mubr.msk.f32.gmra.mrb[168].mxu0 %vm630_vm0, %v499_v20  ;;  %3544 = vst [vmem:[#allocation2 + $0x360] sm:$0xff] %v3400_v0  ;;  %3547 = vst [vmem:[#allocation2 + $0x378] sm:$0xff] %v3403_v24  ;;  %v3231_v19 = vmax.f32 %v2701_v57, 0.0  ;;  %v4292_v13 = vsel %vm4281_vm3, %v4157_v3, %v9763_v10  ;;  %v501_v45 = vld [vmem:[%s8662_s23 + $0x558] sm:$0xff]  ;;  %v503_v52 = vld [vmem:[%s8662_s23 + $0x568] sm:$0xff] }
 0x173   : > { %3951 = vst [vmem:[#allocation3 + $0x60] sm:$0xff] %v9896_v7  ;;  %v4505_v27 = vsel %vm4497_vm6, %v4433_v40, %v9763_v10  ;;  %v9917_v42 = vadd.f32 %v9648_v31, %v7893_v25  ;;  %8056 = vmatprep.mubr.msk.f32.mxu0 %vm630_vm0, %v500_v21  ;;  %v3402_v26 = vmax.f32 %v3222_v44, %v3228_v28  ;;  %v3230_v10 = vmax.f32 %v2696_v38, 0.0  ;;  %v9976_v40 = vpop.f32.mrb[60].mxu1 }
 0x174   : > { %v3606_v9 = vld [vmem:[#allocation2 + $0xd0] ss:$2 sm:$0xff]  ;;  %v3750_v54 = vld [vmem:[#allocation2 + $0xd1] ss:$2 sm:$0xff]  ;;  %v9924_v8 = vadd.f32 %v9648_v31, %v1865_v37  ;;  %v9927_v36 = vadd.f32 %v9648_v31, %v7896_v59  ;;  %v3405_v17 = vmax.f32 %v3225_v43, %v3231_v19  ;;  %v4434_v25 = vsel %vm4425_vm5, %v4362_v50, %v9808_v46 }
 0x175   : > { %v9930_v1 = vmax.f32 %v3606_v9, %v3750_v54  ;;  %v4363_v44 = vsel %vm4353_vm4, %v4291_v11, %v9703_v48  ;;  %v9939_v60 = vadd.f32 %v9648_v31, %v1875_v56  ;;  %v7899_v35 = vpop.f32.mrb[64].mxu0  ;;  %3546 = vst [vmem:[#allocation2 + $0x370] sm:$0xff] %v3402_v26  ;;  %v9946_v37 = vsel %vm4353_vm4, %v4292_v13, %v9749_v55  ;;  %v506_v26 = vld [vmem:[%s8662_s23 + $0x580] sm:$0xff] }
 0x176   : > { %v4435_v43 = vsel %vm4425_vm5, %v4363_v44, %v9844_v23  ;;  %v9951_v30 = vpop.f32.mrb[65].mxu0  ;;  %8057 = vmatmul.mubr.msk.f32.gmra.mrb[170].mxu0 %vm630_vm0, %v501_v45  ;;  %v4577_v61 = vsel %vm4569_vm7, %v4505_v27, %v9749_v55  ;;  %3549 = vst [vmem:[#allocation2 + $0x388] sm:$0xff] %v3405_v17  ;;  %v3404_v3 = vmax.f32 %v3224_v62, %v3230_v10  ;;  %v3065_v20 = vmax.f32 %v9917_v42, 0.0  ;;  %v10011_v27 = vpop.f32.mrb[61].mxu1  ;;  %v505_v45 = vld [vmem:[%s8662_s23 + $0x578] sm:$0xff] }
 0x177   : > { %3952 = vst [vmem:[#allocation3 + $0x68] sm:$0xff] %v9930_v1  ;;  %v9962_v4 = vsel %vm4146_vm2, %v9667_v53, %v9808_v46  ;;  %8059 = vmatprep.mubr.msk.f32.mxu0 %vm630_vm0, %v502_v41  ;;  %v9970_v16 = vadd.f32 %v9648_v31, %v9780_v18  ;;  %v9974_v49 = vadd.f32 %v9648_v31, %v9793_v14  ;;  %v3064_v18 = vmax.f32 %v9924_v8, 0.0 }
 0x178   : > { %v4506_v53 = vsel %vm4497_vm6, %v4434_v25, %v9810_v47  ;;  %v3608_v46 = vld [vmem:[#allocation2 + $0xe0] ss:$2 sm:$0xff]  ;;  %v3752_v21 = vld [vmem:[#allocation2 + $0xe1] ss:$2 sm:$0xff]  ;;  %v9985_v0 = vsel %vm4146_vm2, %v9703_v48, %v9844_v23  ;;  %v3067_v24 = vmax.f32 %v9927_v36, 0.0  ;;  %3548 = vst [vmem:[#allocation2 + $0x380] sm:$0xff] %v3404_v3  ;;  %v4507_v57 = vsel %vm4497_vm6, %v4435_v43, %v9846_v39 }
 0x179   : > { %v9989_v14 = vmax.f32 %v3608_v46, %v3752_v21  ;;  %v3066_v63 = vmax.f32 %v9939_v60, 0.0  ;;  %v7902_v59 = vpop.f32.mrb[66].mxu0  ;;  %v3688_v28 = vld [vmem:[#allocation2 + $0x360] ss:$2 sm:$0xff]  ;;  %v3832_v38 = vld [vmem:[#allocation2 + $0x361] ss:$2 sm:$0xff]  ;;  %v9997_v48 = vadd.f32 %v9648_v31, %v9819_v5  ;;  %v2741_v19 = vadd.f32 %v9648_v31, %v9881_v58 }
 0x17a   : > { %v1901_v23 = vadd.f32 %v9648_v31, %v7902_v59  ;;  %v1895_v50 = vpop.f32.mrb[67].mxu0  ;;  %8060 = vmatmul.mubr.msk.f32.gmra.mrb[172].mxu0 %vm630_vm0, %v503_v52  ;;  %v10001_v11 = vld [vmem:[#allocation3 + $0x59] sm:$0xff]  ;;  %v3921_v62 = vmax.f32 %v3688_v28, %v3832_v38  ;;  %v10009_v13 = vadd.f32 %v9648_v31, %v9890_v2  ;;  %v3233_v58 = vmax.f32 %v9970_v16, 0.0  ;;  %v10023_v2 = vpop.f32.mrb[62].mxu1 }
 0x17b   : > { %v10003_v56 = vld [vmem:[#allocation3 + $0x5a] sm:$0xff]  ;;  %3953 = vst [vmem:[#allocation3 + $0x70] sm:$0xff] %v9989_v14  ;;  %v1896_v5 = vadd.f32 %v9648_v31, %v1895_v50  ;;  %8062 = vmatprep.mubr.msk.f32.mxu0 %vm630_vm0, %v504_v6  ;;  %v4649_v42 = vsel %vm4641_vm8, %v4577_v61, %v10001_v11  ;;  %v3232_v9 = vmax.f32 %v9974_v49, 0.0  ;;  %v10026_v54 = vadd.f32 %v9648_v31, %v7899_v35  ;;  %v10034_v44 = vpop.f32.mrb[63].mxu1 }
 0x17c   : > { %v3071_v8 = vmax.f32 %v1901_v23, 0.0  ;;  %v4721_v41 = vsel %vm4713_vm9, %v4649_v42, %v10003_v56  ;;  %v4578_v17 = vsel %vm4569_vm7, %v4506_v53, %v9896_v7  ;;  %3993 = vst [vmem:[#allocation3 + $0x1b0] sm:$0xff] %v3921_v62  ;;  %v3690_v10 = vld [vmem:[#allocation2 + $0x370] ss:$2 sm:$0xff]  ;;  %v3834_v25 = vld [vmem:[#allocation2 + $0x371] ss:$2 sm:$0xff]  ;;  %v2751_v52 = vadd.f32 %v9648_v31, %v9921_v33 }
 0x17d   : > { %v3070_v43 = vmax.f32 %v1896_v5, 0.0  ;;  %v7905_v61 = vpop.f32.mrb[68].mxu0  ;;  %8272 = vmatmul.mubr.f32.gmra.mrb[114].mxu1 %v4721_v41  ;;  %v3922_v35 = vmax.f32 %v3690_v10, %v3834_v25  ;;  %v3235_v3 = vmax.f32 %v9997_v48, 0.0  ;;  %v3239_v21 = vmax.f32 %v2741_v19, 0.0  ;;  %v507_v33 = vld [vmem:[%s8662_s23 + $0x588] sm:$0xff]  ;;  %v10055_v62 = vpop.f32.mrb[64].mxu1 }
 0x17e   : > { %v3323_v6 = vmax.f32 %v3065_v20, %v3071_v8  ;;  %v1911_v16 = vadd.f32 %v9648_v31, %v7905_v61  ;;  %v1905_v49 = vpop.f32.mrb[69].mxu0  ;;  %8063 = vmatmul.mubr.msk.f32.gmra.mrb[174].mxu0 %vm630_vm0, %v505_v45  ;;  %v10041_v53 = vld [vmem:[#allocation3 + $0x61] sm:$0xff]  ;;  %v3238_v59 = vmax.f32 %v10009_v13, 0.0  ;;  %v1886_v28 = vadd.f32 %v9648_v31, %v9951_v30  ;;  %v10067_v5 = vpop.f32.mrb[65].mxu1  ;;  %s324_s23 = scalar_lea.vmem [#allocation5], %s323_s25 }
 0x17f   : > { %v10043_v46 = vld [vmem:[#allocation3 + $0x62] sm:$0xff]  ;;  %v3322_v38 = vmax.f32 %v3064_v18, %v3070_v43  ;;  %v1906_v48 = vadd.f32 %v9648_v31, %v1905_v49  ;;  %8065 = vmatprep.mubr.msk.f32.mxu0 %vm630_vm0, %v506_v26  ;;  %3994 = vst [vmem:[#allocation3 + $0x1b8] sm:$0xff] %v3922_v35  ;;  %v10053_v50 = vadd.f32 %v9648_v31, %v9833_v29  ;;  %v3241_v43 = vmax.f32 %v2751_v52, 0.0  ;;  %v10086_v35 = vpop.f32.mrb[66].mxu1  ;;  %s6803_s27 = sshll.u32 %s324_s23, 4  ;;  %s13961_s27 = int_to_ptr.vmem [resolvable:$true] %s6803_s27 }
 0x180   : > { %v3692_v20 = vld [vmem:[#allocation2 + $0x380] ss:$2 sm:$0xff]  ;;  %v3836_v23 = vld [vmem:[#allocation2 + $0x381] ss:$2 sm:$0xff]  ;;  %3467 = vst [vmem:[#allocation2 + $0xf8] sm:$0xff] %v3323_v6  ;;  %v3073_v19 = vmax.f32 %v1911_v16, 0.0  ;;  %v4650_v30 = vsel %vm4641_vm8, %v4578_v17, %v10041_v53  ;;  %v4579_v18 = vsel %vm4569_vm7, %v4507_v57, %v9930_v1  ;;  %v10065_v13 = vadd.f32 %v9648_v31, %v9858_v32  ;;  %p8483_p0 = scmp.lt.s32.totalorder %s13961_s27, %s8481_s21 }
 0x181   : > { %3466 = vst [vmem:[#allocation2 + $0xf0] sm:$0xff] %v3322_v38  ;;  %v3072_v29 = vmax.f32 %v1906_v48, 0.0  ;;  %v7908_v42 = vpop.f32.mrb[70].mxu0  ;;  %v4722_v45 = vsel %vm4713_vm9, %v4650_v30, %v10043_v46  ;;  %v3923_v26 = vmax.f32 %v3692_v20, %v3836_v23  ;;  %v3407_v8 = vmax.f32 %v3233_v58, %v3239_v21  ;;  %v10092_v60 = vpop.f32.mrb[67].mxu1  ;;  %s8476_s17 = scalar_lea.vmem %s13961_s27, 16 }
 0x182   : > { %v3325_v41 = vmax.f32 %v3067_v24, %v3073_v19  ;;  %v1921_v57 = vadd.f32 %v9648_v31, %v7908_v42  ;;  %8274 = vmatprep.mubr.f32.mxu1 %v4722_v45  ;;  %v1915_v17 = vpop.f32.mrb[71].mxu0  ;;  %8066 = vmatmul.mubr.msk.f32.gmra.mrb[176].mxu0 %vm630_vm0, %v507_v33  ;;  %v10076_v32 = vld [vmem:[#allocation3 + $0x69] sm:$0xff]  ;;  %v3406_v25 = vmax.f32 %v3232_v9, %v3238_v59  ;;  %v3069_v61 = vmax.f32 %v10026_v54, 0.0  ;;  %p8477_p11 = scmp.ne.s32.totalorder %s13961_s27, %s8476_s17  ;;  %p8484_p1 = scmp.lt.s32.totalorder %s8482_s22, %s8476_s17 }
 0x183   : > { %v10078_v10 = vld [vmem:[#allocation3 + $0x6a] sm:$0xff]  ;;  %v3324_v58 = vmax.f32 %v3066_v63, %v3072_v29  ;;  %v1916_v36 = vadd.f32 %v9648_v31, %v1915_v17  ;;  %3995 = vst [vmem:[#allocation3 + $0x1c0] sm:$0xff] %v3923_v26  ;;  %v2726_v24 = vadd.f32 %v9648_v31, %v9866_v34  ;;  %3551 = vst [vmem:[#allocation2 + $0x398] sm:$0xff] %v3407_v8  ;;  %v3068_v6 = vmax.f32 %v1886_v28, 0.0 }
 0x184   : > { %3469 = vst [vmem:[#allocation2 + $0x108] sm:$0xff] %v3325_v41  ;;  %v3075_v16 = vmax.f32 %v1921_v57, 0.0  ;;  %v4651_v9 = vsel %vm4641_vm8, %v4579_v18, %v10076_v32  ;;  %v3234_v54 = vmax.f32 %v10053_v50, 0.0  ;;  %3550 = vst [vmem:[#allocation2 + $0x390] sm:$0xff] %v3406_v25  ;;  %v3409_v49 = vmax.f32 %v3235_v3, %v3241_v43  ;;  %v8172_v50 = vpop.f32.mrb[68].mxu1  ;;  %p8478_p12 = pnand %p8477_p11, %p8632_p5  ;;  %p8485_p2 = por %p8484_p1, %p8483_p0 }
 0x185   : > { %3468 = vst [vmem:[#allocation2 + $0x100] sm:$0xff] %v3324_v58  ;;  %v3074_v63 = vmax.f32 %v1916_v36, 0.0  ;;  %v7911_v52 = vpop.f32.mrb[72].mxu0  ;;  %v4723_v34 = vsel %vm4713_vm9, %v4651_v9, %v10078_v10  ;;  %v2746_v21 = vadd.f32 %v9648_v31, %v9941_v51  ;;  %v3237_v38 = vmax.f32 %v10065_v13, 0.0 }
 0x186   : > { %v3327_v59 = vmax.f32 %v3069_v61, %v3075_v16  ;;  %8275 = vmatmul.mubr.f32.gmra.mrb[116].mxu1 %v4723_v34  ;;  %v1925_v28 = vpop.f32.mrb[73].mxu0  ;;  %v2761_v48 = vadd.f32 %v9648_v31, %v9976_v40  ;;  %v2756_v33 = vadd.f32 %v9648_v31, %v10011_v27  ;;  %v4436_v20 = vsel %vm4425_vm5, %v9946_v37, %v10001_v11  ;;  %p8479_p13 = pneg %p8478_p12 }
 0x187   : > { %v3326_v3 = vmax.f32 %v3068_v6, %v3074_v63  ;;  %v3236_v23 = vmax.f32 %v2726_v24, 0.0  ;;  %3553 = vst [vmem:[#allocation2 + $0x3a8] sm:$0xff] %v3409_v49  ;;  %v3240_v51 = vmax.f32 %v2746_v21, 0.0  ;;  %v4293_v19 = vsel %vm4281_vm3, %v9962_v4, %v9810_v47  ;;  %v2795_v47 = vpop.f32.mrb[69].mxu1 }
 0x188   : > { %v4294_v40 = vsel %vm4281_vm3, %v9985_v0, %v9846_v39  ;;  %v3610_v27 = vld [vmem:[#allocation2 + $0xf0] ss:$2 sm:$0xff]  ;;  %v3754_v30 = vld [vmem:[#allocation2 + $0xf1] ss:$2 sm:$0xff]  ;;  %3471 = vst [vmem:[#allocation2 + $0x118] sm:$0xff] %v3327_v59  ;;  %v3243_v18 = vmax.f32 %v2761_v48, 0.0  ;;  %v4365_v37 = vsel %vm4353_vm4, %v4293_v19, %v9896_v7  ;;  %v4160_v39 = vsel %vm4146_vm2, %v9749_v55, %v10001_v11  ;;  %p8486_p3 = pnand %p8485_p2, %p8479_p13 }
 0x189   : > { %v10119_v13 = vmax.f32 %v3610_v27, %v3754_v30  ;;  %3470 = vst [vmem:[#allocation2 + $0x110] sm:$0xff] %v3326_v3  ;;  %v7914_v29 = vpop.f32.mrb[74].mxu0  ;;  %v3408_v42 = vmax.f32 %v3234_v54, %v3240_v51  ;;  %v3242_v45 = vmax.f32 %v2756_v33, 0.0  ;;  %v4508_v4 = vsel %vm4497_vm6, %v4436_v20, %v10003_v56  ;;  %v8175_v43 = vpop.f32.mrb[70].mxu1 }
 0x18a   : > { %v4437_v0 = vsel %vm4425_vm5, %v4365_v37, %v10041_v53  ;;  %v1935_v26 = vpop.f32.mrb[75].mxu0  ;;  %v3411_v8 = vmax.f32 %v3237_v38, %v3243_v18  ;;  %v10133_v41 = vadd.f32 %v9648_v31, %v7911_v52  ;;  %v10136_v57 = vadd.f32 %v9648_v31, %v1925_v28  ;;  %v2805_v34 = vpop.f32.mrb[71].mxu1 }
 0x18b   : > { %3954 = vst [vmem:[#allocation3 + $0x78] sm:$0xff] %v10119_v13  ;;  %v3694_v17 = vld [vmem:[#allocation2 + $0x390] ss:$2 sm:$0xff]  ;;  %v3838_v55 = vld [vmem:[#allocation2 + $0x391] ss:$2 sm:$0xff]  ;;  %3552 = vst [vmem:[#allocation2 + $0x3a0] sm:$0xff] %v3408_v42  ;;  %v3410_v11 = vmax.f32 %v3236_v23, %v3242_v45  ;;  %v10140_v25 = vadd.f32 %v9648_v31, %v10023_v2  ;;  %v4366_v61 = vsel %vm4353_vm4, %v4294_v40, %v9930_v1 }
 0x18c   : > { %v3612_v58 = vld [vmem:[#allocation2 + $0x100] ss:$2 sm:$0xff]  ;;  %v3756_v36 = vld [vmem:[#allocation2 + $0x101] ss:$2 sm:$0xff]  ;;  %v10146_v24 = vadd.f32 %v9648_v31, %v7914_v29  ;;  %v3924_v6 = vmax.f32 %v3694_v17, %v3838_v55  ;;  %3555 = vst [vmem:[#allocation2 + $0x3b8] sm:$0xff] %v3411_v8  ;;  %v10150_v16 = vadd.f32 %v9648_v31, %v10034_v44  ;;  %v4438_v2 = vsel %vm4425_vm5, %v4366_v61, %v10076_v32  ;;  %v8178_v33 = vpop.f32.mrb[72].mxu1 }
 0x18d   : > { %v10152_v9 = vmax.f32 %v3612_v58, %v3756_v36  ;;  %v10158_v54 = vadd.f32 %v9648_v31, %v1935_v26  ;;  %v7917_v63 = vpop.f32.mrb[76].mxu0  ;;  %3554 = vst [vmem:[#allocation2 + $0x3b0] sm:$0xff] %v3410_v11  ;;  %v10162_v52 = vadd.f32 %v9648_v31, %v10055_v62  ;;  %v10167_v44 = vsel %vm4281_vm3, %v4160_v39, %v10003_v56  ;;  %v2815_v29 = vpop.f32.mrb[73].mxu1 }
 0x18e   : > { %v4509_v49 = vsel %vm4497_vm6, %v4437_v0, %v10043_v46  ;;  %v1945_v21 = vpop.f32.mrb[77].mxu0  ;;  %v4580_v59 = vsel %vm4569_vm7, %v4508_v4, %v9989_v14  ;;  %3996 = vst [vmem:[#allocation3 + $0x1c8] sm:$0xff] %v3924_v6  ;;  %v2801_v28 = vadd.f32 %v9648_v31, %v8172_v50  ;;  %v3077_v62 = vmax.f32 %v10133_v41, 0.0  ;;  %v10221_v11 = vpop.f32.mrb[74].mxu1 }
 0x18f   : > { %3955 = vst [vmem:[#allocation3 + $0x80] sm:$0xff] %v10152_v9  ;;  %v3076_v38 = vmax.f32 %v10136_v57, 0.0  ;;  %v3245_v56 = vmax.f32 %v10140_v25, 0.0  ;;  %v10181_v48 = vadd.f32 %v9648_v31, %v2795_v47  ;;  %v10186_v23 = vsel %vm4497_vm6, %v4438_v2, %v10078_v10  ;;  %v10230_v6 = vpop.f32.mrb[75].mxu1 }
 0x190   : > { %v3614_v20 = vld [vmem:[#allocation2 + $0x110] ss:$2 sm:$0xff]  ;;  %v3758_v3 = vld [vmem:[#allocation2 + $0x111] ss:$2 sm:$0xff]  ;;  %v3079_v51 = vmax.f32 %v10146_v24, 0.0  ;;  %v4581_v50 = vsel %vm4569_vm7, %v4509_v49, %v10119_v13  ;;  %v3244_v19 = vmax.f32 %v10150_v16, 0.0  ;;  %v2811_v37 = vadd.f32 %v9648_v31, %v8175_v43 }
 0x191   : > { %v10193_v40 = vmax.f32 %v3614_v20, %v3758_v3  ;;  %v3078_v27 = vmax.f32 %v10158_v54, 0.0  ;;  %v7920_v30 = vpop.f32.mrb[78].mxu0  ;;  %v3247_v18 = vmax.f32 %v10162_v52, 0.0  ;;  %v10205_v0 = vadd.f32 %v9648_v31, %v10067_v5 }
 0x192   : > { %v1961_v42 = vadd.f32 %v9648_v31, %v7920_v30  ;;  %v1955_v45 = vpop.f32.mrb[79].mxu0  ;;  %v10199_v47 = vld [vmem:[#allocation3 + $0x71] sm:$0xff]  ;;  %v3696_v4 = vld [vmem:[#allocation2 + $0x3a0] ss:$2 sm:$0xff]  ;;  %v10209_v26 = vadd.f32 %v9648_v31, %v10086_v35  ;;  %v3251_v8 = vmax.f32 %v2801_v28, 0.0  ;;  %v10218_v55 = vadd.f32 %v9648_v31, %v10092_v60 }
 0x193   : > { %v10201_v39 = vld [vmem:[#allocation3 + $0x72] sm:$0xff]  ;;  %3956 = vst [vmem:[#allocation3 + $0x88] sm:$0xff] %v10193_v40  ;;  %v1956_v41 = vadd.f32 %v9648_v31, %v1955_v45  ;;  %v4652_v57 = vsel %vm4641_vm8, %v4580_v59, %v10199_v47  ;;  %v3840_v17 = vld [vmem:[#allocation2 + $0x3a1] ss:$2 sm:$0xff]  ;;  %v3250_v5 = vmax.f32 %v10181_v48, 0.0  ;;  %v10224_v35 = vadd.f32 %v9648_v31, %v7917_v63 }
 0x194   : > { %v3083_v25 = vmax.f32 %v1961_v42, 0.0  ;;  %v4724_v43 = vsel %vm4713_vm9, %v4652_v57, %v10201_v39  ;;  %v3698_v61 = vld [vmem:[#allocation2 + $0x3b0] ss:$2 sm:$0xff]  ;;  %v3842_v58 = vld [vmem:[#allocation2 + $0x3b1] ss:$2 sm:$0xff]  ;;  %v2806_v36 = vadd.f32 %v9648_v31, %v2805_v34  ;;  %v3925_v2 = vmax.f32 %v3696_v4, %v3840_v17  ;;  %v10241_v4 = vpop.f32.mrb[76].mxu1 }
 0x195   : > { %v3082_v60 = vmax.f32 %v1956_v41, 0.0  ;;  %v7923_v16 = vpop.f32.mrb[80].mxu0  ;;  %8277 = vmatprep.mubr.f32.mxu1 %v4724_v43  ;;  %v3253_v52 = vmax.f32 %v2811_v37, 0.0  ;;  %v2821_v49 = vadd.f32 %v9648_v31, %v8178_v33  ;;  %v3926_v3 = vmax.f32 %v3698_v61, %v3842_v58 }
 0x196   : > { %v3329_v63 = vmax.f32 %v3077_v62, %v3083_v25  ;;  %v1971_v59 = vadd.f32 %v9648_v31, %v7923_v16  ;;  %v1965_v28 = vpop.f32.mrb[81].mxu0  ;;  %v10234_v48 = vld [vmem:[#allocation3 + $0x79] sm:$0xff]  ;;  %v3413_v30 = vmax.f32 %v3245_v56, %v3251_v8  ;;  %v1946_v34 = vadd.f32 %v9648_v31, %v1945_v21  ;;  %3997 = vst [vmem:[#allocation3 + $0x1d0] sm:$0xff] %v3925_v2 }
 0x197   : > { %v10236_v20 = vld [vmem:[#allocation3 + $0x7a] sm:$0xff]  ;;  %v3328_v42 = vmax.f32 %v3076_v38, %v3082_v60  ;;  %v1966_v45 = vadd.f32 %v9648_v31, %v1965_v28  ;;  %v3246_v37 = vmax.f32 %v10205_v0, 0.0  ;;  %v4653_v33 = vsel %vm4641_vm8, %v4581_v50, %v10234_v48  ;;  %3998 = vst [vmem:[#allocation3 + $0x1d8] sm:$0xff] %v3926_v3  ;;  %v10248_v38 = vpop.f32.mrb[77].mxu1 }
 0x198   : > { %3473 = vst [vmem:[#allocation2 + $0x128] sm:$0xff] %v3329_v63  ;;  %v3085_v62 = vmax.f32 %v1971_v59, 0.0  ;;  %v3249_v41 = vmax.f32 %v10209_v26, 0.0  ;;  %3557 = vst [vmem:[#allocation2 + $0x3c8] sm:$0xff] %v3413_v30  ;;  %v2816_v21 = vadd.f32 %v9648_v31, %v2815_v29  ;;  %v4725_v0 = vsel %vm4713_vm9, %v4653_v33, %v10236_v20 }
 0x199   : > { %3472 = vst [vmem:[#allocation2 + $0x120] sm:$0xff] %v3328_v42  ;;  %v3084_v56 = vmax.f32 %v1966_v45, 0.0  ;;  %v7926_v8 = vpop.f32.mrb[82].mxu0  ;;  %v3412_v57 = vmax.f32 %v3244_v19, %v3250_v5  ;;  %v3415_v17 = vmax.f32 %v3247_v18, %v3253_v52  ;;  %8278 = vmatmul.mubr.f32.gmra.mrb[118].mxu1 %v4725_v0  ;;  %v3252_v61 = vmax.f32 %v2806_v36, 0.0 }
 0x19a   : > { %v3331_v50 = vmax.f32 %v3079_v51, %v3085_v62  ;;  %v1981_v25 = vadd.f32 %v9648_v31, %v7926_v8  ;;  %v1975_v26 = vpop.f32.mrb[83].mxu0  ;;  %v10256_v43 = vld [vmem:[#allocation3 + $0x81] sm:$0xff]  ;;  %v3255_v58 = vmax.f32 %v2821_v49, 0.0  ;;  %v3081_v60 = vmax.f32 %v10224_v35, 0.0  ;;  %v10268_v51 = vpop.f32.mrb[78].mxu1 }
 0x19b   : > { %v10258_v29 = vld [vmem:[#allocation3 + $0x82] sm:$0xff]  ;;  %v3330_v16 = vmax.f32 %v3078_v27, %v3084_v56  ;;  %v1976_v19 = vadd.f32 %v9648_v31, %v1975_v26  ;;  %v4582_v24 = vsel %vm4569_vm7, %v10186_v23, %v10152_v9  ;;  %3556 = vst [vmem:[#allocation2 + $0x3c0] sm:$0xff] %v3412_v57  ;;  %3559 = vst [vmem:[#allocation2 + $0x3d8] sm:$0xff] %v3415_v17  ;;  %v3080_v18 = vmax.f32 %v1946_v34, 0.0  ;;  %v10274_v27 = vpop.f32.mrb[79].mxu1 }
 0x19c   : > { %3475 = vst [vmem:[#allocation2 + $0x138] sm:$0xff] %v3331_v50  ;;  %v3087_v5 = vmax.f32 %v1981_v25, 0.0  ;;  %v4654_v35 = vsel %vm4641_vm8, %v4582_v24, %v10256_v43  ;;  %v3248_v54 = vmax.f32 %v10218_v55, 0.0  ;;  %v3414_v2 = vmax.f32 %v3246_v37, %v3252_v61 }
 0x19d   : > { %3474 = vst [vmem:[#allocation2 + $0x130] sm:$0xff] %v3330_v16  ;;  %v3086_v31 = vmax.f32 %v1976_v19, 0.0  ;;  %v7929_v36 = vpop.f32.mrb[84].mxu0  ;;  %v4726_v23 = vsel %vm4713_vm9, %v4654_v35, %v10258_v29  ;;  %v3417_v52 = vmax.f32 %v3249_v41, %v3255_v58  ;;  %v4367_v49 = vsel %vm4353_vm4, %v10167_v44, %v9989_v14  ;;  %v8190_v44 = vpop.f32.mrb[80].mxu1 }
 0x19e   : > { %v4161_v55 = vsel %vm4146_vm2, %v9896_v7, %v10041_v53  ;;  %v3333_v63 = vmax.f32 %v3081_v60, %v3087_v5  ;;  %8280 = vmatprep.mubr.f32.mxu1 %v4726_v23  ;;  %v1985_v59 = vpop.f32.mrb[85].mxu0  ;;  %v3254_v28 = vmax.f32 %v2816_v21, 0.0  ;;  %v4162_v3 = vsel %vm4146_vm2, %v9930_v1, %v10076_v32  ;;  %3558 = vst [vmem:[#allocation2 + $0x3d0] sm:$0xff] %v3414_v2  ;;  %v10297_v53 = vld [vmem:[%s14004_s2] ss:$0 sm:$0xff]  ;;  %v2855_v41 = vpop.f32.mrb[81].mxu1 }
 0x19f   : > { %v4439_v30 = vsel %vm4425_vm5, %v4367_v49, %v10199_v47  ;;  %v3332_v34 = vmax.f32 %v3080_v18, %v3086_v31  ;;  %3561 = vst [vmem:[#allocation2 + $0x3e8] sm:$0xff] %v3417_v52  ;;  %v2831_v1 = vadd.f32 %v10297_v53, %v10221_v11  ;;  %v4296_v32 = vsel %vm4281_vm3, %v4161_v55, %v10043_v46 }
 0x1a0   : > { %v3616_v42 = vld [vmem:[#allocation2 + $0x120] ss:$2 sm:$0xff]  ;;  %v3760_v45 = vld [vmem:[#allocation2 + $0x121] ss:$2 sm:$0xff]  ;;  %3477 = vst [vmem:[#allocation2 + $0x148] sm:$0xff] %v3333_v63  ;;  %v3416_v7 = vmax.f32 %v3248_v54, %v3254_v28  ;;  %v10310_v33 = vadd.f32 %v10297_v53, %v10230_v6  ;;  %v4368_v21 = vsel %vm4353_vm4, %v4296_v32, %v10119_v13  ;;  %v4297_v11 = vsel %vm4281_vm3, %v4162_v3, %v10078_v10 }
 0x1a1   : > { %v10304_v37 = vmax.f32 %v3616_v42, %v3760_v45  ;;  %3476 = vst [vmem:[#allocation2 + $0x140] sm:$0xff] %v3332_v34  ;;  %v10306_v62 = vpop.f32.mrb[86].mxu0  ;;  %v4163_v46 = vsel %vm4146_vm2, %v9989_v14, %v10199_v47  ;;  %v4511_v56 = vsel %vm4497_vm6, %v4439_v30, %v10201_v39  ;;  %v4440_v57 = vsel %vm4425_vm5, %v4368_v21, %v10234_v48  ;;  %v8193_v47 = vpop.f32.mrb[82].mxu1 }
 0x1a2   : > { %v1995_v6 = vpop.f32.mrb[87].mxu0  ;;  %v3700_v8 = vld [vmem:[#allocation2 + $0x3c0] ss:$2 sm:$0xff]  ;;  %v3844_v0 = vld [vmem:[#allocation2 + $0x3c1] ss:$2 sm:$0xff]  ;;  %3560 = vst [vmem:[#allocation2 + $0x3e0] sm:$0xff] %v3416_v7  ;;  %v10330_v10 = vadd.f32 %v10297_v53, %v7929_v36  ;;  %v10333_v17 = vadd.f32 %v10297_v53, %v1985_v59  ;;  %v10337_v61 = vadd.f32 %v10297_v53, %v10241_v4  ;;  %v2861_v58 = vadd.f32 %v10297_v53, %v8190_v44 }
 0x1a3   : > { %3957 = vst [vmem:[#allocation3 + $0x90] sm:$0xff] %v10304_v37  ;;  %v3927_v14 = vmax.f32 %v3700_v8, %v3844_v0  ;;  %v3257_v26 = vmax.f32 %v2831_v1, 0.0  ;;  %v2856_v60 = vadd.f32 %v10297_v53, %v2855_v41  ;;  %v4369_v16 = vsel %vm4353_vm4, %v4297_v11, %v10152_v9  ;;  %v2865_v5 = vpop.f32.mrb[83].mxu1 }
 0x1a4   : > { %v3618_v50 = vld [vmem:[#allocation2 + $0x130] ss:$2 sm:$0xff]  ;;  %v3762_v25 = vld [vmem:[#allocation2 + $0x131] ss:$2 sm:$0xff]  ;;  %v10347_v19 = vsel %vm4281_vm3, %v4163_v46, %v10201_v39  ;;  %v3256_v4 = vmax.f32 %v10310_v33, 0.0  ;;  %v4512_v35 = vsel %vm4497_vm6, %v4440_v57, %v10236_v20  ;;  %v4583_v31 = vsel %vm4569_vm7, %v4511_v56, %v10193_v40  ;;  %v8196_v59 = vpop.f32.mrb[84].mxu1 }
 0x1a5   : > { %v10349_v24 = vmax.f32 %v3618_v50, %v3762_v25  ;;  %v10351_v18 = vpop.f32.mrb[88].mxu0  ;;  %3999 = vst [vmem:[#allocation3 + $0x1e0] sm:$0xff] %v3927_v14  ;;  %v3702_v39 = vld [vmem:[#allocation2 + $0x3d0] ss:$2 sm:$0xff]  ;;  %v3846_v36 = vld [vmem:[#allocation2 + $0x3d1] ss:$2 sm:$0xff]  ;;  %v2871_v2 = vadd.f32 %v10297_v53, %v8193_v47  ;;  %v10368_v49 = vsel %vm4425_vm5, %v4369_v16, %v10256_v43  ;;  %v10374_v34 = vadd.f32 %v10297_v53, %v10248_v38 }
 0x1a6   : > { %v10357_v54 = vpop.f32.mrb[89].mxu0  ;;  %v3263_v23 = vmax.f32 %v2861_v58, 0.0  ;;  %v3089_v52 = vmax.f32 %v10330_v10, 0.0  ;;  %v3088_v55 = vmax.f32 %v10333_v17, 0.0  ;;  %v3928_v63 = vmax.f32 %v3702_v39, %v3846_v36  ;;  %v2875_v10 = vpop.f32.mrb[85].mxu1 }
 0x1a7   : > { %3958 = vst [vmem:[#allocation3 + $0x98] sm:$0xff] %v10349_v24  ;;  %v3259_v30 = vmax.f32 %v10337_v61, 0.0  ;;  %v3262_v42 = vmax.f32 %v2856_v60, 0.0  ;;  %v2851_v33 = vadd.f32 %v10297_v53, %v10268_v51  ;;  %v2866_v41 = vadd.f32 %v10297_v53, %v2865_v5  ;;  %v10395_v50 = vpop.f32.mrb[86].mxu1 }
 0x1a8   : > { %v3620_v28 = vld [vmem:[#allocation2 + $0x140] ss:$2 sm:$0xff]  ;;  %v3764_v3 = vld [vmem:[#allocation2 + $0x141] ss:$2 sm:$0xff]  ;;  %v3419_v44 = vmax.f32 %v3257_v26, %v3263_v23  ;;  %4000 = vst [vmem:[#allocation3 + $0x1e8] sm:$0xff] %v3928_v63  ;;  %v2881_v21 = vadd.f32 %v10297_v53, %v8196_v59  ;;  %v3265_v57 = vmax.f32 %v2871_v2, 0.0  ;;  %v2001_v51 = vadd.f32 %v10297_v53, %v10306_v62 }
 0x1a9   : > { %v10376_v45 = vmax.f32 %v3620_v28, %v3764_v3  ;;  %v7938_v7 = vpop.f32.mrb[90].mxu0  ;;  %v3704_v1 = vld [vmem:[#allocation2 + $0x3e0] ss:$2 sm:$0xff]  ;;  %v3848_v32 = vld [vmem:[#allocation2 + $0x3e1] ss:$2 sm:$0xff]  ;;  %v3418_v0 = vmax.f32 %v3256_v4, %v3262_v42  ;;  %v1996_v17 = vadd.f32 %v10297_v53, %v1995_v6  ;;  %v3258_v61 = vmax.f32 %v10374_v34, 0.0 }
 0x1aa   : > { %v2021_v11 = vadd.f32 %v10297_v53, %v7938_v7  ;;  %v2015_v46 = vpop.f32.mrb[91].mxu0  ;;  %v10383_v38 = vld [vmem:[#allocation3 + $0x89] sm:$0xff]  ;;  %v3929_v8 = vmax.f32 %v3704_v1, %v3848_v32  ;;  %3563 = vst [vmem:[#allocation2 + $0x3f8] sm:$0xff] %v3419_v44  ;;  %v10403_v62 = vadd.f32 %v10297_v53, %v10274_v27  ;;  %v10405_v6 = vpop.f32.mrb[87].mxu1  ;;  %v4584_v16 = vsel %vm4569_vm7, %v4512_v35, %v10304_v37 }
 0x1ab   : > { %v10385_v56 = vld [vmem:[#allocation3 + $0x8a] sm:$0xff]  ;;  %3959 = vst [vmem:[#allocation3 + $0xa0] sm:$0xff] %v10376_v45  ;;  %v2016_v14 = vadd.f32 %v10297_v53, %v2015_v46  ;;  %v4655_v47 = vsel %vm4641_vm8, %v4583_v31, %v10383_v38  ;;  %3562 = vst [vmem:[#allocation2 + $0x3f0] sm:$0xff] %v3418_v0  ;;  %v3261_v4 = vmax.f32 %v2851_v33, 0.0  ;;  %v3421_v5 = vmax.f32 %v3259_v30, %v3265_v57  ;;  %v8202_v44 = vpop.f32.mrb[88].mxu1 }
 0x1ac   : > { %v3095_v25 = vmax.f32 %v2021_v11, 0.0  ;;  %v4727_v26 = vsel %vm4713_vm9, %v4655_v47, %v10385_v56  ;;  %4001 = vst [vmem:[#allocation3 + $0x1f0] sm:$0xff] %v3929_v8  ;;  %v3264_v2 = vmax.f32 %v2866_v41, 0.0  ;;  %v3267_v63 = vmax.f32 %v2881_v21, 0.0  ;;  %v10423_v7 = vpop.f32.mrb[89].mxu1 }
 0x1ad   : > { %v3094_v58 = vmax.f32 %v2016_v14, 0.0  ;;  %v7941_v60 = vpop.f32.mrb[92].mxu0  ;;  %8281 = vmatmul.mubr.f32.gmra.mrb[120].mxu1 %v4727_v26  ;;  %v3091_v59 = vmax.f32 %v2001_v51, 0.0  ;;  %v3090_v28 = vmax.f32 %v1996_v17, 0.0  ;;  %3565 = vst [vmem:[#allocation2 + $0x408] sm:$0xff] %v3421_v5  ;;  %v2011_v35 = vadd.f32 %v10297_v53, %v10351_v18 }
 0x1ae   : > { %v3335_v31 = vmax.f32 %v3089_v52, %v3095_v25  ;;  %v2031_v39 = vadd.f32 %v10297_v53, %v7941_v60  ;;  %v2025_v36 = vpop.f32.mrb[93].mxu0  ;;  %v10411_v23 = vld [vmem:[#allocation3 + $0x91] sm:$0xff]  ;;  %v2006_v52 = vadd.f32 %v10297_v53, %v10357_v54  ;;  %v3420_v33 = vmax.f32 %v3258_v61, %v3264_v2  ;;  %v10443_v25 = vpop.f32.mrb[90].mxu1 }
 0x1af   : > { %v10413_v27 = vld [vmem:[#allocation3 + $0x92] sm:$0xff]  ;;  %v3334_v3 = vmax.f32 %v3088_v55, %v3094_v58  ;;  %v2026_v34 = vadd.f32 %v10297_v53, %v2025_v36  ;;  %v4656_v42 = vsel %vm4641_vm8, %v4584_v16, %v10411_v23  ;;  %v3423_v18 = vmax.f32 %v3261_v4, %v3267_v63  ;;  %v10448_v60 = vpop.f32.mrb[91].mxu1 }
 0x1b0   : > { %3479 = vst [vmem:[#allocation2 + $0x158] sm:$0xff] %v3335_v31  ;;  %v3097_v30 = vmax.f32 %v2031_v39, 0.0  ;;  %v4728_v32 = vsel %vm4713_vm9, %v4656_v42, %v10413_v27  ;;  %v4513_v54 = vsel %vm4497_vm6, %v10368_v49, %v10258_v29  ;;  %v2876_v0 = vadd.f32 %v10297_v53, %v2875_v10  ;;  %3564 = vst [vmem:[#allocation2 + $0x400] sm:$0xff] %v3420_v33 }
 0x1b1   : > { %3478 = vst [vmem:[#allocation2 + $0x150] sm:$0xff] %v3334_v3  ;;  %v3096_v55 = vmax.f32 %v2026_v34, 0.0  ;;  %v7944_v1 = vpop.f32.mrb[94].mxu0  ;;  %8283 = vmatprep.mubr.f32.mxu1 %v4728_v32  ;;  %v4585_v17 = vsel %vm4569_vm7, %v4513_v54, %v10349_v24  ;;  %v3260_v49 = vmax.f32 %v10403_v62, 0.0  ;;  %3567 = vst [vmem:[#allocation2 + $0x418] sm:$0xff] %v3423_v18  ;;  %v3093_v26 = vmax.f32 %v2011_v35, 0.0 }
 0x1b2   : > { %v3337_v41 = vmax.f32 %v3091_v59, %v3097_v30  ;;  %v2041_v21 = vadd.f32 %v10297_v53, %v7944_v1  ;;  %v2035_v11 = vpop.f32.mrb[95].mxu0  ;;  %v10433_v46 = vld [vmem:[#allocation3 + $0x99] sm:$0xff]  ;;  %v3092_v61 = vmax.f32 %v2006_v52, 0.0  ;;  %v3266_v31 = vmax.f32 %v2876_v0, 0.0 }
 0x1b3   : > { %v10435_v8 = vld [vmem:[#allocation3 + $0x9a] sm:$0xff]  ;;  %v3336_v57 = vmax.f32 %v3090_v28, %v3096_v55  ;;  %v2036_v51 = vadd.f32 %v10297_v53, %v2035_v11  ;;  %v4657_v10 = vsel %vm4641_vm8, %v4585_v17, %v10433_v46  ;;  %v4164_v39 = vsel %vm4146_vm2, %v10119_v13, %v10234_v48  ;;  %v8208_v13 = vpop.f32.mrb[92].mxu1 }
 0x1b4   : > { %v3706_v14 = vld [vmem:[#allocation2 + $0x3f0] ss:$2 sm:$0xff]  ;;  %v3850_v47 = vld [vmem:[#allocation2 + $0x3f1] ss:$2 sm:$0xff]  ;;  %3481 = vst [vmem:[#allocation2 + $0x168] sm:$0xff] %v3337_v41  ;;  %v3099_v58 = vmax.f32 %v2041_v21, 0.0  ;;  %v4729_v62 = vsel %vm4713_vm9, %v4657_v10, %v10435_v8  ;;  %v4165_v36 = vsel %vm4146_vm2, %v10152_v9, %v10256_v43  ;;  %v4370_v59 = vsel %vm4353_vm4, %v10347_v19, %v10193_v40 }
 0x1b5   : > { %3480 = vst [vmem:[#allocation2 + $0x160] sm:$0xff] %v3336_v57  ;;  %v3098_v16 = vmax.f32 %v2036_v51, 0.0  ;;  %v7947_v4 = vpop.f32.mrb[96].mxu0  ;;  %v3930_v5 = vmax.f32 %v3706_v14, %v3850_v47  ;;  %8284 = vmatmul.mubr.f32.gmra.mrb[122].mxu1 %v4729_v62  ;;  %v3422_v3 = vmax.f32 %v3260_v49, %v3266_v31  ;;  %v2891_v34 = vadd.f32 %v10297_v53, %v10395_v50  ;;  %v2915_v55 = vpop.f32.mrb[93].mxu1 }
 0x1b6   : > { %v3339_v2 = vmax.f32 %v3093_v26, %v3099_v58  ;;  %v2045_v63 = vpop.f32.mrb[97].mxu0  ;;  %v4442_v9 = vsel %vm4425_vm5, %v4370_v59, %v10383_v38  ;;  %v2886_v43 = vadd.f32 %v10297_v53, %v10405_v6  ;;  %v2901_v52 = vadd.f32 %v10297_v53, %v8202_v44  ;;  %v8211_v41 = vpop.f32.mrb[94].mxu1 }
 0x1b7   : > { %v3338_v28 = vmax.f32 %v3092_v61, %v3098_v16  ;;  %4002 = vst [vmem:[#allocation3 + $0x1f8] sm:$0xff] %v3930_v5  ;;  %v4299_v19 = vsel %vm4281_vm3, %v4164_v39, %v10236_v20  ;;  %v4300_v50 = vsel %vm4281_vm3, %v4165_v36, %v10258_v29  ;;  %3566 = vst [vmem:[#allocation2 + $0x410] sm:$0xff] %v3422_v3  ;;  %v3708_v1 = vld [vmem:[#allocation2 + $0x400] ss:$2 sm:$0xff]  ;;  %v3852_v32 = vld [vmem:[#allocation2 + $0x401] ss:$2 sm:$0xff] }
 0x1b8   : > { %v3622_v48 = vld [vmem:[#allocation2 + $0x150] ss:$2 sm:$0xff]  ;;  %v3766_v35 = vld [vmem:[#allocation2 + $0x151] ss:$2 sm:$0xff]  ;;  %3483 = vst [vmem:[#allocation2 + $0x178] sm:$0xff] %v3339_v2  ;;  %v4166_v6 = vsel %vm4146_vm2, %v10193_v40, %v10383_v38  ;;  %v2896_v20 = vadd.f32 %v10297_v53, %v10423_v7  ;;  %v2921_v33 = vadd.f32 %v10297_v53, %v8208_v13  ;;  %v2916_v29 = vadd.f32 %v10297_v53, %v2915_v55  ;;  %v2925_v61 = vpop.f32.mrb[95].mxu1 }
 0x1b9   : > { %v10479_v30 = vmax.f32 %v3622_v48, %v3766_v35  ;;  %3482 = vst [vmem:[#allocation2 + $0x170] sm:$0xff] %v3338_v28  ;;  %v7950_v42 = vpop.f32.mrb[98].mxu0  ;;  %v4371_v18 = vsel %vm4353_vm4, %v4299_v19, %v10304_v37  ;;  %v4514_v40 = vsel %vm4497_vm6, %v4442_v9, %v10385_v56  ;;  %v3931_v38 = vmax.f32 %v3708_v1, %v3852_v32  ;;  %v8214_v2 = vpop.f32.mrb[96].mxu1 }
 0x1ba   : > { %v2055_v44 = vpop.f32.mrb[99].mxu0  ;;  %v3269_v54 = vmax.f32 %v2891_v34, 0.0  ;;  %v4443_v7 = vsel %vm4425_vm5, %v4371_v18, %v10411_v23  ;;  %v3268_v0 = vmax.f32 %v2886_v43, 0.0  ;;  %v3271_v57 = vmax.f32 %v2901_v52, 0.0 }
 0x1bb   : > { %3960 = vst [vmem:[#allocation3 + $0xa8] sm:$0xff] %v10479_v30  ;;  %v2931_v51 = vadd.f32 %v10297_v53, %v8211_v41  ;;  %v4372_v17 = vsel %vm4353_vm4, %v4300_v50, %v10349_v24  ;;  %v10506_v49 = vsel %vm4281_vm3, %v4166_v6, %v10385_v56  ;;  %4003 = vst [vmem:[#allocation3 + $0x200] sm:$0xff] %v3931_v38  ;;  %v3275_v26 = vmax.f32 %v2921_v33, 0.0 }
 0x1bc   : > { %v3624_v21 = vld [vmem:[#allocation2 + $0x160] ss:$2 sm:$0xff]  ;;  %v3768_v11 = vld [vmem:[#allocation2 + $0x161] ss:$2 sm:$0xff]  ;;  %v3270_v10 = vmax.f32 %v2896_v20, 0.0  ;;  %v3274_v16 = vmax.f32 %v2916_v29, 0.0  ;;  %v2926_v5 = vadd.f32 %v10297_v53, %v2925_v61  ;;  %v4515_v56 = vsel %vm4497_vm6, %v4443_v7, %v10413_v27 }
 0x1bd   : > { %v10508_v14 = vmax.f32 %v3624_v21, %v3768_v11  ;;  %v10510_v47 = vpop.f32.mrb[100].mxu0  ;;  %v3277_v62 = vmax.f32 %v2931_v51, 0.0  ;;  %v2051_v31 = vadd.f32 %v10297_v53, %v7947_v4  ;;  %v4586_v39 = vsel %vm4569_vm7, %v4514_v40, %v10376_v45  ;;  %v2935_v29 = vpop.f32.mrb[97].mxu1 }
 0x1be   : > { %v10512_v58 = vpop.f32.mrb[101].mxu0  ;;  %v3425_v36 = vmax.f32 %v3269_v54, %v3275_v26  ;;  %v2046_v3 = vadd.f32 %v10297_v53, %v2045_v63  ;;  %v3424_v34 = vmax.f32 %v3268_v0, %v3274_v16  ;;  %v3276_v48 = vmax.f32 %v2926_v5, 0.0  ;;  %v3710_v43 = vld [vmem:[#allocation2 + $0x410] ss:$2 sm:$0xff]  ;;  %v3854_v52 = vld [vmem:[#allocation2 + $0x411] ss:$2 sm:$0xff] }
 0x1bf   : > { %3961 = vst [vmem:[#allocation3 + $0xb0] sm:$0xff] %v10508_v14  ;;  %v3427_v13 = vmax.f32 %v3271_v57, %v3277_v62  ;;  %v4444_v9 = vsel %vm4425_vm5, %v4372_v17, %v10433_v46  ;;  %v2911_v19 = vadd.f32 %v10297_v53, %v10443_v25  ;;  %v2941_v50 = vadd.f32 %v10297_v53, %v8214_v2  ;;  %v8217_v38 = vpop.f32.mrb[98].mxu1 }
 0x1c0   : > { %v3626_v59 = vld [vmem:[#allocation2 + $0x170] ss:$2 sm:$0xff]  ;;  %v3770_v28 = vld [vmem:[#allocation2 + $0x171] ss:$2 sm:$0xff]  ;;  %3569 = vst [vmem:[#allocation2 + $0x428] sm:$0xff] %v3425_v36  ;;  %v2061_v63 = vadd.f32 %v10297_v53, %v7950_v42  ;;  %v3932_v20 = vmax.f32 %v3710_v43, %v3854_v52  ;;  %3568 = vst [vmem:[#allocation2 + $0x420] sm:$0xff] %v3424_v34  ;;  %v3426_v33 = vmax.f32 %v3270_v10, %v3276_v48 }
 0x1c1   : > { %v10524_v35 = vmax.f32 %v3626_v59, %v3770_v28  ;;  %v7956_v4 = vpop.f32.mrb[102].mxu0  ;;  %3571 = vst [vmem:[#allocation2 + $0x438] sm:$0xff] %v3427_v13  ;;  %v3101_v25 = vmax.f32 %v2051_v31, 0.0  ;;  %v2056_v18 = vadd.f32 %v10297_v53, %v2055_v44  ;;  %v3100_v54 = vmax.f32 %v2046_v3, 0.0  ;;  %v10551_v44 = vpop.f32.mrb[99].mxu1 }
 0x1c2   : > { %v2081_v55 = vadd.f32 %v10297_v53, %v7956_v4  ;;  %v2075_v6 = vpop.f32.mrb[103].mxu0  ;;  %v10534_v1 = vld [vmem:[#allocation3 + $0xa1] sm:$0xff]  ;;  %4004 = vst [vmem:[#allocation3 + $0x208] sm:$0xff] %v3932_v20  ;;  %v10549_v11 = vadd.f32 %v10297_v53, %v10448_v60  ;;  %3570 = vst [vmem:[#allocation2 + $0x430] sm:$0xff] %v3426_v33  ;;  %v4587_v57 = vsel %vm4569_vm7, %v4515_v56, %v10479_v30  ;;  %v3273_v51 = vmax.f32 %v2911_v19, 0.0  ;;  %v8220_v2 = vpop.f32.mrb[100].mxu1 }
 0x1c3   : > { %v10536_v32 = vld [vmem:[#allocation3 + $0xa2] sm:$0xff]  ;;  %3962 = vst [vmem:[#allocation3 + $0xb8] sm:$0xff] %v10524_v35  ;;  %v2076_v40 = vadd.f32 %v10297_v53, %v2075_v6  ;;  %v4658_v42 = vsel %vm4641_vm8, %v4586_v39, %v10534_v1  ;;  %v3279_v17 = vmax.f32 %v2941_v50, 0.0  ;;  %v3103_v26 = vmax.f32 %v2061_v63, 0.0  ;;  %v2955_v13 = vpop.f32.mrb[101].mxu1 }
 0x1c4   : > { %v3107_v41 = vmax.f32 %v2081_v55, 0.0  ;;  %v4730_v21 = vsel %vm4713_vm9, %v4658_v42, %v10536_v32  ;;  %v2936_v5 = vadd.f32 %v10297_v53, %v2935_v29  ;;  %v3102_v31 = vmax.f32 %v2056_v18, 0.0 }
 0x1c5   : > { %v3106_v7 = vmax.f32 %v2076_v40, 0.0  ;;  %v7959_v0 = vpop.f32.mrb[104].mxu0  ;;  %8286 = vmatprep.mubr.f32.mxu1 %v4730_v21  ;;  %v2071_v39 = vadd.f32 %v10297_v53, %v10510_v47  ;;  %v2066_v59 = vadd.f32 %v10297_v53, %v10512_v58  ;;  %v3272_v34 = vmax.f32 %v10549_v11, 0.0 }
 0x1c6   : > { %v3341_v61 = vmax.f32 %v3101_v25, %v3107_v41  ;;  %v2091_v10 = vadd.f32 %v10297_v53, %v7959_v0  ;;  %v2085_v16 = vpop.f32.mrb[105].mxu0  ;;  %v10557_v62 = vld [vmem:[#allocation3 + $0xa9] sm:$0xff]  ;;  %v4516_v47 = vsel %vm4497_vm6, %v4444_v9, %v10435_v8  ;;  %v3429_v19 = vmax.f32 %v3273_v51, %v3279_v17  ;;  %v10586_v41 = vpop.f32.mrb[102].mxu1 }
 0x1c7   : > { %v10559_v60 = vld [vmem:[#allocation3 + $0xaa] sm:$0xff]  ;;  %v3340_v36 = vmax.f32 %v3100_v54, %v3106_v7  ;;  %v2086_v56 = vadd.f32 %v10297_v53, %v2085_v16  ;;  %v4659_v3 = vsel %vm4641_vm8, %v4587_v57, %v10557_v62  ;;  %v3278_v33 = vmax.f32 %v2936_v5, 0.0  ;;  %v10592_v57 = vpop.f32.mrb[103].mxu1 }
 0x1c8   : > { %3485 = vst [vmem:[#allocation2 + $0x188] sm:$0xff] %v3341_v61  ;;  %v3109_v28 = vmax.f32 %v2091_v10, 0.0  ;;  %v4731_v58 = vsel %vm4713_vm9, %v4659_v3, %v10559_v60  ;;  %v3712_v43 = vld [vmem:[#allocation2 + $0x420] ss:$2 sm:$0xff]  ;;  %v3856_v52 = vld [vmem:[#allocation2 + $0x421] ss:$2 sm:$0xff]  ;;  %v4588_v40 = vsel %vm4569_vm7, %v4516_v47, %v10508_v14  ;;  %v2951_v0 = vadd.f32 %v10297_v53, %v8217_v38 }
 0x1c9   : > { %3484 = vst [vmem:[#allocation2 + $0x180] sm:$0xff] %v3340_v36  ;;  %v3108_v48 = vmax.f32 %v2086_v56, 0.0  ;;  %v7962_v4 = vpop.f32.mrb[106].mxu0  ;;  %8287 = vmatmul.mubr.f32.gmra.mrb[124].mxu1 %v4731_v58  ;;  %v3933_v9 = vmax.f32 %v3712_v43, %v3856_v52  ;;  %v3105_v29 = vmax.f32 %v2071_v39, 0.0  ;;  %v3714_v42 = vld [vmem:[#allocation2 + $0x430] ss:$2 sm:$0xff]  ;;  %v3428_v10 = vmax.f32 %v3272_v34, %v3278_v33 }
 0x1ca   : > { %v3343_v50 = vmax.f32 %v3103_v26, %v3109_v28  ;;  %v2101_v63 = vadd.f32 %v10297_v53, %v7962_v4  ;;  %v2095_v55 = vpop.f32.mrb[107].mxu0  ;;  %v10578_v6 = vld [vmem:[#allocation3 + $0xb1] sm:$0xff]  ;;  %3573 = vst [vmem:[#allocation2 + $0x448] sm:$0xff] %v3429_v19  ;;  %v3104_v21 = vmax.f32 %v2066_v59, 0.0  ;;  %v4373_v16 = vsel %vm4353_vm4, %v10506_v49, %v10376_v45  ;;  %v8226_v49 = vpop.f32.mrb[104].mxu1 }
 0x1cb   : > { %v10580_v20 = vld [vmem:[#allocation3 + $0xb2] sm:$0xff]  ;;  %v3342_v25 = vmax.f32 %v3102_v31, %v3108_v48  ;;  %v2096_v18 = vadd.f32 %v10297_v53, %v2095_v55  ;;  %v4660_v7 = vsel %vm4641_vm8, %v4588_v40, %v10578_v6  ;;  %4005 = vst [vmem:[#allocation3 + $0x210] sm:$0xff] %v3933_v9  ;;  %v4167_v38 = vsel %vm4146_vm2, %v10304_v37, %v10411_v23 }
 0x1cc   : > { %v3858_v54 = vld [vmem:[#allocation2 + $0x431] ss:$2 sm:$0xff]  ;;  %3487 = vst [vmem:[#allocation2 + $0x198] sm:$0xff] %v3343_v50  ;;  %v3111_v11 = vmax.f32 %v2101_v63, 0.0  ;;  %v4732_v26 = vsel %vm4713_vm9, %v4660_v7, %v10580_v20  ;;  %v4168_v39 = vsel %vm4146_vm2, %v10349_v24, %v10433_v46  ;;  %3572 = vst [vmem:[#allocation2 + $0x440] sm:$0xff] %v3428_v10  ;;  %v2946_v56 = vadd.f32 %v10297_v53, %v10551_v44  ;;  %v2975_v24 = vpop.f32.mrb[105].mxu1 }
 0x1cd   : > { %3486 = vst [vmem:[#allocation2 + $0x190] sm:$0xff] %v3342_v25  ;;  %v3110_v51 = vmax.f32 %v2096_v18, 0.0  ;;  %v7965_v17 = vpop.f32.mrb[108].mxu0  ;;  %v3934_v61 = vmax.f32 %v3714_v42, %v3858_v54  ;;  %8289 = vmatprep.mubr.f32.mxu1 %v4732_v26  ;;  %v4445_v3 = vsel %vm4425_vm5, %v4373_v16, %v10534_v1  ;;  %v3281_v37 = vmax.f32 %v2951_v0, 0.0 }
 0x1ce   : > { %v3345_v5 = vmax.f32 %v3105_v29, %v3111_v11  ;;  %v2105_v31 = vpop.f32.mrb[109].mxu0  ;;  %v2961_v23 = vadd.f32 %v10297_v53, %v8220_v2  ;;  %v2981_v34 = vadd.f32 %v10297_v53, %v8226_v49  ;;  %v2956_v44 = vadd.f32 %v10297_v53, %v2955_v13 }
 0x1cf   : > { %v3344_v36 = vmax.f32 %v3104_v21, %v3110_v51  ;;  %4006 = vst [vmem:[#allocation3 + $0x218] sm:$0xff] %v3934_v61  ;;  %v4302_v48 = vsel %vm4281_vm3, %v4167_v38, %v10413_v27  ;;  %v4303_v4 = vsel %vm4281_vm3, %v4168_v39, %v10435_v8  ;;  %v4517_v13 = vsel %vm4497_vm6, %v4445_v3, %v10536_v32  ;;  %v8229_v27 = vpop.f32.mrb[106].mxu1 }
 0x1d0   : > { %v3628_v59 = vld [vmem:[#allocation2 + $0x180] ss:$2 sm:$0xff]  ;;  %v3772_v28 = vld [vmem:[#allocation2 + $0x181] ss:$2 sm:$0xff]  ;;  %3489 = vst [vmem:[#allocation2 + $0x1a8] sm:$0xff] %v3345_v5  ;;  %v3287_v43 = vmax.f32 %v2981_v34, 0.0  ;;  %v4374_v2 = vsel %vm4353_vm4, %v4302_v48, %v10479_v30  ;;  %v2976_v19 = vadd.f32 %v10297_v53, %v2975_v24  ;;  %v2991_v33 = vadd.f32 %v10297_v53, %v8229_v27 }
 0x1d1   : > { %v10616_v46 = vmax.f32 %v3628_v59, %v3772_v28  ;;  %3488 = vst [vmem:[#allocation2 + $0x1a0] sm:$0xff] %v3344_v36  ;;  %v7968_v47 = vpop.f32.mrb[110].mxu0  ;;  %v3280_v52 = vmax.f32 %v2946_v56, 0.0  ;;  %v4446_v8 = vsel %vm4425_vm5, %v4374_v2, %v10557_v62  ;;  %v3283_v55 = vmax.f32 %v2961_v23, 0.0  ;;  %v2985_v29 = vpop.f32.mrb[107].mxu1 }
 0x1d2   : > { %v2115_v58 = vpop.f32.mrb[111].mxu0  ;;  %v3431_v9 = vmax.f32 %v3281_v37, %v3287_v43  ;;  %v3282_v40 = vmax.f32 %v2956_v44, 0.0  ;;  %v3286_v42 = vmax.f32 %v2976_v19, 0.0  ;;  %v2986_v54 = vadd.f32 %v10297_v53, %v2985_v29  ;;  %v8232_v5 = vpop.f32.mrb[108].mxu1 }
 0x1d3   : > { %3963 = vst [vmem:[#allocation3 + $0xc0] sm:$0xff] %v10616_v46  ;;  %v4375_v21 = vsel %vm4353_vm4, %v4303_v4, %v10508_v14  ;;  %v3716_v7 = vld [vmem:[#allocation2 + $0x440] ss:$2 sm:$0xff]  ;;  %v3860_v0 = vld [vmem:[#allocation2 + $0x441] ss:$2 sm:$0xff]  ;;  %v3289_v51 = vmax.f32 %v2991_v33, 0.0  ;;  %v4518_v26 = vsel %vm4497_vm6, %v4446_v8, %v10559_v60  ;;  %v2111_v61 = vadd.f32 %v10297_v53, %v7965_v17 }
 0x1d4   : > { %v3630_v50 = vld [vmem:[#allocation2 + $0x190] ss:$2 sm:$0xff]  ;;  %v3774_v63 = vld [vmem:[#allocation2 + $0x191] ss:$2 sm:$0xff]  ;;  %3575 = vst [vmem:[#allocation2 + $0x458] sm:$0xff] %v3431_v9  ;;  %v4589_v10 = vsel %vm4569_vm7, %v4517_v13, %v10524_v35  ;;  %v3935_v16 = vmax.f32 %v3716_v7, %v3860_v0  ;;  %v2106_v36 = vadd.f32 %v10297_v53, %v2105_v31  ;;  %v3430_v56 = vmax.f32 %v3280_v52, %v3286_v42  ;;  %v2995_v34 = vpop.f32.mrb[109].mxu1 }
 0x1d5   : > { %v10637_v25 = vmax.f32 %v3630_v50, %v3774_v63  ;;  %v10639_v18 = vpop.f32.mrb[112].mxu0  ;;  %v3433_v49 = vmax.f32 %v3283_v55, %v3289_v51  ;;  %v3288_v59 = vmax.f32 %v2986_v54, 0.0  ;;  %v2971_v17 = vadd.f32 %v10297_v53, %v10586_v41 }
 0x1d6   : > { %v2125_v11 = vpop.f32.mrb[113].mxu0  ;;  %4007 = vst [vmem:[#allocation3 + $0x220] sm:$0xff] %v3935_v16  ;;  %v2966_v37 = vadd.f32 %v10297_v53, %v10592_v57  ;;  %v3001_v23 = vadd.f32 %v10297_v53, %v8232_v5  ;;  %v4447_v31 = vsel %vm4425_vm5, %v4375_v21, %v10578_v6  ;;  %3574 = vst [vmem:[#allocation2 + $0x450] sm:$0xff] %v3430_v56  ;;  %v3113_v19 = vmax.f32 %v2111_v61, 0.0 }
 0x1d7   : > { %3964 = vst [vmem:[#allocation3 + $0xc8] sm:$0xff] %v10637_v25  ;;  %3577 = vst [vmem:[#allocation2 + $0x468] sm:$0xff] %v3433_v49  ;;  %v3432_v41 = vmax.f32 %v3282_v40, %v3288_v59  ;;  %v2996_v43 = vadd.f32 %v10297_v53, %v2995_v34  ;;  %v2121_v57 = vadd.f32 %v10297_v53, %v7968_v47  ;;  %v3112_v27 = vmax.f32 %v2106_v36, 0.0 }
 0x1d8   : > { %v3632_v38 = vld [vmem:[#allocation2 + $0x1a0] ss:$2 sm:$0xff]  ;;  %v3776_v39 = vld [vmem:[#allocation2 + $0x1a1] ss:$2 sm:$0xff]  ;;  %v2116_v2 = vadd.f32 %v10297_v53, %v2115_v58  ;;  %v3285_v47 = vmax.f32 %v2971_v17, 0.0  ;;  %v3284_v9 = vmax.f32 %v2966_v37, 0.0  ;;  %v4590_v21 = vsel %vm4569_vm7, %v4518_v26, %v10616_v46 }
 0x1d9   : > { %v10654_v28 = vmax.f32 %v3632_v38, %v3776_v39  ;;  %v7974_v3 = vpop.f32.mrb[114].mxu0  ;;  %3576 = vst [vmem:[#allocation2 + $0x460] sm:$0xff] %v3432_v41  ;;  %v3291_v58 = vmax.f32 %v3001_v23, 0.0  ;;  %v3290_v7 = vmax.f32 %v2996_v43, 0.0  ;;  %v3115_v0 = vmax.f32 %v2121_v57, 0.0 }
 0x1da   : > { %v2141_v24 = vadd.f32 %v10297_v53, %v7974_v3  ;;  %v2135_v44 = vpop.f32.mrb[115].mxu0  ;;  %v10665_v48 = vld [vmem:[#allocation3 + $0xb9] sm:$0xff]  ;;  %v3114_v51 = vmax.f32 %v2116_v2, 0.0  ;;  %v2131_v16 = vadd.f32 %v10297_v53, %v10639_v18  ;;  %v2126_v5 = vadd.f32 %v10297_v53, %v2125_v11 }
 0x1db   : > { %v10667_v4 = vld [vmem:[#allocation3 + $0xba] sm:$0xff]  ;;  %3965 = vst [vmem:[#allocation3 + $0xd0] sm:$0xff] %v10654_v28  ;;  %v2136_v13 = vadd.f32 %v10297_v53, %v2135_v44  ;;  %v4661_v52 = vsel %vm4641_vm8, %v4589_v10, %v10665_v48  ;;  %v3435_v49 = vmax.f32 %v3285_v47, %v3291_v58  ;;  %v3434_v59 = vmax.f32 %v3284_v9, %v3290_v7 }
 0x1dc   : > { %v3119_v50 = vmax.f32 %v2141_v24, 0.0  ;;  %v4733_v63 = vsel %vm4713_vm9, %v4661_v52, %v10667_v4  ;;  %v4519_v18 = vsel %vm4497_vm6, %v4447_v31, %v10580_v20  ;;  %v3117_v41 = vmax.f32 %v2131_v16, 0.0 }
 0x1dd   : > { %v3118_v8 = vmax.f32 %v2136_v13, 0.0  ;;  %v7977_v55 = vpop.f32.mrb[116].mxu0  ;;  %8290 = vmatmul.mubr.f32.gmra.mrb[126].mxu1 %v4733_v63  ;;  %v4591_v44 = vsel %vm4569_vm7, %v4519_v18, %v10637_v25  ;;  %3579 = vst [vmem:[#allocation2 + $0x478] sm:$0xff] %v3435_v49  ;;  %3578 = vst [vmem:[#allocation2 + $0x470] sm:$0xff] %v3434_v59  ;;  %v4169_v57 = vsel %vm4146_vm2, %v10376_v45, %v10534_v1  ;;  %v3116_v2 = vmax.f32 %v2126_v5, 0.0 }
 0x1de   : > { %v3347_v33 = vmax.f32 %v3113_v19, %v3119_v50  ;;  %v2151_v29 = vadd.f32 %v10297_v53, %v7977_v55  ;;  %v2145_v40 = vpop.f32.mrb[117].mxu0  ;;  %v10681_v42 = vld [vmem:[#allocation3 + $0xc1] sm:$0xff]  ;;  %v4170_v7 = vsel %vm4146_vm2, %v10479_v30, %v10557_v62  ;;  %vm5734_vm0 = vcmp.eq.s32.totalorder %v9284_v22, 3 }
 0x1df   : > { %v10683_v54 = vld [vmem:[#allocation3 + $0xc2] sm:$0xff]  ;;  %v3346_v61 = vmax.f32 %v3112_v27, %v3118_v8  ;;  %v2146_v10 = vadd.f32 %v10297_v53, %v2145_v40  ;;  %v4662_v39 = vsel %vm4641_vm8, %v4590_v21, %v10681_v42  ;;  %v4304_v8 = vsel %vm4281_vm3, %v4169_v57, %v10536_v32 }
 0x1e0   : > { %3491 = vst [vmem:[#allocation2 + $0x1b8] sm:$0xff] %v3347_v33  ;;  %v3121_v38 = vmax.f32 %v2151_v29, 0.0  ;;  %v4734_v56 = vsel %vm4713_vm9, %v4662_v39, %v10683_v54  ;;  %v4376_v58 = vsel %vm4353_vm4, %v4304_v8, %v10524_v35  ;;  %v4305_v5 = vsel %vm4281_vm3, %v4170_v7, %v10559_v60 }
 0x1e1   : > { %3490 = vst [vmem:[#allocation2 + $0x1b0] sm:$0xff] %v3346_v61  ;;  %v3120_v36 = vmax.f32 %v2146_v10, 0.0  ;;  %v7980_v26 = vpop.f32.mrb[118].mxu0  ;;  %8292 = vmatprep.mubr.f32.mxu1 %v4734_v56  ;;  %v4448_v33 = vsel %vm4425_vm5, %v4376_v58, %v10665_v48  ;;  %v4377_v62 = vsel %vm4353_vm4, %v4305_v5, %v10616_v46 }
 0x1e2   : > { %v3349_v11 = vmax.f32 %v3115_v0, %v3121_v38  ;;  %v2161_v3 = vadd.f32 %v10297_v53, %v7980_v26  ;;  %v2155_v17 = vpop.f32.mrb[119].mxu0  ;;  %v10702_v37 = vld [vmem:[#allocation3 + $0xc9] sm:$0xff]  ;;  %v4449_v18 = vsel %vm4425_vm5, %v4377_v62, %v10681_v42 }
 0x1e3   : > { %v10704_v23 = vld [vmem:[#allocation3 + $0xca] sm:$0xff]  ;;  %v3348_v34 = vmax.f32 %v3114_v51, %v3120_v36  ;;  %v2156_v24 = vadd.f32 %v10297_v53, %v2155_v17  ;;  %v4663_v43 = vsel %vm4641_vm8, %v4591_v44, %v10702_v37  ;;  %v4520_v51 = vsel %vm4497_vm6, %v4448_v33, %v10667_v4 }
 0x1e4   : > { %3493 = vst [vmem:[#allocation2 + $0x1c8] sm:$0xff] %v3349_v11  ;;  %v3123_v31 = vmax.f32 %v2161_v3, 0.0  ;;  %v4735_v19 = vsel %vm4713_vm9, %v4663_v43, %v10704_v23  ;;  %v4171_v36 = vsel %vm4146_vm2, %v10508_v14, %v10578_v6  ;;  %v4592_v59 = vsel %vm4569_vm7, %v4520_v51, %v10654_v28 }
 0x1e5   : > { %3492 = vst [vmem:[#allocation2 + $0x1c0] sm:$0xff] %v3348_v34  ;;  %v3122_v13 = vmax.f32 %v2156_v24, 0.0  ;;  %v7983_v52 = vpop.f32.mrb[120].mxu0  ;;  %8293 = vmatmul.mubr.f32.gmra.mrb[128].mxu1 %v4735_v19  ;;  %v4306_v24 = vsel %vm4281_vm3, %v4171_v36, %v10580_v20 }
 0x1e6   : > { %v3351_v27 = vmax.f32 %v3117_v41, %v3123_v31  ;;  %v2165_v50 = vpop.f32.mrb[121].mxu0  ;;  %v2171_v16 = vadd.f32 %v10297_v53, %v7983_v52  ;;  %v4378_v57 = vsel %vm4353_vm4, %v4306_v24, %v10637_v25 }
 0x1e7   : > { %v3350_v63 = vmax.f32 %v3116_v2, %v3122_v13  ;;  %v2166_v39 = vadd.f32 %v10297_v53, %v2165_v50  ;;  %v4521_v2 = vsel %vm4497_vm6, %v4449_v18, %v10683_v54  ;;  %v4450_v50 = vsel %vm4425_vm5, %v4378_v57, %v10702_v37 }
 0x1e8   : > { %v3634_v55 = vld [vmem:[#allocation2 + $0x1b0] ss:$2 sm:$0xff]  ;;  %v3778_v47 = vld [vmem:[#allocation2 + $0x1b1] ss:$2 sm:$0xff]  ;;  %3495 = vst [vmem:[#allocation2 + $0x1d8] sm:$0xff] %v3351_v27  ;;  %v3125_v6 = vmax.f32 %v2171_v16, 0.0 }
 0x1e9   : > { %v10723_v45 = vmax.f32 %v3634_v55, %v3778_v47  ;;  %3494 = vst [vmem:[#allocation2 + $0x1d0] sm:$0xff] %v3350_v63  ;;  %v7986_v1 = vpop.f32.mrb[122].mxu0  ;;  %v3124_v44 = vmax.f32 %v2166_v39, 0.0 }
 0x1ea   : > { %v2175_v9 = vpop.f32.mrb[123].mxu0  ;;  %v2181_v3 = vadd.f32 %v10297_v53, %v7986_v1 }
 0x1eb   : > { %3966 = vst [vmem:[#allocation3 + $0xd8] sm:$0xff] %v10723_v45  ;;  %v2176_v41 = vadd.f32 %v10297_v53, %v2175_v9  ;;  %v4593_v55 = vsel %vm4569_vm7, %v4521_v2, %v10723_v45 }
 0x1ec   : > { %v3636_v29 = vld [vmem:[#allocation2 + $0x1c0] ss:$2 sm:$0xff]  ;;  %v3780_v32 = vld [vmem:[#allocation2 + $0x1c1] ss:$2 sm:$0xff]  ;;  %v3127_v47 = vmax.f32 %v2181_v3, 0.0 }
 0x1ed   : > { %v10732_v40 = vmax.f32 %v3636_v29, %v3780_v32  ;;  %v7989_v21 = vpop.f32.mrb[124].mxu0  ;;  %v3126_v33 = vmax.f32 %v2176_v41, 0.0 }
 0x1ee   : > { %v2185_v0 = vpop.f32.mrb[125].mxu0  ;;  %v2191_v1 = vadd.f32 %v10297_v53, %v7989_v21  ;;  %v4522_v21 = vsel %vm4497_vm6, %v4450_v50, %v10704_v23 }
 0x1ef   : > { %3967 = vst [vmem:[#allocation3 + $0xe0] sm:$0xff] %v10732_v40  ;;  %v2186_v29 = vadd.f32 %v10297_v53, %v2185_v0  ;;  %v4594_v62 = vsel %vm4569_vm7, %v4522_v21, %v10732_v40 }
 0x1f0   : > { %v3638_v61 = vld [vmem:[#allocation2 + $0x1d0] ss:$2 sm:$0xff]  ;;  %v3782_v10 = vld [vmem:[#allocation2 + $0x1d1] ss:$2 sm:$0xff]  ;;  %v3129_v36 = vmax.f32 %v2191_v1, 0.0 }
 0x1f1   : > { %v10746_v38 = vmax.f32 %v3638_v61, %v3782_v10  ;;  %v7992_v30 = vpop.f32.mrb[126].mxu0  ;;  %v10812_v10 = vld [vmem:[%s14004_s2] ss:$0 sm:$0xff]  ;;  %v3128_v18 = vmax.f32 %v2186_v29, 0.0 }
 0x1f2   : > { %v2201_v26 = vadd.f32 %v10297_v53, %v7992_v30  ;;  %v2195_v56 = vpop.f32.mrb[127].mxu0  ;;  %v10757_v49 = vld [vmem:[#allocation3 + $0xd1] sm:$0xff] }
 0x1f3   : > { %v10759_v60 = vld [vmem:[#allocation3 + $0xd2] sm:$0xff]  ;;  %3968 = vst [vmem:[#allocation3 + $0xe8] sm:$0xff] %v10746_v38  ;;  %v2196_v11 = vadd.f32 %v10297_v53, %v2195_v56  ;;  %v4664_v14 = vsel %vm4641_vm8, %v4592_v59, %v10757_v49  ;;  %v4172_v59 = vsel %vm4146_vm2, %v10524_v35, %v10665_v48 }
 0x1f4   : > { %v3131_v17 = vmax.f32 %v2201_v26, 0.0  ;;  %v4736_v34 = vsel %vm4713_vm9, %v4664_v14, %v10759_v60  ;;  %v4307_v24 = vsel %vm4281_vm3, %v4172_v59, %v10667_v4 }
 0x1f5   : > { %v3130_v31 = vmax.f32 %v2196_v11, 0.0  ;;  %v7995_v43 = vpop.f32.mrb[128].mxu0  ;;  %8295 = vmatprep.mubr.f32.mxu1 %v4736_v34 }
 0x1f6   : > { %v3353_v13 = vmax.f32 %v3125_v6, %v3131_v17  ;;  %v2211_v52 = vadd.f32 %v10297_v53, %v7995_v43  ;;  %v2205_v19 = vpop.f32.mrb[129].mxu0  ;;  %v10787_v27 = vld [vmem:[#allocation3 + $0xd9] sm:$0xff]  ;;  %v4379_v43 = vsel %vm4353_vm4, %v4307_v24, %v10654_v28 }
 0x1f7   : > { %v10789_v20 = vld [vmem:[#allocation3 + $0xda] sm:$0xff]  ;;  %v3352_v63 = vmax.f32 %v3124_v44, %v3130_v31  ;;  %v2206_v8 = vadd.f32 %v10297_v53, %v2205_v19  ;;  %v4665_v58 = vsel %vm4641_vm8, %v4593_v55, %v10787_v27  ;;  %v4451_v57 = vsel %vm4425_vm5, %v4379_v43, %v10757_v49 }
 0x1f8   : > { %3497 = vst [vmem:[#allocation2 + $0x1e8] sm:$0xff] %v3353_v13  ;;  %v3133_v9 = vmax.f32 %v2211_v52, 0.0  ;;  %v4737_v51 = vsel %vm4713_vm9, %v4665_v58, %v10789_v20  ;;  %v4173_v19 = vsel %vm4146_vm2, %v10616_v46, %v10681_v42 }
 0x1f9   : > { %3496 = vst [vmem:[#allocation2 + $0x1e0] sm:$0xff] %v3352_v63  ;;  %v3132_v32 = vmax.f32 %v2206_v8, 0.0  ;;  %v7998_v7 = vpop.f32.mrb[130].mxu0  ;;  %8296 = vmatmul.mubr.f32.gmra.mrb[130].mxu1 %v4737_v51  ;;  %v4523_v63 = vsel %vm4497_vm6, %v4451_v57, %v10759_v60  ;;  %v4308_v1 = vsel %vm4281_vm3, %v4173_v19, %v10683_v54 }
 0x1fa   : > { %v3355_v61 = vmax.f32 %v3127_v47, %v3133_v9  ;;  %v2221_v16 = vadd.f32 %v10812_v10, %v7998_v7  ;;  %v2215_v53 = vpop.f32.mrb[131].mxu0  ;;  %v10815_v0 = vld [vmem:[#allocation3 + $0xe1] sm:$0xff]  ;;  %v4380_v42 = vsel %vm4353_vm4, %v4308_v1, %v10723_v45  ;;  %v4595_v51 = vsel %vm4569_vm7, %v4523_v63, %v10746_v38 }
 0x1fb   : > { %v10817_v5 = vld [vmem:[#allocation3 + $0xe2] sm:$0xff]  ;;  %v3354_v39 = vmax.f32 %v3126_v33, %v3132_v32  ;;  %v2216_v30 = vadd.f32 %v10812_v10, %v2215_v53  ;;  %v4666_v56 = vsel %vm4641_vm8, %v4594_v62, %v10815_v0  ;;  %v4174_v33 = vsel %vm4146_vm2, %v10637_v25, %v10702_v37 }
 0x1fc   : > { %3499 = vst [vmem:[#allocation2 + $0x1f8] sm:$0xff] %v3355_v61  ;;  %v3135_v26 = vmax.f32 %v2221_v16, 0.0  ;;  %v4738_v6 = vsel %vm4713_vm9, %v4666_v56, %v10817_v5  ;;  %v4452_v21 = vsel %vm4425_vm5, %v4380_v42, %v10787_v27 }
 0x1fd   : > { %3498 = vst [vmem:[#allocation2 + $0x1f0] sm:$0xff] %v3354_v39  ;;  %v3134_v11 = vmax.f32 %v2216_v30, 0.0  ;;  %v8001_v14 = vpop.f32.mrb[132].mxu0  ;;  %8298 = vmatprep.mubr.f32.mxu1 %v4738_v6  ;;  %v4309_v30 = vsel %vm4281_vm3, %v4174_v33, %v10704_v23 }
 0x1fe   : > { %v3357_v3 = vmax.f32 %v3129_v36, %v3135_v26  ;;  %v2225_v17 = vpop.f32.mrb[133].mxu0  ;;  %v2231_v47 = vadd.f32 %v10812_v10, %v8001_v14  ;;  %v4381_v59 = vsel %vm4353_vm4, %v4309_v30, %v10732_v40 }
 0x1ff   : > { %v3356_v34 = vmax.f32 %v3128_v18, %v3134_v11  ;;  %v2226_v58 = vadd.f32 %v10812_v10, %v2225_v17  ;;  %v4524_v18 = vsel %vm4497_vm6, %v4452_v21, %v10789_v20  ;;  %v4453_v17 = vsel %vm4425_vm5, %v4381_v59, %v10815_v0 }
 0x200   : > { %v3640_v44 = vld [vmem:[#allocation2 + $0x1e0] ss:$2 sm:$0xff]  ;;  %v3784_v41 = vld [vmem:[#allocation2 + $0x1e1] ss:$2 sm:$0xff]  ;;  %3501 = vst [vmem:[#allocation2 + $0x208] sm:$0xff] %v3357_v3  ;;  %v3137_v37 = vmax.f32 %v2231_v47, 0.0 }
 0x201   : > { %v10836_v35 = vmax.f32 %v3640_v44, %v3784_v41  ;;  %3500 = vst [vmem:[#allocation2 + $0x200] sm:$0xff] %v3356_v34  ;;  %v8004_v48 = vpop.f32.mrb[134].mxu0  ;;  %v3136_v62 = vmax.f32 %v2226_v58, 0.0 }
 0x202   : > { %v2235_v31 = vpop.f32.mrb[135].mxu0  ;;  %v2241_v16 = vadd.f32 %v10812_v10, %v8004_v48 }
 0x203   : > { %3969 = vst [vmem:[#allocation3 + $0xf0] sm:$0xff] %v10836_v35  ;;  %v2236_v36 = vadd.f32 %v10812_v10, %v2235_v31  ;;  %v4596_v44 = vsel %vm4569_vm7, %v4524_v18, %v10836_v35 }
 0x204   : > { %v3642_v2 = vld [vmem:[#allocation2 + $0x1f0] ss:$2 sm:$0xff]  ;;  %v3786_v4 = vld [vmem:[#allocation2 + $0x1f1] ss:$2 sm:$0xff]  ;;  %v3139_v41 = vmax.f32 %v2241_v16, 0.0 }
 0x205   : > { %v10845_v13 = vmax.f32 %v3642_v2, %v3786_v4  ;;  %v8007_v52 = vpop.f32.mrb[136].mxu0  ;;  %v3138_v57 = vmax.f32 %v2236_v36, 0.0 }
 0x206   : > { %v2245_v50 = vpop.f32.mrb[137].mxu0  ;;  %v2251_v48 = vadd.f32 %v10812_v10, %v8007_v52  ;;  %v4525_v52 = vsel %vm4497_vm6, %v4453_v17, %v10817_v5 }
 0x207   : > { %3970 = vst [vmem:[#allocation3 + $0xf8] sm:$0xff] %v10845_v13  ;;  %v2246_v2 = vadd.f32 %v10812_v10, %v2245_v50  ;;  %v4597_v42 = vsel %vm4569_vm7, %v4525_v52, %v10845_v13 }
 0x208   : > { %v3644_v8 = vld [vmem:[#allocation2 + $0x200] ss:$2 sm:$0xff]  ;;  %v3788_v55 = vld [vmem:[#allocation2 + $0x201] ss:$2 sm:$0xff]  ;;  %v3141_v33 = vmax.f32 %v2251_v48, 0.0 }
 0x209   : > { %v10859_v9 = vmax.f32 %v3644_v8, %v3788_v55  ;;  %v8010_v46 = vpop.f32.mrb[138].mxu0  ;;  %v3140_v21 = vmax.f32 %v2246_v2, 0.0 }
 0x20a   : > { %v2261_v29 = vadd.f32 %v10812_v10, %v8010_v46  ;;  %v2255_v32 = vpop.f32.mrb[139].mxu0  ;;  %v10870_v7 = vld [vmem:[#allocation3 + $0xe9] sm:$0xff] }
 0x20b   : > { %v10872_v54 = vld [vmem:[#allocation3 + $0xea] sm:$0xff]  ;;  %3971 = vst [vmem:[#allocation3 + $0x100] sm:$0xff] %v10859_v9  ;;  %v2256_v61 = vadd.f32 %v10812_v10, %v2255_v32  ;;  %v4667_v25 = vsel %vm4641_vm8, %v4595_v51, %v10870_v7  ;;  %v4175_v51 = vsel %vm4146_vm2, %v10654_v28, %v10757_v49 }
 0x20c   : > { %v3143_v53 = vmax.f32 %v2261_v29, 0.0  ;;  %v4739_v39 = vsel %vm4713_vm9, %v4667_v25, %v10872_v54  ;;  %v4310_v30 = vsel %vm4281_vm3, %v4175_v51, %v10759_v60 }
 0x20d   : > { %v3142_v26 = vmax.f32 %v2256_v61, 0.0  ;;  %v8013_v56 = vpop.f32.mrb[140].mxu0  ;;  %8299 = vmatmul.mubr.f32.gmra.mrb[132].mxu1 %v4739_v39 }
 0x20e   : > { %v3359_v11 = vmax.f32 %v3137_v37, %v3143_v53  ;;  %v2271_v14 = vadd.f32 %v10812_v10, %v8013_v56  ;;  %v2265_v6 = vpop.f32.mrb[141].mxu0  ;;  %v10900_v3 = vld [vmem:[#allocation3 + $0xf1] sm:$0xff]  ;;  %v4382_v56 = vsel %vm4353_vm4, %v4310_v30, %v10746_v38 }
 0x20f   : > { %v10902_v23 = vld [vmem:[#allocation3 + $0xf2] sm:$0xff]  ;;  %v3358_v34 = vmax.f32 %v3136_v62, %v3142_v26  ;;  %v2266_v24 = vadd.f32 %v10812_v10, %v2265_v6  ;;  %v4668_v43 = vsel %vm4641_vm8, %v4596_v44, %v10900_v3  ;;  %v4454_v59 = vsel %vm4425_vm5, %v4382_v56, %v10870_v7 }
 0x210   : > { %3503 = vst [vmem:[#allocation2 + $0x218] sm:$0xff] %v3359_v11  ;;  %v3145_v31 = vmax.f32 %v2271_v14, 0.0  ;;  %v4740_v63 = vsel %vm4713_vm9, %v4668_v43, %v10902_v23  ;;  %v4176_v6 = vsel %vm4146_vm2, %v10723_v45, %v10787_v27 }
 0x211   : > { %3502 = vst [vmem:[#allocation2 + $0x210] sm:$0xff] %v3358_v34  ;;  %v3144_v4 = vmax.f32 %v2266_v24, 0.0  ;;  %v8016_v19 = vpop.f32.mrb[142].mxu0  ;;  %8301 = vmatprep.mubr.f32.mxu1 %v4740_v63  ;;  %v4526_v34 = vsel %vm4497_vm6, %v4454_v59, %v10872_v54  ;;  %v4311_v48 = vsel %vm4281_vm3, %v4176_v6, %v10789_v20 }
 0x212   : > { %v3361_v8 = vmax.f32 %v3139_v41, %v3145_v31  ;;  %v2281_v55 = vadd.f32 %v10812_v10, %v8016_v19  ;;  %v2275_v47 = vpop.f32.mrb[143].mxu0  ;;  %v10923_v1 = vld [vmem:[#allocation3 + $0xf9] sm:$0xff]  ;;  %v4383_v27 = vsel %vm4353_vm4, %v4311_v48, %v10836_v35  ;;  %v4598_v63 = vsel %vm4569_vm7, %v4526_v34, %v10859_v9 }
 0x213   : > { %v10925_v58 = vld [vmem:[#allocation3 + $0xfa] sm:$0xff]  ;;  %v3360_v50 = vmax.f32 %v3138_v57, %v3144_v4  ;;  %v2276_v46 = vadd.f32 %v10812_v10, %v2275_v47  ;;  %v4669_v32 = vsel %vm4641_vm8, %v4597_v42, %v10923_v1  ;;  %v4177_v57 = vsel %vm4146_vm2, %v10732_v40, %v10815_v0 }
 0x214   : > { %3505 = vst [vmem:[#allocation2 + $0x228] sm:$0xff] %v3361_v8  ;;  %v3147_v29 = vmax.f32 %v2281_v55, 0.0  ;;  %v4741_v37 = vsel %vm4713_vm9, %v4669_v32, %v10925_v58  ;;  %v4455_v52 = vsel %vm4425_vm5, %v4383_v27, %v10900_v3 }
 0x215   : > { %3504 = vst [vmem:[#allocation2 + $0x220] sm:$0xff] %v3360_v50  ;;  %v3146_v61 = vmax.f32 %v2276_v46, 0.0  ;;  %v8019_v25 = vpop.f32.mrb[144].mxu0  ;;  %8302 = vmatmul.mubr.f32.gmra.mrb[134].mxu1 %v4741_v37  ;;  %v4312_v46 = vsel %vm4281_vm3, %v4177_v57, %v10817_v5 }
 0x216   : > { %v3363_v16 = vmax.f32 %v3141_v33, %v3147_v29  ;;  %v2285_v53 = vpop.f32.mrb[145].mxu0  ;;  %v2291_v41 = vadd.f32 %v10812_v10, %v8019_v25  ;;  %v4384_v51 = vsel %vm4353_vm4, %v4312_v46, %v10845_v13 }
 0x217   : > { %v3362_v39 = vmax.f32 %v3140_v21, %v3146_v61  ;;  %v2286_v43 = vadd.f32 %v10812_v10, %v2285_v53  ;;  %v4527_v21 = vsel %vm4497_vm6, %v4455_v52, %v10902_v23  ;;  %v4456_v53 = vsel %vm4425_vm5, %v4384_v51, %v10923_v1 }
 0x218   : > { %v3646_v62 = vld [vmem:[#allocation2 + $0x210] ss:$2 sm:$0xff]  ;;  %v3790_v36 = vld [vmem:[#allocation2 + $0x211] ss:$2 sm:$0xff]  ;;  %3507 = vst [vmem:[#allocation2 + $0x238] sm:$0xff] %v3363_v16  ;;  %v3149_v0 = vmax.f32 %v2291_v41, 0.0  ;;  %v4178_v52 = vsel %vm4146_vm2, %v10746_v38, %v10870_v7 }
 0x219   : > { %v10944_v28 = vmax.f32 %v3646_v62, %v3790_v36  ;;  %3506 = vst [vmem:[#allocation2 + $0x230] sm:$0xff] %v3362_v39  ;;  %v8022_v49 = vpop.f32.mrb[146].mxu0  ;;  %v3148_v42 = vmax.f32 %v2286_v43, 0.0  ;;  %v4313_v38 = vsel %vm4281_vm3, %v4178_v52, %v10872_v54  ;;  %v11066_v54 = vld [vmem:[#allocation3 + $0x168] sm:$0xff] }
 0x21a   : > { %v2295_v26 = vpop.f32.mrb[147].mxu0  ;;  %v2301_v55 = vadd.f32 %v10812_v10, %v8022_v49 }
 0x21b   : > { %3972 = vst [vmem:[#allocation3 + $0x108] sm:$0xff] %v10944_v28  ;;  %v2296_v33 = vadd.f32 %v10812_v10, %v2295_v26  ;;  %v4599_v62 = vsel %vm4569_vm7, %v4527_v21, %v10944_v28  ;;  %v4385_v21 = vsel %vm4353_vm4, %v4313_v38, %v10859_v9 }
 0x21c   : > { %v3648_v18 = vld [vmem:[#allocation2 + $0x220] ss:$2 sm:$0xff]  ;;  %v3792_v60 = vld [vmem:[#allocation2 + $0x221] ss:$2 sm:$0xff]  ;;  %v3151_v36 = vmax.f32 %v2301_v55, 0.0 }
 0x21d   : > { %v10953_v11 = vmax.f32 %v3648_v18, %v3792_v60  ;;  %v8025_v14 = vpop.f32.mrb[148].mxu0  ;;  %v3150_v18 = vmax.f32 %v2296_v33, 0.0 }
 0x21e   : > { %v2305_v17 = vpop.f32.mrb[149].mxu0  ;;  %v2311_v49 = vadd.f32 %v10812_v10, %v8025_v14 }
 0x21f   : > { %3973 = vst [vmem:[#allocation3 + $0x110] sm:$0xff] %v10953_v11  ;;  %v2306_v60 = vadd.f32 %v10812_v10, %v2305_v17  ;;  %v4528_v17 = vsel %vm4497_vm6, %v4456_v53, %v10925_v58 }
 0x220   : > { %v3650_v24 = vld [vmem:[#allocation2 + $0x230] ss:$2 sm:$0xff]  ;;  %v3794_v44 = vld [vmem:[#allocation2 + $0x231] ss:$2 sm:$0xff] }
 0x221   : > { %v10967_v31 = vmax.f32 %v3650_v24, %v3794_v44  ;;  %v8028_v45 = vpop.f32.mrb[150].mxu0 }
 0x222   : > { %v2321_v2 = vadd.f32 %v10812_v10, %v8028_v45  ;;  %v2315_v4 = vpop.f32.mrb[151].mxu0  ;;  %v10978_v19 = vld [vmem:[#allocation3 + $0x101] sm:$0xff] }
 0x223   : > { %v10980_v20 = vld [vmem:[#allocation3 + $0x102] sm:$0xff]  ;;  %3974 = vst [vmem:[#allocation3 + $0x118] sm:$0xff] %v10967_v31  ;;  %v2316_v8 = vadd.f32 %v10812_v10, %v2315_v4  ;;  %v4670_v40 = vsel %vm4641_vm8, %v4598_v63, %v10978_v19  ;;  %v4600_v63 = vsel %vm4569_vm7, %v4528_v17, %v10953_v11 }
 0x224   : > { %v3155_v47 = vmax.f32 %v2321_v2, 0.0  ;;  %v4742_v50 = vsel %vm4713_vm9, %v4670_v40, %v10980_v20  ;;  %v3153_v2 = vmax.f32 %v2311_v49, 0.0 }
 0x225   : > { %v3154_v29 = vmax.f32 %v2316_v8, 0.0  ;;  %v8031_v32 = vpop.f32.mrb[152].mxu0  ;;  %8304 = vmatprep.mubr.f32.mxu1 %v4742_v50  ;;  %v3152_v8 = vmax.f32 %v2306_v60, 0.0  ;;  %v3864_v60 = vld [vmem:[#allocation2 + $0x461] ss:$2 sm:$0xff] }
 0x226   : > { %v3365_v61 = vmax.f32 %v3149_v0, %v3155_v47  ;;  %v2331_v25 = vadd.f32 %v10812_v10, %v8031_v32  ;;  %v2325_v37 = vpop.f32.mrb[153].mxu0  ;;  %v11008_v16 = vld [vmem:[#allocation3 + $0x109] sm:$0xff] }
 0x227   : > { %v11010_v5 = vld [vmem:[#allocation3 + $0x10a] sm:$0xff]  ;;  %v3364_v39 = vmax.f32 %v3148_v42, %v3154_v29  ;;  %v2326_v30 = vadd.f32 %v10812_v10, %v2325_v37  ;;  %v4671_v59 = vsel %vm4641_vm8, %v4599_v62, %v11008_v16 }
 0x228   : > { %3509 = vst [vmem:[#allocation2 + $0x248] sm:$0xff] %v3365_v61  ;;  %v3157_v26 = vmax.f32 %v2331_v25, 0.0  ;;  %v11020_v56 = vpop.f32.mrb[110].mxu1  ;;  %v4743_v14 = vsel %vm4713_vm9, %v4671_v59, %v11010_v5  ;;  %v4179_v61 = vsel %vm4146_vm2, %v10836_v35, %v10900_v3  ;;  %v4457_v25 = vsel %vm4425_vm5, %v4385_v21, %v10978_v19  ;;  %v3718_v62 = vld [vmem:[#allocation2 + $0x450] ss:$2 sm:$0xff] }
 0x229   : > { %3508 = vst [vmem:[#allocation2 + $0x240] sm:$0xff] %v3364_v39  ;;  %v3156_v6 = vmax.f32 %v2326_v30, 0.0  ;;  %v8034_v34 = vpop.f32.mrb[154].mxu0  ;;  %v11026_v24 = vpop.f32.mrb[111].mxu1  ;;  %8305 = vmatmul.mubr.f32.gmra.mrb[136].mxu1 %v4743_v14  ;;  %v11071_v39 = vld [vmem:[#allocation3 + $0x169] sm:$0xff]  ;;  %v4180_v30 = vsel %vm4146_vm2, %v10845_v13, %v10923_v1  ;;  %v4314_v49 = vsel %vm4281_vm3, %v4179_v61, %v10902_v23  ;;  %v4529_v13 = vsel %vm4497_vm6, %v4457_v25, %v10980_v20 }
 0x22a   : > { %v3367_v44 = vmax.f32 %v3151_v36, %v3157_v26  ;;  %v2341_v41 = vadd.f32 %v10812_v10, %v8034_v34  ;;  %v2335_v48 = vpop.f32.mrb[155].mxu0  ;;  %v11032_v43 = vld [vmem:[#allocation3 + $0x111] sm:$0xff]  ;;  %v4386_v59 = vsel %vm4353_vm4, %v4314_v49, %v10944_v28  ;;  %v11094_v1 = vld [vmem:[%s14006_s4] ss:$0 sm:$0xff]  ;;  %v11100_v23 = vsel %vm4146_vm2, %v11066_v54, %v11071_v39 }
 0x22b   : > { %v3366_v45 = vmax.f32 %v3150_v18, %v3156_v6  ;;  %v2336_v27 = vadd.f32 %v10812_v10, %v2335_v48  ;;  %v11038_v57 = vld [vmem:[#allocation3 + $0x112] sm:$0xff]  ;;  %v4672_v55 = vsel %vm4641_vm8, %v4600_v63, %v11032_v43  ;;  %v3720_v18 = vld [vmem:[#allocation2 + $0x460] ss:$2 sm:$0xff]  ;;  %v4315_v6 = vsel %vm4281_vm3, %v4180_v30, %v10925_v58 }
 0x22c   : > { %3511 = vst [vmem:[#allocation2 + $0x258] sm:$0xff] %v3367_v44  ;;  %v3159_v4 = vmax.f32 %v2341_v41, 0.0  ;;  %v4744_v50 = vsel %vm4713_vm9, %v4672_v55, %v11038_v57  ;;  %v3862_v36 = vld [vmem:[#allocation2 + $0x451] ss:$2 sm:$0xff]  ;;  %v4458_v34 = vsel %vm4425_vm5, %v4386_v59, %v11008_v16  ;;  %v4387_v17 = vsel %vm4353_vm4, %v4315_v6, %v10953_v11 }
 0x22d   : > { %3510 = vst [vmem:[#allocation2 + $0x250] sm:$0xff] %v3366_v45  ;;  %v3158_v40 = vmax.f32 %v2336_v27, 0.0  ;;  %v8037_v0 = vpop.f32.mrb[156].mxu0  ;;  %8307 = vmatprep.mubr.f32.mxu1 %v4744_v50  ;;  %v3936_v48 = vmax.f32 %v3718_v62, %v3862_v36  ;;  %v3722_v45 = vld [vmem:[#allocation2 + $0x470] ss:$2 sm:$0xff]  ;;  %v4872_v63 = vadd.f32 %v11094_v1, %v11026_v24  ;;  %v4601_v55 = vsel %vm4569_vm7, %v4529_v13, %v10967_v31 }
 0x22e   : > { %v3369_v47 = vmax.f32 %v3153_v2, %v3159_v4  ;;  %v2345_v46 = vpop.f32.mrb[157].mxu0  ;;  %v2351_v41 = vadd.f32 %v10812_v10, %v8037_v0  ;;  %v3866_v58 = vld [vmem:[#allocation2 + $0x471] ss:$2 sm:$0xff]  ;;  %v4530_v50 = vsel %vm4497_vm6, %v4458_v34, %v11010_v5  ;;  %v4459_v24 = vsel %vm4425_vm5, %v4387_v17, %v11032_v43 }
 0x22f   : > { %v3368_v42 = vmax.f32 %v3152_v8, %v3158_v40  ;;  %v2346_v2 = vadd.f32 %v10812_v10, %v2345_v46  ;;  %4008 = vst [vmem:[#allocation3 + $0x228] sm:$0xff] %v3936_v48  ;;  %v3938_v62 = vmax.f32 %v3722_v45, %v3866_v58  ;;  %v5200_v36 = vmax.f32 %v4872_v63, 0.0 }
 0x230   : > { %v3652_v7 = vld [vmem:[#allocation2 + $0x240] ss:$2 sm:$0xff]  ;;  %v3796_v33 = vld [vmem:[#allocation2 + $0x241] ss:$2 sm:$0xff]  ;;  %3513 = vst [vmem:[#allocation2 + $0x268] sm:$0xff] %v3369_v47  ;;  %v3937_v47 = vmax.f32 %v3720_v18, %v3864_v60  ;;  %v3161_v38 = vmax.f32 %v2351_v41, 0.0 }
 0x231   : > { %v11056_v29 = vmax.f32 %v3652_v7, %v3796_v33  ;;  %3512 = vst [vmem:[#allocation2 + $0x260] sm:$0xff] %v3368_v42  ;;  %v8040_v32 = vpop.f32.mrb[158].mxu0  ;;  %v3160_v61 = vmax.f32 %v2346_v2, 0.0  ;;  %4010 = vst [vmem:[#allocation3 + $0x238] sm:$0xff] %v3938_v62 }
 0x232   : > { %v2355_v51 = vpop.f32.mrb[159].mxu0  ;;  %v2361_v7 = vadd.f32 %v10812_v10, %v8040_v32  ;;  %4009 = vst [vmem:[#allocation3 + $0x230] sm:$0xff] %v3937_v47 }
 0x233   : > { %3975 = vst [vmem:[#allocation3 + $0x120] sm:$0xff] %v11056_v29  ;;  %v2356_v25 = vadd.f32 %v10812_v10, %v2355_v51  ;;  %v4531_v51 = vsel %vm4497_vm6, %v4459_v24, %v11038_v57 }
 0x234   : > { %v3654_v37 = vld [vmem:[#allocation2 + $0x250] ss:$2 sm:$0xff]  ;;  %v3798_v53 = vld [vmem:[#allocation2 + $0x251] ss:$2 sm:$0xff]  ;;  %v3163_v41 = vmax.f32 %v2361_v7, 0.0  ;;  %v4181_v7 = vsel %vm4146_vm2, %v10859_v9, %v10978_v19  ;;  %v11192_v19 = vld [vmem:[#allocation3 + $0x180] sm:$0xff] }
 0x235   : > { %v11077_v35 = vmax.f32 %v3654_v37, %v3798_v53  ;;  %v8043_v3 = vpop.f32.mrb[160].mxu0  ;;  %v3162_v2 = vmax.f32 %v2356_v25, 0.0  ;;  %v11184_v25 = vld [vmem:[#allocation3 + $0x178] sm:$0xff] }
 0x236   : > { %v11082_v26 = vpop.f32.mrb[161].mxu0  ;;  %v2371_v48 = vadd.f32 %v10812_v10, %v8043_v3 }
 0x237   : > { %3976 = vst [vmem:[#allocation3 + $0x128] sm:$0xff] %v11077_v35 }
 0x238   : > { %v3656_v14 = vld [vmem:[#allocation2 + $0x260] ss:$2 sm:$0xff]  ;;  %v3800_v44 = vld [vmem:[#allocation2 + $0x261] ss:$2 sm:$0xff] }
 0x239   : > { %v11112_v27 = vmax.f32 %v3656_v14, %v3800_v44  ;;  %v8046_v4 = vpop.f32.mrb[162].mxu0  ;;  %v4602_v44 = vsel %vm4569_vm7, %v4530_v50, %v11056_v29 }
 0x23a   : > { %v2381_v52 = vadd.f32 %v10812_v10, %v8046_v4  ;;  %v2375_v8 = vpop.f32.mrb[163].mxu0  ;;  %v11118_v40 = vld [vmem:[#allocation3 + $0x119] sm:$0xff]  ;;  %v2366_v4 = vadd.f32 %v10812_v10, %v11082_v26 }
 0x23b   : > { %v11120_v0 = vld [vmem:[#allocation3 + $0x11a] sm:$0xff]  ;;  %3977 = vst [vmem:[#allocation3 + $0x130] sm:$0xff] %v11112_v27  ;;  %v2376_v46 = vadd.f32 %v10812_v10, %v2375_v8  ;;  %v4673_v42 = vsel %vm4641_vm8, %v4601_v55, %v11118_v40  ;;  %v11162_v8 = vld [vmem:[#allocation3 + $0x170] sm:$0xff] }
 0x23c   : > { %v3167_v33 = vmax.f32 %v2381_v52, 0.0  ;;  %v4745_v21 = vsel %vm4713_vm9, %v4673_v42, %v11120_v0  ;;  %v11164_v55 = vld [vmem:[#allocation3 + $0x16a] sm:$0xff] }
 0x23d   : > { %v3166_v37 = vmax.f32 %v2376_v46, 0.0  ;;  %v8270_v53 = vpop.f32.mrb[112].mxu1  ;;  %v8049_v30 = vpop.f32.mrb[164].mxu0  ;;  %8308 = vmatmul.mubr.f32.gmra.mrb[138].mxu1 %v4745_v21  ;;  %v4329_v62 = vsel %vm4281_vm3, %v11100_v23, %v11164_v55  ;;  %v4316_v23 = vsel %vm4281_vm3, %v4181_v7, %v10980_v20  ;;  %v11232_v20 = vadd.f32 %v10812_v10, %v9219_v15 }
 0x23e   : > { %v3371_v49 = vmax.f32 %v3161_v38, %v3167_v33  ;;  %v4887_v59 = vadd.f32 %v8270_v53, %v11094_v1  ;;  %v2391_v32 = vadd.f32 %v10812_v10, %v8049_v30  ;;  %v11143_v18 = vpop.f32.mrb[113].mxu1  ;;  %v2385_v60 = vpop.f32.mrb[165].mxu0  ;;  %v11145_v13 = vld [vmem:[#allocation3 + $0x121] sm:$0xff]  ;;  %v11174_v38 = vld [vmem:[#allocation3 + $0x171] sm:$0xff]  ;;  %v3165_v53 = vmax.f32 %v2371_v48, 0.0 }
 0x23f   : > { %v3370_v6 = vmax.f32 %v3160_v61, %v3166_v37  ;;  %v2386_v34 = vadd.f32 %v10812_v10, %v2385_v60  ;;  %v11151_v14 = vld [vmem:[#allocation3 + $0x122] sm:$0xff]  ;;  %v4674_v52 = vsel %vm4641_vm8, %v4602_v44, %v11145_v13  ;;  %v4603_v61 = vsel %vm4569_vm7, %v4531_v51, %v11077_v35  ;;  %v11186_v37 = vld [vmem:[#allocation3 + $0x179] sm:$0xff] }
 0x240   : > { %3515 = vst [vmem:[#allocation2 + $0x278] sm:$0xff] %v3371_v49  ;;  %v5203_v17 = vmax.f32 %v4887_v59, 0.0  ;;  %v3169_v45 = vmax.f32 %v2391_v32, 0.0  ;;  %v4746_v24 = vsel %vm4713_vm9, %v4674_v52, %v11151_v14  ;;  %v4195_v60 = vsel %vm4146_vm2, %v11162_v8, %v11174_v38  ;;  %v11207_v51 = vld [vmem:[#allocation3 + $0x172] sm:$0xff]  ;;  %v11220_v48 = vld [vmem:[#allocation3 + $0x17a] sm:$0xff] }
 0x241   : > { %3514 = vst [vmem:[#allocation2 + $0x270] sm:$0xff] %v3370_v6  ;;  %v3168_v58 = vmax.f32 %v2386_v34, 0.0  ;;  %v8052_v63 = vpop.f32.mrb[166].mxu0  ;;  %8310 = vmatprep.mubr.f32.mxu1 %v4746_v24  ;;  %v11209_v6 = vld [vmem:[#allocation3 + $0x181] sm:$0xff]  ;;  %v4330_v52 = vsel %vm4281_vm3, %v4195_v60, %v11207_v51  ;;  %v11251_v24 = vld [vmem:[#allocation3 + $0x190] sm:$0xff] }
 0x242   : > { %v5266_v47 = vmax.f32 %v5200_v36, %v5203_v17  ;;  %v3373_v3 = vmax.f32 %v3163_v41, %v3169_v45  ;;  %v2401_v50 = vadd.f32 %v10812_v10, %v8052_v63  ;;  %v2395_v26 = vpop.f32.mrb[167].mxu0  ;;  %v11170_v46 = vld [vmem:[#allocation3 + $0x129] sm:$0xff]  ;;  %v3164_v36 = vmax.f32 %v2366_v4, 0.0  ;;  %14017 = vst [vmem:[#allocation8_spill] sm:$0xff] %v11209_v6 }
 0x243   : > { %v11172_v42 = vld [vmem:[#allocation3 + $0x12a] sm:$0xff]  ;;  %v3372_v33 = vmax.f32 %v3162_v2, %v3168_v58  ;;  %v2396_v21 = vadd.f32 %v10812_v10, %v2395_v26  ;;  %v4675_v9 = vsel %vm4641_vm8, %v4603_v61, %v11170_v46  ;;  %v4196_v41 = vsel %vm4146_vm2, %v11184_v25, %v11186_v37 }
 0x244   : > { %5300 = vst.msk [vmem:[#allocation4] sm:$0xff] %vm5299_vm10, %v5266_v47  ;;  %3517 = vst [vmem:[#allocation2 + $0x288] sm:$0xff] %v3373_v3  ;;  %v3171_v30 = vmax.f32 %v2401_v50, 0.0  ;;  %v4747_v32 = vsel %vm4713_vm9, %v4675_v9, %v11172_v42  ;;  %v4197_v17 = vsel %vm4146_vm2, %v11192_v19, %v11209_v6  ;;  %v11228_v45 = vadd.f32 %v10812_v10, %v9213_v12  ;;  %v11240_v47 = vld [vmem:[#allocation3 + $0x182] sm:$0xff] }
 0x245   : > { %3516 = vst [vmem:[#allocation2 + $0x280] sm:$0xff] %v3372_v33  ;;  %v3170_v49 = vmax.f32 %v2396_v21, 0.0  ;;  %v11198_v59 = vpop.f32.mrb[168].mxu0  ;;  %8311 = vmatmul.mubr.f32.gmra.mrb[140].mxu1 %v4747_v32  ;;  %v4401_v4 = vsel %vm4353_vm4, %v4329_v62, %v11192_v19  ;;  %14018 = vst [vmem:[#allocation9_spill] sm:$0xff] %v11240_v47  ;;  %v4388_v12 = vsel %vm4353_vm4, %v4316_v23, %v10967_v31  ;;  %v11249_v50 = vld [vmem:[#allocation3 + $0x188] sm:$0xff]  ;;  %v8540_v33 = vmov 0.0  }
 0x246   : > { %v3375_v34 = vmax.f32 %v3165_v53, %v3171_v30  ;;  %v11214_v44 = vpop.f32.mrb[169].mxu0  ;;  %14019 = vst [vmem:[#allocation10_spill] sm:$0xff] %v11249_v50  ;;  %v4331_v26 = vsel %vm4281_vm3, %v4196_v41, %v11220_v48  ;;  %v4332_v7 = vsel %vm4281_vm3, %v4197_v17, %v11240_v47  ;;  %4011 = vst [vmem:[#allocation3 + $0x240] sm:$0xff] %v8540_v33  ;;  %v11273_v62 = vld [vmem:[#allocation3 + $0x189] sm:$0xff] }
 0x247   : > { %v3374_v2 = vmax.f32 %v3164_v36, %v3170_v49  ;;  %v11261_v21 = vadd.f32 %v11020_v56, %v11094_v1  ;;  %v4182_v61 = vsel %vm4146_vm2, %v10944_v28, %v11008_v16  ;;  %v4460_v53 = vsel %vm4425_vm5, %v4388_v12, %v11118_v40  ;;  %v11280_v16 = vld [vmem:[#allocation3 + $0x198] sm:$0xff] }
 0x248   : > { %v3658_v58 = vld [vmem:[#allocation2 + $0x270] ss:$2 sm:$0xff]  ;;  %v3802_v63 = vld [vmem:[#allocation2 + $0x271] ss:$2 sm:$0xff]  ;;  %3519 = vst [vmem:[#allocation2 + $0x298] sm:$0xff] %v3375_v34  ;;  %v4473_v9 = vsel %vm4425_vm5, %v4401_v4, %v11209_v6  ;;  %v3183_v36 = vmax.f32 %v11228_v45, 0.0  ;;  %v4882_v28 = vadd.f32 %v11094_v1, %v11143_v18  ;;  %v4198_v49 = vsel %vm4146_vm2, %v11249_v50, %v11273_v62 }
 0x249   : > { %v11245_v15 = vmax.f32 %v3658_v58, %v3802_v63  ;;  %3518 = vst [vmem:[#allocation2 + $0x290] sm:$0xff] %v3374_v2  ;;  %v11247_v3 = vpop.f32.mrb[170].mxu0  ;;  %v3182_v56 = vmax.f32 %v11232_v20, 0.0  ;;  %v4183_v32 = vsel %vm4146_vm2, %v10953_v11, %v11032_v43  ;;  %v11293_v34 = vsel %vm4353_vm4, %v4330_v52, %v11249_v50  ;;  %v11318_v2 = vld [vmem:[#allocation3 + $0x18a] sm:$0xff] }
 0x24a   : > { %v2415_v30 = vpop.f32.mrb[171].mxu0  ;;  %v11298_v18 = vsel %vm4353_vm4, %v4331_v26, %v11251_v24  ;;  %v11303_v41 = vsel %vm4353_vm4, %v4332_v7, %v11280_v16  ;;  %v4317_v11 = vsel %vm4281_vm3, %v4182_v61, %v11010_v5  ;;  %v4532_v43 = vsel %vm4497_vm6, %v4460_v53, %v11120_v0 }
 0x24b   : > { %3978 = vst [vmem:[#allocation3 + $0x138] sm:$0xff] %v11245_v15  ;;  %v11316_v20 = vsel %vm4497_vm6, %v4473_v9, %v11240_v47  ;;  %v5201_v4 = vmax.f32 %v11261_v21, 0.0  ;;  %v4389_v5 = vsel %vm4353_vm4, %v4317_v11, %v11056_v29  ;;  %v11328_v52 = vsel %vm4281_vm3, %v4198_v49, %v11318_v2 }
 0x24c   : > { %v3660_v60 = vld [vmem:[#allocation2 + $0x280] ss:$2 sm:$0xff]  ;;  %v3804_v23 = vld [vmem:[#allocation2 + $0x281] ss:$2 sm:$0xff]  ;;  %v4318_v12 = vsel %vm4281_vm3, %v4183_v32, %v11038_v57  ;;  %v5202_v26 = vmax.f32 %v4882_v28, 0.0  ;;  %v4461_v7 = vsel %vm4425_vm5, %v4389_v5, %v11145_v13  ;;  %v2411_v9 = vadd.f32 %v10812_v10, %v11198_v59 }
 0x24d   : > { %v11311_v17 = vmax.f32 %v3660_v60, %v3804_v23  ;;  %v8061_v45 = vpop.f32.mrb[172].mxu0  ;;  %v4390_v21 = vsel %vm4353_vm4, %v4318_v12, %v11077_v35  ;;  %v4604_v28 = vsel %vm4569_vm7, %v4532_v43, %v11112_v27  ;;  %v2406_v60 = vadd.f32 %v10812_v10, %v11214_v44 }
 0x24e   : > { %v2431_v58 = vadd.f32 %v10812_v10, %v8061_v45  ;;  %v2425_v63 = vpop.f32.mrb[173].mxu0  ;;  %v4533_v59 = vsel %vm4497_vm6, %v4461_v7, %v11151_v14  ;;  %v4462_v44 = vsel %vm4425_vm5, %v4390_v21, %v11170_v46  ;;  %v3173_v47 = vmax.f32 %v2411_v9, 0.0 }
 0x24f   : > { %3979 = vst [vmem:[#allocation3 + $0x140] sm:$0xff] %v11311_v17  ;;  %v2426_v33 = vadd.f32 %v10812_v10, %v2425_v63  ;;  %v2416_v50 = vadd.f32 %v10812_v10, %v2415_v30 }
 0x250   : > { %v3662_v61 = vld [vmem:[#allocation2 + $0x290] ss:$2 sm:$0xff]  ;;  %v3806_v53 = vld [vmem:[#allocation2 + $0x291] ss:$2 sm:$0xff]  ;;  %v3177_v49 = vmax.f32 %v2431_v58, 0.0  ;;  %v8273_v57 = vpop.f32.mrb[114].mxu1 }
 0x251   : > { %v11346_v32 = vmax.f32 %v3662_v61, %v3806_v53  ;;  %v3176_v23 = vmax.f32 %v2426_v33, 0.0  ;;  %v4897_v11 = vadd.f32 %v8273_v57, %v11094_v1  ;;  %v8064_v45 = vpop.f32.mrb[174].mxu0  ;;  %v4891_v5 = vpop.f32.mrb[115].mxu1 }
 0x252   : > { %v3381_v58 = vmax.f32 %v3177_v49, %v3183_v36  ;;  %v2441_v63 = vadd.f32 %v10812_v10, %v8064_v45  ;;  %v4892_v12 = vadd.f32 %v11094_v1, %v4891_v5  ;;  %v2435_v43 = vpop.f32.mrb[175].mxu0  ;;  %v11361_v57 = vld [vmem:[#allocation3 + $0x131] sm:$0xff]  ;;  %v2421_v36 = vadd.f32 %v10812_v10, %v11247_v3 }
 0x253   : > { %3980 = vst [vmem:[#allocation3 + $0x148] sm:$0xff] %v11346_v32  ;;  %v3380_v33 = vmax.f32 %v3176_v23, %v3182_v56  ;;  %v5205_v61 = vmax.f32 %v4897_v11, 0.0  ;;  %v2436_v53 = vadd.f32 %v10812_v10, %v2435_v43  ;;  %v11365_v45 = vld [vmem:[#allocation3 + $0x132] sm:$0xff]  ;;  %v3172_v5 = vmax.f32 %v2406_v60, 0.0 }
 0x254   : > { %3525 = vst [vmem:[#allocation2 + $0x2c8] sm:$0xff] %v3381_v58  ;;  %v3179_v7 = vmax.f32 %v2441_v63, 0.0  ;;  %v5204_v49 = vmax.f32 %v4892_v12, 0.0  ;;  %v4676_v3 = vsel %vm4641_vm8, %v4604_v28, %v11361_v57  ;;  %v3175_v60 = vmax.f32 %v2421_v36, 0.0  ;;  %v4066_v36 = vld [vmem:[#allocation3 + $0x1a0] sm:$0xff] }
 0x255   : > { %3524 = vst [vmem:[#allocation2 + $0x2c0] sm:$0xff] %v3380_v33  ;;  %v5268_v21 = vmax.f32 %v5202_v26, %v5205_v61  ;;  %v3178_v56 = vmax.f32 %v2436_v53, 0.0  ;;  %v8067_v23 = vpop.f32.mrb[176].mxu0  ;;  %v4748_v26 = vsel %vm4713_vm9, %v4676_v3, %v11365_v45  ;;  %v4474_v33 = vsel %vm4425_vm5, %v11293_v34, %v11273_v62 }
 0x256   : > { %v3377_v11 = vmax.f32 %v3173_v47, %v3179_v7  ;;  %v5267_v43 = vmax.f32 %v5201_v4, %v5204_v49  ;;  %v2451_v6 = vadd.f32 %v10812_v10, %v8067_v23  ;;  %v2445_v9 = vpop.f32.mrb[177].mxu0  ;;  %v11372_v58 = vld [vmem:[#allocation3 + $0x139] sm:$0xff]  ;;  %v4605_v4 = vsel %vm4569_vm7, %v4533_v59, %v11245_v15  ;;  %8313 = vmatprep.mubr.f32.mxu1 %v4748_v26 }
 0x257   : > { %v11374_v63 = vld [vmem:[#allocation3 + $0x13a] sm:$0xff]  ;;  %5302 = vst.msk [vmem:[#allocation4 + $0x10] sm:$0xff] %vm5299_vm10, %v5268_v21  ;;  %v3376_v30 = vmax.f32 %v3172_v5, %v3178_v56  ;;  %v2446_v47 = vadd.f32 %v10812_v10, %v2445_v9  ;;  %v4677_v12 = vsel %vm4641_vm8, %v4605_v4, %v11372_v58  ;;  %v11392_v10 = vld [vmem:[#allocation3 + $0x191] sm:$0xff]  ;;  %v3174_v61 = vmax.f32 %v2416_v50, 0.0 }
 0x258   : > { %3521 = vst [vmem:[#allocation2 + $0x2a8] sm:$0xff] %v3377_v11  ;;  %5301 = vst.msk [vmem:[#allocation4 + $0x8] sm:$0xff] %vm5299_vm10, %v5267_v43  ;;  %v3181_v28 = vmax.f32 %v2451_v6, 0.0  ;;  %v4749_v6 = vsel %vm4713_vm9, %v4677_v12, %v11374_v63  ;;  %v4199_v7 = vsel %vm4146_vm2, %v11251_v24, %v11392_v10  ;;  %v4131_v49 = vld [vmem:[#allocation3 + $0x199] sm:$0xff]  ;;  %v4534_v34 = vsel %vm4497_vm6, %v4462_v44, %v11172_v42  ;;  %v4132_v12 = vld [vmem:[#allocation3 + $0x1a1] sm:$0xff] }
 0x259   : > { %3520 = vst [vmem:[#allocation2 + $0x2a0] sm:$0xff] %v3376_v30  ;;  %v3180_v59 = vmax.f32 %v2446_v47, 0.0  ;;  %v11394_v53 = vpop.f32.mrb[116].mxu1  ;;  %8314 = vmatmul.mubr.f32.gmra.mrb[142].mxu1 %v4749_v6  ;;  %v4405_v23 = vsel %vm4353_vm4, %v11328_v52, %v4066_v36  ;;  %v4200_v11 = vsel %vm4146_vm2, %v11280_v16, %v4131_v49  ;;  %v4606_v44 = vsel %vm4569_vm7, %v4534_v34, %v11311_v17  ;;  %v11424_v9 = vld [vmem:[#allocation3 + $0x192] sm:$0xff]  ;;  %v4266_v30 = vld [vmem:[#allocation3 + $0x19a] sm:$0xff] }
 0x25a   : > { %v3379_v50 = vmax.f32 %v3175_v60, %v3181_v28  ;;  %v11406_v5 = vpop.f32.mrb[117].mxu1  ;;  %v11408_v21 = vld [vmem:[#allocation3 + $0x141] sm:$0xff]  ;;  %v4546_v3 = vsel %vm4497_vm6, %v4474_v33, %v11318_v2  ;;  %v4475_v52 = vsel %vm4425_vm5, %v11298_v18, %v11392_v10  ;;  %v4184_v26 = vsel %vm4146_vm2, %v10967_v31, %v11118_v40 }
 0x25b   : > { %v11410_v56 = vld [vmem:[#allocation3 + $0x142] sm:$0xff]  ;;  %v3378_v43 = vmax.f32 %v3174_v61, %v3180_v59  ;;  %v4678_v60 = vsel %vm4641_vm8, %v4606_v44, %v11408_v21  ;;  %v4334_v28 = vsel %vm4281_vm3, %v4199_v7, %v11424_v9  ;;  %v4617_v18 = vsel %vm4569_vm7, %v11316_v20, %v11280_v16  ;;  %v11462_v7 = vld [vmem:[#allocation3 + $0x1b0] sm:$0xff] }
 0x25c   : > { %v3668_v47 = vld [vmem:[#allocation2 + $0x2c0] ss:$2 sm:$0xff]  ;;  %v3812_v4 = vld [vmem:[#allocation2 + $0x2c1] ss:$2 sm:$0xff]  ;;  %3523 = vst [vmem:[#allocation2 + $0x2b8] sm:$0xff] %v3379_v50  ;;  %v4750_v31 = vsel %vm4713_vm9, %v4678_v60, %v11410_v56  ;;  %v4335_v40 = vsel %vm4281_vm3, %v4200_v11, %v4266_v30  ;;  %v4201_v61 = vsel %vm4146_vm2, %v4066_v36, %v4132_v12  ;;  %v4618_v59 = vsel %vm4569_vm7, %v4546_v3, %v4066_v36 }
 0x25d   : > { %v11444_v33 = vmax.f32 %v3668_v47, %v3812_v4  ;;  %3522 = vst [vmem:[#allocation2 + $0x2b0] sm:$0xff] %v3378_v43  ;;  %8316 = vmatprep.mubr.f32.mxu1 %v4750_v31  ;;  %v4319_v16 = vsel %vm4281_vm3, %v4184_v26, %v11120_v0  ;;  %v4067_v20 = vld [vmem:[#allocation3 + $0x1a8] sm:$0xff]  ;;  %v4547_v6 = vsel %vm4497_vm6, %v4475_v52, %v11424_v9 }
 0x25e   : > { %v4476_v34 = vsel %vm4425_vm5, %v11303_v41, %v4131_v49  ;;  %v4689_v36 = vsel %vm4641_vm8, %v4617_v18, %v4131_v49  ;;  %v4267_v50 = vld [vmem:[#allocation3 + $0x1a2] sm:$0xff]  ;;  %v4406_v0 = vsel %vm4353_vm4, %v4334_v28, %v4067_v20  ;;  %v11474_v44 = vsel %vm4353_vm4, %v4335_v40, %v11462_v7  ;;  %v11505_v28 = vld [vmem:[#allocation3 + $0x1b8] sm:$0xff] }
 0x25f   : > { %3983 = vst [vmem:[#allocation3 + $0x160] sm:$0xff] %v11444_v33  ;;  %v4336_v3 = vsel %vm4281_vm3, %v4201_v61, %v4267_v50  ;;  %v4477_v41 = vsel %vm4425_vm5, %v4405_v23, %v4132_v12  ;;  %v4133_v52 = vld [vmem:[#allocation3 + $0x1a9] sm:$0xff]  ;;  %v4185_v49 = vsel %vm4146_vm2, %v11056_v29, %v11145_v13  ;;  %v4690_v47 = vsel %vm4641_vm8, %v4618_v59, %v4132_v12 }
 0x260   : > { %v3664_v11 = vld [vmem:[#allocation2 + $0x2a0] ss:$2 sm:$0xff]  ;;  %v3808_v43 = vld [vmem:[#allocation2 + $0x2a1] ss:$2 sm:$0xff]  ;;  %v4202_v4 = vsel %vm4146_vm2, %v4067_v20, %v4133_v52  ;;  %v4391_v60 = vsel %vm4353_vm4, %v4319_v16, %v11112_v27  ;;  %v4186_v23 = vsel %vm4146_vm2, %v11077_v35, %v11170_v46  ;;  %v11499_v29 = vsel %vm4497_vm6, %v4476_v34, %v4266_v30 }
 0x261   : > { %v11484_v26 = vmax.f32 %v3664_v11, %v3808_v43  ;;  %v11503_v13 = vsel %vm4713_vm9, %v4689_v36, %v4266_v30  ;;  %v4187_v18 = vsel %vm4146_vm2, %v11112_v27, %v11361_v57  ;;  %v4463_v35 = vsel %vm4425_vm5, %v4391_v60, %v11361_v57  ;;  %v11524_v12 = vld [vmem:[#allocation3 + $0x1aa] sm:$0xff] }
 0x262   : > { %v11518_v46 = vsel %vm4353_vm4, %v4336_v3, %v11505_v28  ;;  %v11522_v30 = vsel %vm4497_vm6, %v4477_v41, %v4267_v50  ;;  %v4320_v31 = vsel %vm4281_vm3, %v4185_v49, %v11151_v14  ;;  %v11531_v57 = vsel %vm4713_vm9, %v4690_v47, %v4267_v50  ;;  %v11577_v41 = vld [vmem:[#allocation3 + $0x1c0] sm:$0xff]  ;;  %v11594_v47 = vld [vmem:[#allocation3 + $0x1b1] sm:$0xff] }
 0x263   : > { %3981 = vst [vmem:[#allocation3 + $0x150] sm:$0xff] %v11484_v26  ;;  %v4337_v61 = vsel %vm4281_vm3, %v4202_v4, %v11524_v12  ;;  %v4478_v59 = vsel %vm4425_vm5, %v4406_v0, %v4133_v52  ;;  %v4392_v16 = vsel %vm4353_vm4, %v4320_v31, %v11245_v15  ;;  %v4321_v14 = vsel %vm4281_vm3, %v4186_v23, %v11172_v42 }
 0x264   : > { %v3666_v27 = vld [vmem:[#allocation2 + $0x2b0] ss:$2 sm:$0xff]  ;;  %v3810_v40 = vld [vmem:[#allocation2 + $0x2b1] ss:$2 sm:$0xff]  ;;  %v4619_v36 = vsel %vm4569_vm7, %v4547_v6, %v4067_v20  ;;  %v4393_v50 = vsel %vm4353_vm4, %v4321_v14, %v11311_v17  ;;  %v4322_v11 = vsel %vm4281_vm3, %v4187_v18, %v11365_v45  ;;  %v4535_v43 = vsel %vm4497_vm6, %v4463_v35, %v11365_v45 }
 0x265   : > { %v11544_v34 = vmax.f32 %v3666_v27, %v3810_v40  ;;  %v4188_v42 = vsel %vm4146_vm2, %v11245_v15, %v11372_v58  ;;  %v4464_v20 = vsel %vm4425_vm5, %v4392_v16, %v11372_v58  ;;  %v4189_v6 = vsel %vm4146_vm2, %v11311_v17, %v11408_v21 }
 0x266   : > { %v4124_v0 = vld [vmem:[#allocation3 + $0x161] sm:$0xff]  ;;  %v4465_v45 = vsel %vm4425_vm5, %v4393_v50, %v11408_v21  ;;  %v4902_v49 = vadd.f32 %v11094_v1, %v11406_v5  ;;  %v11587_v17 = vsel %vm4353_vm4, %v4337_v61, %v11577_v41  ;;  %v11592_v21 = vsel %vm4497_vm6, %v4478_v59, %v11524_v12 }
 0x267   : > { %v11561_v3 = vld [vmem:[#allocation3 + $0x162] sm:$0xff]  ;;  %3982 = vst [vmem:[#allocation3 + $0x158] sm:$0xff] %v11544_v34  ;;  %v4193_v15 = vsel %vm4146_vm2, %v11444_v33, %v4124_v0  ;;  %v4394_v5 = vsel %vm4353_vm4, %v4322_v11, %v11346_v32  ;;  %v4323_v4 = vsel %vm4281_vm3, %v4188_v42, %v11374_v63  ;;  %v11604_v60 = vsel %vm4641_vm8, %v4619_v36, %v4133_v52 }
 0x268   : > { %v4328_v58 = vsel %vm4281_vm3, %v4193_v15, %v11561_v3  ;;  %v11610_v23 = vsel %vm4146_vm2, %v11462_v7, %v11594_v47  ;;  %v4536_v18 = vsel %vm4497_vm6, %v4464_v20, %v11374_v63  ;;  %v4324_v35 = vsel %vm4281_vm3, %v4189_v6, %v11410_v56 }
 0x269   : > { %v4537_v31 = vsel %vm4497_vm6, %v4465_v45, %v11410_v56  ;;  %v4607_v40 = vsel %vm4569_vm7, %v4535_v43, %v11346_v32  ;;  %v4400_v56 = vsel %vm4353_vm4, %v4328_v58, %v11184_v25  ;;  %v5206_v16 = vmax.f32 %v4902_v49, 0.0 }
 0x26a   : > { %v4121_v52 = vld [vmem:[#allocation3 + $0x149] sm:$0xff]  ;;  %v4395_v50 = vsel %vm4353_vm4, %v4323_v4, %v11484_v26  ;;  %v4608_v42 = vsel %vm4569_vm7, %v4536_v18, %v11484_v26  ;;  %v4396_v6 = vsel %vm4353_vm4, %v4324_v35, %v11544_v34  ;;  %v4609_v4 = vsel %vm4569_vm7, %v4537_v31, %v11544_v34 }
 0x26b   : > { %v4256_v27 = vld [vmem:[#allocation3 + $0x14a] sm:$0xff]  ;;  %v4190_v61 = vsel %vm4146_vm2, %v11346_v32, %v4121_v52  ;;  %v4466_v63 = vsel %vm4425_vm5, %v4394_v5, %v4121_v52  ;;  %v4679_v59 = vsel %vm4641_vm8, %v4607_v40, %v4121_v52  ;;  %v4472_v18 = vsel %vm4425_vm5, %v4400_v56, %v11186_v37 }
 0x26c   : > { %v4325_v14 = vsel %vm4281_vm3, %v4190_v61, %v4256_v27  ;;  %v4538_v36 = vsel %vm4497_vm6, %v4466_v63, %v4256_v27  ;;  %v4751_v32 = vsel %vm4713_vm9, %v4679_v59, %v4256_v27  ;;  %v8279_v11 = vpop.f32.mrb[118].mxu1 }
 0x26d   : > { %v4397_v43 = vsel %vm4353_vm4, %v4325_v14, %v11444_v33  ;;  %8317 = vmatmul.mubr.f32.gmra.mrb[144].mxu1 %v4751_v32  ;;  %v4610_v20 = vsel %vm4569_vm7, %v4538_v36, %v11444_v33  ;;  %v4917_v45 = vadd.f32 %v8279_v11, %v11094_v1  ;;  %v11656_v15 = vpop.f32.mrb[119].mxu1 }
 0x26e   : > { %v4122_v49 = vld [vmem:[#allocation3 + $0x151] sm:$0xff]  ;;  %v4123_v5 = vld [vmem:[#allocation3 + $0x159] sm:$0xff]  ;;  %v4469_v40 = vsel %vm4425_vm5, %v4397_v43, %v4124_v0 }
 0x26f   : > { %v4257_v58 = vld [vmem:[#allocation3 + $0x152] sm:$0xff]  ;;  %v4191_v33 = vsel %vm4146_vm2, %v11484_v26, %v4122_v49  ;;  %v4467_v35 = vsel %vm4425_vm5, %v4395_v50, %v4122_v49  ;;  %v4680_v52 = vsel %vm4641_vm8, %v4608_v42, %v4122_v49  ;;  %v4258_v27 = vld [vmem:[#allocation3 + $0x15a] sm:$0xff]  ;;  %v5209_v61 = vmax.f32 %v4917_v45, 0.0 }
 0x270   : > { %v4326_v31 = vsel %vm4281_vm3, %v4191_v33, %v4257_v58  ;;  %v4752_v63 = vsel %vm4713_vm9, %v4680_v52, %v4257_v58  ;;  %v4682_v26 = vsel %vm4641_vm8, %v4610_v20, %v4124_v0  ;;  %v4539_v56 = vsel %vm4497_vm6, %v4467_v35, %v4257_v58  ;;  %v4135_v35 = vld [vmem:[#allocation3 + $0x1b9] sm:$0xff] }
 0x271   : > { %v4398_v59 = vsel %vm4353_vm4, %v4326_v31, %v11066_v54  ;;  %8319 = vmatprep.mubr.f32.mxu1 %v4752_v63  ;;  %v4192_v14 = vsel %vm4146_vm2, %v11544_v34, %v4123_v5  ;;  %v4468_v36 = vsel %vm4425_vm5, %v4396_v6, %v4123_v5  ;;  %v5269_v32 = vmax.f32 %v5206_v16, %v5209_v61  ;;  %v4270_v31 = vld [vmem:[#allocation3 + $0x1ba] sm:$0xff] }
 0x272   : > { %v4327_v50 = vsel %vm4281_vm3, %v4192_v14, %v4258_v27  ;;  %v4540_v0 = vsel %vm4497_vm6, %v4468_v36, %v4258_v27  ;;  %v4681_v11 = vsel %vm4641_vm8, %v4609_v4, %v4123_v5  ;;  %v4541_v16 = vsel %vm4497_vm6, %v4469_v40, %v11561_v3  ;;  %v4271_v14 = vld [vmem:[#allocation3 + $0x1c2] sm:$0xff]  ;;  %v14022_v36 = vld [vmem:[#allocation9_spill] sm:$0xff] }
 0x273   : > { %v4399_v43 = vsel %vm4353_vm4, %v4327_v50, %v11162_v8  ;;  %v4753_v34 = vsel %vm4713_vm9, %v4681_v11, %v4258_v27  ;;  %v4754_v42 = vsel %vm4713_vm9, %v4682_v26, %v11561_v3  ;;  %5303 = vst.msk [vmem:[#allocation4 + $0x18] sm:$0xff] %vm5299_vm10, %v5269_v32  ;;  %v4470_v20 = vsel %vm4425_vm5, %v4398_v59, %v11071_v39  ;;  %v4269_v3 = vld [vmem:[#allocation3 + $0x1b2] sm:$0xff]  ;;  %v11798_v59 = vld [vmem:[#allocation3 + $0x1c9] sm:$0xff] }
 0x274   : > { %8320 = vmatmul.mubr.f32.gmra.mrb[146].mxu1 %v4753_v34  ;;  %v4611_v6 = vsel %vm4569_vm7, %v4539_v56, %v11066_v54  ;;  %v4471_v45 = vsel %vm4425_vm5, %v4399_v43, %v11174_v38  ;;  %v4612_v49 = vsel %vm4569_vm7, %v4540_v0, %v11162_v8  ;;  %v4542_v58 = vsel %vm4497_vm6, %v4470_v20, %v11164_v55  ;;  %v14020_v27 = vld [vmem:[#allocation8_spill] sm:$0xff] }
 0x275   : > { %8322 = vmatprep.mubr.f32.mxu1 %v4754_v42  ;;  %v4683_v5 = vsel %vm4641_vm8, %v4611_v6, %v11071_v39  ;;  %v4684_v54 = vsel %vm4641_vm8, %v4612_v49, %v11174_v38  ;;  %v4338_v4 = vsel %vm4281_vm3, %v11610_v23, %v4269_v3  ;;  %v4543_v8 = vsel %vm4497_vm6, %v4471_v45, %v11207_v51  ;;  %v4072_v0 = vld [vmem:[#allocation3 + $0x1d0] sm:$0xff] }
 0x276   : > { %v4613_v33 = vsel %vm4569_vm7, %v4541_v16, %v11184_v25  ;;  %v4614_v39 = vsel %vm4569_vm7, %v4542_v58, %v11192_v19  ;;  %v11744_v38 = vsel %vm4713_vm9, %v11604_v60, %v11524_v12  ;;  %v4755_v23 = vsel %vm4713_vm9, %v4683_v5, %v11164_v55  ;;  %v11752_v25 = vld [vmem:[#allocation3 + $0x1c8] sm:$0xff] }
 0x277   : > { %v4544_v52 = vsel %vm4497_vm6, %v4472_v18, %v11220_v48  ;;  %v4620_v19 = vsel %vm4569_vm7, %v11499_v29, %v11462_v7  ;;  %v4204_v12 = vsel %vm4146_vm2, %v11505_v28, %v4135_v35  ;;  %v4756_v55 = vsel %vm4713_vm9, %v4684_v54, %v11207_v51  ;;  %v4136_v29 = vld [vmem:[#allocation3 + $0x1c1] sm:$0xff]  ;;  %v5367_v11 = vld [vmem:[#allocation4 + $0x1] ss:$2 sm:$0xff] }
 0x278   : > { %8323 = vmatmul.mubr.f32.gmra.mrb[148].mxu1 %v4755_v23  ;;  %v4685_v60 = vsel %vm4641_vm8, %v4613_v33, %v11186_v37  ;;  %v4410_v18 = vsel %vm4353_vm4, %v4338_v4, %v11752_v25  ;;  %v4621_v7 = vsel %vm4569_vm7, %v11522_v30, %v11505_v28  ;;  %v4686_v40 = vsel %vm4641_vm8, %v4614_v39, %v14020_v27  ;;  %v14021_v51 = vld [vmem:[#allocation10_spill] sm:$0xff]  ;;  %v11835_v42 = vld [vmem:[#allocation3 + $0x1ca] sm:$0xff] }
 0x279   : > { %8325 = vmatprep.mubr.f32.mxu1 %v4756_v55  ;;  %v4615_v61 = vsel %vm4569_vm7, %v4543_v8, %v14021_v51  ;;  %v4479_v37 = vsel %vm4425_vm5, %v11474_v44, %v11594_v47  ;;  %v4205_v28 = vsel %vm4146_vm2, %v11577_v41, %v4136_v29  ;;  %v4616_v30 = vsel %vm4569_vm7, %v4544_v52, %v11251_v24  ;;  %v11873_v23 = vld [vmem:[#allocation3 + $0x1e0] sm:$0xff]  ;;  %v11886_v55 = vld [vmem:[#allocation3 + $0x1d2] sm:$0xff] }
 0x27a   : > { %v4692_v63 = vsel %vm4641_vm8, %v4620_v19, %v11594_v47  ;;  %v4339_v26 = vsel %vm4281_vm3, %v4204_v12, %v4270_v31  ;;  %v4480_v44 = vsel %vm4425_vm5, %v11518_v46, %v4135_v35  ;;  %v4757_v56 = vsel %vm4713_vm9, %v4685_v60, %v11220_v48  ;;  %v5369_v58 = vld [vmem:[#allocation4 + $0x11] ss:$2 sm:$0xff]  ;;  %v7358_v60 = vld [vmem:[%s14007_s5 + $0x6e8] sm:$0xff] }
 0x27b   : > { %v4693_v24 = vsel %vm4641_vm8, %v4621_v7, %v4135_v35  ;;  %v4622_v47 = vsel %vm4569_vm7, %v11592_v21, %v11577_v41  ;;  %v4206_v46 = vsel %vm4146_vm2, %v11752_v25, %v11798_v59  ;;  %v4758_v32 = vsel %vm4713_vm9, %v4686_v40, %v14022_v36  ;;  %v5333_v21 = vld [vmem:[#allocation4] ss:$2 sm:$0xff] }
 0x27c   : > { %8326 = vmatmul.mubr.f32.gmra.mrb[150].mxu1 %v4757_v56  ;;  %v4687_v48 = vsel %vm4641_vm8, %v4615_v61, %v11273_v62  ;;  %v4551_v50 = vsel %vm4497_vm6, %v4479_v37, %v4269_v3  ;;  %v4340_v41 = vsel %vm4281_vm3, %v4205_v28, %v4271_v14  ;;  %v4688_v43 = vsel %vm4641_vm8, %v4616_v30, %v11392_v10  ;;  %v11843_v10 = vld [vmem:[#allocation3 + $0x1d8] sm:$0xff]  ;;  %v7375_v36 = vld [vmem:[%s14007_s5 + $0x770] sm:$0xff] }
 0x27d   : > { %8328 = vmatprep.mubr.f32.mxu1 %v4758_v32  ;;  %v11828_v34 = vsel %vm4713_vm9, %v4692_v63, %v4269_v3  ;;  %v4411_v62 = vsel %vm4353_vm4, %v4339_v26, %v4072_v0  ;;  %v4481_v16 = vsel %vm4425_vm5, %v11587_v17, %v4136_v29  ;;  %v4552_v20 = vsel %vm4497_vm6, %v4480_v44, %v4270_v31  ;;  %v4138_v3 = vld [vmem:[#allocation3 + $0x1d1] sm:$0xff]  ;;  %v7342_v44 = vld [vmem:[%s14007_s5 + $0x668] sm:$0xff] }
 0x27e   : > { %v11841_v6 = vsel %vm4713_vm9, %v4693_v24, %v4270_v31  ;;  %v4694_v45 = vsel %vm4641_vm8, %v4622_v47, %v4136_v29  ;;  %v4341_v49 = vsel %vm4281_vm3, %v4206_v46, %v11835_v42  ;;  %v5335_v17 = vld [vmem:[#allocation4 + $0x10] ss:$2 sm:$0xff]  ;;  %v4912_v5 = vadd.f32 %v11094_v1, %v11656_v15  ;;  %v11931_v47 = vld [vmem:[#allocation3 + $0x1e8] sm:$0xff] }
 0x27f   : > { %v4759_v54 = vsel %vm4713_vm9, %v4687_v48, %v11318_v2  ;;  %v11858_v4 = vsel %vm4353_vm4, %v4340_v41, %v11843_v10  ;;  %v4207_v8 = vsel %vm4146_vm2, %v4072_v0, %v4138_v3  ;;  %v11862_v33 = vmax.f32 %v5333_v21, %v5367_v11  ;;  %v11907_v31 = vld [vmem:[#allocation3 + $0x1d9] sm:$0xff]  ;;  %v4140_v11 = vld [vmem:[#allocation3 + $0x1e1] sm:$0xff] }
 0x280   : > { %v4907_v39 = vadd.f32 %v11394_v53, %v11094_v1  ;;  %8329 = vmatmul.mubr.f32.gmra.mrb[152].mxu1 %v4759_v54  ;;  %v4760_v15 = vsel %vm4713_vm9, %v4688_v43, %v11424_v9  ;;  %v8282_v35 = vpop.f32.mrb[120].mxu1  ;;  %v11871_v2 = vsel %vm4497_vm6, %v4481_v16, %v4271_v14  ;;  %v11878_v12 = vsel %vm4713_vm9, %v4694_v45, %v4271_v14  ;;  %v7392_v56 = vld [vmem:[%s14007_s5 + $0x7f8] sm:$0xff] }
 0x281   : > { %8331 = vmatprep.mubr.f32.mxu1 %v4760_v15  ;;  %v4927_v52 = vadd.f32 %v8282_v35, %v11094_v1  ;;  %v4921_v19 = vpop.f32.mrb[121].mxu1  ;;  %v4413_v53 = vsel %vm4353_vm4, %v4341_v49, %v11873_v23  ;;  %v4482_v9 = vsel %vm4425_vm5, %v4410_v18, %v11798_v59  ;;  %v11891_v7 = vmax.f32 %v5335_v17, %v5369_v58  ;;  %v7341_v18 = vld [vmem:[%s14007_s5 + $0x660] sm:$0xff]  ;;  %v7376_v16 = vld [vmem:[%s14007_s5 + $0x778] sm:$0xff] }
 0x282   : > { %v4922_v29 = vadd.f32 %v11094_v1, %v4921_v19  ;;  %v4623_v27 = vsel %vm4569_vm7, %v4551_v50, %v11752_v25  ;;  %v4342_v40 = vsel %vm4281_vm3, %v4207_v8, %v11886_v55  ;;  %v5208_v51 = vmax.f32 %v4912_v5, 0.0  ;;  %v7359_v25 = vld [vmem:[%s14007_s5 + $0x6f0] sm:$0xff]  ;;  %v11943_v50 = vld [vmem:[#allocation3 + $0x1da] sm:$0xff]  ;;  %v4275_v15 = vld [vmem:[#allocation3 + $0x1e2] sm:$0xff] }
 0x283   : > { %v5211_v61 = vmax.f32 %v4927_v52, 0.0  ;;  %v4483_v37 = vsel %vm4425_vm5, %v4411_v62, %v4138_v3  ;;  %v4624_v1 = vsel %vm4569_vm7, %v4552_v20, %v4072_v0  ;;  %v5207_v28 = vmax.f32 %v4907_v39, 0.0  ;;  %v7393_v0 = vld [vmem:[%s14007_s5 + $0x800] sm:$0xff] }
 0x284   : > { %v5210_v30 = vmax.f32 %v4922_v29, 0.0  ;;  %8332 = vmatmul.mubr.f32.gmra.mrb[154].mxu1 %v11503_v13  ;;  %v4208_v63 = vsel %vm4146_vm2, %v11843_v10, %v11907_v31  ;;  %v6475_v26 = vmul.f32 %v7358_v60, %v11862_v33  ;;  %v4554_v13 = vsel %vm4497_vm6, %v4482_v9, %v11835_v42  ;;  %v4076_v29 = vld [vmem:[#allocation3 + $0x1f0] sm:$0xff] }
 0x285   : > { %v5271_v24 = vmax.f32 %v5208_v51, %v5211_v61  ;;  %8334 = vmatprep.mubr.f32.mxu1 %v11531_v57  ;;  %v4695_v14 = vsel %vm4641_vm8, %v4623_v27, %v11798_v59  ;;  %v6395_v46 = vmul.f32 %v7341_v18, %v11862_v33  ;;  %v4414_v57 = vsel %vm4353_vm4, %v4342_v40, %v11931_v47  ;;  %v4142_v27 = vld [vmem:[#allocation3 + $0x1f1] sm:$0xff] }
 0x286   : > { %v5270_v32 = vmax.f32 %v5207_v28, %v5210_v30  ;;  %v4555_v48 = vsel %vm4497_vm6, %v4483_v37, %v11886_v55  ;;  %v6476_v59 = vmul.f32 %v7359_v25, %v11891_v7  ;;  %v4696_v41 = vsel %vm4641_vm8, %v4624_v1, %v4138_v3  ;;  %v4077_v25 = vld [vmem:[#allocation3 + $0x1f8] sm:$0xff] }
 0x287   : > { %5305 = vst.msk [vmem:[#allocation4 + $0x28] sm:$0xff] %vm5299_vm10, %v5271_v24  ;;  %v4343_v21 = vsel %vm4281_vm3, %v4208_v63, %v11943_v50  ;;  %v6396_v43 = vmul.f32 %v7342_v44, %v11891_v7  ;;  %v6635_v62 = vmul.f32 %v7392_v56, %v11862_v33  ;;  %v4209_v20 = vsel %vm4146_vm2, %v11873_v23, %v4140_v11  ;;  %v4276_v44 = vld [vmem:[#allocation3 + $0x1ea] sm:$0xff]  ;;  %v4277_v56 = vld [vmem:[#allocation3 + $0x1f2] sm:$0xff] }
 0x288   : > { %5304 = vst.msk [vmem:[#allocation4 + $0x20] sm:$0xff] %vm5299_vm10, %v5270_v32  ;;  %8335 = vmatmul.mubr.f32.gmra.mrb[156].mxu1 %v11744_v38  ;;  %v6492_v45 = vsel %vm5299_vm10, %v6475_v26, 0.0  ;;  %v6493_v49 = vsel %vm5299_vm10, %v6476_v59, 0.0  ;;  %v6555_v3 = vmul.f32 %v7375_v36, %v11862_v33  ;;  %v11969_v17 = vpop.f32.mrb[122].mxu1  ;;  %v6412_v5 = vsel %vm5299_vm10, %v6395_v46, 0.0  ;;  %v4078_v36 = vld [vmem:[#allocation3 + $0x200] sm:$0xff] }
 0x289   : > { %8337 = vmatprep.mubr.f32.mxu1 %v11828_v34  ;;  %v11971_v58 = vadd.f32 %v6493_v49, %v6492_v45  ;;  %v6413_v38 = vsel %vm5299_vm10, %v6396_v43, 0.0  ;;  %v6636_v54 = vmul.f32 %v7393_v0, %v11891_v7  ;;  %v11976_v8 = vpop.f32.mrb[123].mxu1  ;;  %v4484_v39 = vsel %vm4425_vm5, %v11858_v4, %v11907_v31  ;;  %v4278_v49 = vld [vmem:[#allocation3 + $0x1fa] sm:$0xff] }
 0x28a   : > { %v4625_v34 = vsel %vm4569_vm7, %v11871_v2, %v11843_v10  ;;  %v11986_v35 = vadd.f32 %v6413_v38, %v6412_v5  ;;  %v6556_v52 = vmul.f32 %v7376_v16, %v11891_v7  ;;  %v4344_v19 = vsel %vm4281_vm3, %v4209_v20, %v4275_v15  ;;  %v4141_v2 = vld [vmem:[#allocation3 + $0x1e9] sm:$0xff] }
 0x28b   : > { %v4485_v9 = vsel %vm4425_vm5, %v4413_v53, %v4140_v11  ;;  %v6652_v60 = vsel %vm5299_vm10, %v6635_v62, 0.0  ;;  %v6653_v4 = vsel %vm5299_vm10, %v6636_v54, 0.0  ;;  %v4626_v10 = vsel %vm4569_vm7, %v4554_v13, %v11873_v23  ;;  %v4279_v54 = vld [vmem:[#allocation3 + $0x202] sm:$0xff] }
 0x28c   : > { %8338 = vmatmul.mubr.f32.gmra.mrb[158].mxu1 %v11841_v6  ;;  %v11999_v40 = vadd.f32 %v6653_v4, %v6652_v60  ;;  %v6572_v18 = vsel %vm5299_vm10, %v6555_v3, 0.0  ;;  %v6573_v51 = vsel %vm5299_vm10, %v6556_v52, 0.0  ;;  %v4556_v53 = vsel %vm4497_vm6, %v4484_v39, %v11943_v50  ;;  %v4145_v3 = vld [vmem:[#allocation3 + $0x209] sm:$0xff] }
 0x28d   : > { %8340 = vmatprep.mubr.f32.mxu1 %v11878_v12  ;;  %v4210_v6 = vsel %vm4146_vm2, %v11931_v47, %v4141_v2  ;;  %v4211_v23 = vsel %vm4146_vm2, %v4076_v29, %v4142_v27  ;;  %v12012_v61 = vadd.f32 %v6573_v51, %v6572_v18  ;;  %v4767_v37 = vsel %vm4713_vm9, %v4695_v14, %v11835_v42  ;;  %v4143_v14 = vld [vmem:[#allocation3 + $0x1f9] sm:$0xff]  ;;  %v4350_v52 = vld [vmem:[#allocation3 + $0x210] sm:$0xff]  ;;  %v7394_v51 = vld [vmem:[%s14007_s5 + $0x808] sm:$0xff] }
 0x28e   : > { %v4415_v12 = vsel %vm4353_vm4, %v4343_v21, %v4076_v29  ;;  %v4697_v1 = vsel %vm4641_vm8, %v4625_v34, %v11907_v31  ;;  %v4486_v28 = vsel %vm4425_vm5, %v4414_v57, %v4141_v2  ;;  %v4768_v30 = vsel %vm4713_vm9, %v4696_v41, %v11886_v55  ;;  %v4079_v21 = vld [vmem:[#allocation3 + $0x208] sm:$0xff]  ;;  %v7343_v18 = vld [vmem:[%s14007_s5 + $0x670] sm:$0xff] }
 0x28f   : > { %v4416_v63 = vsel %vm4353_vm4, %v4344_v19, %v4077_v25  ;;  %v4557_v42 = vsel %vm4497_vm6, %v4485_v9, %v4275_v15  ;;  %v4698_v26 = vsel %vm4641_vm8, %v4626_v10, %v4140_v11  ;;  %v4345_v31 = vsel %vm4281_vm3, %v4210_v6, %v4276_v44  ;;  %v5337_v59 = vld [vmem:[#allocation4 + $0x20] ss:$2 sm:$0xff]  ;;  %v5371_v0 = vld [vmem:[#allocation4 + $0x21] ss:$2 sm:$0xff]  ;;  %v4351_v6 = vld [vmem:[#allocation3 + $0x218] sm:$0xff] }
 0x290   : > { %8341 = vmatmul.mubr.f32.gmra.mrb[160].mxu1 %v4767_v37  ;;  %v4627_v24 = vsel %vm4569_vm7, %v4555_v48, %v11931_v47  ;;  %v4346_v55 = vsel %vm4281_vm3, %v4211_v23, %v4277_v56  ;;  %v4628_v13 = vsel %vm4569_vm7, %v4556_v53, %v4076_v29  ;;  %v4769_v46 = vsel %vm4713_vm9, %v4697_v1, %v11943_v50  ;;  %v4144_v48 = vld [vmem:[#allocation3 + $0x201] sm:$0xff]  ;;  %v4280_v4 = vld [vmem:[#allocation3 + $0x20a] sm:$0xff] }
 0x291   : > { %8343 = vmatprep.mubr.f32.mxu1 %v4768_v30  ;;  %v4558_v32 = vsel %vm4497_vm6, %v4486_v28, %v4276_v44  ;;  %v4487_v57 = vsel %vm4425_vm5, %v4415_v12, %v4142_v27  ;;  %v4212_v47 = vsel %vm4146_vm2, %v4077_v25, %v4143_v14  ;;  %v4770_v41 = vsel %vm4713_vm9, %v4698_v26, %v4275_v15  ;;  %v7377_v1 = vld [vmem:[%s14007_s5 + $0x780] sm:$0xff] }
 0x292   : > { %v4488_v50 = vsel %vm4425_vm5, %v4416_v63, %v4143_v14  ;;  %v4629_v11 = vsel %vm4569_vm7, %v4557_v42, %v4077_v25  ;;  %v4213_v43 = vsel %vm4146_vm2, %v4078_v36, %v4144_v48  ;;  %v4417_v62 = vsel %vm4353_vm4, %v4345_v31, %v4078_v36  ;;  %v4422_v63 = vld [vmem:[#allocation3 + $0x211] sm:$0xff] }
 0x293   : > { %v4699_v16 = vsel %vm4641_vm8, %v4627_v24, %v4141_v2  ;;  %v4418_v20 = vsel %vm4353_vm4, %v4346_v55, %v4079_v21  ;;  %v4700_v45 = vsel %vm4641_vm8, %v4628_v13, %v4142_v27  ;;  %v4559_v5 = vsel %vm4497_vm6, %v4487_v57, %v4277_v56  ;;  %v7360_v27 = vld [vmem:[%s14007_s5 + $0x6f8] sm:$0xff] }
 0x294   : > { %8344 = vmatmul.mubr.f32.gmra.mrb[162].mxu1 %v4769_v46  ;;  %v4347_v38 = vsel %vm4281_vm3, %v4212_v47, %v4278_v49  ;;  %v4630_v39 = vsel %vm4569_vm7, %v4558_v32, %v4078_v36  ;;  %v4214_v34 = vsel %vm4146_vm2, %v4079_v21, %v4145_v3  ;;  %v12075_v15 = vmax.f32 %v5337_v59, %v5371_v0  ;;  %v4423_v46 = vld [vmem:[#allocation3 + $0x219] sm:$0xff] }
 0x295   : > { %8346 = vmatprep.mubr.f32.mxu1 %v4770_v41  ;;  %v4560_v19 = vsel %vm4497_vm6, %v4488_v50, %v4278_v49  ;;  %v4701_v9 = vsel %vm4641_vm8, %v4629_v11, %v4143_v14  ;;  %v4348_v60 = vsel %vm4281_vm3, %v4213_v43, %v4279_v54  ;;  %v4771_v29 = vsel %vm4713_vm9, %v4699_v16, %v4276_v44  ;;  %v4352_v44 = vld [vmem:[#allocation3 + $0x220] sm:$0xff]  ;;  %v4494_v43 = vld [vmem:[#allocation3 + $0x212] sm:$0xff] }
 0x296   : > { %v4772_v10 = vsel %vm4713_vm9, %v4700_v45, %v4277_v56  ;;  %v4489_v2 = vsel %vm4425_vm5, %v4417_v62, %v4144_v48  ;;  %v4419_v53 = vsel %vm4353_vm4, %v4347_v38, %v4350_v52  ;;  %v4702_v23 = vsel %vm4641_vm8, %v4630_v39, %v4144_v48  ;;  %v12140_v59 = vld [vmem:[%s14006_s4] ss:$0 sm:$0xff]  ;;  %v4424_v38 = vld [vmem:[#allocation3 + $0x221] sm:$0xff] }
 0x297   : > { %v4349_v37 = vsel %vm4281_vm3, %v4214_v34, %v4280_v4  ;;  %v4490_v12 = vsel %vm4425_vm5, %v4418_v20, %v4145_v3  ;;  %v4773_v25 = vsel %vm4713_vm9, %v4701_v9, %v4278_v49  ;;  %v4420_v28 = vsel %vm4353_vm4, %v4348_v60, %v4351_v6 }
 0x298   : > { %8347 = vmatmul.mubr.f32.gmra.mrb[164].mxu1 %v4771_v29  ;;  %v4631_v30 = vsel %vm4569_vm7, %v4559_v5, %v4079_v21  ;;  %v4632_v42 = vsel %vm4569_vm7, %v4560_v19, %v4350_v52  ;;  %v4561_v26 = vsel %vm4497_vm6, %v4489_v2, %v4279_v54  ;;  %v6477_v56 = vmul.f32 %v7360_v27, %v12075_v15  ;;  %v4495_v5 = vld [vmem:[#allocation3 + $0x21a] sm:$0xff] }
 0x299   : > { %8349 = vmatprep.mubr.f32.mxu1 %v4772_v10  ;;  %v6397_v31 = vmul.f32 %v7343_v18, %v12075_v15  ;;  %v6637_v24 = vmul.f32 %v7394_v51, %v12075_v15  ;;  %v4774_v55 = vsel %vm4713_vm9, %v4702_v23, %v4279_v54  ;;  %v4421_v13 = vsel %vm4353_vm4, %v4349_v37, %v4352_v44  ;;  %v8471_v10 = vld [vmem:[#allocation3 + $0x228] sm:$0xff]  ;;  %v8472_v51 = vld [vmem:[#allocation3 + $0x230] sm:$0xff] }
 0x29a   : > { %v4562_v14 = vsel %vm4497_vm6, %v4490_v12, %v4280_v4  ;;  %v6557_v36 = vmul.f32 %v7377_v1, %v12075_v15  ;;  %v4703_v32 = vsel %vm4641_vm8, %v4631_v30, %v4145_v3  ;;  %v4491_v57 = vsel %vm4425_vm5, %v4419_v53, %v4422_v63  ;;  %v4710_v1 = vld [vmem:[#allocation3 + $0x22a] sm:$0xff]  ;;  %v8473_v30 = vld [vmem:[#allocation3 + $0x238] sm:$0xff] }
 0x29b   : > { %v4704_v47 = vsel %vm4641_vm8, %v4632_v42, %v4422_v63  ;;  %v4492_v48 = vsel %vm4425_vm5, %v4420_v28, %v4423_v46  ;;  %v4932_v0 = vadd.f32 %v12140_v59, %v11976_v8  ;;  %v6495_v41 = vsel %vm5299_vm10, %v6477_v56, 0.0  ;;  %v4711_v28 = vld [vmem:[#allocation3 + $0x232] sm:$0xff] }
 0x29c   : > { %8350 = vmatmul.mubr.f32.gmra.mrb[166].mxu1 %v4773_v25  ;;  %v6415_v21 = vsel %vm5299_vm10, %v6397_v31, 0.0  ;;  %v6655_v50 = vsel %vm5299_vm10, %v6637_v24, 0.0  ;;  %v8288_v11 = vpop.f32.mrb[124].mxu1  ;;  %v4633_v62 = vsel %vm4569_vm7, %v4561_v26, %v4351_v6  ;;  %v12150_v16 = vadd.f32 %v6495_v41, %v11971_v58  ;;  %v4639_v6 = vld [vmem:[#allocation3 + $0x231] sm:$0xff]  ;;  %v4640_v42 = vld [vmem:[#allocation3 + $0x239] sm:$0xff] }
 0x29d   : > { %8352 = vmatprep.mubr.f32.mxu1 %v4774_v55  ;;  %v12153_v20 = vadd.f32 %v6415_v21, %v11986_v35  ;;  %v12156_v8 = vadd.f32 %v6655_v50, %v11999_v40  ;;  %v4947_v45 = vadd.f32 %v12140_v59, %v8288_v11  ;;  %v4941_v49 = vpop.f32.mrb[125].mxu1  ;;  %v4563_v3 = vsel %vm4497_vm6, %v4491_v57, %v4494_v43  ;;  %v4712_v31 = vld [vmem:[#allocation3 + $0x23a] sm:$0xff] }
 0x29e   : > { %v4634_v54 = vsel %vm4569_vm7, %v4562_v14, %v4352_v44  ;;  %v6575_v58 = vsel %vm5299_vm10, %v6557_v36, 0.0  ;;  %v4775_v35 = vsel %vm4713_vm9, %v4703_v32, %v4280_v4  ;;  %v4564_v40 = vsel %vm4497_vm6, %v4492_v48, %v4495_v5  ;;  %v4496_v4 = vld [vmem:[#allocation3 + $0x222] sm:$0xff] }
 0x29f   : > { %v4493_v39 = vsel %vm4425_vm5, %v4421_v13, %v4424_v38  ;;  %v12171_v34 = vadd.f32 %v6575_v58, %v12012_v61  ;;  %v5212_v52 = vmax.f32 %v4932_v0, 0.0  ;;  %v5215_v19 = vmax.f32 %v4947_v45, 0.0  ;;  %v4638_v61 = vld [vmem:[#allocation3 + $0x229] sm:$0xff]  ;;  %v7361_v45 = vld [vmem:[%s14007_s5 + $0x700] sm:$0xff] }
 0x2a0   : > { %8353 = vmatmul.mubr.f32.gmra.mrb[168].mxu1 %v4775_v35  ;;  %v4776_v9 = vsel %vm4713_vm9, %v4704_v47, %v4494_v43  ;;  %v4705_v60 = vsel %vm4641_vm8, %v4633_v62, %v4423_v46  ;;  %v4706_v29 = vsel %vm4641_vm8, %v4634_v54, %v4424_v38  ;;  %v4635_v2 = vsel %vm4569_vm7, %v4563_v3, %v8471_v10  ;;  %v7395_v3 = vld [vmem:[%s14007_s5 + $0x810] sm:$0xff] }
 0x2a1   : > { %8355 = vmatprep.mubr.f32.mxu1 %v4776_v9  ;;  %v5272_v27 = vmax.f32 %v5212_v52, %v5215_v19  ;;  %v4565_v18 = vsel %vm4497_vm6, %v4493_v39, %v4496_v4  ;;  %v4636_v53 = vsel %vm4569_vm7, %v4564_v40, %v8472_v51  ;;  %v4777_v23 = vsel %vm4713_vm9, %v4705_v60, %v4495_v5  ;;  %v7378_v5 = vld [vmem:[%s14007_s5 + $0x788] sm:$0xff] }
 0x2a2   : > { %v4778_v37 = vsel %vm4713_vm9, %v4706_v29, %v4496_v4  ;;  %v4707_v12 = vsel %vm4641_vm8, %v4635_v2, %v4638_v61  ;;  %v4708_v25 = vsel %vm4641_vm8, %v4636_v53, %v4639_v6  ;;  %v4637_v63 = vsel %vm4569_vm7, %v4565_v18, %v8473_v30  ;;  %v7362_v30 = vld [vmem:[%s14007_s5 + $0x708] sm:$0xff] }
 0x2a3   : > { %5306 = vst.msk [vmem:[#allocation4 + $0x30] sm:$0xff] %vm5299_vm10, %v5272_v27  ;;  %v4779_v26 = vsel %vm4713_vm9, %v4707_v12, %v4710_v1  ;;  %v4780_v44 = vsel %vm4713_vm9, %v4708_v25, %v4711_v28  ;;  %v4709_v56 = vsel %vm4641_vm8, %v4637_v63, %v4640_v42  ;;  %v4942_v55 = vadd.f32 %v12140_v59, %v4941_v49  ;;  %v7344_v49 = vld [vmem:[%s14007_s5 + $0x678] sm:$0xff] }
 0x2a4   : > { %8356 = vmatmul.mubr.f32.gmra.mrb[170].mxu1 %v4777_v23  ;;  %v4781_v24 = vsel %vm4713_vm9, %v4709_v56, %v4712_v31  ;;  %v4937_v13 = vadd.f32 %v12140_v59, %v11969_v17  ;;  %vm5894_vm2 = vcmp.eq.s32.totalorder %v9284_v22, 5  ;;  %vm5974_vm3 = vcmp.eq.s32.totalorder %v9284_v22, 6 }
 0x2a5   : > { %8358 = vmatprep.mubr.f32.mxu1 %v4778_v37  ;;  %v5214_v57 = vmax.f32 %v4942_v55, 0.0  ;;  %vm6054_vm4 = vcmp.eq.s32.totalorder %v9284_v22, 7  ;;  %vm6134_vm5 = vcmp.eq.s32.totalorder %v9284_v22, 8  ;;  %vm6214_vm6 = vcmp.eq.s32.totalorder %v9284_v22, 9 }
 0x2a6   : > { %v5213_v48 = vmax.f32 %v4937_v13, 0.0  ;;  %v7379_v13 = vld [vmem:[%s14007_s5 + $0x790] sm:$0xff]  ;;  %vm6294_vm7 = vcmp.eq.s32.totalorder %v9284_v22, 10  ;;  %vm6374_vm8 = vcmp.eq.s32.totalorder %v9284_v22, 11  ;;  %vm6454_vm9 = vcmp.eq.s32.totalorder %v9284_v22, 12 }
 0x2a8   : > { %8359 = vmatmul.mubr.f32.gmra.mrb[172].mxu1 %v4779_v26  ;;  %v7345_v26 = vld [vmem:[%s14007_s5 + $0x680] sm:$0xff] }
 0x2a9   : > { %8361 = vmatprep.mubr.f32.mxu1 %v4780_v44 }
 0x2ac   : > { %8362 = vmatmul.mubr.f32.gmra.mrb[174].mxu1 %v4781_v24  ;;  %v7396_v24 = vld [vmem:[%s14007_s5 + $0x818] sm:$0xff] }
 0x2b0   : > { %v8291_v14 = vpop.f32.mrb[126].mxu1 }
 0x2b1   : > { %v4957_v46 = vadd.f32 %v12140_v59, %v8291_v14  ;;  %v4951_v36 = vpop.f32.mrb[127].mxu1 }
 0x2b2   : > { %v4952_v32 = vadd.f32 %v12140_v59, %v4951_v36 }
 0x2b3   : > { %v5217_v47 = vmax.f32 %v4957_v46, 0.0 }
 0x2b4   : > { %v5216_v0 = vmax.f32 %v4952_v32, 0.0 }
 0x2b5   : > { %v5274_v41 = vmax.f32 %v5214_v57, %v5217_v47 }
 0x2b6   : > { %v5273_v21 = vmax.f32 %v5213_v48, %v5216_v0 }
 0x2b7   : > { %5308 = vst.msk [vmem:[#allocation4 + $0x40] sm:$0xff] %vm5299_vm10, %v5274_v41 }
 0x2b8   : > { %5307 = vst.msk [vmem:[#allocation4 + $0x38] sm:$0xff] %vm5299_vm10, %v5273_v21  ;;  %v8294_v50 = vpop.f32.mrb[128].mxu1 }
 0x2b9   : > { %v4961_v11 = vpop.f32.mrb[129].mxu1 }
 0x2ba   : > { %v4962_v40 = vadd.f32 %v12140_v59, %v4961_v11 }
 0x2bc   : > { %v5218_v18 = vmax.f32 %v4962_v40, 0.0 }
 0x2bf   : > { %v5339_v43 = vld [vmem:[#allocation4 + $0x30] ss:$2 sm:$0xff]  ;;  %v5373_v17 = vld [vmem:[#allocation4 + $0x31] ss:$2 sm:$0xff] }
 0x2c0   : > { %v12211_v62 = vmax.f32 %v5339_v43, %v5373_v17 }
 0x2c2   : > { %v6478_v38 = vmul.f32 %v7361_v45, %v12211_v62  ;;  %v6398_v54 = vmul.f32 %v7344_v49, %v12211_v62  ;;  %v6638_v58 = vmul.f32 %v7395_v3, %v12211_v62  ;;  %v6558_v35 = vmul.f32 %v7378_v5, %v12211_v62  ;;  %v7363_v49 = vld [vmem:[%s14007_s5 + $0x710] sm:$0xff]  ;;  %v7346_v3 = vld [vmem:[%s14007_s5 + $0x688] sm:$0xff]  ;;  %v7397_v5 = vld [vmem:[%s14007_s5 + $0x820] sm:$0xff] }
 0x2c4   : > { %v6497_v39 = vsel %vm5299_vm10, %v6478_v38, 0.0  ;;  %v6417_v52 = vsel %vm5299_vm10, %v6398_v54, 0.0  ;;  %v6657_v19 = vsel %vm5299_vm10, %v6638_v58, 0.0  ;;  %v6577_v61 = vsel %vm5299_vm10, %v6558_v35, 0.0  ;;  %v7380_v38 = vld [vmem:[%s14007_s5 + $0x798] sm:$0xff]  ;;  %v7171_v54 = vld [vmem:[%s14007_s5 + $0x110] sm:$0xff] }
 0x2c5   : > { %v6498_v60 = vadd.f32 %v6497_v39, %v12150_v16  ;;  %v6418_v4 = vadd.f32 %v6417_v52, %v12153_v20  ;;  %v6658_v29 = vadd.f32 %v6657_v19, %v12156_v8  ;;  %v6578_v27 = vadd.f32 %v6577_v61, %v12171_v34  ;;  %v5417_v58 = vld [vmem:[%s14007_s5] sm:$0xff]  ;;  %v7188_v52 = vld [vmem:[%s14007_s5 + $0x198] sm:$0xff] }
 0x2c6   : > { %v4967_v20 = vadd.f32 %v12140_v59, %v8294_v50 }
 0x2c8   : > { %v5219_v63 = vmax.f32 %v4967_v20, 0.0 }
 0x2cc   : > { %v8297_v9 = vpop.f32.mrb[130].mxu1 }
 0x2cd   : > { %v4977_v10 = vadd.f32 %v12140_v59, %v8297_v9  ;;  %v4971_v2 = vpop.f32.mrb[131].mxu1  ;;  %v5595_v9 = vmul.f32 %v7171_v54, %v11862_v33 }
 0x2ce   : > { %v4972_v16 = vadd.f32 %v12140_v59, %v4971_v2  ;;  %v7205_v2 = vld [vmem:[%s14007_s5 + $0x220] sm:$0xff] }
 0x2cf   : > { %v5221_v51 = vmax.f32 %v4977_v10, 0.0 }
 0x2d0   : > { %v5220_v34 = vmax.f32 %v4972_v16, 0.0 }
 0x2d1   : > { %v5275_v53 = vmax.f32 %v5218_v18, %v5221_v51 }
 0x2d3   : > { %5309 = vst.msk [vmem:[#allocation4 + $0x48] sm:$0xff] %vm5299_vm10, %v5275_v53  ;;  %v5675_v53 = vmul.f32 %v7188_v52, %v11862_v33 }
 0x2da   : > { %v5341_v6 = vld [vmem:[#allocation4 + $0x40] ss:$2 sm:$0xff]  ;;  %v5375_v23 = vld [vmem:[#allocation4 + $0x41] ss:$2 sm:$0xff] }
 0x2db   : > { %v12243_v1 = vmax.f32 %v5341_v6, %v5375_v23 }
 0x2dd   : > { %v6479_v31 = vmul.f32 %v7362_v30, %v12243_v1  ;;  %v6399_v55 = vmul.f32 %v7345_v26, %v12243_v1  ;;  %v6639_v57 = vmul.f32 %v7396_v24, %v12243_v1  ;;  %v6559_v0 = vmul.f32 %v7379_v13, %v12243_v1  ;;  %v7172_v30 = vld [vmem:[%s14007_s5 + $0x118] sm:$0xff]  ;;  %v7290_v24 = vld [vmem:[%s14007_s5 + $0x4c8] sm:$0xff] }
 0x2de   : > { %v7324_v13 = vld [vmem:[%s14007_s5 + $0x5d8] sm:$0xff]  ;;  %v6155_v54 = vmul.f32 %v7290_v24, %v11862_v33 }
 0x2df   : > { %v6499_v14 = vsel %vm5299_vm10, %v6479_v31, 0.0  ;;  %v6419_v32 = vsel %vm5299_vm10, %v6399_v55, 0.0  ;;  %v6659_v41 = vsel %vm5299_vm10, %v6639_v57, 0.0  ;;  %v6579_v50 = vsel %vm5299_vm10, %v6559_v0, 0.0  ;;  %v7273_v55 = vld [vmem:[%s14007_s5 + $0x440] sm:$0xff]  ;;  %v7155_v57 = vld [vmem:[%s14007_s5 + $0x90] sm:$0xff] }
 0x2e0   : > { %v8300_v37 = vpop.f32.mrb[132].mxu1  ;;  %v6500_v36 = vadd.f32 %v6499_v14, %v6498_v60  ;;  %v6420_v48 = vadd.f32 %v6419_v32, %v6418_v4  ;;  %v6660_v21 = vadd.f32 %v6659_v41, %v6658_v29  ;;  %v6580_v11 = vadd.f32 %v6579_v50, %v6578_v27  ;;  %v7154_v4 = vld [vmem:[%s14007_s5 + $0x88] sm:$0xff]  ;;  %v7307_v0 = vld [vmem:[%s14007_s5 + $0x550] sm:$0xff] }
 0x2e1   : > { %v4987_v8 = vadd.f32 %v12140_v59, %v8300_v37  ;;  %v4981_v12 = vpop.f32.mrb[133].mxu1  ;;  %v5434_v60 = vmul.f32 %v5417_v58, %v11862_v33  ;;  %v7222_v29 = vld [vmem:[%s14007_s5 + $0x2a8] sm:$0xff]  ;;  %v5612_v31 = vsel %vm5299_vm10, %v5595_v9, 0.0  ;;  %v5692_v32 = vsel %vm5299_vm10, %v5675_v53, 0.0 }
 0x2e2   : > { %v4982_v25 = vadd.f32 %v12140_v59, %v4981_v12  ;;  %v5835_v12 = vmul.f32 %v7222_v29, %v11862_v33  ;;  %v6075_v58 = vmul.f32 %v7273_v55, %v11862_v33  ;;  %v5516_v52 = vmul.f32 %v7155_v57, %v11891_v7 }
 0x2e3   : > { %v5223_v28 = vmax.f32 %v4987_v8, 0.0  ;;  %v5515_v8 = vmul.f32 %v7154_v4, %v11862_v33  ;;  %v5451_v14 = vsel %vm5299_vm10, %v5434_v60, 0.0  ;;  %v6235_v9 = vmul.f32 %v7307_v0, %v11862_v33 }
 0x2e4   : > { %v5222_v42 = vmax.f32 %v4982_v25, 0.0  ;;  %v7256_v25 = vld [vmem:[%s14007_s5 + $0x3b8] sm:$0xff]  ;;  %v6092_v53 = vsel %vm5299_vm10, %v6075_v58, 0.0  ;;  %v7258_v58 = vld [vmem:[%s14007_s5 + $0x3c8] sm:$0xff] }
 0x2e5   : > { %v5277_v44 = vmax.f32 %v5220_v34, %v5223_v28  ;;  %v7239_v34 = vld [vmem:[%s14007_s5 + $0x330] sm:$0xff]  ;;  %v5532_v50 = vsel %vm5299_vm10, %v5515_v8, 0.0 }
 0x2e6   : > { %v5276_v56 = vmax.f32 %v5219_v63, %v5222_v42  ;;  %v5418_v63 = vld [vmem:[%s14007_s5 + $0x8] sm:$0xff]  ;;  %v5755_v42 = vmul.f32 %v7205_v2, %v11862_v33 }
 0x2e7   : > { %5311 = vst.msk [vmem:[#allocation4 + $0x58] sm:$0xff] %vm5299_vm10, %v5277_v44 }
 0x2e8   : > { %5310 = vst.msk [vmem:[#allocation4 + $0x50] sm:$0xff] %vm5299_vm10, %v5276_v56  ;;  %v12263_v46 = vpop.f32.mrb[134].mxu1 }
 0x2e9   : > { %v4991_v47 = vpop.f32.mrb[135].mxu1 }
 0x2ea   : > { %v4992_v10 = vadd.f32 %v12140_v59, %v4991_v47  ;;  %v5995_v47 = vmul.f32 %v7256_v25, %v11862_v33  ;;  %v7173_v25 = vld [vmem:[%s14007_s5 + $0x120] sm:$0xff] }
 0x2ec   : > { %v5224_v44 = vmax.f32 %v4992_v10, 0.0  ;;  %v6012_v10 = vsel %vm5299_vm10, %v5995_v47, 0.0 }
 0x2ef   : > { %v5343_v43 = vld [vmem:[#allocation4 + $0x50] ss:$2 sm:$0xff]  ;;  %v5377_v17 = vld [vmem:[#allocation4 + $0x51] ss:$2 sm:$0xff] }
 0x2f0   : > { %v12270_v45 = vmax.f32 %v5343_v43, %v5377_v17  ;;  %v5852_v43 = vsel %vm5299_vm10, %v5835_v12, 0.0  ;;  %v7206_v17 = vld [vmem:[%s14007_s5 + $0x228] sm:$0xff]  ;;  %v7308_v12 = vld [vmem:[%s14007_s5 + $0x558] sm:$0xff] }
 0x2f1   : > { %v5756_v4 = vmul.f32 %v7206_v17, %v11891_v7 }
 0x2f2   : > { %v6480_v35 = vmul.f32 %v7363_v49, %v12270_v45  ;;  %v6400_v40 = vmul.f32 %v7346_v3, %v12270_v45  ;;  %v6640_v39 = vmul.f32 %v7397_v5, %v12270_v45  ;;  %v6560_v19 = vmul.f32 %v7380_v38, %v12270_v45  ;;  %v7257_v49 = vld [vmem:[%s14007_s5 + $0x3c0] sm:$0xff]  ;;  %v7240_v5 = vld [vmem:[%s14007_s5 + $0x338] sm:$0xff]  ;;  %v7291_v38 = vld [vmem:[%s14007_s5 + $0x4d0] sm:$0xff] }
 0x2f3   : > { %v5772_v3 = vsel %vm5299_vm10, %v5755_v42, 0.0  ;;  %v5996_v29 = vmul.f32 %v7257_v49, %v11891_v7  ;;  %v6252_v42 = vsel %vm5299_vm10, %v6235_v9, 0.0  ;;  %v5773_v55 = vsel %vm5299_vm10, %v5756_v4, 0.0 }
 0x2f4   : > { %v6501_v61 = vsel %vm5299_vm10, %v6480_v35, 0.0  ;;  %v6421_v27 = vsel %vm5299_vm10, %v6400_v40, 0.0  ;;  %v6661_v18 = vsel %vm5299_vm10, %v6640_v39, 0.0  ;;  %v6581_v28 = vsel %vm5299_vm10, %v6560_v19, 0.0  ;;  %v7274_v19 = vld [vmem:[%s14007_s5 + $0x448] sm:$0xff] }
 0x2f5   : > { %v12313_v6 = vadd.f32 %v6501_v61, %v6500_v36  ;;  %v12315_v23 = vadd.f32 %v6421_v27, %v6420_v48  ;;  %v12317_v16 = vadd.f32 %v6661_v18, %v6660_v21  ;;  %v12338_v26 = vadd.f32 %v6581_v28, %v6580_v11  ;;  %v7189_v36 = vld [vmem:[%s14007_s5 + $0x1a0] sm:$0xff]  ;;  %v7223_v11 = vld [vmem:[%s14007_s5 + $0x2b0] sm:$0xff] }
 0x2f6   : > { %v5915_v48 = vmul.f32 %v7239_v34, %v11862_v33  ;;  %v5596_v21 = vmul.f32 %v7172_v30, %v11891_v7  ;;  %v6315_v35 = vmul.f32 %v7324_v13, %v11862_v33  ;;  %v5435_v40 = vmul.f32 %v5418_v63, %v11891_v7  ;;  %v5419_v34 = vld [vmem:[%s14007_s5 + $0x10] sm:$0xff] }
 0x2f7   : > { %v5676_v39 = vmul.f32 %v7189_v36, %v11891_v7  ;;  %v5836_v60 = vmul.f32 %v7223_v11, %v11891_v7  ;;  %v5916_v61 = vmul.f32 %v7240_v5, %v11891_v7  ;;  %v6156_v18 = vmul.f32 %v7291_v38, %v11891_v7  ;;  %v7224_v38 = vld [vmem:[%s14007_s5 + $0x2b8] sm:$0xff] }
 0x2f8   : > { %v5613_v2 = vsel %vm5299_vm10, %v5596_v21, 0.0  ;;  %v5932_v27 = vsel %vm5299_vm10, %v5915_v48, 0.0  ;;  %v6076_v33 = vmul.f32 %v7274_v19, %v11891_v7  ;;  %v6332_v8 = vsel %vm5299_vm10, %v6315_v35, 0.0  ;;  %v7156_v21 = vld [vmem:[%s14007_s5 + $0x98] sm:$0xff] }
 0x2f9   : > { %v5452_v28 = vsel %vm5299_vm10, %v5435_v40, 0.0  ;;  %v5693_v30 = vsel %vm5299_vm10, %v5676_v39, 0.0  ;;  %v5533_v63 = vsel %vm5299_vm10, %v5516_v52, 0.0  ;;  %v5853_v24 = vsel %vm5299_vm10, %v5836_v60, 0.0 }
 0x2fa   : > { %v6013_v13 = vsel %vm5299_vm10, %v5996_v29, 0.0  ;;  %v5933_v36 = vsel %vm5299_vm10, %v5916_v61, 0.0  ;;  %v6173_v57 = vsel %vm5299_vm10, %v6156_v18, 0.0  ;;  %v6236_v48 = vmul.f32 %v7308_v12, %v11891_v7 }
 0x2fb   : > { %v5436_v0 = vmul.f32 %v5419_v34, %v12075_v15  ;;  %v6093_v11 = vsel %vm5299_vm10, %v6076_v33, 0.0  ;;  %v5694_v49 = vadd.f32 %v5693_v30, %v5692_v32  ;;  %v5534_v5 = vadd.f32 %v5533_v63, %v5532_v50  ;;  %v7292_v34 = vld [vmem:[%s14007_s5 + $0x4d8] sm:$0xff] }
 0x2fc   : > { %v8306_v51 = vpop.f32.mrb[136].mxu1  ;;  %v6014_v35 = vadd.f32 %v6013_v13, %v6012_v10  ;;  %v12451_v40 = vadd.f32 %v5933_v36, %v5932_v27  ;;  %v5517_v50 = vmul.f32 %v7156_v21, %v12075_v15  ;;  %v12459_v39 = vadd.f32 %v6093_v11, %v6092_v53 }
 0x2fd   : > { %v5007_v20 = vadd.f32 %v12140_v59, %v8306_v51  ;;  %v12320_v37 = vpop.f32.mrb[137].mxu1  ;;  %v6172_v51 = vsel %vm5299_vm10, %v6155_v54, 0.0  ;;  %v12446_v54 = vadd.f32 %v5773_v55, %v5772_v3  ;;  %v6253_v52 = vsel %vm5299_vm10, %v6236_v48, 0.0  ;;  %v7309_v55 = vld [vmem:[%s14007_s5 + $0x560] sm:$0xff] }
 0x2fe   : > { %v12453_v32 = vadd.f32 %v6173_v57, %v6172_v51  ;;  %v5002_v19 = vadd.f32 %v12140_v59, %v12320_v37  ;;  %v5454_v60 = vsel %vm5299_vm10, %v5436_v0, 0.0  ;;  %v5837_v4 = vmul.f32 %v7224_v38, %v12075_v15  ;;  %v7191_v57 = vld [vmem:[%s14007_s5 + $0x1b0] sm:$0xff] }
 0x2ff   : > { %v5227_v56 = vmax.f32 %v5007_v20, 0.0  ;;  %v7325_v20 = vld [vmem:[%s14007_s5 + $0x5e0] sm:$0xff]  ;;  %v4997_v29 = vadd.f32 %v12140_v59, %v12263_v46  ;;  %v5997_v27 = vmul.f32 %v7258_v58, %v12075_v15  ;;  %v12477_v53 = vadd.f32 %v6253_v52, %v6252_v42  ;;  %v7174_v42 = vld [vmem:[%s14007_s5 + $0x128] sm:$0xff] }
 0x300   : > { %v6316_v47 = vmul.f32 %v7325_v20, %v11891_v7  ;;  %v12441_v7 = vadd.f32 %v5853_v24, %v5852_v43  ;;  %v7241_v43 = vld [vmem:[%s14007_s5 + $0x340] sm:$0xff]  ;;  %v5226_v30 = vmax.f32 %v5002_v19, 0.0  ;;  %v5855_v24 = vsel %vm5299_vm10, %v5837_v4, 0.0  ;;  %v7208_v19 = vld [vmem:[%s14007_s5 + $0x238] sm:$0xff] }
 0x301   : > { %v5278_v41 = vmax.f32 %v5224_v44, %v5227_v56  ;;  %v5614_v44 = vadd.f32 %v5613_v2, %v5612_v31  ;;  %v7190_v56 = vld [vmem:[%s14007_s5 + $0x1a8] sm:$0xff]  ;;  %v5597_v31 = vmul.f32 %v7173_v25, %v12075_v15  ;;  %v5917_v37 = vmul.f32 %v7241_v43, %v12075_v15 }
 0x302   : > { %v5677_v17 = vmul.f32 %v7190_v56, %v12075_v15  ;;  %v6333_v3 = vsel %vm5299_vm10, %v6316_v47, 0.0  ;;  %v5535_v25 = vsel %vm5299_vm10, %v5517_v50, 0.0  ;;  %v5225_v13 = vmax.f32 %v4997_v29, 0.0  ;;  %v7157_v47 = vld [vmem:[%s14007_s5 + $0xa0] sm:$0xff] }
 0x303   : > { %5312 = vst.msk [vmem:[#allocation4 + $0x60] sm:$0xff] %vm5299_vm10, %v5278_v41  ;;  %v5453_v41 = vadd.f32 %v5452_v28, %v5451_v14  ;;  %v7207_v14 = vld [vmem:[%s14007_s5 + $0x230] sm:$0xff]  ;;  %v5615_v9 = vsel %vm5299_vm10, %v5597_v31, 0.0  ;;  %v12475_v33 = vadd.f32 %v6333_v3, %v6332_v8  ;;  %v7326_v8 = vld [vmem:[%s14007_s5 + $0x5e8] sm:$0xff]  ;;  %v6015_v31 = vsel %vm5299_vm10, %v5997_v27, 0.0 }
 0x304   : > { %v5695_v2 = vsel %vm5299_vm10, %v5677_v17, 0.0  ;;  %v5757_v61 = vmul.f32 %v7207_v14, %v12075_v15  ;;  %v12480_v12 = vadd.f32 %v5615_v9, %v5614_v44  ;;  %v7275_v28 = vld [vmem:[%s14007_s5 + $0x450] sm:$0xff]  ;;  %v5420_v44 = vld [vmem:[%s14007_s5 + $0x18] sm:$0xff]  ;;  %v6157_v21 = vmul.f32 %v7292_v34, %v12075_v15 }
 0x305   : > { %v12482_v46 = vadd.f32 %v5454_v60, %v5453_v41  ;;  %v5696_v56 = vadd.f32 %v5695_v2, %v5694_v49  ;;  %v7225_v41 = vld [vmem:[%s14007_s5 + $0x2c0] sm:$0xff]  ;;  %v6077_v11 = vmul.f32 %v7275_v28, %v12075_v15  ;;  %v6317_v17 = vmul.f32 %v7326_v8, %v12075_v15  ;;  %v7259_v9 = vld [vmem:[%s14007_s5 + $0x3d0] sm:$0xff] }
 0x306   : > { %v5775_v48 = vsel %vm5299_vm10, %v5757_v61, 0.0  ;;  %v5598_v38 = vmul.f32 %v7174_v42, %v12211_v62  ;;  %v5935_v14 = vsel %vm5299_vm10, %v5917_v37, 0.0  ;;  %v6237_v58 = vmul.f32 %v7309_v55, %v12075_v15  ;;  %v7293_v61 = vld [vmem:[%s14007_s5 + $0x4e0] sm:$0xff]  ;;  %v7175_v55 = vld [vmem:[%s14007_s5 + $0x130] sm:$0xff] }
 0x307   : > { %v5437_v50 = vmul.f32 %v5420_v44, %v12211_v62  ;;  %v5678_v43 = vmul.f32 %v7191_v57, %v12211_v62  ;;  %v5518_v3 = vmul.f32 %v7157_v47, %v12211_v62  ;;  %v5536_v52 = vadd.f32 %v5535_v25, %v5534_v5  ;;  %v7242_v5 = vld [vmem:[%s14007_s5 + $0x348] sm:$0xff] }
 0x308   : > { %v5838_v15 = vmul.f32 %v7225_v41, %v12211_v62  ;;  %v5856_v60 = vadd.f32 %v5855_v24, %v12441_v7  ;;  %v5776_v4 = vadd.f32 %v5775_v48, %v12446_v54  ;;  %v6016_v29 = vadd.f32 %v6015_v31, %v6014_v35  ;;  %v7276_v7 = vld [vmem:[%s14007_s5 + $0x458] sm:$0xff]  ;;  %v7327_v24 = vld [vmem:[%s14007_s5 + $0x5f0] sm:$0xff]  ;;  %v7310_v47 = vld [vmem:[%s14007_s5 + $0x568] sm:$0xff] }
 0x309   : > { %v5936_v2 = vadd.f32 %v5935_v14, %v12451_v40  ;;  %v6175_v27 = vsel %vm5299_vm10, %v6157_v21, 0.0  ;;  %v6095_v54 = vsel %vm5299_vm10, %v6077_v11, 0.0  ;;  %v6335_v35 = vsel %vm5299_vm10, %v6317_v17, 0.0  ;;  %v7158_v41 = vld [vmem:[%s14007_s5 + $0xa8] sm:$0xff]  ;;  %v7243_v17 = vld [vmem:[%s14007_s5 + $0x350] sm:$0xff] }
 0x30a   : > { %v5758_v40 = vmul.f32 %v7208_v19, %v12211_v62  ;;  %v5998_v37 = vmul.f32 %v7259_v9, %v12211_v62  ;;  %v5456_v25 = vsel %vm5299_vm10, %v5437_v50, 0.0  ;;  %v5697_v34 = vsel %vm5299_vm10, %v5678_v43, 0.0 }
 0x30b   : > { %v5537_v28 = vsel %vm5299_vm10, %v5518_v3, 0.0  ;;  %v5918_v8 = vmul.f32 %v7242_v5, %v12211_v62  ;;  %v6176_v42 = vadd.f32 %v6175_v27, %v12453_v32  ;;  %v6078_v44 = vmul.f32 %v7276_v7, %v12211_v62 }
 0x30c   : > { %v6096_v57 = vadd.f32 %v6095_v54, %v12459_v39  ;;  %v6336_v32 = vadd.f32 %v6335_v35, %v12475_v33  ;;  %v5457_v31 = vadd.f32 %v5456_v25, %v12482_v46  ;;  %v5538_v39 = vadd.f32 %v5537_v28, %v5536_v52  ;;  %v7226_v33 = vld [vmem:[%s14007_s5 + $0x2c8] sm:$0xff]  ;;  %v7260_v46 = vld [vmem:[%s14007_s5 + $0x3d8] sm:$0xff] }
 0x30d   : > { %v5777_v21 = vsel %vm5299_vm10, %v5758_v40, 0.0  ;;  %v5599_v50 = vmul.f32 %v7175_v55, %v12243_v1  ;;  %v6097_v3 = vsel %vm5299_vm10, %v6078_v44, 0.0  ;;  %v6238_v52 = vmul.f32 %v7310_v47, %v12211_v62  ;;  %v7277_v40 = vld [vmem:[%s14007_s5 + $0x460] sm:$0xff] }
 0x30e   : > { %v5999_v27 = vmul.f32 %v7260_v46, %v12243_v1  ;;  %v5919_v35 = vmul.f32 %v7243_v17, %v12243_v1  ;;  %v6079_v55 = vmul.f32 %v7277_v40, %v12243_v1  ;;  %v7176_v17 = vld [vmem:[%s14007_s5 + $0x138] sm:$0xff] }
 0x30f   : > { %v6257_v25 = vsel %vm5299_vm10, %v6238_v52, 0.0 }
 0x310   : > { %v8309_v10 = vpop.f32.mrb[138].mxu1  ;;  %v6019_v44 = vsel %vm5299_vm10, %v5999_v27, 0.0 }
 0x311   : > { %v5017_v18 = vadd.f32 %v12140_v59, %v8309_v10  ;;  %v5011_v51 = vpop.f32.mrb[139].mxu1 }
 0x312   : > { %v5012_v20 = vadd.f32 %v12140_v59, %v5011_v51  ;;  %v5617_v51 = vsel %vm5299_vm10, %v5598_v38, 0.0  ;;  %v6318_v38 = vmul.f32 %v7327_v24, %v12211_v62 }
 0x313   : > { %v5229_v63 = vmax.f32 %v5017_v18, 0.0 }
 0x314   : > { %v5228_v36 = vmax.f32 %v5012_v20, 0.0  ;;  %v6255_v20 = vsel %vm5299_vm10, %v6237_v58, 0.0 }
 0x315   : > { %v5280_v0 = vmax.f32 %v5226_v30, %v5229_v63  ;;  %v5857_v30 = vsel %vm5299_vm10, %v5838_v15, 0.0  ;;  %v6158_v63 = vmul.f32 %v7293_v61, %v12211_v62  ;;  %v6256_v48 = vadd.f32 %v6255_v20, %v12477_v53  ;;  %v7209_v53 = vld [vmem:[%s14007_s5 + $0x240] sm:$0xff]  ;;  %v7294_v62 = vld [vmem:[%s14007_s5 + $0x4e8] sm:$0xff] }
 0x316   : > { %v5279_v49 = vmax.f32 %v5225_v13, %v5228_v36  ;;  %v5618_v13 = vadd.f32 %v5617_v51, %v12480_v12  ;;  %v5421_v36 = vld [vmem:[%s14007_s5 + $0x20] sm:$0xff]  ;;  %v7192_v12 = vld [vmem:[%s14007_s5 + $0x1b8] sm:$0xff]  ;;  %v5858_v11 = vadd.f32 %v5857_v30, %v5856_v60  ;;  %v5519_v15 = vmul.f32 %v7158_v41, %v12243_v1 }
 0x317   : > { %5314 = vst.msk [vmem:[#allocation4 + $0x70] sm:$0xff] %vm5299_vm10, %v5280_v0  ;;  %v5698_v0 = vadd.f32 %v5697_v34, %v5696_v56  ;;  %v6017_v56 = vsel %vm5299_vm10, %v5998_v37, 0.0  ;;  %v6177_v43 = vsel %vm5299_vm10, %v6158_v63, 0.0  ;;  %v5438_v19 = vmul.f32 %v5421_v36, %v12243_v1  ;;  %v7364_v34 = vld [vmem:[%s14007_s5 + $0x718] sm:$0xff] }
 0x318   : > { %5313 = vst.msk [vmem:[#allocation4 + $0x68] sm:$0xff] %vm5299_vm10, %v5279_v49  ;;  %v12538_v10 = vpop.f32.mrb[140].mxu1  ;;  %v5937_v49 = vsel %vm5299_vm10, %v5918_v8, 0.0  ;;  %v5679_v9 = vmul.f32 %v7192_v12, %v12243_v1  ;;  %v5839_v60 = vmul.f32 %v7226_v33, %v12243_v1  ;;  %v5759_v5 = vmul.f32 %v7209_v53, %v12243_v1  ;;  %v7311_v12 = vld [vmem:[%s14007_s5 + $0x570] sm:$0xff] }
 0x319   : > { %v12550_v18 = vpop.f32.mrb[141].mxu1  ;;  %v5778_v61 = vadd.f32 %v5777_v21, %v5776_v4  ;;  %v6018_v7 = vadd.f32 %v6017_v56, %v6016_v29  ;;  %v5938_v51 = vadd.f32 %v5937_v49, %v5936_v2  ;;  %v6337_v37 = vsel %vm5299_vm10, %v6318_v38, 0.0  ;;  %v7328_v2 = vld [vmem:[%s14007_s5 + $0x5f8] sm:$0xff]  ;;  %v7347_v56 = vld [vmem:[%s14007_s5 + $0x690] sm:$0xff]  ;;  %v5422_v38 = vld [vmem:[%s14007_s5 + $0x28] sm:$0xff] }
 0x31a   : > { %v5619_v4 = vsel %vm5299_vm10, %v5599_v50, 0.0  ;;  %v12624_v20 = vadd.f32 %v6177_v43, %v6176_v42  ;;  %v12626_v29 = vadd.f32 %v6097_v3, %v6096_v57  ;;  %v5458_v28 = vsel %vm5299_vm10, %v5438_v19, 0.0 }
 0x31b   : > { %v5699_v8 = vsel %vm5299_vm10, %v5679_v9, 0.0  ;;  %v5539_v30 = vsel %vm5299_vm10, %v5519_v15, 0.0  ;;  %v5859_v63 = vsel %vm5299_vm10, %v5839_v60, 0.0  ;;  %v5779_v42 = vsel %vm5299_vm10, %v5759_v5, 0.0  ;;  %v7159_v60 = vld [vmem:[%s14007_s5 + $0xb0] sm:$0xff] }
 0x31c   : > { %v6159_v24 = vmul.f32 %v7294_v62, %v12243_v1  ;;  %v5939_v36 = vsel %vm5299_vm10, %v5919_v35, 0.0  ;;  %v6319_v57 = vmul.f32 %v7328_v2, %v12243_v1  ;;  %v6338_v47 = vadd.f32 %v6337_v37, %v6336_v32  ;;  %v7398_v32 = vld [vmem:[%s14007_s5 + $0x828] sm:$0xff] }
 0x31d   : > { %v12649_v33 = vadd.f32 %v5619_v4, %v5618_v13  ;;  %v12651_v21 = vadd.f32 %v5458_v28, %v5457_v31  ;;  %v12653_v53 = vadd.f32 %v5699_v8, %v5698_v0  ;;  %v6258_v46 = vadd.f32 %v6257_v25, %v6256_v48  ;;  %v7381_v48 = vld [vmem:[%s14007_s5 + $0x7a0] sm:$0xff]  ;;  %v7210_v35 = vld [vmem:[%s14007_s5 + $0x248] sm:$0xff]  ;;  %v7244_v4 = vld [vmem:[%s14007_s5 + $0x358] sm:$0xff] }
 0x31e   : > { %v12664_v49 = vadd.f32 %v5539_v30, %v5538_v39  ;;  %v12666_v13 = vadd.f32 %v5859_v63, %v5858_v11  ;;  %v12668_v31 = vadd.f32 %v5779_v42, %v5778_v61  ;;  %v12670_v0 = vadd.f32 %v6019_v44, %v6018_v7 }
 0x31f   : > { %v5345_v14 = vld [vmem:[#allocation4 + $0x60] ss:$2 sm:$0xff]  ;;  %v5379_v58 = vld [vmem:[#allocation4 + $0x61] ss:$2 sm:$0xff]  ;;  %v12681_v39 = vadd.f32 %v5939_v36, %v5938_v51  ;;  %v6179_v11 = vsel %vm5299_vm10, %v6159_v24, 0.0  ;;  %v6239_v50 = vmul.f32 %v7311_v12, %v12243_v1  ;;  %v6339_v43 = vsel %vm5299_vm10, %v6319_v57, 0.0 }
 0x320   : > { %v12613_v54 = vmax.f32 %v5345_v14, %v5379_v58  ;;  %v7193_v14 = vld [vmem:[%s14007_s5 + $0x1c0] sm:$0xff]  ;;  %v6099_v58 = vsel %vm5299_vm10, %v6079_v55, 0.0  ;;  %v5022_v9 = vadd.f32 %v12140_v59, %v12550_v18  ;;  %v5600_v15 = vmul.f32 %v7176_v17, %v12270_v45  ;;  %v7227_v1 = vld [vmem:[%s14007_s5 + $0x2d0] sm:$0xff]  ;;  %v7278_v57 = vld [vmem:[%s14007_s5 + $0x468] sm:$0xff] }
 0x321   : > { %v5439_v7 = vmul.f32 %v5422_v38, %v12270_v45  ;;  %v5680_v18 = vmul.f32 %v7193_v14, %v12270_v45  ;;  %v7261_v51 = vld [vmem:[%s14007_s5 + $0x3e0] sm:$0xff]  ;;  %v5520_v28 = vmul.f32 %v7159_v60, %v12270_v45  ;;  %v5840_v8 = vmul.f32 %v7227_v1, %v12270_v45 }
 0x322   : > { %v6481_v41 = vmul.f32 %v7364_v34, %v12613_v54  ;;  %v6401_v52 = vmul.f32 %v7347_v56, %v12613_v54  ;;  %v6641_v19 = vmul.f32 %v7398_v32, %v12613_v54  ;;  %v6561_v61 = vmul.f32 %v7381_v48, %v12613_v54  ;;  %v7329_v12 = vld [vmem:[%s14007_s5 + $0x600] sm:$0xff] }
 0x323   : > { %v6259_v30 = vsel %vm5299_vm10, %v6239_v50, 0.0  ;;  %v5230_v42 = vmax.f32 %v5022_v9, 0.0  ;;  %v5760_v24 = vmul.f32 %v7210_v35, %v12270_v45  ;;  %v5920_v55 = vmul.f32 %v7244_v4, %v12270_v45 }
 0x324   : > { %v6503_v3 = vsel %vm5299_vm10, %v6481_v41, 0.0  ;;  %v6423_v62 = vsel %vm5299_vm10, %v6401_v52, 0.0  ;;  %v6583_v34 = vsel %vm5299_vm10, %v6561_v61, 0.0  ;;  %v6180_v36 = vadd.f32 %v6179_v11, %v12624_v20  ;;  %v7312_v20 = vld [vmem:[%s14007_s5 + $0x578] sm:$0xff] }
 0x325   : > { %v12700_v5 = vadd.f32 %v6503_v3, %v12313_v6  ;;  %v6663_v6 = vsel %vm5299_vm10, %v6641_v19, 0.0  ;;  %v12720_v2 = vadd.f32 %v6423_v62, %v12315_v23  ;;  %v12730_v63 = vadd.f32 %v6583_v34, %v12338_v26  ;;  %v7160_v61 = vld [vmem:[%s14007_s5 + $0xb8] sm:$0xff] }
 0x326   : > { %v12723_v25 = vadd.f32 %v6663_v6, %v12317_v16  ;;  %v6000_v23 = vmul.f32 %v7261_v51, %v12270_v45  ;;  %v7295_v16 = vld [vmem:[%s14007_s5 + $0x4f0] sm:$0xff]  ;;  %v6100_v26 = vadd.f32 %v6099_v58, %v12626_v29  ;;  %v6340_v41 = vadd.f32 %v6339_v43, %v6338_v47  ;;  %v7177_v29 = vld [vmem:[%s14007_s5 + $0x140] sm:$0xff] }
 0x327   : > { %v5621_v32 = vsel %vm5299_vm10, %v5600_v15, 0.0  ;;  %v5460_v17 = vsel %vm5299_vm10, %v5439_v7, 0.0  ;;  %v5701_v48 = vsel %vm5299_vm10, %v5680_v18, 0.0  ;;  %v5541_v38 = vsel %vm5299_vm10, %v5520_v28, 0.0  ;;  %v5423_v58 = vld [vmem:[%s14007_s5 + $0x30] sm:$0xff]  ;;  %v7245_v6 = vld [vmem:[%s14007_s5 + $0x360] sm:$0xff] }
 0x328   : > { %v5861_v14 = vsel %vm5299_vm10, %v5840_v8, 0.0  ;;  %v6160_v47 = vmul.f32 %v7295_v16, %v12270_v45  ;;  %v6260_v11 = vadd.f32 %v6259_v30, %v6258_v46  ;;  %v5781_v50 = vsel %vm5299_vm10, %v5760_v24, 0.0  ;;  %v7194_v46 = vld [vmem:[%s14007_s5 + $0x1c8] sm:$0xff] }
 0x329   : > { %v6021_v43 = vsel %vm5299_vm10, %v6000_v23, 0.0  ;;  %v6080_v3 = vmul.f32 %v7278_v57, %v12270_v45  ;;  %v6320_v52 = vmul.f32 %v7329_v12, %v12270_v45  ;;  %v5622_v19 = vadd.f32 %v5621_v32, %v12649_v33  ;;  %v7228_v33 = vld [vmem:[%s14007_s5 + $0x2d8] sm:$0xff] }
 0x32a   : > { %v5461_v9 = vadd.f32 %v5460_v17, %v12651_v21  ;;  %v5702_v15 = vadd.f32 %v5701_v48, %v12653_v53  ;;  %v6240_v60 = vmul.f32 %v7312_v20, %v12270_v45  ;;  %v5601_v1 = vmul.f32 %v7177_v29, %v12613_v54  ;;  %v7211_v45 = vld [vmem:[%s14007_s5 + $0x250] sm:$0xff] }
 0x32b   : > { %v5862_v21 = vadd.f32 %v5861_v14, %v12666_v13  ;;  %v5941_v7 = vsel %vm5299_vm10, %v5920_v55, 0.0  ;;  %v5440_v53 = vmul.f32 %v5423_v58, %v12613_v54  ;;  %v5782_v18 = vadd.f32 %v5781_v50, %v12668_v31  ;;  %v12840_v50 = vld [vmem:[%s14006_s4] ss:$0 sm:$0xff] }
 0x32c   : > { %v8315_v27 = vpop.f32.mrb[142].mxu1  ;;  %v6022_v35 = vadd.f32 %v6021_v43, %v12670_v0  ;;  %v6181_v51 = vsel %vm5299_vm10, %v6160_v47, 0.0  ;;  %v12795_v13 = vadd.f32 %v12140_v59, %v12538_v10  ;;  %v5681_v62 = vmul.f32 %v7194_v46, %v12613_v54 }
 0x32d   : > { %v5037_v40 = vadd.f32 %v12140_v59, %v8315_v27  ;;  %v12714_v37 = vpop.f32.mrb[143].mxu1  ;;  %v5542_v27 = vadd.f32 %v5541_v38, %v12664_v49  ;;  %v7262_v49 = vld [vmem:[%s14007_s5 + $0x3e8] sm:$0xff]  ;;  %v6101_v31 = vsel %vm5299_vm10, %v6080_v3, 0.0  ;;  %v5521_v4 = vmul.f32 %v7160_v61, %v12613_v54  ;;  %v7296_v59 = vld [vmem:[%s14007_s5 + $0x4f8] sm:$0xff] }
 0x32e   : > { %v5841_v0 = vmul.f32 %v7228_v33, %v12613_v54  ;;  %v5942_v34 = vadd.f32 %v5941_v7, %v12681_v39  ;;  %v6261_v10 = vsel %vm5299_vm10, %v6240_v60, 0.0  ;;  %v5623_v28 = vsel %vm5299_vm10, %v5601_v1, 0.0  ;;  %v7279_v39 = vld [vmem:[%s14007_s5 + $0x470] sm:$0xff]  ;;  %v5424_v3 = vld [vmem:[%s14007_s5 + $0x38] sm:$0xff] }
 0x32f   : > { %v5233_v44 = vmax.f32 %v5037_v40, 0.0  ;;  %v6341_v40 = vsel %vm5299_vm10, %v6320_v52, 0.0  ;;  %v5761_v8 = vmul.f32 %v7211_v45, %v12613_v54  ;;  %v6001_v30 = vmul.f32 %v7262_v49, %v12613_v54 }
 0x330   : > { %v5462_v23 = vsel %vm5299_vm10, %v5440_v53, 0.0  ;;  %v5921_v16 = vmul.f32 %v7245_v6, %v12613_v54  ;;  %v6102_v55 = vadd.f32 %v6101_v31, %v6100_v26  ;;  %v6342_v57 = vadd.f32 %v6341_v40, %v6340_v41  ;;  %v7313_v26 = vld [vmem:[%s14007_s5 + $0x580] sm:$0xff]  ;;  %v7178_v41 = vld [vmem:[%s14007_s5 + $0x148] sm:$0xff] }
 0x331   : > { %v5281_v56 = vmax.f32 %v5230_v42, %v5233_v44  ;;  %v6182_v42 = vadd.f32 %v6181_v51, %v6180_v36  ;;  %v5231_v12 = vmax.f32 %v12795_v13, 0.0  ;;  %v6161_v32 = vmul.f32 %v7296_v59, %v12613_v54  ;;  %v7330_v36 = vld [vmem:[%s14007_s5 + $0x608] sm:$0xff]  ;;  %v7229_v51 = vld [vmem:[%s14007_s5 + $0x2e0] sm:$0xff] }
 0x332   : > { %v6262_v17 = vadd.f32 %v6261_v10, %v6260_v11  ;;  %v5624_v20 = vadd.f32 %v5623_v28, %v5622_v19  ;;  %v5543_v29 = vsel %vm5299_vm10, %v5521_v4, 0.0  ;;  %v5863_v38 = vsel %vm5299_vm10, %v5841_v0, 0.0  ;;  %v7263_v10 = vld [vmem:[%s14007_s5 + $0x3f0] sm:$0xff] }
 0x333   : > { %5315 = vst.msk [vmem:[#allocation4 + $0x78] sm:$0xff] %vm5299_vm10, %v5281_v56  ;;  %v5703_v56 = vsel %vm5299_vm10, %v5681_v62, 0.0  ;;  %v5463_v14 = vadd.f32 %v5462_v23, %v5461_v9  ;;  %v5783_v47 = vsel %vm5299_vm10, %v5761_v8, 0.0  ;;  %v6023_v11 = vsel %vm5299_vm10, %v6001_v30, 0.0  ;;  %v7348_v8 = vld [vmem:[%s14007_s5 + $0x698] sm:$0xff] }
 0x334   : > { %v6081_v58 = vmul.f32 %v7279_v39, %v12613_v54  ;;  %v5032_v43 = vadd.f32 %v12840_v50, %v12714_v37  ;;  %v12847_v52 = vadd.f32 %v5703_v56, %v5702_v15  ;;  %v5943_v19 = vsel %vm5299_vm10, %v5921_v16, 0.0  ;;  %v7195_v15 = vld [vmem:[%s14007_s5 + $0x1d0] sm:$0xff] }
 0x335   : > { %v6321_v9 = vmul.f32 %v7330_v36, %v12613_v54  ;;  %v12851_v60 = vadd.f32 %v5543_v29, %v5542_v27  ;;  %v12853_v1 = vadd.f32 %v5863_v38, %v5862_v21  ;;  %v6183_v61 = vsel %vm5299_vm10, %v6161_v32, 0.0  ;;  %v7161_v27 = vld [vmem:[%s14007_s5 + $0xc0] sm:$0xff] }
 0x336   : > { %v6241_v33 = vmul.f32 %v7313_v26, %v12613_v54  ;;  %v12865_v45 = vadd.f32 %v5783_v47, %v5782_v18  ;;  %v12867_v21 = vadd.f32 %v6023_v11, %v6022_v35  ;;  %v12874_v13 = vadd.f32 %v5943_v19, %v5942_v34  ;;  %v7365_v35 = vld [vmem:[%s14007_s5 + $0x720] sm:$0xff]  ;;  %v7212_v34 = vld [vmem:[%s14007_s5 + $0x258] sm:$0xff] }
 0x337   : > { %v6103_v62 = vsel %vm5299_vm10, %v6081_v58, 0.0  ;;  %v5232_v6 = vmax.f32 %v5032_v43, 0.0  ;;  %v12877_v40 = vadd.f32 %v6183_v61, %v6182_v42  ;;  %v6343_v18 = vsel %vm5299_vm10, %v6321_v9, 0.0  ;;  %v7280_v61 = vld [vmem:[%s14007_s5 + $0x478] sm:$0xff] }
 0x338   : > { %v6263_v28 = vsel %vm5299_vm10, %v6241_v33, 0.0  ;;  %v12900_v23 = vadd.f32 %v6103_v62, %v6102_v55  ;;  %v12903_v56 = vadd.f32 %v6343_v18, %v6342_v57  ;;  %v7399_v55 = vld [vmem:[%s14007_s5 + $0x830] sm:$0xff] }
 0x339   : > { %v12909_v26 = vadd.f32 %v6263_v28, %v6262_v17  ;;  %v7382_v17 = vld [vmem:[%s14007_s5 + $0x7a8] sm:$0xff] }
 0x33a   : > { %v5347_v44 = vld [vmem:[#allocation4 + $0x70] ss:$2 sm:$0xff]  ;;  %v5381_v24 = vld [vmem:[#allocation4 + $0x71] ss:$2 sm:$0xff] }
 0x33b   : > { %v12824_v48 = vmax.f32 %v5347_v44, %v5381_v24  ;;  %v7246_v24 = vld [vmem:[%s14007_s5 + $0x368] sm:$0xff] }
 0x33d   : > { %v5602_v53 = vmul.f32 %v7178_v41, %v12824_v48  ;;  %v5441_v54 = vmul.f32 %v5424_v3, %v12824_v48  ;;  %v5682_v0 = vmul.f32 %v7195_v15, %v12824_v48  ;;  %v5522_v59 = vmul.f32 %v7161_v27, %v12824_v48 }
 0x33e   : > { %v5842_v44 = vmul.f32 %v7229_v51, %v12824_v48  ;;  %v6482_v32 = vmul.f32 %v7365_v35, %v12824_v48  ;;  %v5762_v29 = vmul.f32 %v7212_v34, %v12824_v48  ;;  %v6002_v38 = vmul.f32 %v7263_v10, %v12824_v48  ;;  %v5425_v34 = vld [vmem:[%s14007_s5 + $0x40] sm:$0xff] }
 0x33f   : > { %v5625_v42 = vsel %vm5299_vm10, %v5602_v53, 0.0  ;;  %v5464_v39 = vsel %vm5299_vm10, %v5441_v54, 0.0  ;;  %v6402_v41 = vmul.f32 %v7348_v8, %v12824_v48  ;;  %v5705_v47 = vsel %vm5299_vm10, %v5682_v0, 0.0 }
 0x340   : > { %v8318_v46 = vpop.f32.mrb[144].mxu1  ;;  %v5545_v11 = vsel %vm5299_vm10, %v5522_v59, 0.0  ;;  %v5922_v58 = vmul.f32 %v7246_v24, %v12824_v48  ;;  %v12924_v43 = vadd.f32 %v5464_v39, %v5463_v14  ;;  %v5865_v3 = vsel %vm5299_vm10, %v5842_v44, 0.0  ;;  %v7179_v59 = vld [vmem:[%s14007_s5 + $0x150] sm:$0xff] }
 0x341   : > { %v5047_v37 = vadd.f32 %v12840_v50, %v8318_v46  ;;  %v5041_v7 = vpop.f32.mrb[145].mxu1  ;;  %v6505_v19 = vsel %vm5299_vm10, %v6482_v32, 0.0  ;;  %v6425_v9 = vsel %vm5299_vm10, %v6402_v41, 0.0  ;;  %v7297_v46 = vld [vmem:[%s14007_s5 + $0x500] sm:$0xff]  ;;  %v12944_v53 = vadd.f32 %v5705_v47, %v12847_v52  ;;  %v7331_v52 = vld [vmem:[%s14007_s5 + $0x610] sm:$0xff] }
 0x342   : > { %v5042_v49 = vadd.f32 %v12840_v50, %v5041_v7  ;;  %v12937_v33 = vadd.f32 %v6505_v19, %v12700_v5  ;;  %v12940_v14 = vadd.f32 %v6425_v9, %v12720_v2  ;;  %v12947_v15 = vadd.f32 %v5545_v11, %v12851_v60 }
 0x343   : > { %v5235_v31 = vmax.f32 %v5047_v37, 0.0  ;;  %v6642_v37 = vmul.f32 %v7399_v55, %v12824_v48  ;;  %v5785_v27 = vsel %vm5299_vm10, %v5762_v29, 0.0  ;;  %v12953_v51 = vadd.f32 %v5865_v3, %v12853_v1 }
 0x344   : > { %v5234_v4 = vmax.f32 %v5042_v49, 0.0  ;;  %v6562_v49 = vmul.f32 %v7382_v17, %v12824_v48  ;;  %v6025_v2 = vsel %vm5299_vm10, %v6002_v38, 0.0  ;;  %v6162_v60 = vmul.f32 %v7297_v46, %v12824_v48 }
 0x345   : > { %v5283_v30 = vmax.f32 %v5232_v6, %v5235_v31  ;;  %v6665_v62 = vsel %vm5299_vm10, %v6642_v37, 0.0  ;;  %v6082_v6 = vmul.f32 %v7280_v61, %v12824_v48  ;;  %v7314_v31 = vld [vmem:[%s14007_s5 + $0x588] sm:$0xff]  ;;  %v5945_v44 = vsel %vm5299_vm10, %v5922_v58, 0.0 }
 0x346   : > { %v5282_v16 = vmax.f32 %v5231_v12, %v5234_v4  ;;  %v12916_v12 = vadd.f32 %v5625_v42, %v5624_v20  ;;  %v12966_v18 = vadd.f32 %v6665_v62, %v12723_v25  ;;  %v6585_v1 = vsel %vm5299_vm10, %v6562_v49, 0.0 }
 0x347   : > { %5317 = vst.msk [vmem:[#allocation4 + $0x88] sm:$0xff] %vm5299_vm10, %v5283_v30  ;;  %v8321_v36 = vpop.f32.mrb[146].mxu1  ;;  %v12977_v10 = vadd.f32 %v6585_v1, %v12730_v63  ;;  %v12981_v42 = vadd.f32 %v5785_v27, %v12865_v45  ;;  %v6322_v24 = vmul.f32 %v7331_v52, %v12824_v48  ;;  %v6242_v63 = vmul.f32 %v7314_v31, %v12824_v48  ;;  %v7213_v27 = vld [vmem:[%s14007_s5 + $0x260] sm:$0xff]  ;;  %v7298_v1 = vld [vmem:[%s14007_s5 + $0x508] sm:$0xff] }
 0x348   : > { %5316 = vst.msk [vmem:[#allocation4 + $0x80] sm:$0xff] %vm5299_vm10, %v5282_v16  ;;  %v5051_v57 = vpop.f32.mrb[147].mxu1  ;;  %v5057_v8 = vadd.f32 %v12840_v50, %v8321_v36  ;;  %v7196_v36 = vld [vmem:[%s14007_s5 + $0x1d8] sm:$0xff]  ;;  %v12994_v45 = vadd.f32 %v6025_v2, %v12867_v21  ;;  %v6185_v41 = vsel %vm5299_vm10, %v6162_v60, 0.0  ;;  %v6105_v55 = vsel %vm5299_vm10, %v6082_v6, 0.0  ;;  %v7162_v21 = vld [vmem:[%s14007_s5 + $0xc8] sm:$0xff] }
 0x349   : > { %v5052_v20 = vadd.f32 %v12840_v50, %v5051_v57  ;;  %v13005_v19 = vadd.f32 %v5945_v44, %v12874_v13  ;;  %v6345_v9 = vsel %vm5299_vm10, %v6322_v24, 0.0  ;;  %v6265_v49 = vsel %vm5299_vm10, %v6242_v63, 0.0  ;;  %v7247_v2 = vld [vmem:[%s14007_s5 + $0x370] sm:$0xff] }
 0x34a   : > { %v5237_v58 = vmax.f32 %v5057_v8, 0.0  ;;  %v13027_v52 = vadd.f32 %v6185_v41, %v12877_v40  ;;  %v13030_v62 = vadd.f32 %v6105_v55, %v12900_v23 }
 0x34b   : > { %v8324_v7 = vpop.f32.mrb[148].mxu1  ;;  %v5236_v35 = vmax.f32 %v5052_v20, 0.0 }
 0x34c   : > { %v5067_v54 = vadd.f32 %v12840_v50, %v8324_v7  ;;  %v5061_v5 = vpop.f32.mrb[149].mxu1  ;;  %v7230_v7 = vld [vmem:[%s14007_s5 + $0x2e8] sm:$0xff] }
 0x34d   : > { %v5062_v0 = vadd.f32 %v12840_v50, %v5061_v5  ;;  %v7264_v5 = vld [vmem:[%s14007_s5 + $0x3f8] sm:$0xff] }
 0x34e   : > { %v5239_v4 = vmax.f32 %v5067_v54, 0.0 }
 0x34f   : > { %v5349_v28 = vld [vmem:[#allocation4 + $0x80] ss:$2 sm:$0xff]  ;;  %v5383_v25 = vld [vmem:[#allocation4 + $0x81] ss:$2 sm:$0xff]  ;;  %v8327_v30 = vpop.f32.mrb[150].mxu1  ;;  %v5238_v57 = vmax.f32 %v5062_v0, 0.0 }
 0x350   : > { %v12985_v16 = vmax.f32 %v5349_v28, %v5383_v25  ;;  %v5284_v39 = vmax.f32 %v5236_v35, %v5239_v4  ;;  %v5077_v32 = vadd.f32 %v12840_v50, %v8327_v30  ;;  %v5071_v29 = vpop.f32.mrb[151].mxu1  ;;  %v13040_v35 = vadd.f32 %v6345_v9, %v12903_v56  ;;  %v5426_v9 = vld [vmem:[%s14007_s5 + $0x48] sm:$0xff] }
 0x351   : > { %v5072_v38 = vadd.f32 %v12840_v50, %v5071_v29 }
 0x352   : > { %5318 = vst.msk [vmem:[#allocation4 + $0x90] sm:$0xff] %vm5299_vm10, %v5284_v39  ;;  %v5241_v47 = vmax.f32 %v5077_v32, 0.0  ;;  %v5603_v11 = vmul.f32 %v7179_v59, %v12985_v16  ;;  %v5442_v48 = vmul.f32 %v5425_v34, %v12985_v16  ;;  %v5683_v37 = vmul.f32 %v7196_v36, %v12985_v16  ;;  %v7281_v59 = vld [vmem:[%s14007_s5 + $0x480] sm:$0xff] }
 0x353   : > { %v5240_v17 = vmax.f32 %v5072_v38, 0.0  ;;  %v8330_v3 = vpop.f32.mrb[152].mxu1  ;;  %v5523_v31 = vmul.f32 %v7162_v21, %v12985_v16  ;;  %v5843_v4 = vmul.f32 %v7230_v7, %v12985_v16  ;;  %v5763_v0 = vmul.f32 %v7213_v27, %v12985_v16 }
 0x354   : > { %v5286_v20 = vmax.f32 %v5238_v57, %v5241_v47  ;;  %v5081_v46 = vpop.f32.mrb[153].mxu1  ;;  %v5627_v61 = vsel %vm5299_vm10, %v5603_v11, 0.0  ;;  %v13018_v54 = vadd.f32 %v12840_v50, %v8330_v3  ;;  %v5466_v6 = vsel %vm5299_vm10, %v5442_v48, 0.0 }
 0x355   : > { %v5285_v13 = vmax.f32 %v5237_v58, %v5240_v17  ;;  %v5082_v60 = vadd.f32 %v12840_v50, %v5081_v46  ;;  %v13044_v23 = vadd.f32 %v5627_v61, %v12916_v12  ;;  %v13052_v34 = vadd.f32 %v6265_v49, %v12909_v26  ;;  %v7332_v26 = vld [vmem:[%s14007_s5 + $0x618] sm:$0xff] }
 0x356   : > { %5320 = vst.msk [vmem:[#allocation4 + $0xa0] sm:$0xff] %vm5299_vm10, %v5286_v20  ;;  %v5707_v25 = vsel %vm5299_vm10, %v5683_v37, 0.0  ;;  %v6003_v8 = vmul.f32 %v7264_v5, %v12985_v16  ;;  %v5923_v12 = vmul.f32 %v7247_v2, %v12985_v16  ;;  %v5243_v30 = vmax.f32 %v13018_v54, 0.0 }
 0x357   : > { %5319 = vst.msk [vmem:[#allocation4 + $0x98] sm:$0xff] %vm5299_vm10, %v5285_v13  ;;  %v8333_v40 = vpop.f32.mrb[154].mxu1  ;;  %v13061_v24 = vadd.f32 %v5466_v6, %v12924_v43  ;;  %v6163_v39 = vmul.f32 %v7298_v1, %v12985_v16  ;;  %v5242_v32 = vmax.f32 %v5082_v60, 0.0  ;;  %v5547_v63 = vsel %vm5299_vm10, %v5523_v31, 0.0  ;;  %v7163_v60 = vld [vmem:[%s14007_s5 + $0xd0] sm:$0xff] }
 0x358   : > { %v5097_v56 = vadd.f32 %v12840_v50, %v8333_v40  ;;  %v5091_v28 = vpop.f32.mrb[155].mxu1  ;;  %v6083_v38 = vmul.f32 %v7281_v59, %v12985_v16  ;;  %v13070_v41 = vadd.f32 %v5707_v25, %v12944_v53  ;;  %v5867_v55 = vsel %vm5299_vm10, %v5843_v4, 0.0  ;;  %v7180_v53 = vld [vmem:[%s14007_s5 + $0x158] sm:$0xff]  ;;  %v7315_v59 = vld [vmem:[%s14007_s5 + $0x590] sm:$0xff] }
 0x359   : > { %v5092_v44 = vadd.f32 %v12840_v50, %v5091_v28  ;;  %v5787_v43 = vsel %vm5299_vm10, %v5763_v0, 0.0  ;;  %v6027_v57 = vsel %vm5299_vm10, %v6003_v8, 0.0  ;;  %v5947_v58 = vsel %vm5299_vm10, %v5923_v12, 0.0 }
 0x35a   : > { %v5245_v29 = vmax.f32 %v5097_v56, 0.0  ;;  %v6323_v17 = vmul.f32 %v7332_v26, %v12985_v16  ;;  %v5548_v20 = vadd.f32 %v5547_v63, %v12947_v15  ;;  %v6187_v46 = vsel %vm5299_vm10, %v6163_v39, 0.0  ;;  %v7197_v15 = vld [vmem:[%s14007_s5 + $0x1e0] sm:$0xff] }
 0x35b   : > { %v8336_v36 = vpop.f32.mrb[156].mxu1  ;;  %v5244_v3 = vmax.f32 %v5092_v44, 0.0  ;;  %v5868_v27 = vadd.f32 %v5867_v55, %v12953_v51  ;;  %v13090_v49 = vadd.f32 %v5787_v43, %v12981_v42  ;;  %v6107_v13 = vsel %vm5299_vm10, %v6083_v38, 0.0  ;;  %v7231_v51 = vld [vmem:[%s14007_s5 + $0x2f0] sm:$0xff]  ;;  %v7181_v55 = vld [vmem:[%s14007_s5 + $0x160] sm:$0xff] }
 0x35c   : > { %v5287_v47 = vmax.f32 %v5242_v32, %v5245_v29  ;;  %v5107_v11 = vadd.f32 %v12840_v50, %v8336_v36  ;;  %v5101_v48 = vpop.f32.mrb[157].mxu1  ;;  %v13105_v42 = vadd.f32 %v6027_v57, %v12994_v45  ;;  %v13108_v6 = vadd.f32 %v5947_v58, %v13005_v19  ;;  %v7366_v45 = vld [vmem:[%s14007_s5 + $0x728] sm:$0xff] }
 0x35d   : > { %v5102_v21 = vadd.f32 %v12840_v50, %v5101_v48  ;;  %v13114_v4 = vadd.f32 %v6187_v46, %v13027_v52  ;;  %v6347_v0 = vsel %vm5299_vm10, %v6323_v17, 0.0  ;;  %v13126_v25 = vadd.f32 %v6107_v13, %v13030_v62 }
 0x35e   : > { %v5351_v61 = vld [vmem:[#allocation4 + $0x90] ss:$2 sm:$0xff]  ;;  %v5385_v37 = vld [vmem:[#allocation4 + $0x91] ss:$2 sm:$0xff]  ;;  %5321 = vst.msk [vmem:[#allocation4 + $0xa8] sm:$0xff] %vm5299_vm10, %v5287_v47  ;;  %v5247_v7 = vmax.f32 %v5107_v11, 0.0  ;;  %v13139_v26 = vadd.f32 %v6347_v0, %v13040_v35  ;;  %v13142_v32 = vmul.f32 %v7315_v59, %v12985_v16  ;;  %v13145_v29 = vmul.f32 %v7366_v45, %v12985_v16 }
 0x35f   : > { %v13093_v54 = vmax.f32 %v5351_v61, %v5385_v37  ;;  %v5246_v5 = vmax.f32 %v5102_v21, 0.0  ;;  %v8339_v2 = vpop.f32.mrb[158].mxu1  ;;  %v5427_v35 = vld [vmem:[%s14007_s5 + $0x50] sm:$0xff]  ;;  %v7198_v61 = vld [vmem:[%s14007_s5 + $0x1e8] sm:$0xff] }
 0x360   : > { %v5289_v31 = vmax.f32 %v5244_v3, %v5247_v7  ;;  %v13111_v1 = vadd.f32 %v12840_v50, %v8339_v2  ;;  %v5111_v40 = vpop.f32.mrb[159].mxu1  ;;  %v7182_v0 = vld [vmem:[%s14007_s5 + $0x168] sm:$0xff] }
 0x361   : > { %v5288_v19 = vmax.f32 %v5243_v30, %v5246_v5  ;;  %v5604_v56 = vmul.f32 %v7180_v53, %v13093_v54  ;;  %v5443_v28 = vmul.f32 %v5426_v9, %v13093_v54  ;;  %v5112_v52 = vadd.f32 %v12840_v50, %v5111_v40  ;;  %v7214_v30 = vld [vmem:[%s14007_s5 + $0x268] sm:$0xff]  ;;  %v7164_v5 = vld [vmem:[%s14007_s5 + $0xd8] sm:$0xff] }
 0x362   : > { %5323 = vst.msk [vmem:[#allocation4 + $0xb8] sm:$0xff] %vm5299_vm10, %v5289_v31  ;;  %v5684_v8 = vmul.f32 %v7197_v15, %v13093_v54  ;;  %v5524_v12 = vmul.f32 %v7163_v60, %v13093_v54  ;;  %v5844_v44 = vmul.f32 %v7231_v51, %v13093_v54  ;;  %v5249_v63 = vmax.f32 %v13111_v1, 0.0  ;;  %v7248_v60 = vld [vmem:[%s14007_s5 + $0x378] sm:$0xff] }
 0x363   : > { %5322 = vst.msk [vmem:[#allocation4 + $0xb0] sm:$0xff] %vm5299_vm10, %v5288_v19  ;;  %v8342_v39 = vpop.f32.mrb[160].mxu1  ;;  %v5629_v62 = vsel %vm5299_vm10, %v5604_v56, 0.0  ;;  %v5468_v43 = vsel %vm5299_vm10, %v5443_v28, 0.0  ;;  %v5764_v3 = vmul.f32 %v7214_v30, %v13093_v54  ;;  %v5248_v53 = vmax.f32 %v5112_v52, 0.0  ;;  %v5428_v52 = vld [vmem:[%s14007_s5 + $0x58] sm:$0xff] }
 0x364   : > { %v5127_v38 = vadd.f32 %v12840_v50, %v8342_v39  ;;  %v5121_v36 = vpop.f32.mrb[161].mxu1  ;;  %v5709_v57 = vsel %vm5299_vm10, %v5684_v8, 0.0  ;;  %v5549_v58 = vsel %vm5299_vm10, %v5524_v12, 0.0  ;;  %v5869_v17 = vsel %vm5299_vm10, %v5844_v44, 0.0 }
 0x365   : > { %v5353_v47 = vld [vmem:[#allocation4 + $0xa0] ss:$2 sm:$0xff]  ;;  %v5387_v11 = vld [vmem:[#allocation4 + $0xa1] ss:$2 sm:$0xff]  ;;  %v5122_v48 = vadd.f32 %v12840_v50, %v5121_v36  ;;  %v5630_v46 = vadd.f32 %v5629_v62, %v13044_v23  ;;  %v5469_v7 = vadd.f32 %v5468_v43, %v13061_v24  ;;  %v5710_v13 = vadd.f32 %v5709_v57, %v13070_v41  ;;  %v7265_v23 = vld [vmem:[%s14007_s5 + $0x400] sm:$0xff] }
 0x366   : > { %v13161_v21 = vmax.f32 %v5353_v47, %v5387_v11  ;;  %v5251_v9 = vmax.f32 %v5127_v38, 0.0  ;;  %v13172_v2 = vadd.f32 %v5549_v58, %v5548_v20  ;;  %v13174_v15 = vadd.f32 %v5869_v17, %v5868_v27  ;;  %v7232_v20 = vld [vmem:[%s14007_s5 + $0x2f8] sm:$0xff]  ;;  %v7199_v36 = vld [vmem:[%s14007_s5 + $0x1f0] sm:$0xff] }
 0x367   : > { %v8345_v37 = vpop.f32.mrb[162].mxu1  ;;  %v5250_v27 = vmax.f32 %v5122_v48, 0.0  ;;  %v5789_v45 = vsel %vm5299_vm10, %v5764_v3, 0.0  ;;  %v13200_v12 = vmul.f32 %v7265_v23, %v13093_v54  ;;  %v13203_v44 = vmul.f32 %v7248_v60, %v13093_v54  ;;  %v7215_v43 = vld [vmem:[%s14007_s5 + $0x270] sm:$0xff] }
 0x368   : > { %v5290_v51 = vmax.f32 %v5248_v53, %v5251_v9  ;;  %v5137_v24 = vadd.f32 %v12840_v50, %v8345_v37  ;;  %v5131_v41 = vpop.f32.mrb[163].mxu1  ;;  %v5605_v31 = vmul.f32 %v7181_v55, %v13161_v21  ;;  %v5444_v1 = vmul.f32 %v5427_v35, %v13161_v21  ;;  %v7165_v55 = vld [vmem:[%s14007_s5 + $0xe0] sm:$0xff] }
 0x369   : > { %v5132_v40 = vadd.f32 %v12840_v50, %v5131_v41  ;;  %v5685_v59 = vmul.f32 %v7198_v61, %v13161_v21  ;;  %v5525_v8 = vmul.f32 %v7164_v5, %v13161_v21  ;;  %v5845_v35 = vmul.f32 %v7232_v20, %v13161_v21 }
 0x36a   : > { %v5355_v19 = vld [vmem:[#allocation4 + $0xb0] ss:$2 sm:$0xff]  ;;  %v5389_v56 = vld [vmem:[#allocation4 + $0xb1] ss:$2 sm:$0xff]  ;;  %5324 = vst.msk [vmem:[#allocation4 + $0xc0] sm:$0xff] %vm5299_vm10, %v5290_v51  ;;  %v5253_v28 = vmax.f32 %v5137_v24, 0.0  ;;  %v5765_v5 = vmul.f32 %v7215_v43, %v13161_v21  ;;  %v5790_v23 = vadd.f32 %v5789_v45, %v13090_v49 }
 0x36b   : > { %v13205_v30 = vmax.f32 %v5355_v19, %v5389_v56  ;;  %v5252_v39 = vmax.f32 %v5132_v40, 0.0  ;;  %v8348_v62 = vpop.f32.mrb[164].mxu1  ;;  %v5631_v38 = vsel %vm5299_vm10, %v5605_v31, 0.0  ;;  %v5470_v48 = vsel %vm5299_vm10, %v5444_v1, 0.0  ;;  %v7233_v31 = vld [vmem:[%s14007_s5 + $0x300] sm:$0xff]  ;;  %v7216_v1 = vld [vmem:[%s14007_s5 + $0x278] sm:$0xff] }
 0x36c   : > { %v5292_v57 = vmax.f32 %v5250_v27, %v5253_v28  ;;  %v13219_v47 = vadd.f32 %v12840_v50, %v8348_v62  ;;  %v5141_v11 = vpop.f32.mrb[165].mxu1  ;;  %v5711_v58 = vsel %vm5299_vm10, %v5685_v59, 0.0  ;;  %v5632_v51 = vadd.f32 %v5631_v38, %v5630_v46 }
 0x36d   : > { %v5291_v17 = vmax.f32 %v5249_v63, %v5252_v39  ;;  %v5142_v3 = vadd.f32 %v12840_v50, %v5141_v11  ;;  %v5606_v53 = vmul.f32 %v7182_v0, %v13205_v30  ;;  %v5445_v9 = vmul.f32 %v5428_v52, %v13205_v30 }
 0x36e   : > { %5326 = vst.msk [vmem:[#allocation4 + $0xd0] sm:$0xff] %vm5299_vm10, %v5292_v57  ;;  %v5686_v61 = vmul.f32 %v7199_v36, %v13205_v30  ;;  %v5526_v37 = vmul.f32 %v7165_v55, %v13205_v30  ;;  %v5255_v63 = vmax.f32 %v13219_v47, 0.0  ;;  %v5471_v41 = vadd.f32 %v5470_v48, %v5469_v7  ;;  %v7266_v36 = vld [vmem:[%s14007_s5 + $0x408] sm:$0xff]  ;;  %v7267_v48 = vld [vmem:[%s14007_s5 + $0x410] sm:$0xff] }
 0x36f   : > { %5325 = vst.msk [vmem:[#allocation4 + $0xc8] sm:$0xff] %vm5299_vm10, %v5291_v17  ;;  %v8351_v60 = vpop.f32.mrb[166].mxu1  ;;  %v5633_v24 = vsel %vm5299_vm10, %v5606_v53, 0.0  ;;  %v5472_v27 = vsel %vm5299_vm10, %v5445_v9, 0.0  ;;  %v5712_v40 = vadd.f32 %v5711_v58, %v5710_v13  ;;  %v5551_v0 = vsel %vm5299_vm10, %v5525_v8, 0.0 }
 0x370   : > { %v5157_v20 = vadd.f32 %v12840_v50, %v8351_v60  ;;  %v5151_v49 = vpop.f32.mrb[167].mxu1  ;;  %v5254_v46 = vmax.f32 %v5142_v3, 0.0  ;;  %v13244_v7 = vadd.f32 %v5633_v24, %v5632_v51  ;;  %v5713_v45 = vsel %vm5299_vm10, %v5686_v61, 0.0 }
 0x371   : > { %v5152_v59 = vadd.f32 %v12840_v50, %v5151_v49  ;;  %v5553_v56 = vsel %vm5299_vm10, %v5526_v37, 0.0  ;;  %v5846_v28 = vmul.f32 %v7233_v31, %v13205_v30  ;;  %v5766_v52 = vmul.f32 %v7216_v1, %v13205_v30  ;;  %v5429_v37 = vld [vmem:[%s14007_s5 + $0x60] sm:$0xff]  ;;  %v7200_v1 = vld [vmem:[%s14007_s5 + $0x1f8] sm:$0xff]  ;;  %v7234_v49 = vld [vmem:[%s14007_s5 + $0x308] sm:$0xff] }
 0x372   : > { %v5257_v19 = vmax.f32 %v5157_v20, 0.0  ;;  %v13250_v62 = vadd.f32 %v5472_v27, %v5471_v41  ;;  %v5552_v13 = vadd.f32 %v5551_v0, %v13172_v2  ;;  %v5871_v8 = vsel %vm5299_vm10, %v5845_v35, 0.0  ;;  %v7183_v35 = vld [vmem:[%s14007_s5 + $0x170] sm:$0xff]  ;;  %v7166_v20 = vld [vmem:[%s14007_s5 + $0xe8] sm:$0xff] }
 0x373   : > { %v8354_v39 = vpop.f32.mrb[168].mxu1  ;;  %v5791_v38 = vsel %vm5299_vm10, %v5765_v5, 0.0  ;;  %v5256_v43 = vmax.f32 %v5152_v59, 0.0  ;;  %v13259_v11 = vadd.f32 %v5713_v45, %v5712_v40  ;;  %v5873_v17 = vsel %vm5299_vm10, %v5846_v28, 0.0 }
 0x374   : > { %v5293_v55 = vmax.f32 %v5254_v46, %v5257_v19  ;;  %v5167_v57 = vadd.f32 %v12840_v50, %v8354_v39  ;;  %v5161_v47 = vpop.f32.mrb[169].mxu1  ;;  %v13268_v58 = vadd.f32 %v5553_v56, %v5552_v13  ;;  %v5793_v3 = vsel %vm5299_vm10, %v5766_v52, 0.0 }
 0x375   : > { %v5162_v2 = vadd.f32 %v12840_v50, %v5161_v47  ;;  %v5872_v5 = vadd.f32 %v5871_v8, %v13174_v15  ;;  %v5792_v60 = vadd.f32 %v5791_v38, %v5790_v23  ;;  %v6005_v51 = vmul.f32 %v7266_v36, %v13161_v21 }
 0x376   : > { %v5357_v53 = vld [vmem:[#allocation4 + $0xc0] ss:$2 sm:$0xff]  ;;  %v5391_v9 = vld [vmem:[#allocation4 + $0xc1] ss:$2 sm:$0xff]  ;;  %5327 = vst.msk [vmem:[#allocation4 + $0xd8] sm:$0xff] %vm5299_vm10, %v5293_v55  ;;  %v5259_v61 = vmax.f32 %v5167_v57, 0.0  ;;  %v6006_v15 = vmul.f32 %v7267_v48, %v13205_v30 }
 0x377   : > { %v13278_v24 = vmax.f32 %v5357_v53, %v5391_v9  ;;  %v5258_v41 = vmax.f32 %v5162_v2, 0.0  ;;  %v8357_v31 = vpop.f32.mrb[170].mxu1  ;;  %v6029_v23 = vsel %vm5299_vm10, %v13200_v12, 0.0  ;;  %v5874_v46 = vadd.f32 %v5873_v17, %v5872_v5  ;;  %v7217_v55 = vld [vmem:[%s14007_s5 + $0x280] sm:$0xff]  ;;  %v7184_v2 = vld [vmem:[%s14007_s5 + $0x178] sm:$0xff] }
 0x378   : > { %v5295_v27 = vmax.f32 %v5256_v43, %v5259_v61  ;;  %v13293_v40 = vadd.f32 %v12840_v50, %v8357_v31  ;;  %v5171_v0 = vpop.f32.mrb[171].mxu1  ;;  %v13295_v59 = vadd.f32 %v5793_v3, %v5792_v60  ;;  %v6030_v13 = vadd.f32 %v6029_v23, %v13105_v42 }
 0x379   : > { %v5294_v45 = vmax.f32 %v5255_v63, %v5258_v41  ;;  %v5172_v19 = vadd.f32 %v12840_v50, %v5171_v0  ;;  %v5607_v56 = vmul.f32 %v7183_v35, %v13278_v24  ;;  %v5446_v28 = vmul.f32 %v5429_v37, %v13278_v24  ;;  %v7249_v63 = vld [vmem:[%s14007_s5 + $0x380] sm:$0xff]  ;;  %v5430_v35 = vld [vmem:[%s14007_s5 + $0x68] sm:$0xff] }
 0x37a   : > { %5329 = vst.msk [vmem:[#allocation4 + $0xe8] sm:$0xff] %vm5299_vm10, %v5295_v27  ;;  %v5687_v52 = vmul.f32 %v7200_v1, %v13278_v24  ;;  %v5527_v12 = vmul.f32 %v7166_v20, %v13278_v24  ;;  %v5847_v39 = vmul.f32 %v7234_v49, %v13278_v24  ;;  %v5261_v8 = vmax.f32 %v13293_v40, 0.0  ;;  %v7201_v1 = vld [vmem:[%s14007_s5 + $0x200] sm:$0xff]  ;;  %v7167_v20 = vld [vmem:[%s14007_s5 + $0xf0] sm:$0xff] }
 0x37b   : > { %5328 = vst.msk [vmem:[#allocation4 + $0xe0] sm:$0xff] %vm5299_vm10, %v5294_v45  ;;  %v8360_v38 = vpop.f32.mrb[172].mxu1  ;;  %v5635_v36 = vsel %vm5299_vm10, %v5607_v56, 0.0  ;;  %v6031_v43 = vsel %vm5299_vm10, %v6005_v51, 0.0  ;;  %v13316_v57 = vsel %vm5299_vm10, %v6006_v15, 0.0  ;;  %v5260_v42 = vmax.f32 %v5172_v19, 0.0 }
 0x37c   : > { %v5187_v47 = vadd.f32 %v12840_v50, %v8360_v38  ;;  %v5181_v48 = vpop.f32.mrb[173].mxu1  ;;  %v5474_v17 = vsel %vm5299_vm10, %v5446_v28, 0.0  ;;  %v5715_v3 = vsel %vm5299_vm10, %v5687_v52, 0.0  ;;  %v5555_v37 = vsel %vm5299_vm10, %v5527_v12, 0.0  ;;  %v5431_v12 = vld [vmem:[%s14007_s5 + $0x70] sm:$0xff] }
 0x37d   : > { %v5359_v53 = vld [vmem:[#allocation4 + $0xd0] ss:$2 sm:$0xff]  ;;  %v5393_v9 = vld [vmem:[#allocation4 + $0xd1] ss:$2 sm:$0xff]  ;;  %v5182_v61 = vadd.f32 %v12840_v50, %v5181_v48  ;;  %v5875_v5 = vsel %vm5299_vm10, %v5847_v39, 0.0  ;;  %v13331_v60 = vmul.f32 %v7249_v63, %v13161_v21  ;;  %v5636_v31 = vadd.f32 %v5635_v36, %v13244_v7  ;;  %v7202_v39 = vld [vmem:[%s14007_s5 + $0x208] sm:$0xff] }
 0x37e   : > { %v13333_v51 = vmax.f32 %v5359_v53, %v5393_v9  ;;  %v5263_v41 = vmax.f32 %v5187_v47, 0.0  ;;  %v5767_v49 = vmul.f32 %v7217_v55, %v13278_v24  ;;  %v5475_v23 = vadd.f32 %v5474_v17, %v13250_v62  ;;  %v7268_v7 = vld [vmem:[%s14007_s5 + $0x418] sm:$0xff]  ;;  %v7235_v62 = vld [vmem:[%s14007_s5 + $0x310] sm:$0xff] }
 0x37f   : > { %v8363_v15 = vpop.f32.mrb[174].mxu1  ;;  %v5716_v27 = vadd.f32 %v5715_v3, %v13259_v11  ;;  %v5556_v40 = vadd.f32 %v5555_v37, %v13268_v58  ;;  %v13346_v0 = vadd.f32 %v5875_v5, %v5874_v46  ;;  %v5262_v11 = vmax.f32 %v5182_v61, 0.0  ;;  %v7185_v46 = vld [vmem:[%s14007_s5 + $0x180] sm:$0xff]  ;;  %v7168_v3 = vld [vmem:[%s14007_s5 + $0xf8] sm:$0xff]  ;;  %v7218_v61 = vld [vmem:[%s14007_s5 + $0x288] sm:$0xff] }
 0x380   : > { %v5296_v45 = vmax.f32 %v5260_v42, %v5263_v41  ;;  %v5197_v19 = vadd.f32 %v12840_v50, %v8363_v15  ;;  %v5191_v56 = vpop.f32.mrb[175].mxu1  ;;  %v5608_v28 = vmul.f32 %v7184_v2, %v13333_v51  ;;  %v5447_v52 = vmul.f32 %v5430_v35, %v13333_v51  ;;  %v7236_v53 = vld [vmem:[%s14007_s5 + $0x318] sm:$0xff] }
 0x381   : > { %v5192_v58 = vadd.f32 %v12840_v50, %v5191_v56  ;;  %v5688_v63 = vmul.f32 %v7201_v1, %v13333_v51  ;;  %v5528_v38 = vmul.f32 %v7167_v20, %v13333_v51  ;;  %v5795_v42 = vsel %vm5299_vm10, %v5767_v49, 0.0 }
 0x382   : > { %v5361_v36 = vld [vmem:[#allocation4 + $0xe0] ss:$2 sm:$0xff]  ;;  %v5395_v55 = vld [vmem:[#allocation4 + $0xe1] ss:$2 sm:$0xff]  ;;  %5330 = vst.msk [vmem:[#allocation4 + $0xf0] sm:$0xff] %vm5299_vm10, %v5296_v45  ;;  %v5265_v50 = vmax.f32 %v5197_v19, 0.0  ;;  %v6007_v47 = vmul.f32 %v7268_v7, %v13278_v24  ;;  %v6032_v48 = vadd.f32 %v6031_v43, %v6030_v13  ;;  %v5848_v9 = vmul.f32 %v7235_v62, %v13333_v51 }
 0x383   : > { %v13372_v2 = vmax.f32 %v5361_v36, %v5395_v55  ;;  %v5264_v35 = vmax.f32 %v5192_v58, 0.0  ;;  %v5637_v17 = vsel %vm5299_vm10, %v5608_v28, 0.0  ;;  %v5476_v43 = vsel %vm5299_vm10, %v5447_v52, 0.0  ;;  %v7219_v45 = vld [vmem:[%s14007_s5 + $0x290] sm:$0xff]  ;;  %v7270_v58 = vld [vmem:[%s14007_s5 + $0x428] sm:$0xff] }
 0x384   : > { %v5298_v13 = vmax.f32 %v5262_v11, %v5265_v50  ;;  %v5717_v37 = vsel %vm5299_vm10, %v5688_v63, 0.0  ;;  %v5557_v5 = vsel %vm5299_vm10, %v5528_v38, 0.0  ;;  %v5768_v19 = vmul.f32 %v7218_v61, %v13333_v51  ;;  %v7269_v11 = vld [vmem:[%s14007_s5 + $0x420] sm:$0xff] }
 0x385   : > { %v5297_v41 = vmax.f32 %v5261_v8, %v5264_v35  ;;  %v5609_v1 = vmul.f32 %v7185_v46, %v13372_v2  ;;  %v5448_v20 = vmul.f32 %v5431_v12, %v13372_v2  ;;  %v5689_v49 = vmul.f32 %v7202_v39, %v13372_v2  ;;  %v7187_v35 = vld [vmem:[%s14007_s5 + $0x190] sm:$0xf] }
 0x386   : > { %5332 = vst.msk [vmem:[#allocation4 + $0x100] sm:$0xff] %vm5299_vm10, %v5298_v13  ;;  %v5529_v15 = vmul.f32 %v7168_v3, %v13372_v2  ;;  %v5849_v7 = vmul.f32 %v7236_v53, %v13372_v2  ;;  %v5796_v8 = vadd.f32 %v5795_v42, %v13295_v59  ;;  %v5638_v56 = vadd.f32 %v5637_v17, %v5636_v31  ;;  %v7251_v42 = vld [vmem:[%s14007_s5 + $0x390] sm:$0xff]  ;;  %v5433_v17 = vld [vmem:[%s14007_s5 + $0x80] sm:$0xf]  ;;  %v7252_v13 = vld [vmem:[%s14007_s5 + $0x398] sm:$0xff] }
 0x387   : > { %5331 = vst.msk [vmem:[#allocation4 + $0xf8] sm:$0xff] %vm5299_vm10, %v5297_v41  ;;  %v5639_v28 = vsel %vm5299_vm10, %v5609_v1, 0.0  ;;  %v5477_v52 = vadd.f32 %v5476_v43, %v5475_v23  ;;  %v5478_v62 = vsel %vm5299_vm10, %v5448_v20, 0.0  ;;  %v5718_v46 = vadd.f32 %v5717_v37, %v5716_v27  ;;  %v7253_v43 = vld [vmem:[%s14007_s5 + $0x3a0] sm:$0xff]  ;;  %v7186_v37 = vld [vmem:[%s14007_s5 + $0x188] sm:$0xff] }
 0x388   : > { %v5719_v59 = vsel %vm5299_vm10, %v5689_v49, 0.0  ;;  %v5558_v12 = vadd.f32 %v5557_v5, %v5556_v40  ;;  %v5877_v39 = vsel %vm5299_vm10, %v5848_v9, 0.0  ;;  %v13410_v31 = vadd.f32 %v5639_v28, %v5638_v56  ;;  %v7250_v40 = vld [vmem:[%s14007_s5 + $0x388] sm:$0xff] }
 0x389   : > { %v13412_v63 = vadd.f32 %v5478_v62, %v5477_v52  ;;  %v5559_v23 = vsel %vm5299_vm10, %v5529_v15, 0.0  ;;  %v5769_v38 = vmul.f32 %v7219_v45, %v13372_v2  ;;  %v5879_v36 = vsel %vm5299_vm10, %v5849_v7, 0.0  ;;  %v7170_v5 = vld [vmem:[%s14007_s5 + $0x108] sm:$0xf] }
 0x38a   : > { %v5797_v55 = vsel %vm5299_vm10, %v5768_v19, 0.0  ;;  %v6008_v50 = vmul.f32 %v7269_v11, %v13333_v51  ;;  %v6009_v27 = vmul.f32 %v7270_v58, %v13372_v2  ;;  %v5878_v3 = vadd.f32 %v5877_v39, %v13346_v0  ;;  %v5432_v0 = vld [vmem:[%s14007_s5 + $0x78] sm:$0xff] }
 0x38b   : > { %v5799_v53 = vsel %vm5299_vm10, %v5769_v38, 0.0  ;;  %v6034_v9 = vadd.f32 %v13316_v57, %v6032_v48  ;;  %v6035_v61 = vsel %vm5299_vm10, %v6007_v47, 0.0  ;;  %v7203_v57 = vld [vmem:[%s14007_s5 + $0x210] sm:$0xff]  ;;  %v7204_v47 = vld [vmem:[%s14007_s5 + $0x218] sm:$0xf]  ;;  %v5720_v48 = vadd.f32 %v5719_v59, %v5718_v46 }
 0x38c   : > { %v5798_v41 = vadd.f32 %v5797_v55, %v5796_v8  ;;  %v6037_v1 = vsel %vm5299_vm10, %v6008_v50, 0.0  ;;  %v13459_v20 = vsel %vm5299_vm10, %v6009_v27, 0.0  ;;  %v5560_v7 = vadd.f32 %v5559_v23, %v5558_v12  ;;  %v7169_v8 = vld [vmem:[%s14007_s5 + $0x100] sm:$0xff] }
 0x38d   : > { %v5365_v49 = vld [vmem:[#allocation4 + $0x100] ss:$2 sm:$0xf]  ;;  %v5399_v15 = vld [vmem:[#allocation4 + $0x101] ss:$2 sm:$0xf]  ;;  %v5880_v45 = vadd.f32 %v5879_v36, %v5878_v3  ;;  %v6036_v19 = vadd.f32 %v6035_v61, %v6034_v9  ;;  %v13462_v56 = vmul.f32 %v7250_v40, %v13205_v30  ;;  %v13470_v58 = vmul.f32 %v7251_v42, %v13278_v24 }
 0x38e   : > { %v13464_v28 = vmax.f32 %v5365_v49, %v5399_v15  ;;  %v5363_v52 = vld [vmem:[#allocation4 + $0xf0] ss:$2 sm:$0xff]  ;;  %v5397_v62 = vld [vmem:[#allocation4 + $0xf1] ss:$2 sm:$0xff]  ;;  %v5800_v11 = vadd.f32 %v5799_v53, %v5798_v41  ;;  %v13473_v46 = vmul.f32 %v7252_v13, %v13333_v51  ;;  %v13478_v39 = vmul.f32 %v7253_v43, %v13372_v2 }
 0x38f   : > { %v13475_v59 = vmax.f32 %v5363_v52, %v5397_v62  ;;  %v6038_v12 = vadd.f32 %v6037_v1, %v6036_v19  ;;  %v13482_v23 = vsel %vm5299_vm10, %v13203_v44, 0.0  ;;  %v7237_v44 = vld [vmem:[%s14007_s5 + $0x320] sm:$0xff] }
 0x390   : > { %v5611_v38 = vmul.f32 %v7187_v35, %v13464_v28  ;;  %v5450_v36 = vmul.f32 %v5433_v17, %v13464_v28  ;;  %v5691_v55 = vmul.f32 %v7204_v47, %v13464_v28  ;;  %v5531_v50 = vmul.f32 %v7170_v5, %v13464_v28  ;;  %v7238_v35 = vld [vmem:[%s14007_s5 + $0x328] sm:$0xf]  ;;  %v7220_v17 = vld [vmem:[%s14007_s5 + $0x298] sm:$0xff]  ;;  %v7221_v43 = vld [vmem:[%s14007_s5 + $0x2a0] sm:$0xf] }
 0x391   : > { %v5610_v27 = vmul.f32 %v7186_v37, %v13475_v59  ;;  %v5449_v40 = vmul.f32 %v5432_v0, %v13475_v59  ;;  %v5690_v42 = vmul.f32 %v7203_v57, %v13475_v59  ;;  %v5530_v3 = vmul.f32 %v7169_v8, %v13475_v59 }
 0x392   : > { %v5643_v53 = vsel %vm5482_vm11, %v5611_v38, 0.0  ;;  %v5483_v9 = vsel %vm5482_vm11, %v5450_v36, 0.0  ;;  %v5723_v61 = vsel %vm5482_vm11, %v5691_v55, 0.0  ;;  %v5563_v13 = vsel %vm5482_vm11, %v5531_v50, 0.0 }
 0x393   : > { %v5641_v37 = vsel %vm5299_vm10, %v5610_v27, 0.0  ;;  %v5480_v0 = vsel %vm5299_vm10, %v5449_v40, 0.0  ;;  %v5721_v57 = vsel %vm5299_vm10, %v5690_v42, 0.0  ;;  %v5561_v47 = vsel %vm5299_vm10, %v5530_v3, 0.0 }
 0x394   : > { %v5642_v5 = vadd.f32 %v5641_v37, %v13410_v31  ;;  %v5481_v41 = vadd.f32 %v5480_v0, %v13412_v63  ;;  %v5722_v1 = vadd.f32 %v5721_v57, %v5720_v48  ;;  %v5562_v49 = vadd.f32 %v5561_v47, %v5560_v7  ;;  %v7271_v31 = vld [vmem:[%s14007_s5 + $0x430] sm:$0xff]  ;;  %v7272_v63 = vld [vmem:[%s14007_s5 + $0x438] sm:$0xf] }
 0x395   : > { %v5850_v15 = vmul.f32 %v7237_v44, %v13475_v59  ;;  %v5851_v19 = vmul.f32 %v7238_v35, %v13464_v28  ;;  %v5770_v52 = vmul.f32 %v7220_v17, %v13475_v59  ;;  %v5771_v62 = vmul.f32 %v7221_v43, %v13464_v28 }
 0x396   : > { %v5644_v8 = vadd.f32 %v5643_v53, %v5642_v5  ;;  %v5484_v38 = vadd.f32 %v5483_v9, %v5481_v41  ;;  %v5724_v36 = vadd.f32 %v5723_v61, %v5722_v1  ;;  %v5564_v55 = vadd.f32 %v5563_v13, %v5562_v49 }
 0x397   : > { %v5881_v48 = vsel %vm5299_vm10, %v5850_v15, 0.0  ;;  %v5883_v7 = vsel %vm5482_vm11, %v5851_v19, 0.0  ;;  %v5801_v50 = vsel %vm5299_vm10, %v5770_v52, 0.0  ;;  %v5803_v27 = vsel %vm5482_vm11, %v5771_v62, 0.0 }
 0x398   : > { %v5645_v40 = vrot.slane %v5644_v8, 4  ;;  %v5485_v42 = vrot.slane %v5484_v38, 4  ;;  %v5725_v3 = vrot.slane %v5724_v36, 4  ;;  %v5565_v44 = vrot.slane %v5564_v55, 4 }
 0x399   : > { %v5882_v35 = vadd.f32 %v5881_v48, %v5880_v45  ;;  %v5802_v17 = vadd.f32 %v5801_v50, %v5800_v11  ;;  %v6010_v53 = vmul.f32 %v7271_v31, %v13475_v59  ;;  %v6011_v9 = vmul.f32 %v7272_v63, %v13464_v28 }
 0x39a   : > { %v5646_v61 = vadd.f32 %v5645_v40, %v5644_v8  ;;  %v5486_v13 = vadd.f32 %v5485_v42, %v5484_v38  ;;  %v5726_v43 = vadd.f32 %v5725_v3, %v5724_v36  ;;  %v5566_v37 = vadd.f32 %v5565_v44, %v5564_v55 }
 0x39b   : > { %v5884_v0 = vadd.f32 %v5883_v7, %v5882_v35  ;;  %v5804_v57 = vadd.f32 %v5803_v27, %v5802_v17  ;;  %v6040_v47 = vadd.f32 %v13459_v20, %v6038_v12  ;;  %v6041_v5 = vsel %vm5299_vm10, %v6010_v53, 0.0 }
 0x39c   : > { %v5647_v41 = vrot.slane %v5646_v61, 2  ;;  %v5487_v1 = vrot.slane %v5486_v13, 2  ;;  %v5727_v49 = vrot.slane %v5726_v43, 2  ;;  %v5567_v15 = vrot.slane %v5566_v37, 2 }
 0x39d   : > { %v5885_v45 = vrot.slane %v5884_v0, 4  ;;  %v5805_v11 = vrot.slane %v5804_v57, 4  ;;  %v6042_v19 = vadd.f32 %v6041_v5, %v6040_v47  ;;  %v6043_v52 = vsel %vm5482_vm11, %v6011_v9, 0.0 }
 0x39e   : > { %v5648_v62 = vadd.f32 %v5647_v41, %v5646_v61  ;;  %v5488_v8 = vadd.f32 %v5487_v1, %v5486_v13  ;;  %v5728_v38 = vadd.f32 %v5727_v49, %v5726_v43  ;;  %v5568_v36 = vadd.f32 %v5567_v15, %v5566_v37  ;;  %v7299_v41 = vld [vmem:[%s14007_s5 + $0x510] sm:$0xff]  ;;  %v7300_v1 = vld [vmem:[%s14007_s5 + $0x518] sm:$0xff] }
 0x39f   : > { %v5886_v55 = vadd.f32 %v5885_v45, %v5884_v0  ;;  %v5806_v31 = vadd.f32 %v5805_v11, %v5804_v57  ;;  %v6044_v63 = vadd.f32 %v6043_v52, %v6042_v19  ;;  %v5951_v20 = vsel %vm5299_vm10, %v13331_v60, 0.0  ;;  %v7254_v60 = vld [vmem:[%s14007_s5 + $0x3a8] sm:$0xff]  ;;  %v7301_v11 = vld [vmem:[%s14007_s5 + $0x520] sm:$0xff] }
 0x3a0   : > { %v5649_v12 = vrot.slane %v5648_v62, 1  ;;  %v5489_v48 = vrot.slane %v5488_v8, 1  ;;  %v5729_v7 = vrot.slane %v5728_v38, 1  ;;  %v5569_v50 = vrot.slane %v5568_v36, 1 }
 0x3a1   : > { %v5887_v27 = vrot.slane %v5886_v55, 2  ;;  %v5807_v40 = vrot.slane %v5806_v31, 2  ;;  %v6045_v42 = vrot.slane %v6044_v63, 4  ;;  %v5950_v3 = vadd.f32 %v13482_v23, %v13108_v6 }
 0x3a2   : > { %v5650_v44 = vadd.f32 %v5649_v12, %v5648_v62  ;;  %v5490_v35 = vadd.f32 %v5489_v48, %v5488_v8  ;;  %v5730_v17 = vadd.f32 %v5729_v7, %v5728_v38  ;;  %v5953_v53 = vsel %vm5299_vm10, %v13462_v56, 0.0  ;;  %v7303_v48 = vld [vmem:[%s14007_s5 + $0x530] sm:$0xff]  ;;  %v7304_v7 = vld [vmem:[%s14007_s5 + $0x538] sm:$0xff] }
 0x3a3   : > { %v5888_v9 = vadd.f32 %v5887_v27, %v5886_v55  ;;  %v5808_v61 = vadd.f32 %v5807_v40, %v5806_v31  ;;  %v6046_v13 = vadd.f32 %v6045_v42, %v6044_v63  ;;  %v5952_v43 = vadd.f32 %v5951_v20, %v5950_v3 }
 0x3a4   : > { %v5651_v37 = vsel %vm5299_vm10, %v5650_v44, 0.0  ;;  %v5491_v0 = vsel %vm5299_vm10, %v5490_v35, 0.0  ;;  %v5570_v57 = vadd.f32 %v5569_v50, %v5568_v36  ;;  %v5955_v6 = vsel %vm5299_vm10, %v13470_v58, 0.0  ;;  %v7255_v58 = vld [vmem:[%s14007_s5 + $0x3b0] sm:$0xf]  ;;  %v7302_v36 = vld [vmem:[%s14007_s5 + $0x528] sm:$0xff] }
 0x3a5   : > { %5652 = vadd.xlane.f32.xlu1 %v5651_v37  ;;  %5492 = vadd.xlane.f32.xlu0 %v5491_v0  ;;  %v5889_v23 = vrot.slane %v5888_v9, 1  ;;  %v5809_v56 = vrot.slane %v5808_v61, 1  ;;  %v6047_v47 = vrot.slane %v6046_v13, 2  ;;  %v5954_v5 = vadd.f32 %v5953_v53, %v5952_v43  ;;  %v7305_v35 = vld [vmem:[%s14007_s5 + $0x540] sm:$0xff]  ;;  %v7284_v0 = vld [vmem:[%s14007_s5 + $0x498] sm:$0xff] }
 0x3a6   : > { %v5731_v49 = vsel %vm5299_vm10, %v5730_v17, 0.0  ;;  %v5930_v15 = vmul.f32 %v7254_v60, %v13475_v59  ;;  %v5957_v45 = vsel %vm5299_vm10, %v13473_v46, 0.0  ;;  %v6267_v19 = vsel %vm5299_vm10, %v13142_v32, 0.0 }
 0x3a7   : > { %v5890_v52 = vadd.f32 %v5889_v23, %v5888_v9  ;;  %v5810_v62 = vadd.f32 %v5809_v56, %v5808_v61  ;;  %v6048_v8 = vadd.f32 %v6047_v47, %v6046_v13  ;;  %v5956_v38 = vadd.f32 %v5955_v6, %v5954_v5  ;;  %v7282_v9 = vld [vmem:[%s14007_s5 + $0x488] sm:$0xff] }
 0x3a8   : > { %v5571_v55 = vsel %vm5299_vm10, %v5570_v57, 0.0  ;;  %v5959_v46 = vsel %vm5299_vm10, %v13478_v39, 0.0  ;;  %v6164_v31 = vmul.f32 %v7299_v41, %v13093_v54  ;;  %v6165_v63 = vmul.f32 %v7300_v1, %v13161_v21  ;;  %v7306_v13 = vld [vmem:[%s14007_s5 + $0x548] sm:$0xf] }
 0x3a9   : > { %5732 = vadd.xlane.f32.xlu1 %v5731_v49  ;;  %5572 = vadd.xlane.f32.xlu0 %v5571_v55  ;;  %v6049_v32 = vrot.slane %v6048_v8, 1  ;;  %v5931_v20 = vmul.f32 %v7255_v58, %v13464_v28  ;;  %v5958_v12 = vadd.f32 %v5957_v45, %v5956_v38  ;;  %v6166_v39 = vmul.f32 %v7301_v11, %v13205_v30 }
 0x3aa   : > { %v5891_v50 = vsel %vm5299_vm10, %v5890_v52, 0.0  ;;  %v5961_v27 = vsel %vm5299_vm10, %v5930_v15, 0.0  ;;  %v6167_v40 = vmul.f32 %v7302_v36, %v13278_v24  ;;  %v13584_v42 = vadd.f32 %v6267_v19, %v13052_v34  ;;  %v7283_v34 = vld [vmem:[%s14007_s5 + $0x490] sm:$0xff] }
 0x3ab   : > { %v5811_v3 = vsel %vm5299_vm10, %v5810_v62, 0.0  ;;  %v5960_v44 = vadd.f32 %v5959_v46, %v5958_v12  ;;  %v6189_v17 = vsel %vm5299_vm10, %v6164_v31, 0.0  ;;  %v6191_v53 = vsel %vm5299_vm10, %v6165_v63, 0.0  ;;  %v7333_v31 = vld [vmem:[%s14007_s5 + $0x620] sm:$0xff]  ;;  %v7334_v63 = vld [vmem:[%s14007_s5 + $0x628] sm:$0xff]  ;;  %v7288_v12 = vld [vmem:[%s14007_s5 + $0x4b8] sm:$0xff] }
 0x3ac   : > { %v6050_v61 = vadd.f32 %v6049_v32, %v6048_v8  ;;  %v6168_v60 = vmul.f32 %v7303_v48, %v13333_v51  ;;  %v6169_v43 = vmul.f32 %v7304_v7, %v13372_v2  ;;  %v6190_v37 = vadd.f32 %v6189_v17, %v13114_v4  ;;  %v7285_v4 = vld [vmem:[%s14007_s5 + $0x4a0] sm:$0xff]  ;;  %v7287_v8 = vld [vmem:[%s14007_s5 + $0x4b0] sm:$0xff] }
 0x3ad   : > { %5892 = vadd.xlane.f32.xlu1 %v5891_v50  ;;  %5812 = vadd.xlane.f32.xlu0 %v5811_v3  ;;  %v5962_v57 = vadd.f32 %v5961_v27, %v5960_v44  ;;  %v5963_v6 = vsel %vm5482_vm11, %v5931_v20, 0.0  ;;  %v6193_v23 = vsel %vm5299_vm10, %v6166_v39, 0.0  ;;  %v13611_v56 = vsel %vm5299_vm10, %v13145_v29, 0.0  ;;  %v7286_v29 = vld [vmem:[%s14007_s5 + $0x4a8] sm:$0xff]  ;;  %v7335_v39 = vld [vmem:[%s14007_s5 + $0x630] sm:$0xff] }
 0x3ae   : > { %v6170_v47 = vmul.f32 %v7305_v35, %v13475_v59  ;;  %v6192_v5 = vadd.f32 %v6191_v53, %v6190_v37  ;;  %v6084_v41 = vmul.f32 %v7282_v9, %v13093_v54  ;;  %v6085_v1 = vmul.f32 %v7283_v34, %v13161_v21 }
 0x3af   : > { %v5964_v49 = vadd.f32 %v5963_v6, %v5962_v57  ;;  %v6171_v58 = vmul.f32 %v7306_v13, %v13464_v28  ;;  %v6195_v15 = vsel %vm5299_vm10, %v6167_v40, 0.0  ;;  %v6086_v45 = vmul.f32 %v7284_v0, %v13205_v30  ;;  %v7289_v40 = vld [vmem:[%s14007_s5 + $0x4c0] sm:$0xf] }
 0x3b0   : > { %v6051_v11 = vsel %vm5299_vm10, %v6050_v61, 0.0  ;;  %v6194_v19 = vadd.f32 %v6193_v23, %v6192_v5  ;;  %v6197_v52 = vsel %vm5299_vm10, %v6168_v60, 0.0  ;;  %v6199_v62 = vsel %vm5299_vm10, %v6169_v43, 0.0  ;;  %v7337_v6 = vld [vmem:[%s14007_s5 + $0x640] sm:$0xff] }
 0x3b1   : > { %6052 = vadd.xlane.f32.xlu1 %v6051_v11  ;;  %v5965_v38 = vrot.slane %v5964_v49, 4  ;;  %v6087_v36 = vmul.f32 %v7285_v4, %v13278_v24  ;;  %v6109_v55 = vsel %vm5299_vm10, %v6084_v41, 0.0  ;;  %v6111_v46 = vsel %vm5299_vm10, %v6085_v1, 0.0 }
 0x3b2   : > { %v6196_v32 = vadd.f32 %v6195_v15, %v6194_v19  ;;  %v6201_v20 = vsel %vm5299_vm10, %v6170_v47, 0.0  ;;  %v6088_v48 = vmul.f32 %v7286_v29, %v13333_v51  ;;  %v6110_v7 = vadd.f32 %v6109_v55, %v13126_v25  ;;  %v7336_v25 = vld [vmem:[%s14007_s5 + $0x638] sm:$0xff]  ;;  %v7338_v47 = vld [vmem:[%s14007_s5 + $0x648] sm:$0xff] }
 0x3b3   : > { %v5966_v50 = vadd.f32 %v5965_v38, %v5964_v49  ;;  %v6203_v27 = vsel %vm5482_vm11, %v6171_v58, 0.0  ;;  %v6089_v3 = vmul.f32 %v7287_v8, %v13372_v2  ;;  %v6113_v44 = vsel %vm5299_vm10, %v6086_v45, 0.0  ;;  %v7316_v29 = vld [vmem:[%s14007_s5 + $0x598] sm:$0xff]  ;;  %v7317_v45 = vld [vmem:[%s14007_s5 + $0x5a0] sm:$0xff] }
 0x3b4   : > { %v6198_v35 = vadd.f32 %v6197_v52, %v6196_v32  ;;  %v6112_v17 = vadd.f32 %v6111_v46, %v6110_v7  ;;  %v6324_v53 = vmul.f32 %v7333_v31, %v13093_v54  ;;  %v6325_v9 = vmul.f32 %v7334_v63, %v13161_v21  ;;  %v7318_v46 = vld [vmem:[%s14007_s5 + $0x5a8] sm:$0xff]  ;;  %v7340_v63 = vld [vmem:[%s14007_s5 + $0x658] sm:$0xf] }
 0x3b5   : > { %v5967_v34 = vrot.slane %v5966_v50, 2  ;;  %v6090_v61 = vmul.f32 %v7288_v12, %v13475_v59  ;;  %v6115_v13 = vsel %vm5299_vm10, %v6087_v36, 0.0  ;;  %v6326_v60 = vmul.f32 %v7335_v39, %v13205_v30 }
 0x3b6   : > { %v6200_v43 = vadd.f32 %v6199_v62, %v6198_v35  ;;  %v6091_v37 = vmul.f32 %v7289_v40, %v13464_v28  ;;  %v6114_v0 = vadd.f32 %v6113_v44, %v6112_v17  ;;  %v6117_v57 = vsel %vm5299_vm10, %v6088_v48, 0.0 }
 0x3b7   : > { %v5968_v23 = vadd.f32 %v5967_v34, %v5966_v50  ;;  %v6327_v5 = vmul.f32 %v7336_v25, %v13278_v24  ;;  %v6349_v4 = vsel %vm5299_vm10, %v6324_v53, 0.0  ;;  %v6351_v41 = vsel %vm5299_vm10, %v6325_v9, 0.0  ;;  %v7320_v34 = vld [vmem:[%s14007_s5 + $0x5b8] sm:$0xff] }
 0x3b8   : > { %v6202_v1 = vadd.f32 %v6201_v20, %v6200_v43  ;;  %v6116_v49 = vadd.f32 %v6115_v13, %v6114_v0  ;;  %v6119_v58 = vsel %vm5299_vm10, %v6089_v3, 0.0  ;;  %v6350_v15 = vadd.f32 %v6349_v4, %v13139_v26  ;;  %v7339_v26 = vld [vmem:[%s14007_s5 + $0x650] sm:$0xff] }
 0x3b9   : > { %v5969_v11 = vrot.slane %v5968_v23, 1  ;;  %v6121_v19 = vsel %vm5299_vm10, %v6090_v61, 0.0  ;;  %v6328_v52 = vmul.f32 %v7337_v6, %v13333_v51  ;;  %v6353_v62 = vsel %vm5299_vm10, %v6326_v60, 0.0  ;;  %v7321_v61 = vld [vmem:[%s14007_s5 + $0x5c0] sm:$0xff] }
 0x3ba   : > { %v6204_v8 = vadd.f32 %v6203_v27, %v6202_v1  ;;  %v6118_v38 = vadd.f32 %v6117_v57, %v6116_v49  ;;  %v6329_v36 = vmul.f32 %v7338_v47, %v13372_v2  ;;  %v6352_v55 = vadd.f32 %v6351_v41, %v6350_v15  ;;  %v7319_v27 = vld [vmem:[%s14007_s5 + $0x5b0] sm:$0xff] }
 0x3bb   : > { %v5970_v31 = vadd.f32 %v5969_v11, %v5968_v23  ;;  %v6355_v32 = vsel %vm5299_vm10, %v6327_v5, 0.0  ;;  %v6244_v20 = vmul.f32 %v7316_v29, %v13093_v54  ;;  %v6245_v12 = vmul.f32 %v7317_v45, %v13161_v21  ;;  %v7367_v47 = vld [vmem:[%s14007_s5 + $0x730] sm:$0xff]  ;;  %v7368_v5 = vld [vmem:[%s14007_s5 + $0x738] sm:$0xff]  ;;  %v7369_v11 = vld [vmem:[%s14007_s5 + $0x740] sm:$0xff] }
 0x3bc   : > { %v6205_v48 = vrot.slane %v6204_v8, 4  ;;  %v6120_v7 = vadd.f32 %v6119_v58, %v6118_v38  ;;  %v6123_v39 = vsel %vm5482_vm11, %v6091_v37, 0.0  ;;  %v6354_v50 = vadd.f32 %v6353_v62, %v6352_v55 }
 0x3bd   : > { %v5971_v40 = vsel %vm5299_vm10, %v5970_v31, 0.0  ;;  %v6330_v3 = vmul.f32 %v7339_v26, %v13475_v59  ;;  %v6357_v44 = vsel %vm5299_vm10, %v6328_v52, 0.0  ;;  %v6246_v35 = vmul.f32 %v7318_v46, %v13205_v30  ;;  %v7370_v46 = vld [vmem:[%s14007_s5 + $0x748] sm:$0xff] }
 0x3be   : > { %5972 = vadd.xlane.f32.xlu0 %v5971_v40  ;;  %v6206_v17 = vadd.f32 %v6205_v48, %v6204_v8  ;;  %v6122_v25 = vadd.f32 %v6121_v19, %v6120_v7  ;;  %v6331_v53 = vmul.f32 %v7340_v63, %v13464_v28  ;;  %v6356_v9 = vadd.f32 %v6355_v32, %v6354_v50 }
 0x3bf   : > { %v6359_v13 = vsel %vm5299_vm10, %v6329_v36, 0.0  ;;  %v6247_v60 = vmul.f32 %v7319_v27, %v13278_v24  ;;  %v6269_v43 = vsel %vm5299_vm10, %v6244_v20, 0.0  ;;  %v6271_v37 = vsel %vm5299_vm10, %v6245_v12, 0.0  ;;  %v7371_v27 = vld [vmem:[%s14007_s5 + $0x750] sm:$0xff] }
 0x3c0   : > { %v6207_v0 = vrot.slane %v6206_v17, 2  ;;  %v6124_v57 = vadd.f32 %v6123_v39, %v6122_v25  ;;  %v6358_v6 = vadd.f32 %v6357_v44, %v6356_v9  ;;  %v6270_v23 = vadd.f32 %v6269_v43, %v13584_v42  ;;  %v7322_v42 = vld [vmem:[%s14007_s5 + $0x5c8] sm:$0xff]  ;;  %v7323_v39 = vld [vmem:[%s14007_s5 + $0x5d0] sm:$0xf] }
 0x3c1   : > { %v6361_v4 = vsel %vm5299_vm10, %v6330_v3, 0.0  ;;  %v6248_v41 = vmul.f32 %v7320_v34, %v13333_v51  ;;  %v6249_v1 = vmul.f32 %v7321_v61, %v13372_v2  ;;  %v6273_v49 = vsel %vm5299_vm10, %v6246_v35, 0.0  ;;  %v7372_v34 = vld [vmem:[%s14007_s5 + $0x758] sm:$0xff]  ;;  %v7349_v61 = vld [vmem:[%s14007_s5 + $0x6a0] sm:$0xff]  ;;  %v7350_v43 = vld [vmem:[%s14007_s5 + $0x6a8] sm:$0xff] }
 0x3c2   : > { %v6208_v58 = vadd.f32 %v6207_v0, %v6206_v17  ;;  %v6125_v15 = vrot.slane %v6124_v57, 4  ;;  %v6360_v29 = vadd.f32 %v6359_v13, %v6358_v6  ;;  %v6272_v45 = vadd.f32 %v6271_v37, %v6270_v23  ;;  %v7373_v6 = vld [vmem:[%s14007_s5 + $0x760] sm:$0xff] }
 0x3c3   : > { %v6363_v19 = vsel %vm5482_vm11, %v6331_v53, 0.0  ;;  %v6275_v52 = vsel %vm5299_vm10, %v6247_v60, 0.0  ;;  %v6484_v62 = vmul.f32 %v7367_v47, %v13093_v54  ;;  %v6485_v8 = vmul.f32 %v7368_v5, %v13161_v21  ;;  %v7351_v47 = vld [vmem:[%s14007_s5 + $0x6b0] sm:$0xff] }
 0x3c4   : > { %v6209_v38 = vrot.slane %v6208_v58, 1  ;;  %v6126_v26 = vadd.f32 %v6125_v15, %v6124_v57  ;;  %v6362_v36 = vadd.f32 %v6361_v4, %v6360_v29  ;;  %v6274_v55 = vadd.f32 %v6273_v49, %v6272_v45  ;;  %v7352_v29 = vld [vmem:[%s14007_s5 + $0x6b8] sm:$0xff] }
 0x3c5   : > { %v6250_v31 = vmul.f32 %v7322_v42, %v13475_v59  ;;  %v6277_v63 = vsel %vm5299_vm10, %v6248_v41, 0.0  ;;  %v6279_v32 = vsel %vm5299_vm10, %v6249_v1, 0.0  ;;  %v6486_v20 = vmul.f32 %v7369_v11, %v13205_v30 }
 0x3c6   : > { %v6210_v12 = vadd.f32 %v6209_v38, %v6208_v58  ;;  %v6127_v48 = vrot.slane %v6126_v26, 2  ;;  %v6364_v7 = vadd.f32 %v6363_v19, %v6362_v36  ;;  %v6276_v50 = vadd.f32 %v6275_v52, %v6274_v55  ;;  %v7353_v55 = vld [vmem:[%s14007_s5 + $0x6c0] sm:$0xff] }
 0x3c7   : > { %v6487_v40 = vmul.f32 %v7370_v46, %v13278_v24  ;;  %v6508_v3 = vadd.f32 %v13611_v56, %v12937_v33  ;;  %v6509_v44 = vsel %vm5299_vm10, %v6484_v62, 0.0  ;;  %v6511_v35 = vsel %vm5299_vm10, %v6485_v8, 0.0 }
 0x3c8   : > { %v6211_v17 = vsel %vm5299_vm10, %v6210_v12, 0.0  ;;  %v6128_v25 = vadd.f32 %v6127_v48, %v6126_v26  ;;  %v6365_v53 = vrot.slane %v6364_v7, 4  ;;  %v6278_v9 = vadd.f32 %v6277_v63, %v6276_v50  ;;  %v7374_v26 = vld [vmem:[%s14007_s5 + $0x768] sm:$0xf]  ;;  %v7400_v50 = vld [vmem:[%s14007_s5 + $0x838] sm:$0xff] }
 0x3c9   : > { %6212 = vadd.xlane.f32.xlu1 %v6211_v17  ;;  %v6251_v33 = vmul.f32 %v7323_v39, %v13464_v28  ;;  %v6281_v56 = vsel %vm5299_vm10, %v6250_v31, 0.0  ;;  %v6488_v13 = vmul.f32 %v7371_v27, %v13333_v51  ;;  %v6510_v60 = vadd.f32 %v6509_v44, %v6508_v3  ;;  %v7354_v48 = vld [vmem:[%s14007_s5 + $0x6c8] sm:$0xff] }
 0x3ca   : > { %v6129_v37 = vrot.slane %v6128_v25, 1  ;;  %v6366_v0 = vadd.f32 %v6365_v53, %v6364_v7  ;;  %v6280_v57 = vadd.f32 %v6279_v32, %v6278_v9  ;;  %v6513_v23 = vsel %vm5299_vm10, %v6486_v20, 0.0  ;;  %v7355_v53 = vld [vmem:[%s14007_s5 + $0x6d0] sm:$0xff] }
 0x3cb   : > { %v6489_v5 = vmul.f32 %v7372_v34, %v13372_v2  ;;  %v6512_v4 = vadd.f32 %v6511_v35, %v6510_v60  ;;  %v6515_v41 = vsel %vm5299_vm10, %v6487_v40, 0.0  ;;  %v6403_v1 = vmul.f32 %v7349_v61, %v12985_v16  ;;  %v7401_v35 = vld [vmem:[%s14007_s5 + $0x840] sm:$0xff]  ;;  %v7402_v34 = vld [vmem:[%s14007_s5 + $0x848] sm:$0xff] }
 0x3cc   : > { %v6130_v49 = vadd.f32 %v6129_v37, %v6128_v25  ;;  %v6367_v58 = vrot.slane %v6366_v0, 2  ;;  %v6282_v15 = vadd.f32 %v6281_v56, %v6280_v57  ;;  %v6404_v42 = vmul.f32 %v7350_v43, %v13093_v54  ;;  %v7403_v57 = vld [vmem:[%s14007_s5 + $0x850] sm:$0xff] }
 0x3cd   : > { %v6283_v45 = vsel %vm5482_vm11, %v6251_v33, 0.0  ;;  %v6490_v11 = vmul.f32 %v7373_v6, %v13475_v59  ;;  %v6514_v19 = vadd.f32 %v6513_v23, %v6512_v4  ;;  %v6405_v52 = vmul.f32 %v7351_v47, %v13161_v21  ;;  %v7356_v33 = vld [vmem:[%s14007_s5 + $0x6d8] sm:$0xff] }
 0x3ce   : > { %v6131_v62 = vsel %vm5299_vm10, %v6130_v49, 0.0  ;;  %v6368_v8 = vadd.f32 %v6367_v58, %v6366_v0  ;;  %v6284_v38 = vadd.f32 %v6283_v45, %v6282_v15  ;;  %v6517_v36 = vsel %vm5299_vm10, %v6488_v13, 0.0  ;;  %v7404_v15 = vld [vmem:[%s14007_s5 + $0x858] sm:$0xff] }
 0x3cf   : > { %6132 = vadd.xlane.f32.xlu0 %v6131_v62  ;;  %v6516_v46 = vadd.f32 %v6515_v41, %v6514_v19  ;;  %v6519_v31 = vsel %vm5299_vm10, %v6489_v5, 0.0  ;;  %v6406_v63 = vmul.f32 %v7352_v29, %v13205_v30  ;;  %v6427_v32 = vsel %vm5299_vm10, %v6403_v1, 0.0 }
 0x3d0   : > { %v6369_v20 = vrot.slane %v6368_v8, 1  ;;  %v6285_v12 = vrot.slane %v6284_v38, 4  ;;  %v6428_v7 = vadd.f32 %v6427_v32, %v12940_v14  ;;  %v6429_v39 = vsel %vm5299_vm10, %v6404_v42, 0.0  ;;  %v7357_v42 = vld [vmem:[%s14007_s5 + $0x6e0] sm:$0xf] }
 0x3d1   : > { %v6491_v27 = vmul.f32 %v7374_v26, %v13464_v28  ;;  %v6518_v40 = vadd.f32 %v6517_v36, %v6516_v46  ;;  %v6407_v3 = vmul.f32 %v7353_v55, %v13278_v24  ;;  %v6431_v44 = vsel %vm5299_vm10, %v6405_v52, 0.0 }
 0x3d2   : > { %v6370_v17 = vadd.f32 %v6369_v20, %v6368_v8  ;;  %v6286_v25 = vadd.f32 %v6285_v12, %v6284_v38  ;;  %v6521_v14 = vsel %vm5299_vm10, %v6490_v11, 0.0  ;;  %v6430_v9 = vadd.f32 %v6429_v39, %v6428_v7  ;;  %v7405_v8 = vld [vmem:[%s14007_s5 + $0x860] sm:$0xff]  ;;  %v7384_v7 = vld [vmem:[%s14007_s5 + $0x7b8] sm:$0xff] }
 0x3d3   : > { %v6520_v61 = vadd.f32 %v6519_v31, %v6518_v40  ;;  %v6408_v56 = vmul.f32 %v7354_v48, %v13333_v51  ;;  %v6433_v13 = vsel %vm5299_vm10, %v6406_v63, 0.0  ;;  %v6643_v60 = vmul.f32 %v7400_v50, %v12985_v16  ;;  %v7383_v63 = vld [vmem:[%s14007_s5 + $0x7b0] sm:$0xff] }
 0x3d4   : > { %v6371_v43 = vsel %vm5299_vm10, %v6370_v17, 0.0  ;;  %v6287_v37 = vrot.slane %v6286_v25, 2  ;;  %v6432_v0 = vadd.f32 %v6431_v44, %v6430_v9  ;;  %v6644_v6 = vmul.f32 %v7401_v35, %v13093_v54  ;;  %v7407_v17 = vld [vmem:[%s14007_s5 + $0x870] sm:$0xff] }
 0x3d5   : > { %6372 = vadd.xlane.f32.xlu1 %v6371_v43  ;;  %v6522_v23 = vadd.f32 %v6521_v14, %v6520_v61  ;;  %v6409_v47 = vmul.f32 %v7355_v53, %v13372_v2  ;;  %v6435_v5 = vsel %vm5299_vm10, %v6407_v3, 0.0  ;;  %v6645_v4 = vmul.f32 %v7402_v34, %v13161_v21  ;;  %v7385_v3 = vld [vmem:[%s14007_s5 + $0x7c0] sm:$0xff]  ;;  %v7386_v14 = vld [vmem:[%s14007_s5 + $0x7c8] sm:$0xff] }
 0x3d6   : > { %v6288_v41 = vadd.f32 %v6287_v37, %v6286_v25  ;;  %v6523_v1 = vsel %vm5482_vm11, %v6491_v27, 0.0  ;;  %v6410_v49 = vmul.f32 %v7356_v33, %v13475_v59  ;;  %v6434_v58 = vadd.f32 %v6433_v13, %v6432_v0 }
 0x3d7   : > { %v6524_v29 = vadd.f32 %v6523_v1, %v6522_v23  ;;  %v6437_v45 = vsel %vm5299_vm10, %v6408_v56, 0.0  ;;  %v6646_v11 = vmul.f32 %v7403_v57, %v13205_v30  ;;  %v6667_v19 = vsel %vm5299_vm10, %v6643_v60, 0.0  ;;  %v7408_v60 = vld [vmem:[%s14007_s5 + $0x878] sm:$0xf] }
 0x3d8   : > { %v6289_v52 = vrot.slane %v6288_v41, 1  ;;  %v6436_v62 = vadd.f32 %v6435_v5, %v6434_v58  ;;  %v6668_v38 = vadd.f32 %v6667_v19, %v12966_v18  ;;  %v6669_v26 = vsel %vm5299_vm10, %v6644_v6, 0.0  ;;  %v7406_v18 = vld [vmem:[%s14007_s5 + $0x868] sm:$0xff]  ;;  %v7387_v6 = vld [vmem:[%s14007_s5 + $0x7d0] sm:$0xff]  ;;  %v7388_v5 = vld [vmem:[%s14007_s5 + $0x7d8] sm:$0xff] }
 0x3d9   : > { %v6525_v36 = vrot.slane %v6524_v29, 4  ;;  %v6439_v55 = vsel %vm5299_vm10, %v6409_v47, 0.0  ;;  %v6647_v46 = vmul.f32 %v7404_v15, %v13278_v24  ;;  %v6671_v31 = vsel %vm5299_vm10, %v6645_v4, 0.0 }
 0x3da   : > { %v6290_v32 = vadd.f32 %v6289_v52, %v6288_v41  ;;  %v6411_v20 = vmul.f32 %v7357_v42, %v13464_v28  ;;  %v6438_v12 = vadd.f32 %v6437_v45, %v6436_v62  ;;  %v6670_v48 = vadd.f32 %v6669_v26, %v6668_v38  ;;  %v6700_v45 = vld [vmem:[%s14009_s7] sm:$0xff] }
 0x3db   : > { %v6526_v39 = vadd.f32 %v6525_v36, %v6524_v29  ;;  %v6441_v50 = vsel %vm5299_vm10, %v6410_v49, 0.0  ;;  %v6648_v27 = vmul.f32 %v7405_v8, %v13333_v51  ;;  %v6673_v40 = vsel %vm5299_vm10, %v6646_v11, 0.0  ;;  %v6701_v11 = vld [vmem:[%s14009_s7 + $0x8] sm:$0xff] }
 0x3dc   : > { %v6291_v44 = vsel %vm5299_vm10, %v6290_v32, 0.0  ;;  %v6440_v35 = vadd.f32 %v6439_v55, %v6438_v12  ;;  %v6672_v25 = vadd.f32 %v6671_v31, %v6670_v48  ;;  %v6563_v53 = vmul.f32 %v7383_v63, %v12985_v16  ;;  %v7390_v55 = vld [vmem:[%s14007_s5 + $0x7e8] sm:$0xff] }
 0x3dd   : > { %6292 = vadd.xlane.f32.xlu0 %v6291_v44  ;;  %v6527_v9 = vrot.slane %v6526_v39, 2  ;;  %v6649_v34 = vmul.f32 %v7406_v18, %v13372_v2  ;;  %v6675_v61 = vsel %vm5299_vm10, %v6647_v46, 0.0  ;;  %v6564_v33 = vmul.f32 %v7384_v7, %v13093_v54 }
 0x3de   : > { %v6442_v56 = vadd.f32 %v6441_v50, %v6440_v35  ;;  %v6443_v13 = vsel %vm5482_vm11, %v6411_v20, 0.0  ;;  %v6674_v43 = vadd.f32 %v6673_v40, %v6672_v25  ;;  %v6565_v37 = vmul.f32 %v7385_v3, %v13161_v21  ;;  %v7391_v40 = vld [vmem:[%s14007_s5 + $0x7f0] sm:$0xf] }
 0x3df   : > { %v6528_v0 = vadd.f32 %v6527_v9, %v6526_v39  ;;  %v6650_v16 = vmul.f32 %v7407_v17, %v13475_v59  ;;  %v6677_v57 = vsel %vm5299_vm10, %v6648_v27, 0.0  ;;  %v6566_v54 = vmul.f32 %v7386_v14, %v13205_v30 }
 0x3e0   : > { %v6444_v23 = vadd.f32 %v6443_v13, %v6442_v56  ;;  %v6676_v47 = vadd.f32 %v6675_v61, %v6674_v43  ;;  %v6587_v4 = vsel %vm5299_vm10, %v6563_v53, 0.0  ;;  %v6589_v21 = vsel %vm5299_vm10, %v6564_v33, 0.0 }
 0x3e1   : > { %v6529_v41 = vrot.slane %v6528_v0, 1  ;;  %v6651_v1 = vmul.f32 %v7408_v60, %v13464_v28  ;;  %v6679_v49 = vsel %vm5299_vm10, %v6649_v34, 0.0  ;;  %v6588_v58 = vadd.f32 %v6587_v4, %v12977_v10  ;;  %v7389_v10 = vld [vmem:[%s14007_s5 + $0x7e0] sm:$0xff] }
 0x3e2   : > { %v6445_v15 = vrot.slane %v6444_v23, 4  ;;  %v6678_v29 = vadd.f32 %v6677_v57, %v6676_v47  ;;  %v6567_v30 = vmul.f32 %v7387_v6, %v13278_v24  ;;  %v6591_v42 = vsel %vm5299_vm10, %v6565_v37, 0.0 }
 0x3e3   : > { %v6530_v19 = vadd.f32 %v6529_v41, %v6528_v0  ;;  %v6681_v52 = vsel %vm5299_vm10, %v6650_v16, 0.0  ;;  %v6568_v62 = vmul.f32 %v7388_v5, %v13333_v51  ;;  %v6590_v24 = vadd.f32 %v6589_v21, %v6588_v58  ;;  %v8475_v5 = vld [vmem:[#allocation3 + $0x240] sm:$0xff] }
 0x3e4   : > { %v6446_v8 = vadd.f32 %v6445_v15, %v6444_v23  ;;  %v6680_v38 = vadd.f32 %v6679_v49, %v6678_v29  ;;  %v6593_v26 = vsel %vm5299_vm10, %v6566_v54, 0.0  ;;  %v8541_v31 = vmov 0.0|0.0   ;;  %8368 = vmatprep.mubr.msk.f32.mxu1 %vm8542_vm12, %v8475_v5 }
 0x3e5   : > { %v6531_v36 = vsel %vm5299_vm10, %v6530_v19, 0.0  ;;  %v6592_v46 = vadd.f32 %v6591_v42, %v6590_v24  ;;  %8411 = vmatprep.subr.bf16.mxu1 %v8541_v31  ;;  %v8412_v63 = vpack.c.bf16 %v6701_v11, %v6700_v45  ;;  %v6569_v51 = vmul.f32 %v7389_v10, %v13372_v2 }
 0x3e6   : > { %6532 = vadd.xlane.f32.xlu1 %v6531_v36  ;;  %v6447_v32 = vrot.slane %v6446_v8, 2  ;;  %v6682_v20 = vadd.f32 %v6681_v52, %v6680_v38  ;;  %v6595_v12 = vsel %vm5299_vm10, %v6567_v30, 0.0  ;;  %v6683_v18 = vsel %vm5482_vm11, %v6651_v1, 0.0 }
 0x3e7   : > { %v6594_v48 = vadd.f32 %v6593_v26, %v6592_v46  ;;  %8413 = vmatpush3.bf16.msra.mxu1 %v8412_v63  ;;  %v6570_v50 = vmul.f32 %v7390_v55, %v13475_v59  ;;  %v6597_v27 = vsel %vm5299_vm10, %v6568_v62, 0.0  ;;  %v6599_v2 = vsel %vm5299_vm10, %v6569_v51, 0.0 }
 0x3e8   : > { %v6448_v7 = vadd.f32 %v6447_v32, %v6446_v8  ;;  %v6684_v39 = vadd.f32 %v6683_v18, %v6682_v20  ;;  %v6571_v53 = vmul.f32 %v7391_v40, %v13464_v28  ;;  %vm6694_vm12 = vcmp.eq.s32.totalorder %v9284_v22, 15 }
 0x3e9   : > { %v6596_v3 = vadd.f32 %v6595_v12, %v6594_v48  ;;  %v6601_v9 = vsel %vm5299_vm10, %v6570_v50, 0.0 }
 0x3ea   : > { %v6449_v44 = vrot.slane %v6448_v7, 1  ;;  %v6685_v35 = vrot.slane %v6684_v39, 4  ;;  %v6603_v13 = vsel %vm5482_vm11, %v6571_v53, 0.0  ;;  %vm6614_vm11 = vcmp.eq.s32.totalorder %v9284_v22, 14 }
 0x3eb   : > { %v6598_v17 = vadd.f32 %v6597_v27, %v6596_v3 }
 0x3ec   : > { %v6450_v25 = vadd.f32 %v6449_v44, %v6448_v7  ;;  %v6686_v14 = vadd.f32 %v6685_v35, %v6684_v39 }
 0x3ed   : > { %v6600_v34 = vadd.f32 %v6599_v2, %v6598_v17 }
 0x3ee   : > { %v6451_v59 = vsel %vm5299_vm10, %v6450_v25, 0.0  ;;  %v6687_v61 = vrot.slane %v6686_v14, 2 }
 0x3ef   : > { %6452 = vadd.xlane.f32.xlu0 %v6451_v59  ;;  %v6602_v33 = vadd.f32 %v6601_v9, %v6600_v34  ;;  %v6697_v59 = vld [vmem:[%s14008_s6] sm:$0x1] }
 0x3f0   : > { %v6688_v56 = vadd.f32 %v6687_v61, %v6686_v14 }
 0x3f1   : > { %v6604_v60 = vadd.f32 %v6603_v13, %v6602_v33  ;;  %v6702_v13 = vld [vmem:[%s14010_s8] sm:$0x1] }
 0x3f2   : > { %v6689_v43 = vrot.slane %v6688_v56, 1 }
 0x3f3   : > { %v6605_v37 = vrot.slane %v6604_v60, 4 }
 0x3f4   : > { %v6690_v0 = vadd.f32 %v6689_v43, %v6688_v56 }
 0x3f5   : > { %v6606_v16 = vadd.f32 %v6605_v37, %v6604_v60 }
 0x3f6   : > { %v6691_v57 = vsel %vm5299_vm10, %v6690_v0, 0.0 }
 0x3f7   : > { %6692 = vadd.xlane.f32.xlu1 %v6691_v57  ;;  %v6607_v28 = vrot.slane %v6606_v16, 2 }
 0x3f9   : > { %v6608_v6 = vadd.f32 %v6607_v28, %v6606_v16 }
 0x3fb   : > { %v6609_v54 = vrot.slane %v6608_v6, 1 }
 0x3fd   : > { %v6610_v23 = vadd.f32 %v6609_v54, %v6608_v6 }
 0x3ff   : > { %v6611_v47 = vsel %vm5299_vm10, %v6610_v23, 0.0  ;;  %vm6534_vm10 = vcmp.eq.s32.totalorder %v9284_v22, 13 }
 0x400   : > { %6612 = vadd.xlane.f32.xlu0 %v6611_v47 }
 0x432   : > { %v5493_v4 = vpop.xlane.xlu0 %5492  ;;  %v5653_v1 = vpop.xlane.xlu1 %5652 }
 0x433   : > { %v5495_v49 = vsel %vm5494_vm14, %v5493_v4, 0.0  ;;  %v5655_v15 = vsel %vm5654_vm15, %v5653_v1, 0.0  ;;  %vm6777_vm14 = vcmask 8192  }
 0x436   : > { %v5573_v21 = vpop.xlane.xlu0 %5572  ;;  %v5733_v29 = vpop.xlane.xlu1 %5732 }
 0x437   : > { %v5575_v41 = vsel %vm5574_vm13, %v5573_v21, 0.0  ;;  %v5735_v42 = vsel %vm5734_vm0, %v5733_v29, 0.0  ;;  %vm6703_vm13 = vcmask 130048  }
 0x438   : > { %v5576_v58 = vadd.f32 %v5575_v41, %v5495_v49 }
 0x43a   : > { %v5656_v30 = vadd.f32 %v5655_v15, %v5576_v58  ;;  %v5813_v11 = vpop.xlane.xlu0 %5812  ;;  %v5893_v52 = vpop.xlane.xlu1 %5892 }
 0x43b   : > { %v5815_v19 = vsel %vm5814_vm1, %v5813_v11, 0.0  ;;  %v5895_v62 = vsel %vm5894_vm2, %v5893_v52, 0.0 }
 0x43c   : > { %v5736_v45 = vadd.f32 %v5735_v42, %v5656_v30 }
 0x43e   : > { %v5816_v10 = vadd.f32 %v5815_v19, %v5736_v45  ;;  %v6053_v26 = vpop.xlane.xlu1 %6052 }
 0x43f   : > { %v6055_v55 = vsel %vm6054_vm4, %v6053_v26, 0.0 }
 0x440   : > { %v5896_v24 = vadd.f32 %v5895_v62, %v5816_v10 }
 0x44b   : > { %v5973_v8 = vpop.xlane.xlu0 %5972 }
 0x44c   : > { %v5975_v38 = vsel %vm5974_vm3, %v5973_v8, 0.0 }
 0x44d   : > { %v5976_v36 = vadd.f32 %v5975_v38, %v5896_v24 }
 0x44f   : > { %v6056_v46 = vadd.f32 %v6055_v55, %v5976_v36 }
 0x456   : > { %v6213_v32 = vpop.xlane.xlu1 %6212 }
 0x457   : > { %v6215_v51 = vsel %vm6214_vm6, %v6213_v32, 0.0 }
 0x45c   : > { %v6133_v31 = vpop.xlane.xlu0 %6132 }
 0x45d   : > { %v6135_v63 = vsel %vm6134_vm5, %v6133_v31, 0.0 }
 0x45e   : > { %v6136_v20 = vadd.f32 %v6135_v63, %v6056_v46 }
 0x460   : > { %v6216_v12 = vadd.f32 %v6215_v51, %v6136_v20 }
 0x462   : > { %v6373_v7 = vpop.xlane.xlu1 %6372 }
 0x463   : > { %v6375_v50 = vsel %vm6374_vm8, %v6373_v7, 0.0 }
 0x46a   : > { %v6293_v18 = vpop.xlane.xlu0 %6292 }
 0x46b   : > { %v6295_v48 = vsel %vm6294_vm7, %v6293_v18, 0.0 }
 0x46c   : > { %v6296_v39 = vadd.f32 %v6295_v48, %v6216_v12 }
 0x46e   : > { %v6376_v27 = vadd.f32 %v6375_v50, %v6296_v39 }
 0x473   : > { %v6533_v44 = vpop.xlane.xlu1 %6532 }
 0x474   : > { %v6535_v2 = vsel %vm6534_vm10, %v6533_v44, 0.0 }
 0x47c   : > { %v6453_v40 = vpop.xlane.xlu0 %6452 }
 0x47d   : > { %v6455_v3 = vsel %vm6454_vm9, %v6453_v40, 0.0 }
 0x47e   : > { %v6456_v35 = vadd.f32 %v6455_v3, %v6376_v27 }
 0x480   : > { %v6536_v17 = vadd.f32 %v6535_v2, %v6456_v35 }
 0x484   : > { %v6693_v25 = vpop.xlane.xlu1 %6692 }
 0x485   : > { %v6695_v34 = vsel %vm6694_vm12, %v6693_v25, 0.0 }
 0x48d   : > { %v6613_v14 = vpop.xlane.xlu0 %6612 }
 0x48e   : > { %v6615_v53 = vsel %vm6614_vm11, %v6613_v14, 0.0 }
 0x48f   : > { %v6616_v9 = vadd.f32 %v6615_v53, %v6536_v17 }
 0x491   : > { %v6696_v61 = vadd.f32 %v6695_v34, %v6616_v9 }
 0x493   : > { %v6698_v33 = vadd.f32 %v6697_v59, %v6696_v61 }
 0x495   : > { %v6699_v56 = vmax.f32 %v6698_v33, 0.0 }
 0x497   : > { %8369 = vmatmul.mubr.msk.f32.vlgmr.msra.gmra.mrb[176].mxu1 %vm6703_vm13, %v6699_v56 }
 0x56a   : > { %v6773_v22 = vpop.f32.mrb[176].mxu1 }
 0x56b   : > { %v6774_v60 = vadd.f32 %v6773_v22, %v6702_v13  ;;  %v8370_v43 = vpop.f32.mrb[177].mxu1 }
 0x56d   : > { %v6778_v37 = vsel %vm6777_vm14, %v6774_v60, -inf }
 0x56e   : > { %6779 = vmax.xlane.f32.xlu0 %v6778_v37 }
 0x5fb   : > { %v6780_v0 = vpop.xlane.xlu0 %6779 }
 0x5fc   : > { %v6781_v16 = vsub.f32 %v6774_v60, %v6780_v0 }
 0x5fe   : > { %v6782_v57 = vmul.f32 1.442695, %v6781_v16 }
 0x600   : > { %8463 = vpow2.f32 %v6782_v57 }
 0x60a   : > { %v8464_v28 = vpop.eup %8463 }
 0x60b   : > { %v6784_v6 = vsel %vm6777_vm14, %v8464_v28, 0.0 }
 0x60c   : > { %6785 = vadd.xlane.f32.xlu1 %v6784_v6 }
 0x699   : > { %v6786_v54 = vpop.xlane.xlu1 %6785 }
 0x69a   : > { %8465 = vrcp.f32 %v6786_v54 }
 0x6a4   : > { %v8466_v23 = vpop.eup %8465 }
 0x6a5   : > { %v6788_v47 = vmul.f32 %v8466_v23, %v8464_v28 }
 0x6a7   : > { %6789 = vst.msk [vmem:[%s324_s23] sm:$0x1] %vm6777_vm14, %v6788_v47 }
 0x6a8   : > { %8489 = shalt.err (!%p8486_p3)
}
 0x6a9   : > { %s8490_s24 = scalar_lea.hbm %s13959_s14, 16  ;;  %s8494_s23 = scalar_lea.hbm %s14011_s9, 32 }
 0x6aa   : > { %p8491_p4 = scmp.ne.s32.totalorder %s13959_s14, %s8490_s24  ;;  %p8495_p9 = scmp.lt.u32.totalorder %s13959_s14, %s14011_s9 }
 0x6ab   : > { %p8496_p10 = scmp.lt.u32.totalorder %s8494_s23, %s8490_s24  ;;  %p8498_p12 = scmp.lt.u32.totalorder %s8490_s24, %s13959_s14 }
 0x6ac   : > { %p8492_p7 = pnand %p8491_p4, %p8632_p5 }
 0x6ad   : > { %p8497_p11 = por %p8496_p10, %p8495_p9 }
 0x6ae   : > { %p8493_p8 = pneg %p8492_p7 }
 0x6af   : > { %p8499_p13 = por %p8498_p12, %p8497_p11 }
 0x6b1   : > { %p8500_p0 = pnand %p8499_p13, %p8493_p8 }
 0x6b3   : > { %8503 = shalt.err (!%p8500_p0)
}
 0x6b4   : > { %8421 = dma.vmem_to_hbm [thread:$0]  (%p8632_p5), %s13961_s27, 16, %s13959_s14, %s6791_s16  }
 0x6b5 PF: > { %p8427_p1 = scmp.ge.s32.totalorder %s8538_s12, 2  ;;  %s6815_s17 = sand.u32 1, %s8526_s30  }
 0x6b6   : > { %s6816_s13 = scalar_lea.sflag [#allocation6], %s6815_s17 }
 0x6b7   : > { %p8424_p2 = pnand %p8427_p1, %p8636_p6 }
 0x6b9   : > { %8521 = dma.done.wait (!%p8424_p2), %s6816_s13, 16  }
 0x6ba   : > { %8523 = vsyncadd (!%p8424_p2), %s6816_s13, 4294967280  ;;  %p19_p3 = scmp.ge.s32.totalorder %s8619_s15, 4   ;;  %s14023_s30 = smov %s8530_s10 }
 0x6bb   : > { %s14024_s10 = smov %s8534_s11  ;;  %s14025_s11 = smov %s8630_s18 }
 0x6bc   : > { %s14026_s12 = smov %s8619_s15  ;;  %21 = sbr.rel (!%p19_p3) target bundleno = 3 (0x3), region = 282 }
 0x6c3   :  { %6820 = vsyncpa [#allocation6], 1 }
 0x6c4   :  { %6822 = vsyncpa [#allocation6 + $0x1], 1 }

</bundles_post_ra>
